<compile_context>
chip_gen: v7x
topology: tpu7x:2x2x1
jax: 0.10.0
libtpu: 0.0.40
codegen_flags: <defaults>
</compile_context>

<pallas_src>
import numpy as np

import jax
import jax.numpy as jnp
from jax import lax
from jax.experimental import pallas as pl
from jax.experimental.pallas import tpu as pltpu


# ----------------------------------------------------------------------------- parameter init
def _init_conv(key, cout, cin, k):
    k1, k2 = jax.random.split(key)
    bound = 1.0 / jnp.sqrt(cin * k)
    return {
        "w": jax.random.uniform(k1, (cout, cin, k), jnp.float32, -bound, bound),
        "b": jax.random.uniform(k2, (cout,), jnp.float32, -bound, bound),
    }


def _init_res(key, width, depth):
    ks = jax.random.split(key, 2 * depth)
    return [
        {"c1": _init_conv(ks[2 * d], width, width, 3),
         "c2": _init_conv(ks[2 * d + 1], width, width, 1)}
        for d in range(depth)
    ]


def _dilations(depth, dgr):
    # Resnet1D dilation order [dgr^(depth-1), ..., dgr^0] (same as the previously-reviewed version)
    return [dgr ** d for d in reversed(range(depth))]


def init_vqvae(key, in_dim, emb_width, nb_code, width, down_t, stride_t, depth, dgr):
    ke, kd, kc = jax.random.split(key, 3)
    filter_t = stride_t * 2

    # ---- Encoder
    eks = jax.random.split(ke, 2 + down_t)
    enc = {"conv_in": _init_conv(eks[0], width, in_dim, 3), "blocks": []}
    for i in range(down_t):
        bk = jax.random.split(eks[1 + i], 2)
        enc["blocks"].append(
            {"down": _init_conv(bk[0], width, width, filter_t),
             "res": _init_res(bk[1], width, depth)}
        )
    enc["conv_out"] = _init_conv(eks[-1], emb_width, width, 3)

    # ---- Decoder
    dks = jax.random.split(kd, 3 + down_t)
    dec = {"conv_in": _init_conv(dks[0], width, emb_width, 3), "blocks": []}
    for i in range(down_t):
        bk = jax.random.split(dks[1 + i], 2)
        dec["blocks"].append(
            {"res": _init_res(bk[0], width, depth),
             "conv": _init_conv(bk[1], width, width, 3)}
        )
    dec["conv_mid"] = _init_conv(dks[-2], width, width, 3)
    dec["conv_out"] = _init_conv(dks[-1], in_dim, width, 3)

    # ---- Codebook (QuantizeEMAReset; eval-mode, deterministic synthetic init)
    codebook = 0.02 * jax.random.normal(kc, (nb_code, emb_width), jnp.float32)

    return {"encoder": enc, "decoder": dec, "codebook": codebook}


# ----------------------------------------------------------------------------- kernel-input packing
def _tap_selection(batch, t_out, t_in, k, stride, pad, dilation, upsample):
    """Block-diag (over batch) 0/1 matrix selecting the source row of tap k for every output row.

    Output row (b, t) reads input row (b, src) where src = (stride*t + dilation*k - pad)//upsample,
    and is zero (conv zero-padding) when the pre-upsample index is out of range.
    """
    S = np.zeros((batch * t_out, batch * t_in), np.float32)
    t_up = t_in * upsample
    for t in range(t_out):
        s_up = stride * t + dilation * k - pad
        if 0 <= s_up < t_up:
            src = s_up // upsample
            for b in range(batch):
                S[b * t_out + t, b * t_in + src] = 1.0
    return S


def pack_kernel_inputs(params, cfg, batch, seq_len):
    """Repack torch-layout conv params + codebook into the fused-kernel input pytree."""
    stride_t, depth, dgr = cfg["stride_t"], cfg["depth"], cfg["dgr"]
    filter_t, pad_t = stride_t * 2, stride_t // 2
    dil_list = _dilations(depth, dgr)

    def conv_pack(p, t_in, stride=1, pad=0, dilation=1, upsample=1):
        w = p["w"]                         # (Cout, Cin, K) torch layout
        cout, _, K = w.shape
        t_up = t_in * upsample
        t_out = (t_up + 2 * pad - dilation * (K - 1) - 1) // stride + 1
        d = {
            "w": jnp.transpose(w, (2, 1, 0)).astype(jnp.bfloat16),   # (K, Cin, Cout)
            "b": p["b"].astype(jnp.float32).reshape(1, cout),
        }
        if not (K == 1 and stride == 1 and pad == 0 and upsample == 1):
            S = np.stack(
                [_tap_selection(batch, t_out, t_in, k, stride, pad, dilation, upsample)
                 for k in range(K)]
            )
            d["s"] = jnp.asarray(S, jnp.bfloat16)                    # (K, N*t_out, N*t_in)
        return d, t_out

    # ---- Encoder
    t = seq_len
    enc = {}
    enc["conv_in"], t = conv_pack(params["encoder"]["conv_in"], t, pad=1)
    blocks = []
    for blk in params["encoder"]["blocks"]:
        down, t = conv_pack(blk["down"], t, stride=stride_t, pad=pad_t)
        res = []
        for rp, dil in zip(blk["res"], dil_list):
            c1, t = conv_pack(rp["c1"], t, pad=dil, dilation=dil)
            c2, t = conv_pack(rp["c2"], t)
            res.append({"c1": c1, "c2": c2})
        blocks.append({"down": down, "res": res})
    enc["blocks"] = blocks
    enc["conv_out"], t = conv_pack(params["encoder"]["conv_out"], t, pad=1)

    # ---- Decoder (nearest 2x upsample folded into the conv that follows it)
    dec = {}
    dec["conv_in"], t = conv_pack(params["decoder"]["conv_in"], t, pad=1)
    blocks = []
    for blk in params["decoder"]["blocks"]:
        res = []
        for rp, dil in zip(blk["res"], dil_list):
            c1, t = conv_pack(rp["c1"], t, pad=dil, dilation=dil)
            c2, t = conv_pack(rp["c2"], t)
            res.append({"c1": c1, "c2": c2})
        conv, t = conv_pack(blk["conv"], t, pad=1, upsample=2)
        blocks.append({"res": res, "conv": conv})
    dec["blocks"] = blocks
    dec["conv_mid"], t = conv_pack(params["decoder"]["conv_mid"], t, pad=1)
    dec["conv_out"], t = conv_pack(params["decoder"]["conv_out"], t, pad=1)
    assert t == seq_len, (t, seq_len)

    # ---- Quantizer constants (all f32 for exact code selection)
    cb = params["codebook"].astype(jnp.float32)
    quant = {
        "codebook": cb,                                  # (nb_code, emb)
        "neg2cbT": -2.0 * cb.T,                          # (emb, nb_code)
        "csq": jnp.sum(cb * cb, axis=1).reshape(1, -1),  # (1, nb_code)
    }

    return {"enc": enc, "dec": dec, "quant": quant}


# ----------------------------------------------------------------------------- in-kernel building blocks
def _kconv(h, layer, relu=False):
    """Conv1d as sum over taps of (S_k @ H) @ W_k (+ bias, optional fused ReLU). h: (M, Cin) f32."""
    w_ref = layer["w"]                       # (K, Cin, Cout) bf16
    k_taps = w_ref.shape[0]
    hb = h.astype(jnp.bfloat16)
    if "s" in layer:
        s_ref = layer["s"]                   # (K, M_out, M_in) bf16
        acc = None
        for k in range(k_taps):
            g = jnp.dot(s_ref[k], hb, preferred_element_type=jnp.float32)       # tap gather (MXU)
            part = jnp.dot(g.astype(jnp.bfloat16), w_ref[k],
                           preferred_element_type=jnp.float32)                  # channel mix (MXU)
            acc = part if acc is None else acc + part
    else:                                    # 1x1 conv: no time mixing needed
        acc = jnp.dot(hb, w_ref[0], preferred_element_type=jnp.float32)
    out = acc + layer["b"][...]
    if relu:
        out = jnp.maximum(out, 0.0)
    return out


def _kres(h, rp):
    # ResConv1DBlock (norm=None, relu): x + conv2(relu(conv1(relu(x))))
    t = jnp.maximum(h, 0.0)
    t = _kconv(t, rp["c1"], relu=True)
    t = _kconv(t, rp["c2"], relu=False)
    return h + t


def _kencoder(h, enc):
    h = _kconv(h, enc["conv_in"], relu=True)
    for blk in enc["blocks"]:
        h = _kconv(h, blk["down"])           # strided down-sampling conv
        for rb in blk["res"]:
            h = _kres(h, rb)
    return _kconv(h, enc["conv_out"])


def _kdecoder(h, dec):
    h = _kconv(h, dec["conv_in"], relu=True)
    for blk in dec["blocks"]:
        for rb in blk["res"]:
            h = _kres(h, rb)
        h = _kconv(h, blk["conv"])           # nearest-2x upsample folded into this conv's S
    h = _kconv(h, dec["conv_mid"], relu=True)
    return _kconv(h, dec["conv_out"])


def _kquantize(h, q):
    """QuantizeEMAReset forward (eval): nearest code, straight-through value, commit loss, perplexity."""
    cb_ref = q["codebook"]
    nb = cb_ref.shape[0]
    m, emb = h.shape

    # distance argmin: ||x||^2 is row-constant -> drop.  scores = -2 x.c + ||c||^2 (f32)
    scores = jnp.dot(h, q["neg2cbT"][...], preferred_element_type=jnp.float32) + q["csq"][...]
    col = lax.broadcasted_iota(jnp.int32, scores.shape, 1).astype(jnp.float32)
    mins = jnp.min(scores, axis=1, keepdims=True)                    # (m,1)
    idx = jnp.min(jnp.where(scores <= mins, col, float(nb)), axis=1, keepdims=True)  # first argmin
    onehot = (col == idx).astype(jnp.float32)                        # (m, nb)

    # dequantize via one-hot matmul (MXU gather); straight-through value == x_d in forward.
    x_d = jnp.dot(onehot, cb_ref[...], preferred_element_type=jnp.float32)           # (m, emb)

    ones_row = jnp.ones((1, m), jnp.float32)
    sq = jnp.sum((h - x_d) * (h - x_d), axis=1, keepdims=True)       # (m,1) lane reduce
    loss = jnp.dot(ones_row, sq, preferred_element_type=jnp.float32) / float(m * emb)  # (1,1)

    counts = jnp.dot(ones_row, onehot, preferred_element_type=jnp.float32)            # (1, nb)
    prob = counts * (1.0 / m)
    perp = jnp.exp(-jnp.sum(prob * jnp.log(prob + 1e-7), axis=1, keepdims=True))       # (1,1)
    return x_d, loss, perp


# ----------------------------------------------------------------------------- fused pallas_call
def _fused_forward(kin):
    flat, treedef = jax.tree_util.tree_flatten(kin)
    n_in = len(flat)
    m_rows, c_in = kin["x"].shape

    def kernel(*refs):
        tree = jax.tree_util.tree_unflatten(treedef, refs[:n_in])
        xo_ref, loss_ref, perp_ref = refs[n_in], refs[n_in + 1], refs[n_in + 2]

        h = tree["x"][...]                               # (N*T, in_dim) f32, resident in VMEM
        h = _kencoder(h, tree["enc"])                    # (N*T/4, emb)
        x_d, loss, perp = _kquantize(h, tree["quant"])   # fused VQ
        y = _kdecoder(x_d, tree["dec"])                  # (N*T, in_dim)

        xo_ref[...] = y
        loss_ref[...] = loss
        perp_ref[...] = perp

    y2d, loss, perp = pl.pallas_call(
        kernel,
        out_shape=(
            jax.ShapeDtypeStruct((m_rows, c_in), jnp.float32),
            jax.ShapeDtypeStruct((1, 1), jnp.float32),
            jax.ShapeDtypeStruct((1, 1), jnp.float32),
        ),
        in_specs=[pl.BlockSpec(memory_space=pltpu.MemorySpace.VMEM)] * n_in,
        out_specs=(
            pl.BlockSpec(memory_space=pltpu.MemorySpace.VMEM),
            pl.BlockSpec(memory_space=pltpu.MemorySpace.VMEM),
            pl.BlockSpec(memory_space=pltpu.MemorySpace.VMEM),
        ),
        compiler_params=pltpu.CompilerParams(vmem_limit_bytes=32 * 1024 * 1024),
    )(*flat)
    return y2d, loss[0, 0], perp[0, 0]


def vqvae_forward(kin_params, x):
    """VQVAE_251.forward (lgvq=0): x (N, T, in_dim) -> (x_out, loss, perplexity, [0, 0])."""
    N, T, C = x.shape
    x2d = x.astype(jnp.float32).reshape(N * T, C)        # preprocess permute is identity here
    kin = dict(kin_params)
    kin["x"] = x2d
    y2d, loss, perp = _fused_forward(kin)
    zero = jnp.zeros((), jnp.int32)                      # lgvq==0 placeholders (torch.tensor(0))
    return y2d.reshape(N, T, C), loss, perp, [zero, zero]

# TODO(synk): lgvq=1/2 branches (Dualsem_encoderv3 / LGVQ transformer heads) and the
#             training-only EMA codebook update / reset are not instantiated (lgvq=0, eval mode).


# ----------------------------------------------------------------------------- main
if __name__ == "__main__":
    # 'kit' dataset -> 251 input features; reduced hidden sizes, down_t=2 (down_vqvae=1).
    cfg = dict(in_dim=251, emb_width=128, nb_code=256, width=128,
               down_t=2, stride_t=2, depth=2, dgr=3)

    key = jax.random.PRNGKey(0)
    pkey, xkey = jax.random.split(key)
    params = init_vqvae(pkey, **cfg)

    N, T = 2, 32                                        # T divisible by stride_t**down_t
    kin_params = pack_kernel_inputs(params, cfg, N, T)
    x = jax.random.normal(xkey, (N, T, cfg["in_dim"]), jnp.float32)

    fwd = jax.jit(vqvae_forward)
    x_out, loss, perplexity, (c_loss, m_loss) = fwd(kin_params, x)
    jax.block_until_ready((x_out, loss, perplexity, c_loss, m_loss))

    assert x_out.shape == (N, T, cfg["in_dim"]), x_out.shape
    assert loss.shape == () and perplexity.shape == ()
    assert bool(jnp.isfinite(loss)) and bool(jnp.isfinite(perplexity))
    print("KERNEL_OK")
</pallas_src>

<mosaic_0001>
module attributes {stable_mosaic.version = 11 : i64} {
  func.func @kernel(%arg0: memref<1x128xf32, #tpu.memory_space<vmem>>, %arg1: memref<3x32x16xbf16, #tpu.memory_space<vmem>>, %arg2: memref<3x128x128xbf16, #tpu.memory_space<vmem>>, %arg3: memref<1x128xf32, #tpu.memory_space<vmem>>, %arg4: memref<3x16x16xbf16, #tpu.memory_space<vmem>>, %arg5: memref<3x128x128xbf16, #tpu.memory_space<vmem>>, %arg6: memref<1x128xf32, #tpu.memory_space<vmem>>, %arg7: memref<1x128x128xbf16, #tpu.memory_space<vmem>>, %arg8: memref<1x128xf32, #tpu.memory_space<vmem>>, %arg9: memref<3x16x16xbf16, #tpu.memory_space<vmem>>, %arg10: memref<3x128x128xbf16, #tpu.memory_space<vmem>>, %arg11: memref<1x128xf32, #tpu.memory_space<vmem>>, %arg12: memref<1x128x128xbf16, #tpu.memory_space<vmem>>, %arg13: memref<1x128xf32, #tpu.memory_space<vmem>>, %arg14: memref<3x64x32xbf16, #tpu.memory_space<vmem>>, %arg15: memref<3x128x128xbf16, #tpu.memory_space<vmem>>, %arg16: memref<1x128xf32, #tpu.memory_space<vmem>>, %arg17: memref<3x32x32xbf16, #tpu.memory_space<vmem>>, %arg18: memref<3x128x128xbf16, #tpu.memory_space<vmem>>, %arg19: memref<1x128xf32, #tpu.memory_space<vmem>>, %arg20: memref<1x128x128xbf16, #tpu.memory_space<vmem>>, %arg21: memref<1x128xf32, #tpu.memory_space<vmem>>, %arg22: memref<3x32x32xbf16, #tpu.memory_space<vmem>>, %arg23: memref<3x128x128xbf16, #tpu.memory_space<vmem>>, %arg24: memref<1x128xf32, #tpu.memory_space<vmem>>, %arg25: memref<1x128x128xbf16, #tpu.memory_space<vmem>>, %arg26: memref<1x128xf32, #tpu.memory_space<vmem>>, %arg27: memref<3x16x16xbf16, #tpu.memory_space<vmem>>, %arg28: memref<3x128x128xbf16, #tpu.memory_space<vmem>>, %arg29: memref<1x128xf32, #tpu.memory_space<vmem>>, %arg30: memref<3x64x64xbf16, #tpu.memory_space<vmem>>, %arg31: memref<3x128x128xbf16, #tpu.memory_space<vmem>>, %arg32: memref<1x251xf32, #tpu.memory_space<vmem>>, %arg33: memref<3x64x64xbf16, #tpu.memory_space<vmem>>, %arg34: memref<3x128x251xbf16, #tpu.memory_space<vmem>>, %arg35: memref<1x128xf32, #tpu.memory_space<vmem>>, %arg36: memref<4x32x64xbf16, #tpu.memory_space<vmem>>, %arg37: memref<4x128x128xbf16, #tpu.memory_space<vmem>>, %arg38: memref<1x128xf32, #tpu.memory_space<vmem>>, %arg39: memref<3x32x32xbf16, #tpu.memory_space<vmem>>, %arg40: memref<3x128x128xbf16, #tpu.memory_space<vmem>>, %arg41: memref<1x128xf32, #tpu.memory_space<vmem>>, %arg42: memref<1x128x128xbf16, #tpu.memory_space<vmem>>, %arg43: memref<1x128xf32, #tpu.memory_space<vmem>>, %arg44: memref<3x32x32xbf16, #tpu.memory_space<vmem>>, %arg45: memref<3x128x128xbf16, #tpu.memory_space<vmem>>, %arg46: memref<1x128xf32, #tpu.memory_space<vmem>>, %arg47: memref<1x128x128xbf16, #tpu.memory_space<vmem>>, %arg48: memref<1x128xf32, #tpu.memory_space<vmem>>, %arg49: memref<4x16x32xbf16, #tpu.memory_space<vmem>>, %arg50: memref<4x128x128xbf16, #tpu.memory_space<vmem>>, %arg51: memref<1x128xf32, #tpu.memory_space<vmem>>, %arg52: memref<3x16x16xbf16, #tpu.memory_space<vmem>>, %arg53: memref<3x128x128xbf16, #tpu.memory_space<vmem>>, %arg54: memref<1x128xf32, #tpu.memory_space<vmem>>, %arg55: memref<1x128x128xbf16, #tpu.memory_space<vmem>>, %arg56: memref<1x128xf32, #tpu.memory_space<vmem>>, %arg57: memref<3x16x16xbf16, #tpu.memory_space<vmem>>, %arg58: memref<3x128x128xbf16, #tpu.memory_space<vmem>>, %arg59: memref<1x128xf32, #tpu.memory_space<vmem>>, %arg60: memref<1x128x128xbf16, #tpu.memory_space<vmem>>, %arg61: memref<1x128xf32, #tpu.memory_space<vmem>>, %arg62: memref<3x64x64xbf16, #tpu.memory_space<vmem>>, %arg63: memref<3x251x128xbf16, #tpu.memory_space<vmem>>, %arg64: memref<1x128xf32, #tpu.memory_space<vmem>>, %arg65: memref<3x16x16xbf16, #tpu.memory_space<vmem>>, %arg66: memref<3x128x128xbf16, #tpu.memory_space<vmem>>, %arg67: memref<256x128xf32, #tpu.memory_space<vmem>>, %arg68: memref<1x256xf32, #tpu.memory_space<vmem>>, %arg69: memref<128x256xf32, #tpu.memory_space<vmem>>, %arg70: memref<64x251xf32, #tpu.memory_space<vmem>>, %arg71: memref<64x251xf32, #tpu.memory_space<vmem>>, %arg72: memref<1x1xf32, #tpu.memory_space<vmem>>, %arg73: memref<1x1xf32, #tpu.memory_space<vmem>>) attributes {dimension_semantics = [], scalar_prefetch = 0 : i64, scratch_operands = 0 : i64, tpu.core_type = #tpu.core_type<tc>} {
    %c0 = arith.constant 0 : index
    %c0_0 = arith.constant 0 : index
    %0 = vector.load %arg70[%c0, %c0_0] : memref<64x251xf32, #tpu.memory_space<vmem>>, vector<64x251xf32>
    %1 = arith.truncf %0 : vector<64x251xf32> to vector<64x251xbf16>
    %c0_1 = arith.constant 0 : index
    %c0_2 = arith.constant 0 : index
    %c0_3 = arith.constant 0 : index
    %2 = vector.load %arg62[%c0_1, %c0_2, %c0_3] : memref<3x64x64xbf16, #tpu.memory_space<vmem>>, vector<1x64x64xbf16>
    %3 = vector.shape_cast %2 : vector<1x64x64xbf16> to vector<64x64xbf16>
    %cst = arith.constant dense<0.000000e+00> : vector<64x251xf32>
    %4 = tpu.matmul %3, %1, %cst {dimension_numbers = #tpu.dot_dimension_numbers<[1], [0], [0], [1], [0, 0, 1, 1], [], []>} : vector<64x64xbf16>, vector<64x251xbf16>, vector<64x251xf32> -> vector<64x251xf32>
    %5 = arith.truncf %4 : vector<64x251xf32> to vector<64x251xbf16>
    %c0_4 = arith.constant 0 : index
    %c0_5 = arith.constant 0 : index
    %c0_6 = arith.constant 0 : index
    %6 = vector.load %arg63[%c0_4, %c0_5, %c0_6] : memref<3x251x128xbf16, #tpu.memory_space<vmem>>, vector<1x251x128xbf16>
    %7 = vector.shape_cast %6 : vector<1x251x128xbf16> to vector<251x128xbf16>
    %cst_7 = arith.constant dense<0.000000e+00> : vector<64x128xf32>
    %8 = tpu.matmul %5, %7, %cst_7 {dimension_numbers = #tpu.dot_dimension_numbers<[1], [0], [0], [1], [0, 0, 1, 1], [], []>} : vector<64x251xbf16>, vector<251x128xbf16>, vector<64x128xf32> -> vector<64x128xf32>
    %c1 = arith.constant 1 : index
    %c0_8 = arith.constant 0 : index
    %c0_9 = arith.constant 0 : index
    %9 = vector.load %arg62[%c1, %c0_8, %c0_9] : memref<3x64x64xbf16, #tpu.memory_space<vmem>>, vector<1x64x64xbf16>
    %10 = vector.shape_cast %9 : vector<1x64x64xbf16> to vector<64x64xbf16>
    %cst_10 = arith.constant dense<0.000000e+00> : vector<64x251xf32>
    %11 = tpu.matmul %10, %1, %cst_10 {dimension_numbers = #tpu.dot_dimension_numbers<[1], [0], [0], [1], [0, 0, 1, 1], [], []>} : vector<64x64xbf16>, vector<64x251xbf16>, vector<64x251xf32> -> vector<64x251xf32>
    %12 = arith.truncf %11 : vector<64x251xf32> to vector<64x251xbf16>
    %c1_11 = arith.constant 1 : index
    %c0_12 = arith.constant 0 : index
    %c0_13 = arith.constant 0 : index
    %13 = vector.load %arg63[%c1_11, %c0_12, %c0_13] : memref<3x251x128xbf16, #tpu.memory_space<vmem>>, vector<1x251x128xbf16>
    %14 = vector.shape_cast %13 : vector<1x251x128xbf16> to vector<251x128xbf16>
    %cst_14 = arith.constant dense<0.000000e+00> : vector<64x128xf32>
    %15 = tpu.matmul %12, %14, %cst_14 {dimension_numbers = #tpu.dot_dimension_numbers<[1], [0], [0], [1], [0, 0, 1, 1], [], []>} : vector<64x251xbf16>, vector<251x128xbf16>, vector<64x128xf32> -> vector<64x128xf32>
    %16 = arith.addf %8, %15 : vector<64x128xf32>
    %c2 = arith.constant 2 : index
    %c0_15 = arith.constant 0 : index
    %c0_16 = arith.constant 0 : index
    %17 = vector.load %arg62[%c2, %c0_15, %c0_16] : memref<3x64x64xbf16, #tpu.memory_space<vmem>>, vector<1x64x64xbf16>
    %18 = vector.shape_cast %17 : vector<1x64x64xbf16> to vector<64x64xbf16>
    %cst_17 = arith.constant dense<0.000000e+00> : vector<64x251xf32>
    %19 = tpu.matmul %18, %1, %cst_17 {dimension_numbers = #tpu.dot_dimension_numbers<[1], [0], [0], [1], [0, 0, 1, 1], [], []>} : vector<64x64xbf16>, vector<64x251xbf16>, vector<64x251xf32> -> vector<64x251xf32>
    %20 = arith.truncf %19 : vector<64x251xf32> to vector<64x251xbf16>
    %c2_18 = arith.constant 2 : index
    %c0_19 = arith.constant 0 : index
    %c0_20 = arith.constant 0 : index
    %21 = vector.load %arg63[%c2_18, %c0_19, %c0_20] : memref<3x251x128xbf16, #tpu.memory_space<vmem>>, vector<1x251x128xbf16>
    %22 = vector.shape_cast %21 : vector<1x251x128xbf16> to vector<251x128xbf16>
    %cst_21 = arith.constant dense<0.000000e+00> : vector<64x128xf32>
    %23 = tpu.matmul %20, %22, %cst_21 {dimension_numbers = #tpu.dot_dimension_numbers<[1], [0], [0], [1], [0, 0, 1, 1], [], []>} : vector<64x251xbf16>, vector<251x128xbf16>, vector<64x128xf32> -> vector<64x128xf32>
    %24 = arith.addf %16, %23 : vector<64x128xf32>
    %c0_22 = arith.constant 0 : index
    %c0_23 = arith.constant 0 : index
    %25 = vector.load %arg61[%c0_22, %c0_23] : memref<1x128xf32, #tpu.memory_space<vmem>>, vector<1x128xf32>
    %26 = vector.broadcast %25 : vector<1x128xf32> to vector<64x128xf32>
    %27 = arith.addf %24, %26 : vector<64x128xf32>
    %cst_24 = arith.constant 0.000000e+00 : f32
    %28 = vector.broadcast %cst_24 : f32 to vector<64x128xf32>
    %29 = arith.maximumf %27, %28 : vector<64x128xf32>
    %30 = arith.truncf %29 : vector<64x128xf32> to vector<64x128xbf16>
    %c0_25 = arith.constant 0 : index
    %c0_26 = arith.constant 0 : index
    %c0_27 = arith.constant 0 : index
    %31 = vector.load %arg36[%c0_25, %c0_26, %c0_27] : memref<4x32x64xbf16, #tpu.memory_space<vmem>>, vector<1x32x64xbf16>
    %32 = vector.shape_cast %31 : vector<1x32x64xbf16> to vector<32x64xbf16>
    %cst_28 = arith.constant dense<0.000000e+00> : vector<32x128xf32>
    %33 = tpu.matmul %32, %30, %cst_28 {dimension_numbers = #tpu.dot_dimension_numbers<[1], [0], [0], [1], [0, 0, 1, 1], [], []>} : vector<32x64xbf16>, vector<64x128xbf16>, vector<32x128xf32> -> vector<32x128xf32>
    %34 = arith.truncf %33 : vector<32x128xf32> to vector<32x128xbf16>
    %c0_29 = arith.constant 0 : index
    %c0_30 = arith.constant 0 : index
    %c0_31 = arith.constant 0 : index
    %35 = vector.load %arg37[%c0_29, %c0_30, %c0_31] : memref<4x128x128xbf16, #tpu.memory_space<vmem>>, vector<1x128x128xbf16>
    %36 = vector.shape_cast %35 : vector<1x128x128xbf16> to vector<128x128xbf16>
    %cst_32 = arith.constant dense<0.000000e+00> : vector<32x128xf32>
    %37 = tpu.matmul %34, %36, %cst_32 {dimension_numbers = #tpu.dot_dimension_numbers<[1], [0], [0], [1], [0, 0, 1, 1], [], []>} : vector<32x128xbf16>, vector<128x128xbf16>, vector<32x128xf32> -> vector<32x128xf32>
    %c1_33 = arith.constant 1 : index
    %c0_34 = arith.constant 0 : index
    %c0_35 = arith.constant 0 : index
    %38 = vector.load %arg36[%c1_33, %c0_34, %c0_35] : memref<4x32x64xbf16, #tpu.memory_space<vmem>>, vector<1x32x64xbf16>
    %39 = vector.shape_cast %38 : vector<1x32x64xbf16> to vector<32x64xbf16>
    %cst_36 = arith.constant dense<0.000000e+00> : vector<32x128xf32>
    %40 = tpu.matmul %39, %30, %cst_36 {dimension_numbers = #tpu.dot_dimension_numbers<[1], [0], [0], [1], [0, 0, 1, 1], [], []>} : vector<32x64xbf16>, vector<64x128xbf16>, vector<32x128xf32> -> vector<32x128xf32>
    %41 = arith.truncf %40 : vector<32x128xf32> to vector<32x128xbf16>
    %c1_37 = arith.constant 1 : index
    %c0_38 = arith.constant 0 : index
    %c0_39 = arith.constant 0 : index
    %42 = vector.load %arg37[%c1_37, %c0_38, %c0_39] : memref<4x128x128xbf16, #tpu.memory_space<vmem>>, vector<1x128x128xbf16>
    %43 = vector.shape_cast %42 : vector<1x128x128xbf16> to vector<128x128xbf16>
    %cst_40 = arith.constant dense<0.000000e+00> : vector<32x128xf32>
    %44 = tpu.matmul %41, %43, %cst_40 {dimension_numbers = #tpu.dot_dimension_numbers<[1], [0], [0], [1], [0, 0, 1, 1], [], []>} : vector<32x128xbf16>, vector<128x128xbf16>, vector<32x128xf32> -> vector<32x128xf32>
    %45 = arith.addf %37, %44 : vector<32x128xf32>
    %c2_41 = arith.constant 2 : index
    %c0_42 = arith.constant 0 : index
    %c0_43 = arith.constant 0 : index
    %46 = vector.load %arg36[%c2_41, %c0_42, %c0_43] : memref<4x32x64xbf16, #tpu.memory_space<vmem>>, vector<1x32x64xbf16>
    %47 = vector.shape_cast %46 : vector<1x32x64xbf16> to vector<32x64xbf16>
    %cst_44 = arith.constant dense<0.000000e+00> : vector<32x128xf32>
    %48 = tpu.matmul %47, %30, %cst_44 {dimension_numbers = #tpu.dot_dimension_numbers<[1], [0], [0], [1], [0, 0, 1, 1], [], []>} : vector<32x64xbf16>, vector<64x128xbf16>, vector<32x128xf32> -> vector<32x128xf32>
    %49 = arith.truncf %48 : vector<32x128xf32> to vector<32x128xbf16>
    %c2_45 = arith.constant 2 : index
    %c0_46 = arith.constant 0 : index
    %c0_47 = arith.constant 0 : index
    %50 = vector.load %arg37[%c2_45, %c0_46, %c0_47] : memref<4x128x128xbf16, #tpu.memory_space<vmem>>, vector<1x128x128xbf16>
    %51 = vector.shape_cast %50 : vector<1x128x128xbf16> to vector<128x128xbf16>
    %cst_48 = arith.constant dense<0.000000e+00> : vector<32x128xf32>
    %52 = tpu.matmul %49, %51, %cst_48 {dimension_numbers = #tpu.dot_dimension_numbers<[1], [0], [0], [1], [0, 0, 1, 1], [], []>} : vector<32x128xbf16>, vector<128x128xbf16>, vector<32x128xf32> -> vector<32x128xf32>
    %53 = arith.addf %45, %52 : vector<32x128xf32>
    %c3 = arith.constant 3 : index
    %c0_49 = arith.constant 0 : index
    %c0_50 = arith.constant 0 : index
    %54 = vector.load %arg36[%c3, %c0_49, %c0_50] : memref<4x32x64xbf16, #tpu.memory_space<vmem>>, vector<1x32x64xbf16>
    %55 = vector.shape_cast %54 : vector<1x32x64xbf16> to vector<32x64xbf16>
    %cst_51 = arith.constant dense<0.000000e+00> : vector<32x128xf32>
    %56 = tpu.matmul %55, %30, %cst_51 {dimension_numbers = #tpu.dot_dimension_numbers<[1], [0], [0], [1], [0, 0, 1, 1], [], []>} : vector<32x64xbf16>, vector<64x128xbf16>, vector<32x128xf32> -> vector<32x128xf32>
    %57 = arith.truncf %56 : vector<32x128xf32> to vector<32x128xbf16>
    %c3_52 = arith.constant 3 : index
    %c0_53 = arith.constant 0 : index
    %c0_54 = arith.constant 0 : index
    %58 = vector.load %arg37[%c3_52, %c0_53, %c0_54] : memref<4x128x128xbf16, #tpu.memory_space<vmem>>, vector<1x128x128xbf16>
    %59 = vector.shape_cast %58 : vector<1x128x128xbf16> to vector<128x128xbf16>
    %cst_55 = arith.constant dense<0.000000e+00> : vector<32x128xf32>
    %60 = tpu.matmul %57, %59, %cst_55 {dimension_numbers = #tpu.dot_dimension_numbers<[1], [0], [0], [1], [0, 0, 1, 1], [], []>} : vector<32x128xbf16>, vector<128x128xbf16>, vector<32x128xf32> -> vector<32x128xf32>
    %61 = arith.addf %53, %60 : vector<32x128xf32>
    %c0_56 = arith.constant 0 : index
    %c0_57 = arith.constant 0 : index
    %62 = vector.load %arg35[%c0_56, %c0_57] : memref<1x128xf32, #tpu.memory_space<vmem>>, vector<1x128xf32>
    %63 = vector.broadcast %62 : vector<1x128xf32> to vector<32x128xf32>
    %64 = arith.addf %61, %63 : vector<32x128xf32>
    %cst_58 = arith.constant 0.000000e+00 : f32
    %65 = vector.broadcast %cst_58 : f32 to vector<32x128xf32>
    %66 = arith.maximumf %64, %65 : vector<32x128xf32>
    %67 = arith.truncf %66 : vector<32x128xf32> to vector<32x128xbf16>
    %c0_59 = arith.constant 0 : index
    %c0_60 = arith.constant 0 : index
    %c0_61 = arith.constant 0 : index
    %68 = vector.load %arg39[%c0_59, %c0_60, %c0_61] : memref<3x32x32xbf16, #tpu.memory_space<vmem>>, vector<1x32x32xbf16>
    %69 = vector.shape_cast %68 : vector<1x32x32xbf16> to vector<32x32xbf16>
    %cst_62 = arith.constant dense<0.000000e+00> : vector<32x128xf32>
    %70 = tpu.matmul %69, %67, %cst_62 {dimension_numbers = #tpu.dot_dimension_numbers<[1], [0], [0], [1], [0, 0, 1, 1], [], []>} : vector<32x32xbf16>, vector<32x128xbf16>, vector<32x128xf32> -> vector<32x128xf32>
    %71 = arith.truncf %70 : vector<32x128xf32> to vector<32x128xbf16>
    %c0_63 = arith.constant 0 : index
    %c0_64 = arith.constant 0 : index
    %c0_65 = arith.constant 0 : index
    %72 = vector.load %arg40[%c0_63, %c0_64, %c0_65] : memref<3x128x128xbf16, #tpu.memory_space<vmem>>, vector<1x128x128xbf16>
    %73 = vector.shape_cast %72 : vector<1x128x128xbf16> to vector<128x128xbf16>
    %cst_66 = arith.constant dense<0.000000e+00> : vector<32x128xf32>
    %74 = tpu.matmul %71, %73, %cst_66 {dimension_numbers = #tpu.dot_dimension_numbers<[1], [0], [0], [1], [0, 0, 1, 1], [], []>} : vector<32x128xbf16>, vector<128x128xbf16>, vector<32x128xf32> -> vector<32x128xf32>
    %c1_67 = arith.constant 1 : index
    %c0_68 = arith.constant 0 : index
    %c0_69 = arith.constant 0 : index
    %75 = vector.load %arg39[%c1_67, %c0_68, %c0_69] : memref<3x32x32xbf16, #tpu.memory_space<vmem>>, vector<1x32x32xbf16>
    %76 = vector.shape_cast %75 : vector<1x32x32xbf16> to vector<32x32xbf16>
    %cst_70 = arith.constant dense<0.000000e+00> : vector<32x128xf32>
    %77 = tpu.matmul %76, %67, %cst_70 {dimension_numbers = #tpu.dot_dimension_numbers<[1], [0], [0], [1], [0, 0, 1, 1], [], []>} : vector<32x32xbf16>, vector<32x128xbf16>, vector<32x128xf32> -> vector<32x128xf32>
    %78 = arith.truncf %77 : vector<32x128xf32> to vector<32x128xbf16>
    %c1_71 = arith.constant 1 : index
    %c0_72 = arith.constant 0 : index
    %c0_73 = arith.constant 0 : index
    %79 = vector.load %arg40[%c1_71, %c0_72, %c0_73] : memref<3x128x128xbf16, #tpu.memory_space<vmem>>, vector<1x128x128xbf16>
    %80 = vector.shape_cast %79 : vector<1x128x128xbf16> to vector<128x128xbf16>
    %cst_74 = arith.constant dense<0.000000e+00> : vector<32x128xf32>
    %81 = tpu.matmul %78, %80, %cst_74 {dimension_numbers = #tpu.dot_dimension_numbers<[1], [0], [0], [1], [0, 0, 1, 1], [], []>} : vector<32x128xbf16>, vector<128x128xbf16>, vector<32x128xf32> -> vector<32x128xf32>
    %82 = arith.addf %74, %81 : vector<32x128xf32>
    %c2_75 = arith.constant 2 : index
    %c0_76 = arith.constant 0 : index
    %c0_77 = arith.constant 0 : index
    %83 = vector.load %arg39[%c2_75, %c0_76, %c0_77] : memref<3x32x32xbf16, #tpu.memory_space<vmem>>, vector<1x32x32xbf16>
    %84 = vector.shape_cast %83 : vector<1x32x32xbf16> to vector<32x32xbf16>
    %cst_78 = arith.constant dense<0.000000e+00> : vector<32x128xf32>
    %85 = tpu.matmul %84, %67, %cst_78 {dimension_numbers = #tpu.dot_dimension_numbers<[1], [0], [0], [1], [0, 0, 1, 1], [], []>} : vector<32x32xbf16>, vector<32x128xbf16>, vector<32x128xf32> -> vector<32x128xf32>
    %86 = arith.truncf %85 : vector<32x128xf32> to vector<32x128xbf16>
    %c2_79 = arith.constant 2 : index
    %c0_80 = arith.constant 0 : index
    %c0_81 = arith.constant 0 : index
    %87 = vector.load %arg40[%c2_79, %c0_80, %c0_81] : memref<3x128x128xbf16, #tpu.memory_space<vmem>>, vector<1x128x128xbf16>
    %88 = vector.shape_cast %87 : vector<1x128x128xbf16> to vector<128x128xbf16>
    %cst_82 = arith.constant dense<0.000000e+00> : vector<32x128xf32>
    %89 = tpu.matmul %86, %88, %cst_82 {dimension_numbers = #tpu.dot_dimension_numbers<[1], [0], [0], [1], [0, 0, 1, 1], [], []>} : vector<32x128xbf16>, vector<128x128xbf16>, vector<32x128xf32> -> vector<32x128xf32>
    %90 = arith.addf %82, %89 : vector<32x128xf32>
    %c0_83 = arith.constant 0 : index
    %c0_84 = arith.constant 0 : index
    %91 = vector.load %arg38[%c0_83, %c0_84] : memref<1x128xf32, #tpu.memory_space<vmem>>, vector<1x128xf32>
    %92 = vector.broadcast %91 : vector<1x128xf32> to vector<32x128xf32>
    %93 = arith.addf %90, %92 : vector<32x128xf32>
    %cst_85 = arith.constant 0.000000e+00 : f32
    %94 = vector.broadcast %cst_85 : f32 to vector<32x128xf32>
    %95 = arith.maximumf %93, %94 : vector<32x128xf32>
    %96 = arith.truncf %95 : vector<32x128xf32> to vector<32x128xbf16>
    %c0_86 = arith.constant 0 : index
    %c0_87 = arith.constant 0 : index
    %c0_88 = arith.constant 0 : index
    %97 = vector.load %arg42[%c0_86, %c0_87, %c0_88] : memref<1x128x128xbf16, #tpu.memory_space<vmem>>, vector<1x128x128xbf16>
    %98 = vector.shape_cast %97 : vector<1x128x128xbf16> to vector<128x128xbf16>
    %cst_89 = arith.constant dense<0.000000e+00> : vector<32x128xf32>
    %99 = tpu.matmul %96, %98, %cst_89 {dimension_numbers = #tpu.dot_dimension_numbers<[1], [0], [0], [1], [0, 0, 1, 1], [], []>} : vector<32x128xbf16>, vector<128x128xbf16>, vector<32x128xf32> -> vector<32x128xf32>
    %c0_90 = arith.constant 0 : index
    %c0_91 = arith.constant 0 : index
    %100 = vector.load %arg41[%c0_90, %c0_91] : memref<1x128xf32, #tpu.memory_space<vmem>>, vector<1x128xf32>
    %101 = vector.broadcast %100 : vector<1x128xf32> to vector<32x128xf32>
    %102 = arith.addf %99, %101 : vector<32x128xf32>
    %103 = arith.addf %64, %102 : vector<32x128xf32>
    %cst_92 = arith.constant 0.000000e+00 : f32
    %104 = vector.broadcast %cst_92 : f32 to vector<32x128xf32>
    %105 = arith.maximumf %103, %104 : vector<32x128xf32>
    %106 = arith.truncf %105 : vector<32x128xf32> to vector<32x128xbf16>
    %c0_93 = arith.constant 0 : index
    %c0_94 = arith.constant 0 : index
    %c0_95 = arith.constant 0 : index
    %107 = vector.load %arg44[%c0_93, %c0_94, %c0_95] : memref<3x32x32xbf16, #tpu.memory_space<vmem>>, vector<1x32x32xbf16>
    %108 = vector.shape_cast %107 : vector<1x32x32xbf16> to vector<32x32xbf16>
    %cst_96 = arith.constant dense<0.000000e+00> : vector<32x128xf32>
    %109 = tpu.matmul %108, %106, %cst_96 {dimension_numbers = #tpu.dot_dimension_numbers<[1], [0], [0], [1], [0, 0, 1, 1], [], []>} : vector<32x32xbf16>, vector<32x128xbf16>, vector<32x128xf32> -> vector<32x128xf32>
    %110 = arith.truncf %109 : vector<32x128xf32> to vector<32x128xbf16>
    %c0_97 = arith.constant 0 : index
    %c0_98 = arith.constant 0 : index
    %c0_99 = arith.constant 0 : index
    %111 = vector.load %arg45[%c0_97, %c0_98, %c0_99] : memref<3x128x128xbf16, #tpu.memory_space<vmem>>, vector<1x128x128xbf16>
    %112 = vector.shape_cast %111 : vector<1x128x128xbf16> to vector<128x128xbf16>
    %cst_100 = arith.constant dense<0.000000e+00> : vector<32x128xf32>
    %113 = tpu.matmul %110, %112, %cst_100 {dimension_numbers = #tpu.dot_dimension_numbers<[1], [0], [0], [1], [0, 0, 1, 1], [], []>} : vector<32x128xbf16>, vector<128x128xbf16>, vector<32x128xf32> -> vector<32x128xf32>
    %c1_101 = arith.constant 1 : index
    %c0_102 = arith.constant 0 : index
    %c0_103 = arith.constant 0 : index
    %114 = vector.load %arg44[%c1_101, %c0_102, %c0_103] : memref<3x32x32xbf16, #tpu.memory_space<vmem>>, vector<1x32x32xbf16>
    %115 = vector.shape_cast %114 : vector<1x32x32xbf16> to vector<32x32xbf16>
    %cst_104 = arith.constant dense<0.000000e+00> : vector<32x128xf32>
    %116 = tpu.matmul %115, %106, %cst_104 {dimension_numbers = #tpu.dot_dimension_numbers<[1], [0], [0], [1], [0, 0, 1, 1], [], []>} : vector<32x32xbf16>, vector<32x128xbf16>, vector<32x128xf32> -> vector<32x128xf32>
    %117 = arith.truncf %116 : vector<32x128xf32> to vector<32x128xbf16>
    %c1_105 = arith.constant 1 : index
    %c0_106 = arith.constant 0 : index
    %c0_107 = arith.constant 0 : index
    %118 = vector.load %arg45[%c1_105, %c0_106, %c0_107] : memref<3x128x128xbf16, #tpu.memory_space<vmem>>, vector<1x128x128xbf16>
    %119 = vector.shape_cast %118 : vector<1x128x128xbf16> to vector<128x128xbf16>
    %cst_108 = arith.constant dense<0.000000e+00> : vector<32x128xf32>
    %120 = tpu.matmul %117, %119, %cst_108 {dimension_numbers = #tpu.dot_dimension_numbers<[1], [0], [0], [1], [0, 0, 1, 1], [], []>} : vector<32x128xbf16>, vector<128x128xbf16>, vector<32x128xf32> -> vector<32x128xf32>
    %121 = arith.addf %113, %120 : vector<32x128xf32>
    %c2_109 = arith.constant 2 : index
    %c0_110 = arith.constant 0 : index
    %c0_111 = arith.constant 0 : index
    %122 = vector.load %arg44[%c2_109, %c0_110, %c0_111] : memref<3x32x32xbf16, #tpu.memory_space<vmem>>, vector<1x32x32xbf16>
    %123 = vector.shape_cast %122 : vector<1x32x32xbf16> to vector<32x32xbf16>
    %cst_112 = arith.constant dense<0.000000e+00> : vector<32x128xf32>
    %124 = tpu.matmul %123, %106, %cst_112 {dimension_numbers = #tpu.dot_dimension_numbers<[1], [0], [0], [1], [0, 0, 1, 1], [], []>} : vector<32x32xbf16>, vector<32x128xbf16>, vector<32x128xf32> -> vector<32x128xf32>
    %125 = arith.truncf %124 : vector<32x128xf32> to vector<32x128xbf16>
    %c2_113 = arith.constant 2 : index
    %c0_114 = arith.constant 0 : index
    %c0_115 = arith.constant 0 : index
    %126 = vector.load %arg45[%c2_113, %c0_114, %c0_115] : memref<3x128x128xbf16, #tpu.memory_space<vmem>>, vector<1x128x128xbf16>
    %127 = vector.shape_cast %126 : vector<1x128x128xbf16> to vector<128x128xbf16>
    %cst_116 = arith.constant dense<0.000000e+00> : vector<32x128xf32>
    %128 = tpu.matmul %125, %127, %cst_116 {dimension_numbers = #tpu.dot_dimension_numbers<[1], [0], [0], [1], [0, 0, 1, 1], [], []>} : vector<32x128xbf16>, vector<128x128xbf16>, vector<32x128xf32> -> vector<32x128xf32>
    %129 = arith.addf %121, %128 : vector<32x128xf32>
    %c0_117 = arith.constant 0 : index
    %c0_118 = arith.constant 0 : index
    %130 = vector.load %arg43[%c0_117, %c0_118] : memref<1x128xf32, #tpu.memory_space<vmem>>, vector<1x128xf32>
    %131 = vector.broadcast %130 : vector<1x128xf32> to vector<32x128xf32>
    %132 = arith.addf %129, %131 : vector<32x128xf32>
    %cst_119 = arith.constant 0.000000e+00 : f32
    %133 = vector.broadcast %cst_119 : f32 to vector<32x128xf32>
    %134 = arith.maximumf %132, %133 : vector<32x128xf32>
    %135 = arith.truncf %134 : vector<32x128xf32> to vector<32x128xbf16>
    %c0_120 = arith.constant 0 : index
    %c0_121 = arith.constant 0 : index
    %c0_122 = arith.constant 0 : index
    %136 = vector.load %arg47[%c0_120, %c0_121, %c0_122] : memref<1x128x128xbf16, #tpu.memory_space<vmem>>, vector<1x128x128xbf16>
    %137 = vector.shape_cast %136 : vector<1x128x128xbf16> to vector<128x128xbf16>
    %cst_123 = arith.constant dense<0.000000e+00> : vector<32x128xf32>
    %138 = tpu.matmul %135, %137, %cst_123 {dimension_numbers = #tpu.dot_dimension_numbers<[1], [0], [0], [1], [0, 0, 1, 1], [], []>} : vector<32x128xbf16>, vector<128x128xbf16>, vector<32x128xf32> -> vector<32x128xf32>
    %c0_124 = arith.constant 0 : index
    %c0_125 = arith.constant 0 : index
    %139 = vector.load %arg46[%c0_124, %c0_125] : memref<1x128xf32, #tpu.memory_space<vmem>>, vector<1x128xf32>
    %140 = vector.broadcast %139 : vector<1x128xf32> to vector<32x128xf32>
    %141 = arith.addf %138, %140 : vector<32x128xf32>
    %142 = arith.addf %103, %141 : vector<32x128xf32>
    %143 = arith.truncf %142 : vector<32x128xf32> to vector<32x128xbf16>
    %c0_126 = arith.constant 0 : index
    %c0_127 = arith.constant 0 : index
    %c0_128 = arith.constant 0 : index
    %144 = vector.load %arg49[%c0_126, %c0_127, %c0_128] : memref<4x16x32xbf16, #tpu.memory_space<vmem>>, vector<1x16x32xbf16>
    %145 = vector.shape_cast %144 : vector<1x16x32xbf16> to vector<16x32xbf16>
    %cst_129 = arith.constant dense<0.000000e+00> : vector<16x128xf32>
    %146 = tpu.matmul %145, %143, %cst_129 {dimension_numbers = #tpu.dot_dimension_numbers<[1], [0], [0], [1], [0, 0, 1, 1], [], []>} : vector<16x32xbf16>, vector<32x128xbf16>, vector<16x128xf32> -> vector<16x128xf32>
    %147 = arith.truncf %146 : vector<16x128xf32> to vector<16x128xbf16>
    %c0_130 = arith.constant 0 : index
    %c0_131 = arith.constant 0 : index
    %c0_132 = arith.constant 0 : index
    %148 = vector.load %arg50[%c0_130, %c0_131, %c0_132] : memref<4x128x128xbf16, #tpu.memory_space<vmem>>, vector<1x128x128xbf16>
    %149 = vector.shape_cast %148 : vector<1x128x128xbf16> to vector<128x128xbf16>
    %cst_133 = arith.constant dense<0.000000e+00> : vector<16x128xf32>
    %150 = tpu.matmul %147, %149, %cst_133 {dimension_numbers = #tpu.dot_dimension_numbers<[1], [0], [0], [1], [0, 0, 1, 1], [], []>} : vector<16x128xbf16>, vector<128x128xbf16>, vector<16x128xf32> -> vector<16x128xf32>
    %c1_134 = arith.constant 1 : index
    %c0_135 = arith.constant 0 : index
    %c0_136 = arith.constant 0 : index
    %151 = vector.load %arg49[%c1_134, %c0_135, %c0_136] : memref<4x16x32xbf16, #tpu.memory_space<vmem>>, vector<1x16x32xbf16>
    %152 = vector.shape_cast %151 : vector<1x16x32xbf16> to vector<16x32xbf16>
    %cst_137 = arith.constant dense<0.000000e+00> : vector<16x128xf32>
    %153 = tpu.matmul %152, %143, %cst_137 {dimension_numbers = #tpu.dot_dimension_numbers<[1], [0], [0], [1], [0, 0, 1, 1], [], []>} : vector<16x32xbf16>, vector<32x128xbf16>, vector<16x128xf32> -> vector<16x128xf32>
    %154 = arith.truncf %153 : vector<16x128xf32> to vector<16x128xbf16>
    %c1_138 = arith.constant 1 : index
    %c0_139 = arith.constant 0 : index
    %c0_140 = arith.constant 0 : index
    %155 = vector.load %arg50[%c1_138, %c0_139, %c0_140] : memref<4x128x128xbf16, #tpu.memory_space<vmem>>, vector<1x128x128xbf16>
    %156 = vector.shape_cast %155 : vector<1x128x128xbf16> to vector<128x128xbf16>
    %cst_141 = arith.constant dense<0.000000e+00> : vector<16x128xf32>
    %157 = tpu.matmul %154, %156, %cst_141 {dimension_numbers = #tpu.dot_dimension_numbers<[1], [0], [0], [1], [0, 0, 1, 1], [], []>} : vector<16x128xbf16>, vector<128x128xbf16>, vector<16x128xf32> -> vector<16x128xf32>
    %158 = arith.addf %150, %157 : vector<16x128xf32>
    %c2_142 = arith.constant 2 : index
    %c0_143 = arith.constant 0 : index
    %c0_144 = arith.constant 0 : index
    %159 = vector.load %arg49[%c2_142, %c0_143, %c0_144] : memref<4x16x32xbf16, #tpu.memory_space<vmem>>, vector<1x16x32xbf16>
    %160 = vector.shape_cast %159 : vector<1x16x32xbf16> to vector<16x32xbf16>
    %cst_145 = arith.constant dense<0.000000e+00> : vector<16x128xf32>
    %161 = tpu.matmul %160, %143, %cst_145 {dimension_numbers = #tpu.dot_dimension_numbers<[1], [0], [0], [1], [0, 0, 1, 1], [], []>} : vector<16x32xbf16>, vector<32x128xbf16>, vector<16x128xf32> -> vector<16x128xf32>
    %162 = arith.truncf %161 : vector<16x128xf32> to vector<16x128xbf16>
    %c2_146 = arith.constant 2 : index
    %c0_147 = arith.constant 0 : index
    %c0_148 = arith.constant 0 : index
    %163 = vector.load %arg50[%c2_146, %c0_147, %c0_148] : memref<4x128x128xbf16, #tpu.memory_space<vmem>>, vector<1x128x128xbf16>
    %164 = vector.shape_cast %163 : vector<1x128x128xbf16> to vector<128x128xbf16>
    %cst_149 = arith.constant dense<0.000000e+00> : vector<16x128xf32>
    %165 = tpu.matmul %162, %164, %cst_149 {dimension_numbers = #tpu.dot_dimension_numbers<[1], [0], [0], [1], [0, 0, 1, 1], [], []>} : vector<16x128xbf16>, vector<128x128xbf16>, vector<16x128xf32> -> vector<16x128xf32>
    %166 = arith.addf %158, %165 : vector<16x128xf32>
    %c3_150 = arith.constant 3 : index
    %c0_151 = arith.constant 0 : index
    %c0_152 = arith.constant 0 : index
    %167 = vector.load %arg49[%c3_150, %c0_151, %c0_152] : memref<4x16x32xbf16, #tpu.memory_space<vmem>>, vector<1x16x32xbf16>
    %168 = vector.shape_cast %167 : vector<1x16x32xbf16> to vector<16x32xbf16>
    %cst_153 = arith.constant dense<0.000000e+00> : vector<16x128xf32>
    %169 = tpu.matmul %168, %143, %cst_153 {dimension_numbers = #tpu.dot_dimension_numbers<[1], [0], [0], [1], [0, 0, 1, 1], [], []>} : vector<16x32xbf16>, vector<32x128xbf16>, vector<16x128xf32> -> vector<16x128xf32>
    %170 = arith.truncf %169 : vector<16x128xf32> to vector<16x128xbf16>
    %c3_154 = arith.constant 3 : index
    %c0_155 = arith.constant 0 : index
    %c0_156 = arith.constant 0 : index
    %171 = vector.load %arg50[%c3_154, %c0_155, %c0_156] : memref<4x128x128xbf16, #tpu.memory_space<vmem>>, vector<1x128x128xbf16>
    %172 = vector.shape_cast %171 : vector<1x128x128xbf16> to vector<128x128xbf16>
    %cst_157 = arith.constant dense<0.000000e+00> : vector<16x128xf32>
    %173 = tpu.matmul %170, %172, %cst_157 {dimension_numbers = #tpu.dot_dimension_numbers<[1], [0], [0], [1], [0, 0, 1, 1], [], []>} : vector<16x128xbf16>, vector<128x128xbf16>, vector<16x128xf32> -> vector<16x128xf32>
    %174 = arith.addf %166, %173 : vector<16x128xf32>
    %c0_158 = arith.constant 0 : index
    %c0_159 = arith.constant 0 : index
    %175 = vector.load %arg48[%c0_158, %c0_159] : memref<1x128xf32, #tpu.memory_space<vmem>>, vector<1x128xf32>
    %176 = vector.broadcast %175 : vector<1x128xf32> to vector<16x128xf32>
    %177 = arith.addf %174, %176 : vector<16x128xf32>
    %cst_160 = arith.constant 0.000000e+00 : f32
    %178 = vector.broadcast %cst_160 : f32 to vector<16x128xf32>
    %179 = arith.maximumf %177, %178 : vector<16x128xf32>
    %180 = arith.truncf %179 : vector<16x128xf32> to vector<16x128xbf16>
    %c0_161 = arith.constant 0 : index
    %c0_162 = arith.constant 0 : index
    %c0_163 = arith.constant 0 : index
    %181 = vector.load %arg52[%c0_161, %c0_162, %c0_163] : memref<3x16x16xbf16, #tpu.memory_space<vmem>>, vector<1x16x16xbf16>
    %182 = vector.shape_cast %181 : vector<1x16x16xbf16> to vector<16x16xbf16>
    %cst_164 = arith.constant dense<0.000000e+00> : vector<16x128xf32>
    %183 = tpu.matmul %182, %180, %cst_164 {dimension_numbers = #tpu.dot_dimension_numbers<[1], [0], [0], [1], [0, 0, 1, 1], [], []>} : vector<16x16xbf16>, vector<16x128xbf16>, vector<16x128xf32> -> vector<16x128xf32>
    %184 = arith.truncf %183 : vector<16x128xf32> to vector<16x128xbf16>
    %c0_165 = arith.constant 0 : index
    %c0_166 = arith.constant 0 : index
    %c0_167 = arith.constant 0 : index
    %185 = vector.load %arg53[%c0_165, %c0_166, %c0_167] : memref<3x128x128xbf16, #tpu.memory_space<vmem>>, vector<1x128x128xbf16>
    %186 = vector.shape_cast %185 : vector<1x128x128xbf16> to vector<128x128xbf16>
    %cst_168 = arith.constant dense<0.000000e+00> : vector<16x128xf32>
    %187 = tpu.matmul %184, %186, %cst_168 {dimension_numbers = #tpu.dot_dimension_numbers<[1], [0], [0], [1], [0, 0, 1, 1], [], []>} : vector<16x128xbf16>, vector<128x128xbf16>, vector<16x128xf32> -> vector<16x128xf32>
    %c1_169 = arith.constant 1 : index
    %c0_170 = arith.constant 0 : index
    %c0_171 = arith.constant 0 : index
    %188 = vector.load %arg52[%c1_169, %c0_170, %c0_171] : memref<3x16x16xbf16, #tpu.memory_space<vmem>>, vector<1x16x16xbf16>
    %189 = vector.shape_cast %188 : vector<1x16x16xbf16> to vector<16x16xbf16>
    %cst_172 = arith.constant dense<0.000000e+00> : vector<16x128xf32>
    %190 = tpu.matmul %189, %180, %cst_172 {dimension_numbers = #tpu.dot_dimension_numbers<[1], [0], [0], [1], [0, 0, 1, 1], [], []>} : vector<16x16xbf16>, vector<16x128xbf16>, vector<16x128xf32> -> vector<16x128xf32>
    %191 = arith.truncf %190 : vector<16x128xf32> to vector<16x128xbf16>
    %c1_173 = arith.constant 1 : index
    %c0_174 = arith.constant 0 : index
    %c0_175 = arith.constant 0 : index
    %192 = vector.load %arg53[%c1_173, %c0_174, %c0_175] : memref<3x128x128xbf16, #tpu.memory_space<vmem>>, vector<1x128x128xbf16>
    %193 = vector.shape_cast %192 : vector<1x128x128xbf16> to vector<128x128xbf16>
    %cst_176 = arith.constant dense<0.000000e+00> : vector<16x128xf32>
    %194 = tpu.matmul %191, %193, %cst_176 {dimension_numbers = #tpu.dot_dimension_numbers<[1], [0], [0], [1], [0, 0, 1, 1], [], []>} : vector<16x128xbf16>, vector<128x128xbf16>, vector<16x128xf32> -> vector<16x128xf32>
    %195 = arith.addf %187, %194 : vector<16x128xf32>
    %c2_177 = arith.constant 2 : index
    %c0_178 = arith.constant 0 : index
    %c0_179 = arith.constant 0 : index
    %196 = vector.load %arg52[%c2_177, %c0_178, %c0_179] : memref<3x16x16xbf16, #tpu.memory_space<vmem>>, vector<1x16x16xbf16>
    %197 = vector.shape_cast %196 : vector<1x16x16xbf16> to vector<16x16xbf16>
    %cst_180 = arith.constant dense<0.000000e+00> : vector<16x128xf32>
    %198 = tpu.matmul %197, %180, %cst_180 {dimension_numbers = #tpu.dot_dimension_numbers<[1], [0], [0], [1], [0, 0, 1, 1], [], []>} : vector<16x16xbf16>, vector<16x128xbf16>, vector<16x128xf32> -> vector<16x128xf32>
    %199 = arith.truncf %198 : vector<16x128xf32> to vector<16x128xbf16>
    %c2_181 = arith.constant 2 : index
    %c0_182 = arith.constant 0 : index
    %c0_183 = arith.constant 0 : index
    %200 = vector.load %arg53[%c2_181, %c0_182, %c0_183] : memref<3x128x128xbf16, #tpu.memory_space<vmem>>, vector<1x128x128xbf16>
    %201 = vector.shape_cast %200 : vector<1x128x128xbf16> to vector<128x128xbf16>
    %cst_184 = arith.constant dense<0.000000e+00> : vector<16x128xf32>
    %202 = tpu.matmul %199, %201, %cst_184 {dimension_numbers = #tpu.dot_dimension_numbers<[1], [0], [0], [1], [0, 0, 1, 1], [], []>} : vector<16x128xbf16>, vector<128x128xbf16>, vector<16x128xf32> -> vector<16x128xf32>
    %203 = arith.addf %195, %202 : vector<16x128xf32>
    %c0_185 = arith.constant 0 : index
    %c0_186 = arith.constant 0 : index
    %204 = vector.load %arg51[%c0_185, %c0_186] : memref<1x128xf32, #tpu.memory_space<vmem>>, vector<1x128xf32>
    %205 = vector.broadcast %204 : vector<1x128xf32> to vector<16x128xf32>
    %206 = arith.addf %203, %205 : vector<16x128xf32>
    %cst_187 = arith.constant 0.000000e+00 : f32
    %207 = vector.broadcast %cst_187 : f32 to vector<16x128xf32>
    %208 = arith.maximumf %206, %207 : vector<16x128xf32>
    %209 = arith.truncf %208 : vector<16x128xf32> to vector<16x128xbf16>
    %c0_188 = arith.constant 0 : index
    %c0_189 = arith.constant 0 : index
    %c0_190 = arith.constant 0 : index
    %210 = vector.load %arg55[%c0_188, %c0_189, %c0_190] : memref<1x128x128xbf16, #tpu.memory_space<vmem>>, vector<1x128x128xbf16>
    %211 = vector.shape_cast %210 : vector<1x128x128xbf16> to vector<128x128xbf16>
    %cst_191 = arith.constant dense<0.000000e+00> : vector<16x128xf32>
    %212 = tpu.matmul %209, %211, %cst_191 {dimension_numbers = #tpu.dot_dimension_numbers<[1], [0], [0], [1], [0, 0, 1, 1], [], []>} : vector<16x128xbf16>, vector<128x128xbf16>, vector<16x128xf32> -> vector<16x128xf32>
    %c0_192 = arith.constant 0 : index
    %c0_193 = arith.constant 0 : index
    %213 = vector.load %arg54[%c0_192, %c0_193] : memref<1x128xf32, #tpu.memory_space<vmem>>, vector<1x128xf32>
    %214 = vector.broadcast %213 : vector<1x128xf32> to vector<16x128xf32>
    %215 = arith.addf %212, %214 : vector<16x128xf32>
    %216 = arith.addf %177, %215 : vector<16x128xf32>
    %cst_194 = arith.constant 0.000000e+00 : f32
    %217 = vector.broadcast %cst_194 : f32 to vector<16x128xf32>
    %218 = arith.maximumf %216, %217 : vector<16x128xf32>
    %219 = arith.truncf %218 : vector<16x128xf32> to vector<16x128xbf16>
    %c0_195 = arith.constant 0 : index
    %c0_196 = arith.constant 0 : index
    %c0_197 = arith.constant 0 : index
    %220 = vector.load %arg57[%c0_195, %c0_196, %c0_197] : memref<3x16x16xbf16, #tpu.memory_space<vmem>>, vector<1x16x16xbf16>
    %221 = vector.shape_cast %220 : vector<1x16x16xbf16> to vector<16x16xbf16>
    %cst_198 = arith.constant dense<0.000000e+00> : vector<16x128xf32>
    %222 = tpu.matmul %221, %219, %cst_198 {dimension_numbers = #tpu.dot_dimension_numbers<[1], [0], [0], [1], [0, 0, 1, 1], [], []>} : vector<16x16xbf16>, vector<16x128xbf16>, vector<16x128xf32> -> vector<16x128xf32>
    %223 = arith.truncf %222 : vector<16x128xf32> to vector<16x128xbf16>
    %c0_199 = arith.constant 0 : index
    %c0_200 = arith.constant 0 : index
    %c0_201 = arith.constant 0 : index
    %224 = vector.load %arg58[%c0_199, %c0_200, %c0_201] : memref<3x128x128xbf16, #tpu.memory_space<vmem>>, vector<1x128x128xbf16>
    %225 = vector.shape_cast %224 : vector<1x128x128xbf16> to vector<128x128xbf16>
    %cst_202 = arith.constant dense<0.000000e+00> : vector<16x128xf32>
    %226 = tpu.matmul %223, %225, %cst_202 {dimension_numbers = #tpu.dot_dimension_numbers<[1], [0], [0], [1], [0, 0, 1, 1], [], []>} : vector<16x128xbf16>, vector<128x128xbf16>, vector<16x128xf32> -> vector<16x128xf32>
    %c1_203 = arith.constant 1 : index
    %c0_204 = arith.constant 0 : index
    %c0_205 = arith.constant 0 : index
    %227 = vector.load %arg57[%c1_203, %c0_204, %c0_205] : memref<3x16x16xbf16, #tpu.memory_space<vmem>>, vector<1x16x16xbf16>
    %228 = vector.shape_cast %227 : vector<1x16x16xbf16> to vector<16x16xbf16>
    %cst_206 = arith.constant dense<0.000000e+00> : vector<16x128xf32>
    %229 = tpu.matmul %228, %219, %cst_206 {dimension_numbers = #tpu.dot_dimension_numbers<[1], [0], [0], [1], [0, 0, 1, 1], [], []>} : vector<16x16xbf16>, vector<16x128xbf16>, vector<16x128xf32> -> vector<16x128xf32>
    %230 = arith.truncf %229 : vector<16x128xf32> to vector<16x128xbf16>
    %c1_207 = arith.constant 1 : index
    %c0_208 = arith.constant 0 : index
    %c0_209 = arith.constant 0 : index
    %231 = vector.load %arg58[%c1_207, %c0_208, %c0_209] : memref<3x128x128xbf16, #tpu.memory_space<vmem>>, vector<1x128x128xbf16>
    %232 = vector.shape_cast %231 : vector<1x128x128xbf16> to vector<128x128xbf16>
    %cst_210 = arith.constant dense<0.000000e+00> : vector<16x128xf32>
    %233 = tpu.matmul %230, %232, %cst_210 {dimension_numbers = #tpu.dot_dimension_numbers<[1], [0], [0], [1], [0, 0, 1, 1], [], []>} : vector<16x128xbf16>, vector<128x128xbf16>, vector<16x128xf32> -> vector<16x128xf32>
    %234 = arith.addf %226, %233 : vector<16x128xf32>
    %c2_211 = arith.constant 2 : index
    %c0_212 = arith.constant 0 : index
    %c0_213 = arith.constant 0 : index
    %235 = vector.load %arg57[%c2_211, %c0_212, %c0_213] : memref<3x16x16xbf16, #tpu.memory_space<vmem>>, vector<1x16x16xbf16>
    %236 = vector.shape_cast %235 : vector<1x16x16xbf16> to vector<16x16xbf16>
    %cst_214 = arith.constant dense<0.000000e+00> : vector<16x128xf32>
    %237 = tpu.matmul %236, %219, %cst_214 {dimension_numbers = #tpu.dot_dimension_numbers<[1], [0], [0], [1], [0, 0, 1, 1], [], []>} : vector<16x16xbf16>, vector<16x128xbf16>, vector<16x128xf32> -> vector<16x128xf32>
    %238 = arith.truncf %237 : vector<16x128xf32> to vector<16x128xbf16>
    %c2_215 = arith.constant 2 : index
    %c0_216 = arith.constant 0 : index
    %c0_217 = arith.constant 0 : index
    %239 = vector.load %arg58[%c2_215, %c0_216, %c0_217] : memref<3x128x128xbf16, #tpu.memory_space<vmem>>, vector<1x128x128xbf16>
    %240 = vector.shape_cast %239 : vector<1x128x128xbf16> to vector<128x128xbf16>
    %cst_218 = arith.constant dense<0.000000e+00> : vector<16x128xf32>
    %241 = tpu.matmul %238, %240, %cst_218 {dimension_numbers = #tpu.dot_dimension_numbers<[1], [0], [0], [1], [0, 0, 1, 1], [], []>} : vector<16x128xbf16>, vector<128x128xbf16>, vector<16x128xf32> -> vector<16x128xf32>
    %242 = arith.addf %234, %241 : vector<16x128xf32>
    %c0_219 = arith.constant 0 : index
    %c0_220 = arith.constant 0 : index
    %243 = vector.load %arg56[%c0_219, %c0_220] : memref<1x128xf32, #tpu.memory_space<vmem>>, vector<1x128xf32>
    %244 = vector.broadcast %243 : vector<1x128xf32> to vector<16x128xf32>
    %245 = arith.addf %242, %244 : vector<16x128xf32>
    %cst_221 = arith.constant 0.000000e+00 : f32
    %246 = vector.broadcast %cst_221 : f32 to vector<16x128xf32>
    %247 = arith.maximumf %245, %246 : vector<16x128xf32>
    %248 = arith.truncf %247 : vector<16x128xf32> to vector<16x128xbf16>
    %c0_222 = arith.constant 0 : index
    %c0_223 = arith.constant 0 : index
    %c0_224 = arith.constant 0 : index
    %249 = vector.load %arg60[%c0_222, %c0_223, %c0_224] : memref<1x128x128xbf16, #tpu.memory_space<vmem>>, vector<1x128x128xbf16>
    %250 = vector.shape_cast %249 : vector<1x128x128xbf16> to vector<128x128xbf16>
    %cst_225 = arith.constant dense<0.000000e+00> : vector<16x128xf32>
    %251 = tpu.matmul %248, %250, %cst_225 {dimension_numbers = #tpu.dot_dimension_numbers<[1], [0], [0], [1], [0, 0, 1, 1], [], []>} : vector<16x128xbf16>, vector<128x128xbf16>, vector<16x128xf32> -> vector<16x128xf32>
    %c0_226 = arith.constant 0 : index
    %c0_227 = arith.constant 0 : index
    %252 = vector.load %arg59[%c0_226, %c0_227] : memref<1x128xf32, #tpu.memory_space<vmem>>, vector<1x128xf32>
    %253 = vector.broadcast %252 : vector<1x128xf32> to vector<16x128xf32>
    %254 = arith.addf %251, %253 : vector<16x128xf32>
    %255 = arith.addf %216, %254 : vector<16x128xf32>
    %256 = arith.truncf %255 : vector<16x128xf32> to vector<16x128xbf16>
    %c0_228 = arith.constant 0 : index
    %c0_229 = arith.constant 0 : index
    %c0_230 = arith.constant 0 : index
    %257 = vector.load %arg65[%c0_228, %c0_229, %c0_230] : memref<3x16x16xbf16, #tpu.memory_space<vmem>>, vector<1x16x16xbf16>
    %258 = vector.shape_cast %257 : vector<1x16x16xbf16> to vector<16x16xbf16>
    %cst_231 = arith.constant dense<0.000000e+00> : vector<16x128xf32>
    %259 = tpu.matmul %258, %256, %cst_231 {dimension_numbers = #tpu.dot_dimension_numbers<[1], [0], [0], [1], [0, 0, 1, 1], [], []>} : vector<16x16xbf16>, vector<16x128xbf16>, vector<16x128xf32> -> vector<16x128xf32>
    %260 = arith.truncf %259 : vector<16x128xf32> to vector<16x128xbf16>
    %c0_232 = arith.constant 0 : index
    %c0_233 = arith.constant 0 : index
    %c0_234 = arith.constant 0 : index
    %261 = vector.load %arg66[%c0_232, %c0_233, %c0_234] : memref<3x128x128xbf16, #tpu.memory_space<vmem>>, vector<1x128x128xbf16>
    %262 = vector.shape_cast %261 : vector<1x128x128xbf16> to vector<128x128xbf16>
    %cst_235 = arith.constant dense<0.000000e+00> : vector<16x128xf32>
    %263 = tpu.matmul %260, %262, %cst_235 {dimension_numbers = #tpu.dot_dimension_numbers<[1], [0], [0], [1], [0, 0, 1, 1], [], []>} : vector<16x128xbf16>, vector<128x128xbf16>, vector<16x128xf32> -> vector<16x128xf32>
    %c1_236 = arith.constant 1 : index
    %c0_237 = arith.constant 0 : index
    %c0_238 = arith.constant 0 : index
    %264 = vector.load %arg65[%c1_236, %c0_237, %c0_238] : memref<3x16x16xbf16, #tpu.memory_space<vmem>>, vector<1x16x16xbf16>
    %265 = vector.shape_cast %264 : vector<1x16x16xbf16> to vector<16x16xbf16>
    %cst_239 = arith.constant dense<0.000000e+00> : vector<16x128xf32>
    %266 = tpu.matmul %265, %256, %cst_239 {dimension_numbers = #tpu.dot_dimension_numbers<[1], [0], [0], [1], [0, 0, 1, 1], [], []>} : vector<16x16xbf16>, vector<16x128xbf16>, vector<16x128xf32> -> vector<16x128xf32>
    %267 = arith.truncf %266 : vector<16x128xf32> to vector<16x128xbf16>
    %c1_240 = arith.constant 1 : index
    %c0_241 = arith.constant 0 : index
    %c0_242 = arith.constant 0 : index
    %268 = vector.load %arg66[%c1_240, %c0_241, %c0_242] : memref<3x128x128xbf16, #tpu.memory_space<vmem>>, vector<1x128x128xbf16>
    %269 = vector.shape_cast %268 : vector<1x128x128xbf16> to vector<128x128xbf16>
    %cst_243 = arith.constant dense<0.000000e+00> : vector<16x128xf32>
    %270 = tpu.matmul %267, %269, %cst_243 {dimension_numbers = #tpu.dot_dimension_numbers<[1], [0], [0], [1], [0, 0, 1, 1], [], []>} : vector<16x128xbf16>, vector<128x128xbf16>, vector<16x128xf32> -> vector<16x128xf32>
    %271 = arith.addf %263, %270 : vector<16x128xf32>
    %c2_244 = arith.constant 2 : index
    %c0_245 = arith.constant 0 : index
    %c0_246 = arith.constant 0 : index
    %272 = vector.load %arg65[%c2_244, %c0_245, %c0_246] : memref<3x16x16xbf16, #tpu.memory_space<vmem>>, vector<1x16x16xbf16>
    %273 = vector.shape_cast %272 : vector<1x16x16xbf16> to vector<16x16xbf16>
    %cst_247 = arith.constant dense<0.000000e+00> : vector<16x128xf32>
    %274 = tpu.matmul %273, %256, %cst_247 {dimension_numbers = #tpu.dot_dimension_numbers<[1], [0], [0], [1], [0, 0, 1, 1], [], []>} : vector<16x16xbf16>, vector<16x128xbf16>, vector<16x128xf32> -> vector<16x128xf32>
    %275 = arith.truncf %274 : vector<16x128xf32> to vector<16x128xbf16>
    %c2_248 = arith.constant 2 : index
    %c0_249 = arith.constant 0 : index
    %c0_250 = arith.constant 0 : index
    %276 = vector.load %arg66[%c2_248, %c0_249, %c0_250] : memref<3x128x128xbf16, #tpu.memory_space<vmem>>, vector<1x128x128xbf16>
    %277 = vector.shape_cast %276 : vector<1x128x128xbf16> to vector<128x128xbf16>
    %cst_251 = arith.constant dense<0.000000e+00> : vector<16x128xf32>
    %278 = tpu.matmul %275, %277, %cst_251 {dimension_numbers = #tpu.dot_dimension_numbers<[1], [0], [0], [1], [0, 0, 1, 1], [], []>} : vector<16x128xbf16>, vector<128x128xbf16>, vector<16x128xf32> -> vector<16x128xf32>
    %279 = arith.addf %271, %278 : vector<16x128xf32>
    %c0_252 = arith.constant 0 : index
    %c0_253 = arith.constant 0 : index
    %280 = vector.load %arg64[%c0_252, %c0_253] : memref<1x128xf32, #tpu.memory_space<vmem>>, vector<1x128xf32>
    %281 = vector.broadcast %280 : vector<1x128xf32> to vector<16x128xf32>
    %282 = arith.addf %279, %281 : vector<16x128xf32>
    %c0_254 = arith.constant 0 : index
    %c0_255 = arith.constant 0 : index
    %283 = vector.load %arg69[%c0_254, %c0_255] : memref<128x256xf32, #tpu.memory_space<vmem>>, vector<128x256xf32>
    %cst_256 = arith.constant dense<0.000000e+00> : vector<16x256xf32>
    %284 = tpu.matmul %282, %283, %cst_256 {dimension_numbers = #tpu.dot_dimension_numbers<[1], [0], [0], [1], [0, 0, 1, 1], [], []>} : vector<16x128xf32>, vector<128x256xf32>, vector<16x256xf32> -> vector<16x256xf32>
    %c0_257 = arith.constant 0 : index
    %c0_258 = arith.constant 0 : index
    %285 = vector.load %arg68[%c0_257, %c0_258] : memref<1x256xf32, #tpu.memory_space<vmem>>, vector<1x256xf32>
    %286 = vector.broadcast %285 : vector<1x256xf32> to vector<16x256xf32>
    %287 = arith.addf %284, %286 : vector<16x256xf32>
    %288 = tpu.iota {dimensions = array<i32: 1>} : vector<16x256xi32>
    %289 = arith.sitofp %288 : vector<16x256xi32> to vector<16x256xf32>
    %cst_259 = arith.constant dense<0x7F800000> : vector<16xf32>
    %290 = vector.multi_reduction <minimumf>, %287, %cst_259 [1] : vector<16x256xf32> to vector<16xf32>
    %291 = vector.shape_cast %290 : vector<16xf32> to vector<16x1xf32>
    %292 = vector.broadcast %291 : vector<16x1xf32> to vector<16x256xf32>
    %293 = arith.cmpf ole, %287, %292 : vector<16x256xf32>
    %cst_260 = arith.constant 2.560000e+02 : f32
    %294 = vector.broadcast %cst_260 : f32 to vector<16x256xf32>
    %295 = arith.select %293, %289, %294 : vector<16x256xi1>, vector<16x256xf32>
    %cst_261 = arith.constant dense<0x7F800000> : vector<16xf32>
    %296 = vector.multi_reduction <minimumf>, %295, %cst_261 [1] : vector<16x256xf32> to vector<16xf32>
    %297 = vector.shape_cast %296 : vector<16xf32> to vector<16x1xf32>
    %298 = vector.broadcast %297 : vector<16x1xf32> to vector<16x256xf32>
    %299 = arith.cmpf oeq, %289, %298 : vector<16x256xf32>
    %300 = arith.extui %299 : vector<16x256xi1> to vector<16x256xi32>
    %301 = arith.sitofp %300 : vector<16x256xi32> to vector<16x256xf32>
    %c0_262 = arith.constant 0 : index
    %c0_263 = arith.constant 0 : index
    %302 = vector.load %arg67[%c0_262, %c0_263] : memref<256x128xf32, #tpu.memory_space<vmem>>, vector<256x128xf32>
    %cst_264 = arith.constant dense<0.000000e+00> : vector<16x128xf32>
    %303 = tpu.matmul %301, %302, %cst_264 {dimension_numbers = #tpu.dot_dimension_numbers<[1], [0], [0], [1], [0, 0, 1, 1], [], []>} : vector<16x256xf32>, vector<256x128xf32>, vector<16x128xf32> -> vector<16x128xf32>
    %cst_265 = arith.constant 1.000000e+00 : f32
    %304 = vector.broadcast %cst_265 : f32 to vector<1x16xf32>
    %305 = arith.subf %282, %303 : vector<16x128xf32>
    %306 = arith.subf %282, %303 : vector<16x128xf32>
    %307 = arith.mulf %305, %306 : vector<16x128xf32>
    %cst_266 = arith.constant dense<0.000000e+00> : vector<16xf32>
    %308 = vector.multi_reduction <add>, %307, %cst_266 [1] : vector<16x128xf32> to vector<16xf32>
    %309 = vector.shape_cast %308 : vector<16xf32> to vector<16x1xf32>
    %cst_267 = arith.constant dense<0.000000e+00> : vector<1x1xf32>
    %310 = tpu.matmul %304, %309, %cst_267 {dimension_numbers = #tpu.dot_dimension_numbers<[1], [0], [0], [1], [0, 0, 1, 1], [], []>} : vector<1x16xf32>, vector<16x1xf32>, vector<1x1xf32> -> vector<1x1xf32>
    %cst_268 = arith.constant 2.048000e+03 : f32
    %311 = vector.broadcast %cst_268 : f32 to vector<1x1xf32>
    %312 = arith.divf %310, %311 : vector<1x1xf32>
    %cst_269 = arith.constant dense<0.000000e+00> : vector<1x256xf32>
    %313 = tpu.matmul %304, %301, %cst_269 {dimension_numbers = #tpu.dot_dimension_numbers<[1], [0], [0], [1], [0, 0, 1, 1], [], []>} : vector<1x16xf32>, vector<16x256xf32>, vector<1x256xf32> -> vector<1x256xf32>
    %cst_270 = arith.constant 6.250000e-02 : f32
    %314 = vector.broadcast %cst_270 : f32 to vector<1x256xf32>
    %315 = arith.mulf %313, %314 : vector<1x256xf32>
    %cst_271 = arith.constant 1.000000e-07 : f32
    %316 = vector.broadcast %cst_271 : f32 to vector<1x256xf32>
    %317 = arith.addf %315, %316 : vector<1x256xf32>
    %318 = math.log %317 : vector<1x256xf32>
    %319 = arith.mulf %315, %318 : vector<1x256xf32>
    %cst_272 = arith.constant dense<0.000000e+00> : vector<1xf32>
    %320 = vector.multi_reduction <add>, %319, %cst_272 [1] : vector<1x256xf32> to vector<1xf32>
    %321 = vector.shape_cast %320 : vector<1xf32> to vector<1x1xf32>
    %cst_273 = arith.constant 0.000000e+00 : f32
    %322 = vector.broadcast %cst_273 : f32 to vector<1x1xf32>
    %323 = arith.subf %322, %321 : vector<1x1xf32>
    %324 = math.exp %323 : vector<1x1xf32>
    %325 = arith.truncf %303 : vector<16x128xf32> to vector<16x128xbf16>
    %c0_274 = arith.constant 0 : index
    %c0_275 = arith.constant 0 : index
    %c0_276 = arith.constant 0 : index
    %326 = vector.load %arg27[%c0_274, %c0_275, %c0_276] : memref<3x16x16xbf16, #tpu.memory_space<vmem>>, vector<1x16x16xbf16>
    %327 = vector.shape_cast %326 : vector<1x16x16xbf16> to vector<16x16xbf16>
    %cst_277 = arith.constant dense<0.000000e+00> : vector<16x128xf32>
    %328 = tpu.matmul %327, %325, %cst_277 {dimension_numbers = #tpu.dot_dimension_numbers<[1], [0], [0], [1], [0, 0, 1, 1], [], []>} : vector<16x16xbf16>, vector<16x128xbf16>, vector<16x128xf32> -> vector<16x128xf32>
    %329 = arith.truncf %328 : vector<16x128xf32> to vector<16x128xbf16>
    %c0_278 = arith.constant 0 : index
    %c0_279 = arith.constant 0 : index
    %c0_280 = arith.constant 0 : index
    %330 = vector.load %arg28[%c0_278, %c0_279, %c0_280] : memref<3x128x128xbf16, #tpu.memory_space<vmem>>, vector<1x128x128xbf16>
    %331 = vector.shape_cast %330 : vector<1x128x128xbf16> to vector<128x128xbf16>
    %cst_281 = arith.constant dense<0.000000e+00> : vector<16x128xf32>
    %332 = tpu.matmul %329, %331, %cst_281 {dimension_numbers = #tpu.dot_dimension_numbers<[1], [0], [0], [1], [0, 0, 1, 1], [], []>} : vector<16x128xbf16>, vector<128x128xbf16>, vector<16x128xf32> -> vector<16x128xf32>
    %c1_282 = arith.constant 1 : index
    %c0_283 = arith.constant 0 : index
    %c0_284 = arith.constant 0 : index
    %333 = vector.load %arg27[%c1_282, %c0_283, %c0_284] : memref<3x16x16xbf16, #tpu.memory_space<vmem>>, vector<1x16x16xbf16>
    %334 = vector.shape_cast %333 : vector<1x16x16xbf16> to vector<16x16xbf16>
    %cst_285 = arith.constant dense<0.000000e+00> : vector<16x128xf32>
    %335 = tpu.matmul %334, %325, %cst_285 {dimension_numbers = #tpu.dot_dimension_numbers<[1], [0], [0], [1], [0, 0, 1, 1], [], []>} : vector<16x16xbf16>, vector<16x128xbf16>, vector<16x128xf32> -> vector<16x128xf32>
    %336 = arith.truncf %335 : vector<16x128xf32> to vector<16x128xbf16>
    %c1_286 = arith.constant 1 : index
    %c0_287 = arith.constant 0 : index
    %c0_288 = arith.constant 0 : index
    %337 = vector.load %arg28[%c1_286, %c0_287, %c0_288] : memref<3x128x128xbf16, #tpu.memory_space<vmem>>, vector<1x128x128xbf16>
    %338 = vector.shape_cast %337 : vector<1x128x128xbf16> to vector<128x128xbf16>
    %cst_289 = arith.constant dense<0.000000e+00> : vector<16x128xf32>
    %339 = tpu.matmul %336, %338, %cst_289 {dimension_numbers = #tpu.dot_dimension_numbers<[1], [0], [0], [1], [0, 0, 1, 1], [], []>} : vector<16x128xbf16>, vector<128x128xbf16>, vector<16x128xf32> -> vector<16x128xf32>
    %340 = arith.addf %332, %339 : vector<16x128xf32>
    %c2_290 = arith.constant 2 : index
    %c0_291 = arith.constant 0 : index
    %c0_292 = arith.constant 0 : index
    %341 = vector.load %arg27[%c2_290, %c0_291, %c0_292] : memref<3x16x16xbf16, #tpu.memory_space<vmem>>, vector<1x16x16xbf16>
    %342 = vector.shape_cast %341 : vector<1x16x16xbf16> to vector<16x16xbf16>
    %cst_293 = arith.constant dense<0.000000e+00> : vector<16x128xf32>
    %343 = tpu.matmul %342, %325, %cst_293 {dimension_numbers = #tpu.dot_dimension_numbers<[1], [0], [0], [1], [0, 0, 1, 1], [], []>} : vector<16x16xbf16>, vector<16x128xbf16>, vector<16x128xf32> -> vector<16x128xf32>
    %344 = arith.truncf %343 : vector<16x128xf32> to vector<16x128xbf16>
    %c2_294 = arith.constant 2 : index
    %c0_295 = arith.constant 0 : index
    %c0_296 = arith.constant 0 : index
    %345 = vector.load %arg28[%c2_294, %c0_295, %c0_296] : memref<3x128x128xbf16, #tpu.memory_space<vmem>>, vector<1x128x128xbf16>
    %346 = vector.shape_cast %345 : vector<1x128x128xbf16> to vector<128x128xbf16>
    %cst_297 = arith.constant dense<0.000000e+00> : vector<16x128xf32>
    %347 = tpu.matmul %344, %346, %cst_297 {dimension_numbers = #tpu.dot_dimension_numbers<[1], [0], [0], [1], [0, 0, 1, 1], [], []>} : vector<16x128xbf16>, vector<128x128xbf16>, vector<16x128xf32> -> vector<16x128xf32>
    %348 = arith.addf %340, %347 : vector<16x128xf32>
    %c0_298 = arith.constant 0 : index
    %c0_299 = arith.constant 0 : index
    %349 = vector.load %arg26[%c0_298, %c0_299] : memref<1x128xf32, #tpu.memory_space<vmem>>, vector<1x128xf32>
    %350 = vector.broadcast %349 : vector<1x128xf32> to vector<16x128xf32>
    %351 = arith.addf %348, %350 : vector<16x128xf32>
    %cst_300 = arith.constant 0.000000e+00 : f32
    %352 = vector.broadcast %cst_300 : f32 to vector<16x128xf32>
    %353 = arith.maximumf %351, %352 : vector<16x128xf32>
    %cst_301 = arith.constant 0.000000e+00 : f32
    %354 = vector.broadcast %cst_301 : f32 to vector<16x128xf32>
    %355 = arith.maximumf %353, %354 : vector<16x128xf32>
    %356 = arith.truncf %355 : vector<16x128xf32> to vector<16x128xbf16>
    %c0_302 = arith.constant 0 : index
    %c0_303 = arith.constant 0 : index
    %c0_304 = arith.constant 0 : index
    %357 = vector.load %arg4[%c0_302, %c0_303, %c0_304] : memref<3x16x16xbf16, #tpu.memory_space<vmem>>, vector<1x16x16xbf16>
    %358 = vector.shape_cast %357 : vector<1x16x16xbf16> to vector<16x16xbf16>
    %cst_305 = arith.constant dense<0.000000e+00> : vector<16x128xf32>
    %359 = tpu.matmul %358, %356, %cst_305 {dimension_numbers = #tpu.dot_dimension_numbers<[1], [0], [0], [1], [0, 0, 1, 1], [], []>} : vector<16x16xbf16>, vector<16x128xbf16>, vector<16x128xf32> -> vector<16x128xf32>
    %360 = arith.truncf %359 : vector<16x128xf32> to vector<16x128xbf16>
    %c0_306 = arith.constant 0 : index
    %c0_307 = arith.constant 0 : index
    %c0_308 = arith.constant 0 : index
    %361 = vector.load %arg5[%c0_306, %c0_307, %c0_308] : memref<3x128x128xbf16, #tpu.memory_space<vmem>>, vector<1x128x128xbf16>
    %362 = vector.shape_cast %361 : vector<1x128x128xbf16> to vector<128x128xbf16>
    %cst_309 = arith.constant dense<0.000000e+00> : vector<16x128xf32>
    %363 = tpu.matmul %360, %362, %cst_309 {dimension_numbers = #tpu.dot_dimension_numbers<[1], [0], [0], [1], [0, 0, 1, 1], [], []>} : vector<16x128xbf16>, vector<128x128xbf16>, vector<16x128xf32> -> vector<16x128xf32>
    %c1_310 = arith.constant 1 : index
    %c0_311 = arith.constant 0 : index
    %c0_312 = arith.constant 0 : index
    %364 = vector.load %arg4[%c1_310, %c0_311, %c0_312] : memref<3x16x16xbf16, #tpu.memory_space<vmem>>, vector<1x16x16xbf16>
    %365 = vector.shape_cast %364 : vector<1x16x16xbf16> to vector<16x16xbf16>
    %cst_313 = arith.constant dense<0.000000e+00> : vector<16x128xf32>
    %366 = tpu.matmul %365, %356, %cst_313 {dimension_numbers = #tpu.dot_dimension_numbers<[1], [0], [0], [1], [0, 0, 1, 1], [], []>} : vector<16x16xbf16>, vector<16x128xbf16>, vector<16x128xf32> -> vector<16x128xf32>
    %367 = arith.truncf %366 : vector<16x128xf32> to vector<16x128xbf16>
    %c1_314 = arith.constant 1 : index
    %c0_315 = arith.constant 0 : index
    %c0_316 = arith.constant 0 : index
    %368 = vector.load %arg5[%c1_314, %c0_315, %c0_316] : memref<3x128x128xbf16, #tpu.memory_space<vmem>>, vector<1x128x128xbf16>
    %369 = vector.shape_cast %368 : vector<1x128x128xbf16> to vector<128x128xbf16>
    %cst_317 = arith.constant dense<0.000000e+00> : vector<16x128xf32>
    %370 = tpu.matmul %367, %369, %cst_317 {dimension_numbers = #tpu.dot_dimension_numbers<[1], [0], [0], [1], [0, 0, 1, 1], [], []>} : vector<16x128xbf16>, vector<128x128xbf16>, vector<16x128xf32> -> vector<16x128xf32>
    %371 = arith.addf %363, %370 : vector<16x128xf32>
    %c2_318 = arith.constant 2 : index
    %c0_319 = arith.constant 0 : index
    %c0_320 = arith.constant 0 : index
    %372 = vector.load %arg4[%c2_318, %c0_319, %c0_320] : memref<3x16x16xbf16, #tpu.memory_space<vmem>>, vector<1x16x16xbf16>
    %373 = vector.shape_cast %372 : vector<1x16x16xbf16> to vector<16x16xbf16>
    %cst_321 = arith.constant dense<0.000000e+00> : vector<16x128xf32>
    %374 = tpu.matmul %373, %356, %cst_321 {dimension_numbers = #tpu.dot_dimension_numbers<[1], [0], [0], [1], [0, 0, 1, 1], [], []>} : vector<16x16xbf16>, vector<16x128xbf16>, vector<16x128xf32> -> vector<16x128xf32>
    %375 = arith.truncf %374 : vector<16x128xf32> to vector<16x128xbf16>
    %c2_322 = arith.constant 2 : index
    %c0_323 = arith.constant 0 : index
    %c0_324 = arith.constant 0 : index
    %376 = vector.load %arg5[%c2_322, %c0_323, %c0_324] : memref<3x128x128xbf16, #tpu.memory_space<vmem>>, vector<1x128x128xbf16>
    %377 = vector.shape_cast %376 : vector<1x128x128xbf16> to vector<128x128xbf16>
    %cst_325 = arith.constant dense<0.000000e+00> : vector<16x128xf32>
    %378 = tpu.matmul %375, %377, %cst_325 {dimension_numbers = #tpu.dot_dimension_numbers<[1], [0], [0], [1], [0, 0, 1, 1], [], []>} : vector<16x128xbf16>, vector<128x128xbf16>, vector<16x128xf32> -> vector<16x128xf32>
    %379 = arith.addf %371, %378 : vector<16x128xf32>
    %c0_326 = arith.constant 0 : index
    %c0_327 = arith.constant 0 : index
    %380 = vector.load %arg3[%c0_326, %c0_327] : memref<1x128xf32, #tpu.memory_space<vmem>>, vector<1x128xf32>
    %381 = vector.broadcast %380 : vector<1x128xf32> to vector<16x128xf32>
    %382 = arith.addf %379, %381 : vector<16x128xf32>
    %cst_328 = arith.constant 0.000000e+00 : f32
    %383 = vector.broadcast %cst_328 : f32 to vector<16x128xf32>
    %384 = arith.maximumf %382, %383 : vector<16x128xf32>
    %385 = arith.truncf %384 : vector<16x128xf32> to vector<16x128xbf16>
    %c0_329 = arith.constant 0 : index
    %c0_330 = arith.constant 0 : index
    %c0_331 = arith.constant 0 : index
    %386 = vector.load %arg7[%c0_329, %c0_330, %c0_331] : memref<1x128x128xbf16, #tpu.memory_space<vmem>>, vector<1x128x128xbf16>
    %387 = vector.shape_cast %386 : vector<1x128x128xbf16> to vector<128x128xbf16>
    %cst_332 = arith.constant dense<0.000000e+00> : vector<16x128xf32>
    %388 = tpu.matmul %385, %387, %cst_332 {dimension_numbers = #tpu.dot_dimension_numbers<[1], [0], [0], [1], [0, 0, 1, 1], [], []>} : vector<16x128xbf16>, vector<128x128xbf16>, vector<16x128xf32> -> vector<16x128xf32>
    %c0_333 = arith.constant 0 : index
    %c0_334 = arith.constant 0 : index
    %389 = vector.load %arg6[%c0_333, %c0_334] : memref<1x128xf32, #tpu.memory_space<vmem>>, vector<1x128xf32>
    %390 = vector.broadcast %389 : vector<1x128xf32> to vector<16x128xf32>
    %391 = arith.addf %388, %390 : vector<16x128xf32>
    %392 = arith.addf %353, %391 : vector<16x128xf32>
    %cst_335 = arith.constant 0.000000e+00 : f32
    %393 = vector.broadcast %cst_335 : f32 to vector<16x128xf32>
    %394 = arith.maximumf %392, %393 : vector<16x128xf32>
    %395 = arith.truncf %394 : vector<16x128xf32> to vector<16x128xbf16>
    %c0_336 = arith.constant 0 : index
    %c0_337 = arith.constant 0 : index
    %c0_338 = arith.constant 0 : index
    %396 = vector.load %arg9[%c0_336, %c0_337, %c0_338] : memref<3x16x16xbf16, #tpu.memory_space<vmem>>, vector<1x16x16xbf16>
    %397 = vector.shape_cast %396 : vector<1x16x16xbf16> to vector<16x16xbf16>
    %cst_339 = arith.constant dense<0.000000e+00> : vector<16x128xf32>
    %398 = tpu.matmul %397, %395, %cst_339 {dimension_numbers = #tpu.dot_dimension_numbers<[1], [0], [0], [1], [0, 0, 1, 1], [], []>} : vector<16x16xbf16>, vector<16x128xbf16>, vector<16x128xf32> -> vector<16x128xf32>
    %399 = arith.truncf %398 : vector<16x128xf32> to vector<16x128xbf16>
    %c0_340 = arith.constant 0 : index
    %c0_341 = arith.constant 0 : index
    %c0_342 = arith.constant 0 : index
    %400 = vector.load %arg10[%c0_340, %c0_341, %c0_342] : memref<3x128x128xbf16, #tpu.memory_space<vmem>>, vector<1x128x128xbf16>
    %401 = vector.shape_cast %400 : vector<1x128x128xbf16> to vector<128x128xbf16>
    %cst_343 = arith.constant dense<0.000000e+00> : vector<16x128xf32>
    %402 = tpu.matmul %399, %401, %cst_343 {dimension_numbers = #tpu.dot_dimension_numbers<[1], [0], [0], [1], [0, 0, 1, 1], [], []>} : vector<16x128xbf16>, vector<128x128xbf16>, vector<16x128xf32> -> vector<16x128xf32>
    %c1_344 = arith.constant 1 : index
    %c0_345 = arith.constant 0 : index
    %c0_346 = arith.constant 0 : index
    %403 = vector.load %arg9[%c1_344, %c0_345, %c0_346] : memref<3x16x16xbf16, #tpu.memory_space<vmem>>, vector<1x16x16xbf16>
    %404 = vector.shape_cast %403 : vector<1x16x16xbf16> to vector<16x16xbf16>
    %cst_347 = arith.constant dense<0.000000e+00> : vector<16x128xf32>
    %405 = tpu.matmul %404, %395, %cst_347 {dimension_numbers = #tpu.dot_dimension_numbers<[1], [0], [0], [1], [0, 0, 1, 1], [], []>} : vector<16x16xbf16>, vector<16x128xbf16>, vector<16x128xf32> -> vector<16x128xf32>
    %406 = arith.truncf %405 : vector<16x128xf32> to vector<16x128xbf16>
    %c1_348 = arith.constant 1 : index
    %c0_349 = arith.constant 0 : index
    %c0_350 = arith.constant 0 : index
    %407 = vector.load %arg10[%c1_348, %c0_349, %c0_350] : memref<3x128x128xbf16, #tpu.memory_space<vmem>>, vector<1x128x128xbf16>
    %408 = vector.shape_cast %407 : vector<1x128x128xbf16> to vector<128x128xbf16>
    %cst_351 = arith.constant dense<0.000000e+00> : vector<16x128xf32>
    %409 = tpu.matmul %406, %408, %cst_351 {dimension_numbers = #tpu.dot_dimension_numbers<[1], [0], [0], [1], [0, 0, 1, 1], [], []>} : vector<16x128xbf16>, vector<128x128xbf16>, vector<16x128xf32> -> vector<16x128xf32>
    %410 = arith.addf %402, %409 : vector<16x128xf32>
    %c2_352 = arith.constant 2 : index
    %c0_353 = arith.constant 0 : index
    %c0_354 = arith.constant 0 : index
    %411 = vector.load %arg9[%c2_352, %c0_353, %c0_354] : memref<3x16x16xbf16, #tpu.memory_space<vmem>>, vector<1x16x16xbf16>
    %412 = vector.shape_cast %411 : vector<1x16x16xbf16> to vector<16x16xbf16>
    %cst_355 = arith.constant dense<0.000000e+00> : vector<16x128xf32>
    %413 = tpu.matmul %412, %395, %cst_355 {dimension_numbers = #tpu.dot_dimension_numbers<[1], [0], [0], [1], [0, 0, 1, 1], [], []>} : vector<16x16xbf16>, vector<16x128xbf16>, vector<16x128xf32> -> vector<16x128xf32>
    %414 = arith.truncf %413 : vector<16x128xf32> to vector<16x128xbf16>
    %c2_356 = arith.constant 2 : index
    %c0_357 = arith.constant 0 : index
    %c0_358 = arith.constant 0 : index
    %415 = vector.load %arg10[%c2_356, %c0_357, %c0_358] : memref<3x128x128xbf16, #tpu.memory_space<vmem>>, vector<1x128x128xbf16>
    %416 = vector.shape_cast %415 : vector<1x128x128xbf16> to vector<128x128xbf16>
    %cst_359 = arith.constant dense<0.000000e+00> : vector<16x128xf32>
    %417 = tpu.matmul %414, %416, %cst_359 {dimension_numbers = #tpu.dot_dimension_numbers<[1], [0], [0], [1], [0, 0, 1, 1], [], []>} : vector<16x128xbf16>, vector<128x128xbf16>, vector<16x128xf32> -> vector<16x128xf32>
    %418 = arith.addf %410, %417 : vector<16x128xf32>
    %c0_360 = arith.constant 0 : index
    %c0_361 = arith.constant 0 : index
    %419 = vector.load %arg8[%c0_360, %c0_361] : memref<1x128xf32, #tpu.memory_space<vmem>>, vector<1x128xf32>
    %420 = vector.broadcast %419 : vector<1x128xf32> to vector<16x128xf32>
    %421 = arith.addf %418, %420 : vector<16x128xf32>
    %cst_362 = arith.constant 0.000000e+00 : f32
    %422 = vector.broadcast %cst_362 : f32 to vector<16x128xf32>
    %423 = arith.maximumf %421, %422 : vector<16x128xf32>
    %424 = arith.truncf %423 : vector<16x128xf32> to vector<16x128xbf16>
    %c0_363 = arith.constant 0 : index
    %c0_364 = arith.constant 0 : index
    %c0_365 = arith.constant 0 : index
    %425 = vector.load %arg12[%c0_363, %c0_364, %c0_365] : memref<1x128x128xbf16, #tpu.memory_space<vmem>>, vector<1x128x128xbf16>
    %426 = vector.shape_cast %425 : vector<1x128x128xbf16> to vector<128x128xbf16>
    %cst_366 = arith.constant dense<0.000000e+00> : vector<16x128xf32>
    %427 = tpu.matmul %424, %426, %cst_366 {dimension_numbers = #tpu.dot_dimension_numbers<[1], [0], [0], [1], [0, 0, 1, 1], [], []>} : vector<16x128xbf16>, vector<128x128xbf16>, vector<16x128xf32> -> vector<16x128xf32>
    %c0_367 = arith.constant 0 : index
    %c0_368 = arith.constant 0 : index
    %428 = vector.load %arg11[%c0_367, %c0_368] : memref<1x128xf32, #tpu.memory_space<vmem>>, vector<1x128xf32>
    %429 = vector.broadcast %428 : vector<1x128xf32> to vector<16x128xf32>
    %430 = arith.addf %427, %429 : vector<16x128xf32>
    %431 = arith.addf %392, %430 : vector<16x128xf32>
    %432 = arith.truncf %431 : vector<16x128xf32> to vector<16x128xbf16>
    %c0_369 = arith.constant 0 : index
    %c0_370 = arith.constant 0 : index
    %c0_371 = arith.constant 0 : index
    %433 = vector.load %arg1[%c0_369, %c0_370, %c0_371] : memref<3x32x16xbf16, #tpu.memory_space<vmem>>, vector<1x32x16xbf16>
    %434 = vector.shape_cast %433 : vector<1x32x16xbf16> to vector<32x16xbf16>
    %cst_372 = arith.constant dense<0.000000e+00> : vector<32x128xf32>
    %435 = tpu.matmul %434, %432, %cst_372 {dimension_numbers = #tpu.dot_dimension_numbers<[1], [0], [0], [1], [0, 0, 1, 1], [], []>} : vector<32x16xbf16>, vector<16x128xbf16>, vector<32x128xf32> -> vector<32x128xf32>
    %436 = arith.truncf %435 : vector<32x128xf32> to vector<32x128xbf16>
    %c0_373 = arith.constant 0 : index
    %c0_374 = arith.constant 0 : index
    %c0_375 = arith.constant 0 : index
    %437 = vector.load %arg2[%c0_373, %c0_374, %c0_375] : memref<3x128x128xbf16, #tpu.memory_space<vmem>>, vector<1x128x128xbf16>
    %438 = vector.shape_cast %437 : vector<1x128x128xbf16> to vector<128x128xbf16>
    %cst_376 = arith.constant dense<0.000000e+00> : vector<32x128xf32>
    %439 = tpu.matmul %436, %438, %cst_376 {dimension_numbers = #tpu.dot_dimension_numbers<[1], [0], [0], [1], [0, 0, 1, 1], [], []>} : vector<32x128xbf16>, vector<128x128xbf16>, vector<32x128xf32> -> vector<32x128xf32>
    %c1_377 = arith.constant 1 : index
    %c0_378 = arith.constant 0 : index
    %c0_379 = arith.constant 0 : index
    %440 = vector.load %arg1[%c1_377, %c0_378, %c0_379] : memref<3x32x16xbf16, #tpu.memory_space<vmem>>, vector<1x32x16xbf16>
    %441 = vector.shape_cast %440 : vector<1x32x16xbf16> to vector<32x16xbf16>
    %cst_380 = arith.constant dense<0.000000e+00> : vector<32x128xf32>
    %442 = tpu.matmul %441, %432, %cst_380 {dimension_numbers = #tpu.dot_dimension_numbers<[1], [0], [0], [1], [0, 0, 1, 1], [], []>} : vector<32x16xbf16>, vector<16x128xbf16>, vector<32x128xf32> -> vector<32x128xf32>
    %443 = arith.truncf %442 : vector<32x128xf32> to vector<32x128xbf16>
    %c1_381 = arith.constant 1 : index
    %c0_382 = arith.constant 0 : index
    %c0_383 = arith.constant 0 : index
    %444 = vector.load %arg2[%c1_381, %c0_382, %c0_383] : memref<3x128x128xbf16, #tpu.memory_space<vmem>>, vector<1x128x128xbf16>
    %445 = vector.shape_cast %444 : vector<1x128x128xbf16> to vector<128x128xbf16>
    %cst_384 = arith.constant dense<0.000000e+00> : vector<32x128xf32>
    %446 = tpu.matmul %443, %445, %cst_384 {dimension_numbers = #tpu.dot_dimension_numbers<[1], [0], [0], [1], [0, 0, 1, 1], [], []>} : vector<32x128xbf16>, vector<128x128xbf16>, vector<32x128xf32> -> vector<32x128xf32>
    %447 = arith.addf %439, %446 : vector<32x128xf32>
    %c2_385 = arith.constant 2 : index
    %c0_386 = arith.constant 0 : index
    %c0_387 = arith.constant 0 : index
    %448 = vector.load %arg1[%c2_385, %c0_386, %c0_387] : memref<3x32x16xbf16, #tpu.memory_space<vmem>>, vector<1x32x16xbf16>
    %449 = vector.shape_cast %448 : vector<1x32x16xbf16> to vector<32x16xbf16>
    %cst_388 = arith.constant dense<0.000000e+00> : vector<32x128xf32>
    %450 = tpu.matmul %449, %432, %cst_388 {dimension_numbers = #tpu.dot_dimension_numbers<[1], [0], [0], [1], [0, 0, 1, 1], [], []>} : vector<32x16xbf16>, vector<16x128xbf16>, vector<32x128xf32> -> vector<32x128xf32>
    %451 = arith.truncf %450 : vector<32x128xf32> to vector<32x128xbf16>
    %c2_389 = arith.constant 2 : index
    %c0_390 = arith.constant 0 : index
    %c0_391 = arith.constant 0 : index
    %452 = vector.load %arg2[%c2_389, %c0_390, %c0_391] : memref<3x128x128xbf16, #tpu.memory_space<vmem>>, vector<1x128x128xbf16>
    %453 = vector.shape_cast %452 : vector<1x128x128xbf16> to vector<128x128xbf16>
    %cst_392 = arith.constant dense<0.000000e+00> : vector<32x128xf32>
    %454 = tpu.matmul %451, %453, %cst_392 {dimension_numbers = #tpu.dot_dimension_numbers<[1], [0], [0], [1], [0, 0, 1, 1], [], []>} : vector<32x128xbf16>, vector<128x128xbf16>, vector<32x128xf32> -> vector<32x128xf32>
    %455 = arith.addf %447, %454 : vector<32x128xf32>
    %c0_393 = arith.constant 0 : index
    %c0_394 = arith.constant 0 : index
    %456 = vector.load %arg0[%c0_393, %c0_394] : memref<1x128xf32, #tpu.memory_space<vmem>>, vector<1x128xf32>
    %457 = vector.broadcast %456 : vector<1x128xf32> to vector<32x128xf32>
    %458 = arith.addf %455, %457 : vector<32x128xf32>
    %cst_395 = arith.constant 0.000000e+00 : f32
    %459 = vector.broadcast %cst_395 : f32 to vector<32x128xf32>
    %460 = arith.maximumf %458, %459 : vector<32x128xf32>
    %461 = arith.truncf %460 : vector<32x128xf32> to vector<32x128xbf16>
    %c0_396 = arith.constant 0 : index
    %c0_397 = arith.constant 0 : index
    %c0_398 = arith.constant 0 : index
    %462 = vector.load %arg17[%c0_396, %c0_397, %c0_398] : memref<3x32x32xbf16, #tpu.memory_space<vmem>>, vector<1x32x32xbf16>
    %463 = vector.shape_cast %462 : vector<1x32x32xbf16> to vector<32x32xbf16>
    %cst_399 = arith.constant dense<0.000000e+00> : vector<32x128xf32>
    %464 = tpu.matmul %463, %461, %cst_399 {dimension_numbers = #tpu.dot_dimension_numbers<[1], [0], [0], [1], [0, 0, 1, 1], [], []>} : vector<32x32xbf16>, vector<32x128xbf16>, vector<32x128xf32> -> vector<32x128xf32>
    %465 = arith.truncf %464 : vector<32x128xf32> to vector<32x128xbf16>
    %c0_400 = arith.constant 0 : index
    %c0_401 = arith.constant 0 : index
    %c0_402 = arith.constant 0 : index
    %466 = vector.load %arg18[%c0_400, %c0_401, %c0_402] : memref<3x128x128xbf16, #tpu.memory_space<vmem>>, vector<1x128x128xbf16>
    %467 = vector.shape_cast %466 : vector<1x128x128xbf16> to vector<128x128xbf16>
    %cst_403 = arith.constant dense<0.000000e+00> : vector<32x128xf32>
    %468 = tpu.matmul %465, %467, %cst_403 {dimension_numbers = #tpu.dot_dimension_numbers<[1], [0], [0], [1], [0, 0, 1, 1], [], []>} : vector<32x128xbf16>, vector<128x128xbf16>, vector<32x128xf32> -> vector<32x128xf32>
    %c1_404 = arith.constant 1 : index
    %c0_405 = arith.constant 0 : index
    %c0_406 = arith.constant 0 : index
    %469 = vector.load %arg17[%c1_404, %c0_405, %c0_406] : memref<3x32x32xbf16, #tpu.memory_space<vmem>>, vector<1x32x32xbf16>
    %470 = vector.shape_cast %469 : vector<1x32x32xbf16> to vector<32x32xbf16>
    %cst_407 = arith.constant dense<0.000000e+00> : vector<32x128xf32>
    %471 = tpu.matmul %470, %461, %cst_407 {dimension_numbers = #tpu.dot_dimension_numbers<[1], [0], [0], [1], [0, 0, 1, 1], [], []>} : vector<32x32xbf16>, vector<32x128xbf16>, vector<32x128xf32> -> vector<32x128xf32>
    %472 = arith.truncf %471 : vector<32x128xf32> to vector<32x128xbf16>
    %c1_408 = arith.constant 1 : index
    %c0_409 = arith.constant 0 : index
    %c0_410 = arith.constant 0 : index
    %473 = vector.load %arg18[%c1_408, %c0_409, %c0_410] : memref<3x128x128xbf16, #tpu.memory_space<vmem>>, vector<1x128x128xbf16>
    %474 = vector.shape_cast %473 : vector<1x128x128xbf16> to vector<128x128xbf16>
    %cst_411 = arith.constant dense<0.000000e+00> : vector<32x128xf32>
    %475 = tpu.matmul %472, %474, %cst_411 {dimension_numbers = #tpu.dot_dimension_numbers<[1], [0], [0], [1], [0, 0, 1, 1], [], []>} : vector<32x128xbf16>, vector<128x128xbf16>, vector<32x128xf32> -> vector<32x128xf32>
    %476 = arith.addf %468, %475 : vector<32x128xf32>
    %c2_412 = arith.constant 2 : index
    %c0_413 = arith.constant 0 : index
    %c0_414 = arith.constant 0 : index
    %477 = vector.load %arg17[%c2_412, %c0_413, %c0_414] : memref<3x32x32xbf16, #tpu.memory_space<vmem>>, vector<1x32x32xbf16>
    %478 = vector.shape_cast %477 : vector<1x32x32xbf16> to vector<32x32xbf16>
    %cst_415 = arith.constant dense<0.000000e+00> : vector<32x128xf32>
    %479 = tpu.matmul %478, %461, %cst_415 {dimension_numbers = #tpu.dot_dimension_numbers<[1], [0], [0], [1], [0, 0, 1, 1], [], []>} : vector<32x32xbf16>, vector<32x128xbf16>, vector<32x128xf32> -> vector<32x128xf32>
    %480 = arith.truncf %479 : vector<32x128xf32> to vector<32x128xbf16>
    %c2_416 = arith.constant 2 : index
    %c0_417 = arith.constant 0 : index
    %c0_418 = arith.constant 0 : index
    %481 = vector.load %arg18[%c2_416, %c0_417, %c0_418] : memref<3x128x128xbf16, #tpu.memory_space<vmem>>, vector<1x128x128xbf16>
    %482 = vector.shape_cast %481 : vector<1x128x128xbf16> to vector<128x128xbf16>
    %cst_419 = arith.constant dense<0.000000e+00> : vector<32x128xf32>
    %483 = tpu.matmul %480, %482, %cst_419 {dimension_numbers = #tpu.dot_dimension_numbers<[1], [0], [0], [1], [0, 0, 1, 1], [], []>} : vector<32x128xbf16>, vector<128x128xbf16>, vector<32x128xf32> -> vector<32x128xf32>
    %484 = arith.addf %476, %483 : vector<32x128xf32>
    %c0_420 = arith.constant 0 : index
    %c0_421 = arith.constant 0 : index
    %485 = vector.load %arg16[%c0_420, %c0_421] : memref<1x128xf32, #tpu.memory_space<vmem>>, vector<1x128xf32>
    %486 = vector.broadcast %485 : vector<1x128xf32> to vector<32x128xf32>
    %487 = arith.addf %484, %486 : vector<32x128xf32>
    %cst_422 = arith.constant 0.000000e+00 : f32
    %488 = vector.broadcast %cst_422 : f32 to vector<32x128xf32>
    %489 = arith.maximumf %487, %488 : vector<32x128xf32>
    %490 = arith.truncf %489 : vector<32x128xf32> to vector<32x128xbf16>
    %c0_423 = arith.constant 0 : index
    %c0_424 = arith.constant 0 : index
    %c0_425 = arith.constant 0 : index
    %491 = vector.load %arg20[%c0_423, %c0_424, %c0_425] : memref<1x128x128xbf16, #tpu.memory_space<vmem>>, vector<1x128x128xbf16>
    %492 = vector.shape_cast %491 : vector<1x128x128xbf16> to vector<128x128xbf16>
    %cst_426 = arith.constant dense<0.000000e+00> : vector<32x128xf32>
    %493 = tpu.matmul %490, %492, %cst_426 {dimension_numbers = #tpu.dot_dimension_numbers<[1], [0], [0], [1], [0, 0, 1, 1], [], []>} : vector<32x128xbf16>, vector<128x128xbf16>, vector<32x128xf32> -> vector<32x128xf32>
    %c0_427 = arith.constant 0 : index
    %c0_428 = arith.constant 0 : index
    %494 = vector.load %arg19[%c0_427, %c0_428] : memref<1x128xf32, #tpu.memory_space<vmem>>, vector<1x128xf32>
    %495 = vector.broadcast %494 : vector<1x128xf32> to vector<32x128xf32>
    %496 = arith.addf %493, %495 : vector<32x128xf32>
    %497 = arith.addf %458, %496 : vector<32x128xf32>
    %cst_429 = arith.constant 0.000000e+00 : f32
    %498 = vector.broadcast %cst_429 : f32 to vector<32x128xf32>
    %499 = arith.maximumf %497, %498 : vector<32x128xf32>
    %500 = arith.truncf %499 : vector<32x128xf32> to vector<32x128xbf16>
    %c0_430 = arith.constant 0 : index
    %c0_431 = arith.constant 0 : index
    %c0_432 = arith.constant 0 : index
    %501 = vector.load %arg22[%c0_430, %c0_431, %c0_432] : memref<3x32x32xbf16, #tpu.memory_space<vmem>>, vector<1x32x32xbf16>
    %502 = vector.shape_cast %501 : vector<1x32x32xbf16> to vector<32x32xbf16>
    %cst_433 = arith.constant dense<0.000000e+00> : vector<32x128xf32>
    %503 = tpu.matmul %502, %500, %cst_433 {dimension_numbers = #tpu.dot_dimension_numbers<[1], [0], [0], [1], [0, 0, 1, 1], [], []>} : vector<32x32xbf16>, vector<32x128xbf16>, vector<32x128xf32> -> vector<32x128xf32>
    %504 = arith.truncf %503 : vector<32x128xf32> to vector<32x128xbf16>
    %c0_434 = arith.constant 0 : index
    %c0_435 = arith.constant 0 : index
    %c0_436 = arith.constant 0 : index
    %505 = vector.load %arg23[%c0_434, %c0_435, %c0_436] : memref<3x128x128xbf16, #tpu.memory_space<vmem>>, vector<1x128x128xbf16>
    %506 = vector.shape_cast %505 : vector<1x128x128xbf16> to vector<128x128xbf16>
    %cst_437 = arith.constant dense<0.000000e+00> : vector<32x128xf32>
    %507 = tpu.matmul %504, %506, %cst_437 {dimension_numbers = #tpu.dot_dimension_numbers<[1], [0], [0], [1], [0, 0, 1, 1], [], []>} : vector<32x128xbf16>, vector<128x128xbf16>, vector<32x128xf32> -> vector<32x128xf32>
    %c1_438 = arith.constant 1 : index
    %c0_439 = arith.constant 0 : index
    %c0_440 = arith.constant 0 : index
    %508 = vector.load %arg22[%c1_438, %c0_439, %c0_440] : memref<3x32x32xbf16, #tpu.memory_space<vmem>>, vector<1x32x32xbf16>
    %509 = vector.shape_cast %508 : vector<1x32x32xbf16> to vector<32x32xbf16>
    %cst_441 = arith.constant dense<0.000000e+00> : vector<32x128xf32>
    %510 = tpu.matmul %509, %500, %cst_441 {dimension_numbers = #tpu.dot_dimension_numbers<[1], [0], [0], [1], [0, 0, 1, 1], [], []>} : vector<32x32xbf16>, vector<32x128xbf16>, vector<32x128xf32> -> vector<32x128xf32>
    %511 = arith.truncf %510 : vector<32x128xf32> to vector<32x128xbf16>
    %c1_442 = arith.constant 1 : index
    %c0_443 = arith.constant 0 : index
    %c0_444 = arith.constant 0 : index
    %512 = vector.load %arg23[%c1_442, %c0_443, %c0_444] : memref<3x128x128xbf16, #tpu.memory_space<vmem>>, vector<1x128x128xbf16>
    %513 = vector.shape_cast %512 : vector<1x128x128xbf16> to vector<128x128xbf16>
    %cst_445 = arith.constant dense<0.000000e+00> : vector<32x128xf32>
    %514 = tpu.matmul %511, %513, %cst_445 {dimension_numbers = #tpu.dot_dimension_numbers<[1], [0], [0], [1], [0, 0, 1, 1], [], []>} : vector<32x128xbf16>, vector<128x128xbf16>, vector<32x128xf32> -> vector<32x128xf32>
    %515 = arith.addf %507, %514 : vector<32x128xf32>
    %c2_446 = arith.constant 2 : index
    %c0_447 = arith.constant 0 : index
    %c0_448 = arith.constant 0 : index
    %516 = vector.load %arg22[%c2_446, %c0_447, %c0_448] : memref<3x32x32xbf16, #tpu.memory_space<vmem>>, vector<1x32x32xbf16>
    %517 = vector.shape_cast %516 : vector<1x32x32xbf16> to vector<32x32xbf16>
    %cst_449 = arith.constant dense<0.000000e+00> : vector<32x128xf32>
    %518 = tpu.matmul %517, %500, %cst_449 {dimension_numbers = #tpu.dot_dimension_numbers<[1], [0], [0], [1], [0, 0, 1, 1], [], []>} : vector<32x32xbf16>, vector<32x128xbf16>, vector<32x128xf32> -> vector<32x128xf32>
    %519 = arith.truncf %518 : vector<32x128xf32> to vector<32x128xbf16>
    %c2_450 = arith.constant 2 : index
    %c0_451 = arith.constant 0 : index
    %c0_452 = arith.constant 0 : index
    %520 = vector.load %arg23[%c2_450, %c0_451, %c0_452] : memref<3x128x128xbf16, #tpu.memory_space<vmem>>, vector<1x128x128xbf16>
    %521 = vector.shape_cast %520 : vector<1x128x128xbf16> to vector<128x128xbf16>
    %cst_453 = arith.constant dense<0.000000e+00> : vector<32x128xf32>
    %522 = tpu.matmul %519, %521, %cst_453 {dimension_numbers = #tpu.dot_dimension_numbers<[1], [0], [0], [1], [0, 0, 1, 1], [], []>} : vector<32x128xbf16>, vector<128x128xbf16>, vector<32x128xf32> -> vector<32x128xf32>
    %523 = arith.addf %515, %522 : vector<32x128xf32>
    %c0_454 = arith.constant 0 : index
    %c0_455 = arith.constant 0 : index
    %524 = vector.load %arg21[%c0_454, %c0_455] : memref<1x128xf32, #tpu.memory_space<vmem>>, vector<1x128xf32>
    %525 = vector.broadcast %524 : vector<1x128xf32> to vector<32x128xf32>
    %526 = arith.addf %523, %525 : vector<32x128xf32>
    %cst_456 = arith.constant 0.000000e+00 : f32
    %527 = vector.broadcast %cst_456 : f32 to vector<32x128xf32>
    %528 = arith.maximumf %526, %527 : vector<32x128xf32>
    %529 = arith.truncf %528 : vector<32x128xf32> to vector<32x128xbf16>
    %c0_457 = arith.constant 0 : index
    %c0_458 = arith.constant 0 : index
    %c0_459 = arith.constant 0 : index
    %530 = vector.load %arg25[%c0_457, %c0_458, %c0_459] : memref<1x128x128xbf16, #tpu.memory_space<vmem>>, vector<1x128x128xbf16>
    %531 = vector.shape_cast %530 : vector<1x128x128xbf16> to vector<128x128xbf16>
    %cst_460 = arith.constant dense<0.000000e+00> : vector<32x128xf32>
    %532 = tpu.matmul %529, %531, %cst_460 {dimension_numbers = #tpu.dot_dimension_numbers<[1], [0], [0], [1], [0, 0, 1, 1], [], []>} : vector<32x128xbf16>, vector<128x128xbf16>, vector<32x128xf32> -> vector<32x128xf32>
    %c0_461 = arith.constant 0 : index
    %c0_462 = arith.constant 0 : index
    %533 = vector.load %arg24[%c0_461, %c0_462] : memref<1x128xf32, #tpu.memory_space<vmem>>, vector<1x128xf32>
    %534 = vector.broadcast %533 : vector<1x128xf32> to vector<32x128xf32>
    %535 = arith.addf %532, %534 : vector<32x128xf32>
    %536 = arith.addf %497, %535 : vector<32x128xf32>
    %537 = arith.truncf %536 : vector<32x128xf32> to vector<32x128xbf16>
    %c0_463 = arith.constant 0 : index
    %c0_464 = arith.constant 0 : index
    %c0_465 = arith.constant 0 : index
    %538 = vector.load %arg14[%c0_463, %c0_464, %c0_465] : memref<3x64x32xbf16, #tpu.memory_space<vmem>>, vector<1x64x32xbf16>
    %539 = vector.shape_cast %538 : vector<1x64x32xbf16> to vector<64x32xbf16>
    %cst_466 = arith.constant dense<0.000000e+00> : vector<64x128xf32>
    %540 = tpu.matmul %539, %537, %cst_466 {dimension_numbers = #tpu.dot_dimension_numbers<[1], [0], [0], [1], [0, 0, 1, 1], [], []>} : vector<64x32xbf16>, vector<32x128xbf16>, vector<64x128xf32> -> vector<64x128xf32>
    %541 = arith.truncf %540 : vector<64x128xf32> to vector<64x128xbf16>
    %c0_467 = arith.constant 0 : index
    %c0_468 = arith.constant 0 : index
    %c0_469 = arith.constant 0 : index
    %542 = vector.load %arg15[%c0_467, %c0_468, %c0_469] : memref<3x128x128xbf16, #tpu.memory_space<vmem>>, vector<1x128x128xbf16>
    %543 = vector.shape_cast %542 : vector<1x128x128xbf16> to vector<128x128xbf16>
    %cst_470 = arith.constant dense<0.000000e+00> : vector<64x128xf32>
    %544 = tpu.matmul %541, %543, %cst_470 {dimension_numbers = #tpu.dot_dimension_numbers<[1], [0], [0], [1], [0, 0, 1, 1], [], []>} : vector<64x128xbf16>, vector<128x128xbf16>, vector<64x128xf32> -> vector<64x128xf32>
    %c1_471 = arith.constant 1 : index
    %c0_472 = arith.constant 0 : index
    %c0_473 = arith.constant 0 : index
    %545 = vector.load %arg14[%c1_471, %c0_472, %c0_473] : memref<3x64x32xbf16, #tpu.memory_space<vmem>>, vector<1x64x32xbf16>
    %546 = vector.shape_cast %545 : vector<1x64x32xbf16> to vector<64x32xbf16>
    %cst_474 = arith.constant dense<0.000000e+00> : vector<64x128xf32>
    %547 = tpu.matmul %546, %537, %cst_474 {dimension_numbers = #tpu.dot_dimension_numbers<[1], [0], [0], [1], [0, 0, 1, 1], [], []>} : vector<64x32xbf16>, vector<32x128xbf16>, vector<64x128xf32> -> vector<64x128xf32>
    %548 = arith.truncf %547 : vector<64x128xf32> to vector<64x128xbf16>
    %c1_475 = arith.constant 1 : index
    %c0_476 = arith.constant 0 : index
    %c0_477 = arith.constant 0 : index
    %549 = vector.load %arg15[%c1_475, %c0_476, %c0_477] : memref<3x128x128xbf16, #tpu.memory_space<vmem>>, vector<1x128x128xbf16>
    %550 = vector.shape_cast %549 : vector<1x128x128xbf16> to vector<128x128xbf16>
    %cst_478 = arith.constant dense<0.000000e+00> : vector<64x128xf32>
    %551 = tpu.matmul %548, %550, %cst_478 {dimension_numbers = #tpu.dot_dimension_numbers<[1], [0], [0], [1], [0, 0, 1, 1], [], []>} : vector<64x128xbf16>, vector<128x128xbf16>, vector<64x128xf32> -> vector<64x128xf32>
    %552 = arith.addf %544, %551 : vector<64x128xf32>
    %c2_479 = arith.constant 2 : index
    %c0_480 = arith.constant 0 : index
    %c0_481 = arith.constant 0 : index
    %553 = vector.load %arg14[%c2_479, %c0_480, %c0_481] : memref<3x64x32xbf16, #tpu.memory_space<vmem>>, vector<1x64x32xbf16>
    %554 = vector.shape_cast %553 : vector<1x64x32xbf16> to vector<64x32xbf16>
    %cst_482 = arith.constant dense<0.000000e+00> : vector<64x128xf32>
    %555 = tpu.matmul %554, %537, %cst_482 {dimension_numbers = #tpu.dot_dimension_numbers<[1], [0], [0], [1], [0, 0, 1, 1], [], []>} : vector<64x32xbf16>, vector<32x128xbf16>, vector<64x128xf32> -> vector<64x128xf32>
    %556 = arith.truncf %555 : vector<64x128xf32> to vector<64x128xbf16>
    %c2_483 = arith.constant 2 : index
    %c0_484 = arith.constant 0 : index
    %c0_485 = arith.constant 0 : index
    %557 = vector.load %arg15[%c2_483, %c0_484, %c0_485] : memref<3x128x128xbf16, #tpu.memory_space<vmem>>, vector<1x128x128xbf16>
    %558 = vector.shape_cast %557 : vector<1x128x128xbf16> to vector<128x128xbf16>
    %cst_486 = arith.constant dense<0.000000e+00> : vector<64x128xf32>
    %559 = tpu.matmul %556, %558, %cst_486 {dimension_numbers = #tpu.dot_dimension_numbers<[1], [0], [0], [1], [0, 0, 1, 1], [], []>} : vector<64x128xbf16>, vector<128x128xbf16>, vector<64x128xf32> -> vector<64x128xf32>
    %560 = arith.addf %552, %559 : vector<64x128xf32>
    %c0_487 = arith.constant 0 : index
    %c0_488 = arith.constant 0 : index
    %561 = vector.load %arg13[%c0_487, %c0_488] : memref<1x128xf32, #tpu.memory_space<vmem>>, vector<1x128xf32>
    %562 = vector.broadcast %561 : vector<1x128xf32> to vector<64x128xf32>
    %563 = arith.addf %560, %562 : vector<64x128xf32>
    %564 = arith.truncf %563 : vector<64x128xf32> to vector<64x128xbf16>
    %c0_489 = arith.constant 0 : index
    %c0_490 = arith.constant 0 : index
    %c0_491 = arith.constant 0 : index
    %565 = vector.load %arg30[%c0_489, %c0_490, %c0_491] : memref<3x64x64xbf16, #tpu.memory_space<vmem>>, vector<1x64x64xbf16>
    %566 = vector.shape_cast %565 : vector<1x64x64xbf16> to vector<64x64xbf16>
    %cst_492 = arith.constant dense<0.000000e+00> : vector<64x128xf32>
    %567 = tpu.matmul %566, %564, %cst_492 {dimension_numbers = #tpu.dot_dimension_numbers<[1], [0], [0], [1], [0, 0, 1, 1], [], []>} : vector<64x64xbf16>, vector<64x128xbf16>, vector<64x128xf32> -> vector<64x128xf32>
    %568 = arith.truncf %567 : vector<64x128xf32> to vector<64x128xbf16>
    %c0_493 = arith.constant 0 : index
    %c0_494 = arith.constant 0 : index
    %c0_495 = arith.constant 0 : index
    %569 = vector.load %arg31[%c0_493, %c0_494, %c0_495] : memref<3x128x128xbf16, #tpu.memory_space<vmem>>, vector<1x128x128xbf16>
    %570 = vector.shape_cast %569 : vector<1x128x128xbf16> to vector<128x128xbf16>
    %cst_496 = arith.constant dense<0.000000e+00> : vector<64x128xf32>
    %571 = tpu.matmul %568, %570, %cst_496 {dimension_numbers = #tpu.dot_dimension_numbers<[1], [0], [0], [1], [0, 0, 1, 1], [], []>} : vector<64x128xbf16>, vector<128x128xbf16>, vector<64x128xf32> -> vector<64x128xf32>
    %c1_497 = arith.constant 1 : index
    %c0_498 = arith.constant 0 : index
    %c0_499 = arith.constant 0 : index
    %572 = vector.load %arg30[%c1_497, %c0_498, %c0_499] : memref<3x64x64xbf16, #tpu.memory_space<vmem>>, vector<1x64x64xbf16>
    %573 = vector.shape_cast %572 : vector<1x64x64xbf16> to vector<64x64xbf16>
    %cst_500 = arith.constant dense<0.000000e+00> : vector<64x128xf32>
    %574 = tpu.matmul %573, %564, %cst_500 {dimension_numbers = #tpu.dot_dimension_numbers<[1], [0], [0], [1], [0, 0, 1, 1], [], []>} : vector<64x64xbf16>, vector<64x128xbf16>, vector<64x128xf32> -> vector<64x128xf32>
    %575 = arith.truncf %574 : vector<64x128xf32> to vector<64x128xbf16>
    %c1_501 = arith.constant 1 : index
    %c0_502 = arith.constant 0 : index
    %c0_503 = arith.constant 0 : index
    %576 = vector.load %arg31[%c1_501, %c0_502, %c0_503] : memref<3x128x128xbf16, #tpu.memory_space<vmem>>, vector<1x128x128xbf16>
    %577 = vector.shape_cast %576 : vector<1x128x128xbf16> to vector<128x128xbf16>
    %cst_504 = arith.constant dense<0.000000e+00> : vector<64x128xf32>
    %578 = tpu.matmul %575, %577, %cst_504 {dimension_numbers = #tpu.dot_dimension_numbers<[1], [0], [0], [1], [0, 0, 1, 1], [], []>} : vector<64x128xbf16>, vector<128x128xbf16>, vector<64x128xf32> -> vector<64x128xf32>
    %579 = arith.addf %571, %578 : vector<64x128xf32>
    %c2_505 = arith.constant 2 : index
    %c0_506 = arith.constant 0 : index
    %c0_507 = arith.constant 0 : index
    %580 = vector.load %arg30[%c2_505, %c0_506, %c0_507] : memref<3x64x64xbf16, #tpu.memory_space<vmem>>, vector<1x64x64xbf16>
    %581 = vector.shape_cast %580 : vector<1x64x64xbf16> to vector<64x64xbf16>
    %cst_508 = arith.constant dense<0.000000e+00> : vector<64x128xf32>
    %582 = tpu.matmul %581, %564, %cst_508 {dimension_numbers = #tpu.dot_dimension_numbers<[1], [0], [0], [1], [0, 0, 1, 1], [], []>} : vector<64x64xbf16>, vector<64x128xbf16>, vector<64x128xf32> -> vector<64x128xf32>
    %583 = arith.truncf %582 : vector<64x128xf32> to vector<64x128xbf16>
    %c2_509 = arith.constant 2 : index
    %c0_510 = arith.constant 0 : index
    %c0_511 = arith.constant 0 : index
    %584 = vector.load %arg31[%c2_509, %c0_510, %c0_511] : memref<3x128x128xbf16, #tpu.memory_space<vmem>>, vector<1x128x128xbf16>
    %585 = vector.shape_cast %584 : vector<1x128x128xbf16> to vector<128x128xbf16>
    %cst_512 = arith.constant dense<0.000000e+00> : vector<64x128xf32>
    %586 = tpu.matmul %583, %585, %cst_512 {dimension_numbers = #tpu.dot_dimension_numbers<[1], [0], [0], [1], [0, 0, 1, 1], [], []>} : vector<64x128xbf16>, vector<128x128xbf16>, vector<64x128xf32> -> vector<64x128xf32>
    %587 = arith.addf %579, %586 : vector<64x128xf32>
    %c0_513 = arith.constant 0 : index
    %c0_514 = arith.constant 0 : index
    %588 = vector.load %arg29[%c0_513, %c0_514] : memref<1x128xf32, #tpu.memory_space<vmem>>, vector<1x128xf32>
    %589 = vector.broadcast %588 : vector<1x128xf32> to vector<64x128xf32>
    %590 = arith.addf %587, %589 : vector<64x128xf32>
    %cst_515 = arith.constant 0.000000e+00 : f32
    %591 = vector.broadcast %cst_515 : f32 to vector<64x128xf32>
    %592 = arith.maximumf %590, %591 : vector<64x128xf32>
    %593 = arith.truncf %592 : vector<64x128xf32> to vector<64x128xbf16>
    %c0_516 = arith.constant 0 : index
    %c0_517 = arith.constant 0 : index
    %c0_518 = arith.constant 0 : index
    %594 = vector.load %arg33[%c0_516, %c0_517, %c0_518] : memref<3x64x64xbf16, #tpu.memory_space<vmem>>, vector<1x64x64xbf16>
    %595 = vector.shape_cast %594 : vector<1x64x64xbf16> to vector<64x64xbf16>
    %cst_519 = arith.constant dense<0.000000e+00> : vector<64x128xf32>
    %596 = tpu.matmul %595, %593, %cst_519 {dimension_numbers = #tpu.dot_dimension_numbers<[1], [0], [0], [1], [0, 0, 1, 1], [], []>} : vector<64x64xbf16>, vector<64x128xbf16>, vector<64x128xf32> -> vector<64x128xf32>
    %597 = arith.truncf %596 : vector<64x128xf32> to vector<64x128xbf16>
    %c0_520 = arith.constant 0 : index
    %c0_521 = arith.constant 0 : index
    %c0_522 = arith.constant 0 : index
    %598 = vector.load %arg34[%c0_520, %c0_521, %c0_522] : memref<3x128x251xbf16, #tpu.memory_space<vmem>>, vector<1x128x251xbf16>
    %599 = vector.shape_cast %598 : vector<1x128x251xbf16> to vector<128x251xbf16>
    %cst_523 = arith.constant dense<0.000000e+00> : vector<64x251xf32>
    %600 = tpu.matmul %597, %599, %cst_523 {dimension_numbers = #tpu.dot_dimension_numbers<[1], [0], [0], [1], [0, 0, 1, 1], [], []>} : vector<64x128xbf16>, vector<128x251xbf16>, vector<64x251xf32> -> vector<64x251xf32>
    %c1_524 = arith.constant 1 : index
    %c0_525 = arith.constant 0 : index
    %c0_526 = arith.constant 0 : index
    %601 = vector.load %arg33[%c1_524, %c0_525, %c0_526] : memref<3x64x64xbf16, #tpu.memory_space<vmem>>, vector<1x64x64xbf16>
    %602 = vector.shape_cast %601 : vector<1x64x64xbf16> to vector<64x64xbf16>
    %cst_527 = arith.constant dense<0.000000e+00> : vector<64x128xf32>
    %603 = tpu.matmul %602, %593, %cst_527 {dimension_numbers = #tpu.dot_dimension_numbers<[1], [0], [0], [1], [0, 0, 1, 1], [], []>} : vector<64x64xbf16>, vector<64x128xbf16>, vector<64x128xf32> -> vector<64x128xf32>
    %604 = arith.truncf %603 : vector<64x128xf32> to vector<64x128xbf16>
    %c1_528 = arith.constant 1 : index
    %c0_529 = arith.constant 0 : index
    %c0_530 = arith.constant 0 : index
    %605 = vector.load %arg34[%c1_528, %c0_529, %c0_530] : memref<3x128x251xbf16, #tpu.memory_space<vmem>>, vector<1x128x251xbf16>
    %606 = vector.shape_cast %605 : vector<1x128x251xbf16> to vector<128x251xbf16>
    %cst_531 = arith.constant dense<0.000000e+00> : vector<64x251xf32>
    %607 = tpu.matmul %604, %606, %cst_531 {dimension_numbers = #tpu.dot_dimension_numbers<[1], [0], [0], [1], [0, 0, 1, 1], [], []>} : vector<64x128xbf16>, vector<128x251xbf16>, vector<64x251xf32> -> vector<64x251xf32>
    %608 = arith.addf %600, %607 : vector<64x251xf32>
    %c2_532 = arith.constant 2 : index
    %c0_533 = arith.constant 0 : index
    %c0_534 = arith.constant 0 : index
    %609 = vector.load %arg33[%c2_532, %c0_533, %c0_534] : memref<3x64x64xbf16, #tpu.memory_space<vmem>>, vector<1x64x64xbf16>
    %610 = vector.shape_cast %609 : vector<1x64x64xbf16> to vector<64x64xbf16>
    %cst_535 = arith.constant dense<0.000000e+00> : vector<64x128xf32>
    %611 = tpu.matmul %610, %593, %cst_535 {dimension_numbers = #tpu.dot_dimension_numbers<[1], [0], [0], [1], [0, 0, 1, 1], [], []>} : vector<64x64xbf16>, vector<64x128xbf16>, vector<64x128xf32> -> vector<64x128xf32>
    %612 = arith.truncf %611 : vector<64x128xf32> to vector<64x128xbf16>
    %c2_536 = arith.constant 2 : index
    %c0_537 = arith.constant 0 : index
    %c0_538 = arith.constant 0 : index
    %613 = vector.load %arg34[%c2_536, %c0_537, %c0_538] : memref<3x128x251xbf16, #tpu.memory_space<vmem>>, vector<1x128x251xbf16>
    %614 = vector.shape_cast %613 : vector<1x128x251xbf16> to vector<128x251xbf16>
    %cst_539 = arith.constant dense<0.000000e+00> : vector<64x251xf32>
    %615 = tpu.matmul %612, %614, %cst_539 {dimension_numbers = #tpu.dot_dimension_numbers<[1], [0], [0], [1], [0, 0, 1, 1], [], []>} : vector<64x128xbf16>, vector<128x251xbf16>, vector<64x251xf32> -> vector<64x251xf32>
    %616 = arith.addf %608, %615 : vector<64x251xf32>
    %c0_540 = arith.constant 0 : index
    %c0_541 = arith.constant 0 : index
    %617 = vector.load %arg32[%c0_540, %c0_541] : memref<1x251xf32, #tpu.memory_space<vmem>>, vector<1x251xf32>
    %618 = vector.broadcast %617 : vector<1x251xf32> to vector<64x251xf32>
    %619 = arith.addf %616, %618 : vector<64x251xf32>
    %c0_542 = arith.constant 0 : index
    %c0_543 = arith.constant 0 : index
    %620 = vector.load %arg71[%c0_542, %c0_543] : memref<64x251xf32, #tpu.memory_space<vmem>>, vector<64x251xf32>
    tpu.vector_store %arg71[%c0_542, %c0_543], %619 {strides = array<i32>} : memref<64x251xf32, #tpu.memory_space<vmem>>, vector<64x251xf32>,
    %c0_544 = arith.constant 0 : index
    %c0_545 = arith.constant 0 : index
    %621 = vector.load %arg72[%c0_544, %c0_545] : memref<1x1xf32, #tpu.memory_space<vmem>>, vector<1x1xf32>
    tpu.vector_store %arg72[%c0_544, %c0_545], %312 {strides = array<i32>} : memref<1x1xf32, #tpu.memory_space<vmem>>, vector<1x1xf32>,
    %c0_546 = arith.constant 0 : index
    %c0_547 = arith.constant 0 : index
    %622 = vector.load %arg73[%c0_546, %c0_547] : memref<1x1xf32, #tpu.memory_space<vmem>>, vector<1x1xf32>
    tpu.vector_store %arg73[%c0_546, %c0_547], %324 {strides = array<i32>} : memref<1x1xf32, #tpu.memory_space<vmem>>, vector<1x1xf32>,
    return
  }
}

</mosaic_0001>

<bundles_post_ra>
// kernel: vqvae_forward.1
= control target key start
LH: loop header
LB: loop body
LE: loop exit
PB: predicated region body
PF: predicated region fallthrough
CT: control target
= control target key end

     0   :  { %s19253_s6 = smov 1   ;;  %s19254_s10 = smov 2   ;;  %s21273_s0 = inlined_call_operand.smem [shape: u32[74], index: -1, kind: input, shape index: {}] }
   0x1   :  { %s19413_s5 = sld [smem:[%s21273_s0]]   ;;  %s19255_s14 = smov 3  }
   0x2   :  { %s19418_s9 = sld [smem:[%s21273_s0 + %s19253_s6]]   ;;  %s19256_s18 = smov 4  }
   0x3   :  { %s19423_s13 = sld [smem:[%s21273_s0 + %s19254_s10]]   ;;  %s19257_s22 = smov 5  }
   0x4   :  { %s19428_s17 = sld [smem:[%s21273_s0 + %s19255_s14]]   ;;  %s19258_s26 = smov 6  }
   0x5   :  { %s19433_s21 = sld [smem:[%s21273_s0 + %s19256_s18]]   ;;  %s19259_s30 = smov 7  }
   0x6   :  { %s19438_s25 = sld [smem:[%s21273_s0 + %s19257_s22]]   ;;  %s19260_s4 = smov 8  }
   0x7   :  { %21326 = sst [smem:[#allocation136_spill]] %s19413_s5  ;;  %s19261_s10 = smov 9  }
   0x8   :  { %21327 = sst [smem:[#allocation137_spill]] %s19418_s9  ;;  %s19262_s15 = smov 10  }
   0x9   :  { %21328 = sst [smem:[#allocation138_spill]] %s19423_s13  ;;  %s19263_s20 = smov 11  }
   0xa   :  { %21329 = sst [smem:[#allocation139_spill]] %s19428_s17  ;;  %s19265_s1 = smov 13  }
   0xb   :  { %21330 = sst [smem:[#allocation140_spill]] %s19433_s21  ;;  %s19266_s7 = smov 14  }
   0xc   :  { %s19443_s29 = sld [smem:[%s21273_s0 + %s19258_s26]]   ;;  %s19264_s26 = smov 12  }
   0xd   :  { %s19448_s3 = sld [smem:[%s21273_s0 + %s19259_s30]]   ;;  %s19268_s22 = smov 16  }
   0xe   :  { %s19453_s8 = sld [smem:[%s21273_s0 + %s19260_s4]]   ;;  %s19269_s28 = smov 17  }
   0xf   :  { %s19458_s14 = sld [smem:[%s21273_s0 + %s19261_s10]]  }
  0x10   :  { %s19463_s19 = sld [smem:[%s21273_s0 + %s19262_s15]]   ;;  %s19267_s15 = smov 15  }
  0x11   :  { %s19468_s24 = sld [smem:[%s21273_s0 + %s19263_s20]]  }
  0x12   :  { %21331 = sst [smem:[#allocation141_spill]] %s19443_s29 }
  0x13   :  { %21332 = sst [smem:[#allocation142_spill]] %s19448_s3 }
  0x14   :  { %s19473_s30 = sld [smem:[%s21273_s0 + %s19264_s26]]  }
  0x15   :  { %21333 = sst [smem:[#allocation143_spill]] %s19458_s14 }
  0x16   :  { %s19478_s6 = sld [smem:[%s21273_s0 + %s19265_s1]]  }
  0x17   :  { %21334 = sst [smem:[#allocation144_spill]] %s19468_s24 }
  0x18   :  { %s19483_s12 = sld [smem:[%s21273_s0 + %s19266_s7]]   ;;  %s19270_s7 = smov 18  }
  0x19   :  { %s19488_s20 = sld [smem:[%s21273_s0 + %s19267_s15]]   ;;  %s19271_s15 = smov 19  }
  0x1a   :  { %s19493_s27 = sld [smem:[%s21273_s0 + %s19268_s22]]   ;;  %s19272_s22 = smov 20  }
  0x1b   :  { %s19498_s4 = sld [smem:[%s21273_s0 + %s19269_s28]]   ;;  %s19273_s28 = smov 21  }
  0x1c   :  { %21335 = sst [smem:[#allocation145_spill]] %s19478_s6 }
  0x1d   :  { %s19508_s5 = sld [smem:[%s21273_s0 + %s19271_s15]]   ;;  %s19275_s15 = smov 23  }
  0x1e   :  { %21336 = sst [smem:[#allocation146_spill]] %s19483_s12 }
  0x1f   :  { %s19503_s12 = sld [smem:[%s21273_s0 + %s19270_s7]]   ;;  %s19274_s7 = smov 22  }
  0x20   :  { %21337 = sst [smem:[#allocation147_spill]] %s19493_s27 }
  0x21   :  { %s19513_s13 = sld [smem:[%s21273_s0 + %s19272_s22]]   ;;  %s19276_s22 = smov 24  }
  0x22   :  { %s19518_s9 = sld [smem:[%s21273_s0 + %s19273_s28]]   ;;  %s19277_s28 = smov 25  }
  0x23   :  { %s19523_s29 = sld [smem:[%s21273_s0 + %s19274_s7]]   ;;  %s19278_s7 = smov 26  }
  0x24   :  { %s19528_s17 = sld [smem:[%s21273_s0 + %s19275_s15]]   ;;  %s19279_s15 = smov 27  }
  0x25   :  { %21338 = sst [smem:[#allocation148_spill]] %s19503_s12 }
  0x26   :  { %s19538_s12 = sld [smem:[%s21273_s0 + %s19277_s28]]   ;;  %s19281_s28 = smov 29  }
  0x27   :  { %21339 = sst [smem:[#allocation149_spill]] %s19513_s13 }
  0x28   :  { %s19533_s13 = sld [smem:[%s21273_s0 + %s19276_s22]]   ;;  %s19280_s22 = smov 28  }
  0x29   :  { %21340 = sst [smem:[#allocation150_spill]] %s19523_s29 }
  0x2a   :  { %s19543_s29 = sld [smem:[%s21273_s0 + %s19278_s7]]   ;;  %s19282_s7 = smov 30  }
  0x2b   :  { %s19548_s27 = sld [smem:[%s21273_s0 + %s19279_s15]]   ;;  %s19283_s15 = smov 31  }
  0x2c   :  { %s19558_s6 = sld [smem:[%s21273_s0 + %s19281_s28]]   ;;  %s19285_s28 = smov 33  }
  0x2d   :  { %s19568_s24 = sld [smem:[%s21273_s0 + %s19283_s15]]   ;;  %s19287_s15 = smov 35  }
  0x2e   :  { %21341 = sst [smem:[#allocation151_spill]] %s19533_s13 }
  0x2f   :  { %s19553_s13 = sld [smem:[%s21273_s0 + %s19280_s22]]   ;;  %s19284_s22 = smov 32  }
  0x30   :  { %21342 = sst [smem:[#allocation152_spill]] %s19543_s29 }
  0x31   :  { %s19563_s29 = sld [smem:[%s21273_s0 + %s19282_s7]]   ;;  %s19286_s7 = smov 34  }
  0x32   :  { %s19578_s14 = sld [smem:[%s21273_s0 + %s19285_s28]]   ;;  %s19289_s28 = smov 37  }
  0x33   :  { %s19588_s3 = sld [smem:[%s21273_s0 + %s19287_s15]]   ;;  %s19291_s15 = smov 39  }
  0x35   :  { %21343 = sst [smem:[#allocation153_spill]] %s19553_s13 }
  0x36   :  { %s19573_s13 = sld [smem:[%s21273_s0 + %s19284_s22]]   ;;  %s19288_s22 = smov 36  }
  0x37   :  { %21344 = sst [smem:[#allocation154_spill]] %s19563_s29 }
  0x38   :  { %21346 = sst [smem:[#allocation156_spill]] %s19578_s14 }
  0x39   :  { %s19583_s29 = sld [smem:[%s21273_s0 + %s19286_s7]]   ;;  %s19290_s7 = smov 38  }
  0x3a   :  { %21347 = sst [smem:[#allocation157_spill]] %s19588_s3 }
  0x3b   :  { %s19598_s14 = sld [smem:[%s21273_s0 + %s19289_s28]]   ;;  %s19293_s28 = smov 41  }
  0x3c   :  { %21345 = sst [smem:[#allocation155_spill]] %s19573_s13 }
  0x3d   :  { %s19593_s13 = sld [smem:[%s21273_s0 + %s19288_s22]]   ;;  %s19292_s22 = smov 40  }
  0x3e   :  { %s19603_s21 = sld [smem:[%s21273_s0 + %s19290_s7]]   ;;  %s19294_s7 = smov 42  }
  0x3f   :  { %s19608_s3 = sld [smem:[%s21273_s0 + %s19291_s15]]   ;;  %s19295_s15 = smov 43  }
  0x41   :  { %21349 = sst [smem:[#allocation159_spill]] %s19598_s14 }
  0x42   :  { %s19618_s14 = sld [smem:[%s21273_s0 + %s19293_s28]]   ;;  %s19297_s28 = smov 45  }
  0x43   :  { %21348 = sst [smem:[#allocation158_spill]] %s19593_s13 }
  0x44   :  { %21350 = sst [smem:[#allocation160_spill]] %s19603_s21 }
  0x45   :  { %21351 = sst [smem:[#allocation161_spill]] %s19608_s3 }
  0x46   :  { %s19613_s13 = sld [smem:[%s21273_s0 + %s19292_s22]]   ;;  %s19296_s22 = smov 44  }
  0x47   :  { %s19623_s21 = sld [smem:[%s21273_s0 + %s19294_s7]]   ;;  %s19298_s7 = smov 46  }
  0x48   :  { %21353 = sst [smem:[#allocation163_spill]] %s19618_s14 }
  0x49   :  { %s19628_s3 = sld [smem:[%s21273_s0 + %s19295_s15]]   ;;  %s19299_s15 = smov 47  }
  0x4a   :  { %s19638_s14 = sld [smem:[%s21273_s0 + %s19297_s28]]   ;;  %s19301_s28 = smov 49  }
  0x4c   :  { %21352 = sst [smem:[#allocation162_spill]] %s19613_s13 }
  0x4d   :  { %21354 = sst [smem:[#allocation164_spill]] %s19623_s21 }
  0x4e   :  { %s19633_s13 = sld [smem:[%s21273_s0 + %s19296_s22]]   ;;  %s19300_s22 = smov 48  }
  0x4f   :  { %21355 = sst [smem:[#allocation165_spill]] %s19628_s3 }
  0x50   :  { %21357 = sst [smem:[#allocation167_spill]] %s19638_s14 }
  0x51   :  { %s19643_s21 = sld [smem:[%s21273_s0 + %s19298_s7]]   ;;  %s19302_s7 = smov 50  }
  0x52   :  { %s19648_s3 = sld [smem:[%s21273_s0 + %s19299_s15]]   ;;  %s19303_s15 = smov 51  }
  0x53   :  { %s19658_s14 = sld [smem:[%s21273_s0 + %s19301_s28]]   ;;  %s19305_s28 = smov 53  }
  0x54   :  { %21356 = sst [smem:[#allocation166_spill]] %s19633_s13 }
  0x55   :  { %s19653_s13 = sld [smem:[%s21273_s0 + %s19300_s22]]   ;;  %s19304_s22 = smov 52  }
  0x57   :  { %21358 = sst [smem:[#allocation168_spill]] %s19643_s21 }
  0x58   :  { %21359 = sst [smem:[#allocation169_spill]] %s19648_s3 }
  0x59   :  { %21361 = sst [smem:[#allocation171_spill]] %s19658_s14 }
  0x5a   :  { %s19663_s21 = sld [smem:[%s21273_s0 + %s19302_s7]]   ;;  %s19306_s7 = smov 54  }
  0x5b   :  { %21360 = sst [smem:[#allocation170_spill]] %s19653_s13 }
  0x5c   :  { %s19668_s3 = sld [smem:[%s21273_s0 + %s19303_s15]]   ;;  %s19307_s15 = smov 55  }
  0x5d   :  { %s19673_s13 = sld [smem:[%s21273_s0 + %s19304_s22]]   ;;  %s19308_s22 = smov 56  }
  0x5e   :  { %s19678_s14 = sld [smem:[%s21273_s0 + %s19305_s28]]   ;;  %s19309_s28 = smov 57  }
  0x60   :  { %21362 = sst [smem:[#allocation172_spill]] %s19663_s21 }
  0x61   :  { %s19683_s21 = sld [smem:[%s21273_s0 + %s19306_s7]]   ;;  %s19310_s7 = smov 58  }
  0x62   :  { %21363 = sst [smem:[#allocation173_spill]] %s19668_s3 }
  0x63   :  { %21364 = sst [smem:[#allocation174_spill]] %s19673_s13 }
  0x64   :  { %21365 = sst [smem:[#allocation175_spill]] %s19678_s14 }
  0x65   :  { %s19688_s3 = sld [smem:[%s21273_s0 + %s19307_s15]]   ;;  %s19311_s15 = smov 59  }
  0x66   :  { %s19693_s13 = sld [smem:[%s21273_s0 + %s19308_s22]]   ;;  %s19312_s22 = smov 60  }
  0x67   :  { %21366 = sst [smem:[#allocation176_spill]] %s19683_s21 }
  0x68   :  { %s19698_s14 = sld [smem:[%s21273_s0 + %s19309_s28]]   ;;  %s19313_s28 = smov 61  }
  0x69   :  { %s19703_s21 = sld [smem:[%s21273_s0 + %s19310_s7]]   ;;  %s19314_s7 = smov 62  }
  0x6b   :  { %21367 = sst [smem:[#allocation177_spill]] %s19688_s3 }
  0x6c   :  { %21368 = sst [smem:[#allocation178_spill]] %s19693_s13 }
  0x6d   :  { %s19708_s3 = sld [smem:[%s21273_s0 + %s19311_s15]]   ;;  %s19315_s15 = smov 63  }
  0x6e   :  { %21369 = sst [smem:[#allocation179_spill]] %s19698_s14 }
  0x6f   :  { %21370 = sst [smem:[#allocation180_spill]] %s19703_s21 }
  0x70   :  { %s19713_s13 = sld [smem:[%s21273_s0 + %s19312_s22]]   ;;  %s19316_s22 = smov 64  }
  0x71   :  { %s19718_s14 = sld [smem:[%s21273_s0 + %s19313_s28]]   ;;  %s19317_s28 = smov 65  }
  0x72   :  { %s19723_s21 = sld [smem:[%s21273_s0 + %s19314_s7]]   ;;  %s19318_s7 = smov 66  }
  0x73   :  { %21371 = sst [smem:[#allocation181_spill]] %s19708_s3 }
  0x74   :  { %s19728_s3 = sld [smem:[%s21273_s0 + %s19315_s15]]   ;;  %s19319_s15 = smov 67  }
  0x76   :  { %21372 = sst [smem:[#allocation182_spill]] %s19713_s13 }
  0x77   :  { %21373 = sst [smem:[#allocation183_spill]] %s19718_s14 }
  0x78   :  { %21374 = sst [smem:[#allocation184_spill]] %s19723_s21 }
  0x79   :  { %s19733_s13 = sld [smem:[%s21273_s0 + %s19316_s22]]   ;;  %s19320_s22 = smov 68  }
  0x7a   :  { %21375 = sst [smem:[#allocation185_spill]] %s19728_s3 }
  0x7b   :  { %s19738_s14 = sld [smem:[%s21273_s0 + %s19317_s28]]   ;;  %s19321_s28 = smov 69  }
  0x7c   :  { %s19743_s21 = sld [smem:[%s21273_s0 + %s19318_s7]]   ;;  %s19322_s7 = smov 70  }
  0x7d   :  { %s19748_s3 = sld [smem:[%s21273_s0 + %s19319_s15]]   ;;  %s19323_s15 = smov 71  }
  0x7f   :  { %21376 = sst [smem:[#allocation186_spill]] %s19733_s13 }
  0x80   :  { %s19753_s13 = sld [smem:[%s21273_s0 + %s19320_s22]]   ;;  %s19324_s22 = smov 72  }
  0x81   :  { %21377 = sst [smem:[#allocation187_spill]] %s19738_s14 }
  0x82   :  { %21378 = sst [smem:[#allocation188_spill]] %s19743_s21 }
  0x83   :  { %21379 = sst [smem:[#allocation189_spill]] %s19748_s3 }
  0x84   :  { %s19758_s14 = sld [smem:[%s21273_s0 + %s19321_s28]]   ;;  %s19325_s28 = smov 73  }
  0x85   :  { %s19763_s21 = sld [smem:[%s21273_s0 + %s19322_s7]]  }
  0x86   :  { %21380 = sst [smem:[#allocation190_spill]] %s19753_s13 }
  0x87   :  { %s19768_s3 = sld [smem:[%s21273_s0 + %s19323_s15]]  }
  0x88   :  { %s19773_s13 = sld [smem:[%s21273_s0 + %s19324_s22]]  }
  0x8a   :  { %21381 = sst [smem:[#allocation191_spill]] %s19758_s14 }
  0x8b   :  { %s19778_s14 = sld [smem:[%s21273_s0 + %s19325_s28]]  }
  0x8c   :  { %153 = vsyncpa [#allocation3], 0 }
  0x8d   :  { %154 = vsyncpa [#allocation6], 0 }
  0x8e   :  { %155 = vsyncpa [#allocation9], 0 }
  0x8f   :  { %156 = vsyncpa [#allocation12], 0 }
  0x90   :  { %157 = vsyncpa [#allocation15], 0 }
  0x91   :  { %158 = vsyncpa [#allocation18], 0 }
  0x92   :  { %159 = vsyncpa [#allocation21], 0 }
  0x93   :  { %160 = vsyncpa [#allocation24], 0 }
  0x94   :  { %161 = vsyncpa [#allocation27], 0 }
  0x95   :  { %162 = vsyncpa [#allocation30], 0 }
  0x96   :  { %163 = vsyncpa [#allocation33], 0 }
  0x97   :  { %164 = vsyncpa [#allocation36], 0 }
  0x98   :  { %165 = vsyncpa [#allocation39], 0 }
  0x99   :  { %166 = vsyncpa [#allocation42], 0 }
  0x9a   :  { %167 = vsyncpa [#allocation45], 0 }
  0x9b   :  { %168 = vsyncpa [#allocation48], 0 }
  0x9c   :  { %169 = vsyncpa [#allocation51], 0 }
  0x9d   :  { %170 = vsyncpa [#allocation54], 0 }
  0x9e   :  { %171 = vsyncpa [#allocation57], 0 }
  0x9f   :  { %172 = vsyncpa [#allocation60], 0 }
  0xa0   :  { %173 = vsyncpa [#allocation63], 0 }
  0xa1   :  { %174 = vsyncpa [#allocation66], 0 }
  0xa2   :  { %175 = vsyncpa [#allocation69], 0 }
  0xa3   :  { %176 = vsyncpa [#allocation72], 0 }
  0xa4   :  { %177 = vsyncpa [#allocation75], 0 }
  0xa5   :  { %178 = vsyncpa [#allocation78], 0 }
  0xa6   :  { %179 = vsyncpa [#allocation81], 0 }
  0xa7   :  { %180 = vsyncpa [#allocation84], 0 }
  0xa8   :  { %181 = vsyncpa [#allocation87], 0 }
  0xa9   :  { %182 = vsyncpa [#allocation90], 0 }
  0xaa   :  { %183 = vsyncpa [#allocation93], 0 }
  0xab   :  { %184 = vsyncpa [#allocation96], 0 }
  0xac   :  { %185 = vsyncpa [#allocation4], 0 }
  0xad   :  { %186 = vsyncpa [#allocation100], 0  ;;  %s19326_s0 = smov [#allocation5]   ;;  %s19327_s10 = smov [#allocation8]  }
  0xae   :  { %s212_s7 = sshll.u32 %s19326_s0, 4  ;;  %s239_s11 = sshll.u32 %s19327_s10, 4  ;;  %s213_s7 = int_to_ptr.vmem [resolvable:$true] %s212_s7  ;;  %s19780_s11 = int_to_ptr.vmem [resolvable:$true] %s239_s11 }
  0xaf   :  { %s17733_s15 = scalar_lea.hbm %s19438_s25, 3072 }
  0xb0   :  { %p17734_p0 = scmp.ne.s32.totalorder %s19438_s25, %s17733_s15  ;;  %p17737_p1 = scmp.lt.u32.totalorder %s17733_s15, %s19438_s25 }
  0xb2   :  { %p17739_p2 = pnand %p17737_p1, %p17734_p0 }
  0xb4   :  { %17742 = shalt.err (!%p17739_p2)
}
  0xb5   :  { %s17743_s16 = scalar_lea.vmem %s213_s7, 3072  ;;  %p17748_p4 = scmp.lt.s32.totalorder %s213_s7, %s213_s7 }
  0xb6   :  { %p17744_p3 = scmp.ne.s32.totalorder %s213_s7, %s17743_s16  ;;  %p17749_p5 = scmp.lt.s32.totalorder %s17743_s16, %s17743_s16 }
  0xb8   :  { %p17750_p6 = por %p17749_p5, %p17748_p4 }
  0xba   :  { %p17751_p7 = pnand %p17750_p6, %p17744_p3 }
  0xbc   :  { %17754 = shalt.err (!%p17751_p7)
}
  0xbd   :  { %s19328_s18 = smov 64   ;;  %s19329_s22 = smov 4  }
  0xbe   :  { %218 = dma.hbm_to_vmem [thread:$0]  %s19438_s25, 3072, %s213_s7, [#allocation6], %s19328_s18, %s19328_s18, %s19329_s22  }
  0xbf   :  { %s17755_s23 = scalar_lea.hbm %s19453_s8, 16 }
  0xc0   :  { %p17756_p8 = scmp.ne.s32.totalorder %s19453_s8, %s17755_s23  ;;  %p17759_p9 = scmp.lt.u32.totalorder %s17755_s23, %s19453_s8 }
  0xc2   :  { %p17761_p10 = pnand %p17759_p9, %p17756_p8 }
  0xc4   :  { %17764 = shalt.err (!%p17761_p10)
}
  0xc5   :  { %s17765_s26 = scalar_lea.vmem %s19780_s11, 16  ;;  %s17769_s28 = scalar_lea.vmem %s19780_s11, 32 }
  0xc6   :  { %p17766_p11 = scmp.ne.s32.totalorder %s19780_s11, %s17765_s26  ;;  %p17770_p12 = scmp.lt.s32.totalorder %s19780_s11, %s19780_s11 }
  0xc7   :  { %p17771_p13 = scmp.lt.s32.totalorder %s17769_s28, %s17765_s26 }
  0xc9   :  { %p17772_p0 = por %p17771_p13, %p17770_p12 }
  0xcb   :  { %p17773_p1 = pnand %p17772_p0, %p17766_p11 }
  0xcd   :  { %17776 = shalt.err (!%p17773_p1)
}
  0xce   :  { %242 = dma.hbm_to_vmem [thread:$0]  %s19453_s8, 16, %s19780_s11, [#allocation9]  }
  0xcf   :  { %s19330_s25 = smov [#allocation11]   ;;  %s19331_s2 = smov [#allocation14]  }
  0xd0   :  { %s260_s1 = sshll.u32 %s19330_s25, 4  ;;  %s282_s0 = sshll.u32 %s19331_s2, 4  ;;  %s261_s1 = int_to_ptr.vmem [resolvable:$true] %s260_s1  ;;  %s19799_s0 = int_to_ptr.vmem [resolvable:$true] %s282_s0 }
  0xd1   :  { %s17777_s7 = scalar_lea.hbm %s19463_s19, 3072 }
  0xd2   :  { %p17778_p2 = scmp.ne.s32.totalorder %s19463_s19, %s17777_s7  ;;  %p17781_p3 = scmp.lt.u32.totalorder %s17777_s7, %s19463_s19 }
  0xd4   :  { %p17783_p4 = pnand %p17781_p3, %p17778_p2 }
  0xd6   :  { %17786 = shalt.err (!%p17783_p4)
}
  0xd7   :  { %s17787_s10 = scalar_lea.vmem %s261_s1, 3072  ;;  %p17792_p6 = scmp.lt.s32.totalorder %s261_s1, %s261_s1 }
  0xd8   :  { %p17788_p5 = scmp.ne.s32.totalorder %s261_s1, %s17787_s10  ;;  %p17793_p7 = scmp.lt.s32.totalorder %s17787_s10, %s17787_s10 }
  0xda   :  { %p17794_p8 = por %p17793_p7, %p17792_p6 }
  0xdc   :  { %p17795_p9 = pnand %p17794_p8, %p17788_p5 }
  0xde   :  { %17798 = shalt.err (!%p17795_p9)
}
  0xdf   :  { %266 = dma.hbm_to_vmem [thread:$0]  %s19463_s19, 3072, %s261_s1, [#allocation12], %s19328_s18, %s19328_s18, %s19329_s22  }
  0xe0   :  { %s17799_s8 = scalar_lea.hbm %s19473_s30, 1024 }
  0xe1   :  { %p17800_p10 = scmp.ne.s32.totalorder %s19473_s30, %s17799_s8  ;;  %p17803_p11 = scmp.lt.u32.totalorder %s17799_s8, %s19473_s30 }
  0xe3   :  { %p17805_p12 = pnand %p17803_p11, %p17800_p10 }
  0xe5   :  { %17808 = shalt.err (!%p17805_p12)
}
  0xe6   :  { %s17809_s11 = scalar_lea.vmem %s19799_s0, 1024  ;;  %p17814_p0 = scmp.lt.s32.totalorder %s19799_s0, %s19799_s0 }
  0xe7   :  { %p17810_p13 = scmp.ne.s32.totalorder %s19799_s0, %s17809_s11  ;;  %p17815_p1 = scmp.lt.s32.totalorder %s17809_s11, %s17809_s11 }
  0xe9   :  { %p17816_p2 = por %p17815_p1, %p17814_p0 }
  0xeb   :  { %p17817_p3 = pnand %p17816_p2, %p17810_p13 }
  0xed   :  { %17820 = shalt.err (!%p17817_p3)
}
  0xee   :  { %288 = dma.hbm_to_vmem [thread:$0]  %s19473_s30, 1024, %s19799_s0, [#allocation15], %s19328_s18, %s19328_s18, %s19329_s22  }
  0xef   :  { %s19332_s19 = smov [#allocation17]   ;;  %s19333_s16 = smov [#allocation20]  }
  0xf0   :  { %s306_s15 = sshll.u32 %s19332_s19, 4  ;;  %s328_s23 = sshll.u32 %s19333_s16, 4  ;;  %s307_s15 = int_to_ptr.vmem [resolvable:$true] %s306_s15  ;;  %s19820_s23 = int_to_ptr.vmem [resolvable:$true] %s328_s23 }
  0xf1   :  { %s17821_s26 = scalar_lea.hbm %s19488_s20, 3072 }
  0xf2   :  { %p17822_p4 = scmp.ne.s32.totalorder %s19488_s20, %s17821_s26  ;;  %p17825_p5 = scmp.lt.u32.totalorder %s17821_s26, %s19488_s20 }
  0xf4   :  { %p17827_p6 = pnand %p17825_p5, %p17822_p4 }
  0xf6   :  { %17830 = shalt.err (!%p17827_p6)
}
  0xf7   :  { %s17831_s28 = scalar_lea.vmem %s307_s15, 3072  ;;  %p17836_p8 = scmp.lt.s32.totalorder %s307_s15, %s307_s15 }
  0xf8   :  { %p17832_p7 = scmp.ne.s32.totalorder %s307_s15, %s17831_s28  ;;  %p17837_p9 = scmp.lt.s32.totalorder %s17831_s28, %s17831_s28 }
  0xfa   :  { %p17838_p10 = por %p17837_p9, %p17836_p8 }
  0xfc   :  { %p17839_p11 = pnand %p17838_p10, %p17832_p7 }
  0xfe   :  { %17842 = shalt.err (!%p17839_p11)
}
  0xff   :  { %312 = dma.hbm_to_vmem [thread:$0]  %s19488_s20, 3072, %s307_s15, [#allocation18], %s19328_s18, %s19328_s18, %s19329_s22  }
 0x100   :  { %s17843_s30 = scalar_lea.hbm %s19498_s4, 768 }
 0x101   :  { %p17844_p12 = scmp.ne.s32.totalorder %s19498_s4, %s17843_s30  ;;  %p17847_p13 = scmp.lt.u32.totalorder %s17843_s30, %s19498_s4 }
 0x103   :  { %p17849_p0 = pnand %p17847_p13, %p17844_p12 }
 0x105   :  { %17852 = shalt.err (!%p17849_p0)
}
 0x106   :  { %s17853_s25 = scalar_lea.vmem %s19820_s23, 768  ;;  %p17858_p2 = scmp.lt.s32.totalorder %s19820_s23, %s19820_s23 }
 0x107   :  { %p17854_p1 = scmp.ne.s32.totalorder %s19820_s23, %s17853_s25  ;;  %p17859_p3 = scmp.lt.s32.totalorder %s17853_s25, %s17853_s25 }
 0x109   :  { %p17860_p4 = por %p17859_p3, %p17858_p2 }
 0x10b   :  { %p17861_p5 = pnand %p17860_p4, %p17854_p1 }
 0x10d   :  { %17864 = shalt.err (!%p17861_p5)
}
 0x10e   :  { %334 = dma.hbm_to_vmem [thread:$0]  %s19498_s4, 768, %s19820_s23, [#allocation21], %s19328_s18, %s19328_s18, %s19329_s22  }
 0x10f   :  { %s19334_s20 = smov [#allocation23]   ;;  %s19335_s2 = smov [#allocation26]  }
 0x110   :  { %s353_s1 = sshll.u32 %s19334_s20, 4  ;;  %s375_s0 = sshll.u32 %s19335_s2, 4  ;;  %s354_s1 = int_to_ptr.vmem [resolvable:$true] %s353_s1  ;;  %s376_s0 = int_to_ptr.vmem [resolvable:$true] %s375_s0 }
 0x111   :  { %s17865_s7 = scalar_lea.hbm %s19508_s5, 16 }
 0x112   :  { %p17866_p6 = scmp.ne.s32.totalorder %s19508_s5, %s17865_s7  ;;  %p17869_p7 = scmp.lt.u32.totalorder %s17865_s7, %s19508_s5 }
 0x114   :  { %p17871_p8 = pnand %p17869_p7, %p17866_p6 }
 0x116   :  { %17874 = shalt.err (!%p17871_p8)
}
 0x117   :  { %s17875_s10 = scalar_lea.vmem %s354_s1, 16  ;;  %s17879_s8 = scalar_lea.vmem %s354_s1, 32 }
 0x118   :  { %p17876_p9 = scmp.ne.s32.totalorder %s354_s1, %s17875_s10  ;;  %p17880_p10 = scmp.lt.s32.totalorder %s354_s1, %s354_s1 }
 0x119   :  { %p17881_p11 = scmp.lt.s32.totalorder %s17879_s8, %s17875_s10 }
 0x11b   :  { %p17882_p12 = por %p17881_p11, %p17880_p10 }
 0x11d   :  { %p17883_p13 = pnand %p17882_p12, %p17876_p9 }
 0x11f   :  { %17886 = shalt.err (!%p17883_p13)
}
 0x120   :  { %356 = dma.hbm_to_vmem [thread:$0]  %s19508_s5, 16, %s354_s1, [#allocation24]  }
 0x121   :  { %s17887_s4 = scalar_lea.hbm %s19518_s9, 16 }
 0x122   :  { %p17888_p0 = scmp.ne.s32.totalorder %s19518_s9, %s17887_s4  ;;  %p17891_p1 = scmp.lt.u32.totalorder %s17887_s4, %s19518_s9 }
 0x124   :  { %p17893_p2 = pnand %p17891_p1, %p17888_p0 }
 0x126   :  { %17896 = shalt.err (!%p17893_p2)
}
 0x127   :  { %s17897_s11 = scalar_lea.vmem %s376_s0, 16  ;;  %s17901_s19 = scalar_lea.vmem %s376_s0, 32 }
 0x128   :  { %p17898_p3 = scmp.ne.s32.totalorder %s376_s0, %s17897_s11  ;;  %p17902_p4 = scmp.lt.s32.totalorder %s376_s0, %s376_s0 }
 0x129   :  { %p17903_p5 = scmp.lt.s32.totalorder %s17901_s19, %s17897_s11 }
 0x12b   :  { %p17904_p6 = por %p17903_p5, %p17902_p4 }
 0x12d   :  { %p17905_p7 = pnand %p17904_p6, %p17898_p3 }
 0x12f   :  { %17908 = shalt.err (!%p17905_p7)
}
 0x130   :  { %378 = dma.hbm_to_vmem [thread:$0]  %s19518_s9, 16, %s376_s0, [#allocation27]  }
 0x131   :  { %s19336_s15 = smov [#allocation29]   ;;  %s19337_s16 = smov [#allocation32]  }
 0x132   :  { %s396_s5 = sshll.u32 %s19336_s15, 4  ;;  %s418_s23 = sshll.u32 %s19337_s16, 4  ;;  %s397_s5 = int_to_ptr.vmem [resolvable:$true] %s396_s5  ;;  %s19849_s23 = int_to_ptr.vmem [resolvable:$true] %s418_s23 }
 0x133   :  { %s17909_s26 = scalar_lea.hbm %s19528_s17, 3072 }
 0x134   :  { %p17910_p8 = scmp.ne.s32.totalorder %s19528_s17, %s17909_s26  ;;  %p17913_p9 = scmp.lt.u32.totalorder %s17909_s26, %s19528_s17 }
 0x136   :  { %p17915_p10 = pnand %p17913_p9, %p17910_p8 }
 0x138   :  { %17918 = shalt.err (!%p17915_p10)
}
 0x139   :  { %s17919_s28 = scalar_lea.vmem %s397_s5, 3072  ;;  %p17924_p12 = scmp.lt.s32.totalorder %s397_s5, %s397_s5 }
 0x13a   :  { %p17920_p11 = scmp.ne.s32.totalorder %s397_s5, %s17919_s28  ;;  %p17925_p13 = scmp.lt.s32.totalorder %s17919_s28, %s17919_s28 }
 0x13c   :  { %p17926_p0 = por %p17925_p13, %p17924_p12 }
 0x13e   :  { %p17927_p1 = pnand %p17926_p0, %p17920_p11 }
 0x140   :  { %17930 = shalt.err (!%p17927_p1)
}
 0x141   :  { %402 = dma.hbm_to_vmem [thread:$0]  %s19528_s17, 3072, %s397_s5, [#allocation30], %s19328_s18, %s19328_s18, %s19329_s22  }
 0x142   :  { %s17931_s9 = scalar_lea.hbm %s19538_s12, 1024 }
 0x143   :  { %p17932_p2 = scmp.ne.s32.totalorder %s19538_s12, %s17931_s9  ;;  %p17935_p3 = scmp.lt.u32.totalorder %s17931_s9, %s19538_s12 }
 0x145   :  { %p17937_p4 = pnand %p17935_p3, %p17932_p2 }
 0x147   :  { %17940 = shalt.err (!%p17937_p4)
}
 0x148   :  { %s17941_s30 = scalar_lea.vmem %s19849_s23, 1024  ;;  %p17946_p6 = scmp.lt.s32.totalorder %s19849_s23, %s19849_s23 }
 0x149   :  { %p17942_p5 = scmp.ne.s32.totalorder %s19849_s23, %s17941_s30  ;;  %p17947_p7 = scmp.lt.s32.totalorder %s17941_s30, %s17941_s30 }
 0x14b   :  { %p17948_p8 = por %p17947_p7, %p17946_p6 }
 0x14d   :  { %p17949_p9 = pnand %p17948_p8, %p17942_p5 }
 0x14f   :  { %17952 = shalt.err (!%p17949_p9)
}
 0x150   :  { %424 = dma.hbm_to_vmem [thread:$0]  %s19538_s12, 1024, %s19849_s23, [#allocation33], %s19328_s18, %s19328_s18, %s19329_s22  }
 0x151   :  { %s19338_s17 = smov [#allocation35]   ;;  %s19339_s20 = smov [#allocation38]  }
 0x152   :  { %s440_s25 = sshll.u32 %s19338_s17, 4  ;;  %s465_s1 = sshll.u32 %s19339_s20, 4  ;;  %s441_s25 = int_to_ptr.vmem [resolvable:$true] %s440_s25  ;;  %s466_s1 = int_to_ptr.vmem [resolvable:$true] %s465_s1 }
 0x153   :  { %s17953_s2 = scalar_lea.hbm %s19548_s27, 384 }
 0x154   :  { %p17954_p10 = scmp.ne.s32.totalorder %s19548_s27, %s17953_s2  ;;  %p17957_p11 = scmp.lt.u32.totalorder %s17953_s2, %s19548_s27 }
 0x156   :  { %p17959_p12 = pnand %p17957_p11, %p17954_p10 }
 0x158   :  { %17962 = shalt.err (!%p17959_p12)
}
 0x159   :  { %s17963_s0 = scalar_lea.vmem %s441_s25, 384  ;;  %p17968_p0 = scmp.lt.s32.totalorder %s441_s25, %s441_s25 }
 0x15a   :  { %p17964_p13 = scmp.ne.s32.totalorder %s441_s25, %s17963_s0  ;;  %p17969_p1 = scmp.lt.s32.totalorder %s17963_s0, %s17963_s0 }
 0x15c   :  { %p17970_p2 = por %p17969_p1, %p17968_p0 }
 0x15e   :  { %p17971_p3 = pnand %p17970_p2, %p17964_p13 }
 0x160   :  { %17974 = shalt.err (!%p17971_p3)
}
 0x161   :  { %446 = dma.hbm_to_vmem [thread:$0]  %s19548_s27, 384, %s441_s25, [#allocation36], %s19328_s18, %s19328_s18, %s19329_s22  }
 0x162   :  { %s17975_s12 = scalar_lea.hbm %s19558_s6, 16 }
 0x163   :  { %p17976_p4 = scmp.ne.s32.totalorder %s19558_s6, %s17975_s12  ;;  %p17979_p5 = scmp.lt.u32.totalorder %s17975_s12, %s19558_s6 }
 0x165   :  { %p17981_p6 = pnand %p17979_p5, %p17976_p4 }
 0x167   :  { %17984 = shalt.err (!%p17981_p6)
}
 0x168   :  { %s17985_s7 = scalar_lea.vmem %s466_s1, 16  ;;  %s17989_s10 = scalar_lea.vmem %s466_s1, 32 }
 0x169   :  { %p17986_p7 = scmp.ne.s32.totalorder %s466_s1, %s17985_s7  ;;  %p17990_p8 = scmp.lt.s32.totalorder %s466_s1, %s466_s1 }
 0x16a   :  { %p17991_p9 = scmp.lt.s32.totalorder %s17989_s10, %s17985_s7 }
 0x16c   :  { %p17992_p10 = por %p17991_p9, %p17990_p8 }
 0x16e   :  { %p17993_p11 = pnand %p17992_p10, %p17986_p7 }
 0x170   :  { %17996 = shalt.err (!%p17993_p11)
}
 0x171   :  { %468 = dma.hbm_to_vmem [thread:$0]  %s19558_s6, 16, %s466_s1, [#allocation39]  }
 0x172   :  { %s19340_s8 = smov [#allocation41]   ;;  %s19341_s4 = smov [#allocation44]  }
 0x173   :  { %s486_s27 = sshll.u32 %s19340_s8, 4  ;;  %s512_s11 = sshll.u32 %s19341_s4, 4  ;;  %s487_s27 = int_to_ptr.vmem [resolvable:$true] %s486_s27  ;;  %s19881_s11 = int_to_ptr.vmem [resolvable:$true] %s512_s11 }
 0x174   :  { %s17997_s19 = scalar_lea.hbm %s19568_s24, 3072 }
 0x175   :  { %p17998_p12 = scmp.ne.s32.totalorder %s19568_s24, %s17997_s19  ;;  %p18001_p13 = scmp.lt.u32.totalorder %s17997_s19, %s19568_s24 }
 0x177   :  { %p18003_p0 = pnand %p18001_p13, %p17998_p12 }
 0x179   :  { %18006 = shalt.err (!%p18003_p0)
}
 0x17a   :  { %s18007_s15 = scalar_lea.vmem %s487_s27, 3072  ;;  %p18012_p2 = scmp.lt.s32.totalorder %s487_s27, %s487_s27 }
 0x17b   :  { %p18008_p1 = scmp.ne.s32.totalorder %s487_s27, %s18007_s15  ;;  %p18013_p3 = scmp.lt.s32.totalorder %s18007_s15, %s18007_s15 }
 0x17d   :  { %p18014_p4 = por %p18013_p3, %p18012_p2 }
 0x17f   :  { %p18015_p5 = pnand %p18014_p4, %p18008_p1 }
 0x181   :  { %18018 = shalt.err (!%p18015_p5)
}
 0x182   :  { %492 = dma.hbm_to_vmem [thread:$0]  %s19568_s24, 3072, %s487_s27, [#allocation42], %s19328_s18, %s19328_s18, %s19329_s22  }
 0x183   :  { %s18019_s6 = scalar_lea.hbm %s19583_s29, 6144 }
 0x184   :  { %p18020_p6 = scmp.ne.s32.totalorder %s19583_s29, %s18019_s6  ;;  %p18023_p7 = scmp.lt.u32.totalorder %s18019_s6, %s19583_s29 }
 0x186   :  { %p18025_p8 = pnand %p18023_p7, %p18020_p6 }
 0x188   :  { %18028 = shalt.err (!%p18025_p8)
}
 0x189   :  { %s18029_s5 = scalar_lea.vmem %s19881_s11, 6144  ;;  %p18034_p10 = scmp.lt.s32.totalorder %s19881_s11, %s19881_s11 }
 0x18a   :  { %p18030_p9 = scmp.ne.s32.totalorder %s19881_s11, %s18029_s5  ;;  %p18035_p11 = scmp.lt.s32.totalorder %s18029_s5, %s18029_s5 }
 0x18c   :  { %p18036_p12 = por %p18035_p11, %p18034_p10 }
 0x18e   :  { %p18037_p13 = pnand %p18036_p12, %p18030_p9 }
 0x190   :  { %18040 = shalt.err (!%p18037_p13)
}
 0x191   :  { %s19342_s16 = smov 128   ;;  %s21382_s24 = sld [smem:[#allocation158_spill]] }
 0x192   :  { %s19343_s23 = smov 8   ;;  %s19344_s26 = smov [#allocation47]  }
 0x193   :  { %518 = dma.hbm_to_vmem [thread:$0]  %s19583_s29, 6144, %s19881_s11, [#allocation45], %s19342_s16, %s19342_s16, %s19343_s23  }
 0x194   :  { %s534_s28 = sshll.u32 %s19344_s26, 4  ;;  %s19345_s9 = smov [#allocation50]   ;;  %s535_s28 = int_to_ptr.vmem [resolvable:$true] %s534_s28 }
 0x195   :  { %s558_s30 = sshll.u32 %s19345_s9, 4  ;;  %s19902_s30 = int_to_ptr.vmem [resolvable:$true] %s558_s30 }
 0x197   :  { %s18041_s17 = scalar_lea.hbm %s21382_s24, 1024 }
 0x198   :  { %p18042_p0 = scmp.ne.s32.totalorder %s21382_s24, %s18041_s17  ;;  %p18045_p1 = scmp.lt.u32.totalorder %s18041_s17, %s21382_s24 }
 0x19a   :  { %p18047_p2 = pnand %p18045_p1, %p18042_p0 }
 0x19c   :  { %18050 = shalt.err (!%p18047_p2)
}
 0x19d   :  { %s18051_s25 = scalar_lea.vmem %s535_s28, 1024  ;;  %p18056_p4 = scmp.lt.s32.totalorder %s535_s28, %s535_s28 }
 0x19e   :  { %p18052_p3 = scmp.ne.s32.totalorder %s535_s28, %s18051_s25  ;;  %p18057_p5 = scmp.lt.s32.totalorder %s18051_s25, %s18051_s25 }
 0x1a0   :  { %p18058_p6 = por %p18057_p5, %p18056_p4 }
 0x1a2   :  { %p18059_p7 = pnand %p18058_p6, %p18052_p3 }
 0x1a4   :  { %18062 = shalt.err (!%p18059_p7)
}
 0x1a5   :  { %s21383_s29 = sld [smem:[#allocation161_spill]] }
 0x1a6   :  { %540 = dma.hbm_to_vmem [thread:$0]  %s21382_s24, 1024, %s535_s28, [#allocation48], %s19328_s18, %s19328_s18, %s19329_s22  }
 0x1ab   :  { %s18063_s20 = scalar_lea.hbm %s21383_s29, 768 }
 0x1ac   :  { %p18064_p8 = scmp.ne.s32.totalorder %s21383_s29, %s18063_s20  ;;  %p18067_p9 = scmp.lt.u32.totalorder %s18063_s20, %s21383_s29 }
 0x1ae   :  { %p18069_p10 = pnand %p18067_p9, %p18064_p8 }
 0x1b0   :  { %18072 = shalt.err (!%p18069_p10)
}
 0x1b1   :  { %s18073_s1 = scalar_lea.vmem %s19902_s30, 768  ;;  %p18078_p12 = scmp.lt.s32.totalorder %s19902_s30, %s19902_s30 }
 0x1b2   :  { %p18074_p11 = scmp.ne.s32.totalorder %s19902_s30, %s18073_s1  ;;  %p18079_p13 = scmp.lt.s32.totalorder %s18073_s1, %s18073_s1 }
 0x1b4   :  { %p18080_p0 = por %p18079_p13, %p18078_p12 }
 0x1b6   :  { %p18081_p1 = pnand %p18080_p0, %p18074_p11 }
 0x1b8   :  { %18084 = shalt.err (!%p18081_p1)
}
 0x1b9   :  { %s21384_s2 = sld [smem:[#allocation163_spill]]  ;;  %s19346_s0 = smov [#allocation53]  }
 0x1ba   :  { %564 = dma.hbm_to_vmem [thread:$0]  %s21383_s29, 768, %s19902_s30, [#allocation51], %s19328_s18, %s19328_s18, %s19329_s22  }
 0x1bb   :  { %s583_s12 = sshll.u32 %s19346_s0, 4  ;;  %s19347_s7 = smov [#allocation56]   ;;  %s584_s12 = int_to_ptr.vmem [resolvable:$true] %s583_s12 }
 0x1bc   :  { %s605_s10 = sshll.u32 %s19347_s7, 4  ;;  %s606_s10 = int_to_ptr.vmem [resolvable:$true] %s605_s10 }
 0x1bf   :  { %s18085_s8 = scalar_lea.hbm %s21384_s2, 16 }
 0x1c0   :  { %p18086_p2 = scmp.ne.s32.totalorder %s21384_s2, %s18085_s8  ;;  %p18089_p3 = scmp.lt.u32.totalorder %s18085_s8, %s21384_s2 }
 0x1c2   :  { %p18091_p4 = pnand %p18089_p3, %p18086_p2 }
 0x1c4   :  { %18094 = shalt.err (!%p18091_p4)
}
 0x1c5   :  { %s18095_s27 = scalar_lea.vmem %s584_s12, 16  ;;  %s18099_s4 = scalar_lea.vmem %s584_s12, 32 }
 0x1c6   :  { %p18096_p5 = scmp.ne.s32.totalorder %s584_s12, %s18095_s27  ;;  %p18100_p6 = scmp.lt.s32.totalorder %s584_s12, %s584_s12 }
 0x1c7   :  { %p18101_p7 = scmp.lt.s32.totalorder %s18099_s4, %s18095_s27 }
 0x1c9   :  { %p18102_p8 = por %p18101_p7, %p18100_p6 }
 0x1cb   :  { %p18103_p9 = pnand %p18102_p8, %p18096_p5 }
 0x1cd   :  { %18106 = shalt.err (!%p18103_p9)
}
 0x1ce   :  { %s21385_s11 = sld [smem:[#allocation165_spill]] }
 0x1cf   :  { %586 = dma.hbm_to_vmem [thread:$0]  %s21384_s2, 16, %s584_s12, [#allocation54]  }
 0x1d4   :  { %s18107_s19 = scalar_lea.hbm %s21385_s11, 16 }
 0x1d5   :  { %p18108_p10 = scmp.ne.s32.totalorder %s21385_s11, %s18107_s19  ;;  %p18111_p11 = scmp.lt.u32.totalorder %s18107_s19, %s21385_s11 }
 0x1d7   :  { %p18113_p12 = pnand %p18111_p11, %p18108_p10 }
 0x1d9   :  { %18116 = shalt.err (!%p18113_p12)
}
 0x1da   :  { %s18117_s15 = scalar_lea.vmem %s606_s10, 16  ;;  %s18121_s6 = scalar_lea.vmem %s606_s10, 32 }
 0x1db   :  { %p18118_p13 = scmp.ne.s32.totalorder %s606_s10, %s18117_s15  ;;  %p18122_p0 = scmp.lt.s32.totalorder %s606_s10, %s606_s10 }
 0x1dc   :  { %p18123_p1 = scmp.lt.s32.totalorder %s18121_s6, %s18117_s15 }
 0x1de   :  { %p18124_p2 = por %p18123_p1, %p18122_p0 }
 0x1e0   :  { %p18125_p3 = pnand %p18124_p2, %p18118_p13 }
 0x1e2   :  { %18128 = shalt.err (!%p18125_p3)
}
 0x1e3   :  { %s21386_s5 = sld [smem:[#allocation167_spill]]  ;;  %s19348_s24 = smov [#allocation59]  }
 0x1e4   :  { %608 = dma.hbm_to_vmem [thread:$0]  %s21385_s11, 16, %s606_s10, [#allocation57]  }
 0x1e5   :  { %s626_s26 = sshll.u32 %s19348_s24, 4  ;;  %s19349_s28 = smov [#allocation62]   ;;  %s627_s26 = int_to_ptr.vmem [resolvable:$true] %s626_s26 }
 0x1e6   :  { %s648_s9 = sshll.u32 %s19349_s28, 4  ;;  %s19931_s9 = int_to_ptr.vmem [resolvable:$true] %s648_s9 }
 0x1e9   :  { %s18129_s30 = scalar_lea.hbm %s21386_s5, 3072 }
 0x1ea   :  { %p18130_p4 = scmp.ne.s32.totalorder %s21386_s5, %s18129_s30  ;;  %p18133_p5 = scmp.lt.u32.totalorder %s18129_s30, %s21386_s5 }
 0x1ec   :  { %p18135_p6 = pnand %p18133_p5, %p18130_p4 }
 0x1ee   :  { %18138 = shalt.err (!%p18135_p6)
}
 0x1ef   :  { %s18139_s17 = scalar_lea.vmem %s627_s26, 3072  ;;  %p18144_p8 = scmp.lt.s32.totalorder %s627_s26, %s627_s26 }
 0x1f0   :  { %p18140_p7 = scmp.ne.s32.totalorder %s627_s26, %s18139_s17  ;;  %p18145_p9 = scmp.lt.s32.totalorder %s18139_s17, %s18139_s17 }
 0x1f2   :  { %p18146_p10 = por %p18145_p9, %p18144_p8 }
 0x1f4   :  { %p18147_p11 = pnand %p18146_p10, %p18140_p7 }
 0x1f6   :  { %18150 = shalt.err (!%p18147_p11)
}
 0x1f7   :  { %s21387_s25 = sld [smem:[#allocation169_spill]] }
 0x1f8   :  { %632 = dma.hbm_to_vmem [thread:$0]  %s21386_s5, 3072, %s627_s26, [#allocation60], %s19328_s18, %s19328_s18, %s19329_s22  }
 0x1fd   :  { %s18151_s29 = scalar_lea.hbm %s21387_s25, 1024 }
 0x1fe   :  { %p18152_p12 = scmp.ne.s32.totalorder %s21387_s25, %s18151_s29  ;;  %p18155_p13 = scmp.lt.u32.totalorder %s18151_s29, %s21387_s25 }
 0x200   :  { %p18157_p0 = pnand %p18155_p13, %p18152_p12 }
 0x202   :  { %18160 = shalt.err (!%p18157_p0)
}
 0x203   :  { %s18161_s20 = scalar_lea.vmem %s19931_s9, 1024  ;;  %p18166_p2 = scmp.lt.s32.totalorder %s19931_s9, %s19931_s9 }
 0x204   :  { %p18162_p1 = scmp.ne.s32.totalorder %s19931_s9, %s18161_s20  ;;  %p18167_p3 = scmp.lt.s32.totalorder %s18161_s20, %s18161_s20 }
 0x206   :  { %p18168_p4 = por %p18167_p3, %p18166_p2 }
 0x208   :  { %p18169_p5 = pnand %p18168_p4, %p18162_p1 }
 0x20a   :  { %18172 = shalt.err (!%p18169_p5)
}
 0x20b   :  { %s21388_s1 = sld [smem:[#allocation171_spill]]  ;;  %s19350_s2 = smov [#allocation65]  }
 0x20c   :  { %654 = dma.hbm_to_vmem [thread:$0]  %s21387_s25, 1024, %s19931_s9, [#allocation63], %s19328_s18, %s19328_s18, %s19329_s22  }
 0x20d   :  { %s670_s0 = sshll.u32 %s19350_s2, 4  ;;  %s19351_s12 = smov [#allocation68]   ;;  %s671_s0 = int_to_ptr.vmem [resolvable:$true] %s670_s0 }
 0x20e   :  { %s695_s7 = sshll.u32 %s19351_s12, 4  ;;  %s696_s7 = int_to_ptr.vmem [resolvable:$true] %s695_s7 }
 0x211   :  { %s18173_s10 = scalar_lea.hbm %s21388_s1, 512 }
 0x212   :  { %p18174_p6 = scmp.ne.s32.totalorder %s21388_s1, %s18173_s10  ;;  %p18177_p7 = scmp.lt.u32.totalorder %s18173_s10, %s21388_s1 }
 0x214   :  { %p18179_p8 = pnand %p18177_p7, %p18174_p6 }
 0x216   :  { %18182 = shalt.err (!%p18179_p8)
}
 0x217   :  { %s18183_s8 = scalar_lea.vmem %s671_s0, 512  ;;  %p18188_p10 = scmp.lt.s32.totalorder %s671_s0, %s671_s0 }
 0x218   :  { %p18184_p9 = scmp.ne.s32.totalorder %s671_s0, %s18183_s8  ;;  %p18189_p11 = scmp.lt.s32.totalorder %s18183_s8, %s18183_s8 }
 0x21a   :  { %p18190_p12 = por %p18189_p11, %p18188_p10 }
 0x21c   :  { %p18191_p13 = pnand %p18190_p12, %p18184_p9 }
 0x21e   :  { %18194 = shalt.err (!%p18191_p13)
}
 0x21f   :  { %s21389_s27 = sld [smem:[#allocation173_spill]] }
 0x220   :  { %676 = dma.hbm_to_vmem [thread:$0]  %s21388_s1, 512, %s671_s0, [#allocation66], %s19328_s18, %s19328_s18, %s19329_s22  }
 0x225   :  { %s18195_s4 = scalar_lea.hbm %s21389_s27, 16 }
 0x226   :  { %p18196_p0 = scmp.ne.s32.totalorder %s21389_s27, %s18195_s4  ;;  %p18199_p1 = scmp.lt.u32.totalorder %s18195_s4, %s21389_s27 }
 0x228   :  { %p18201_p2 = pnand %p18199_p1, %p18196_p0 }
 0x22a   :  { %18204 = shalt.err (!%p18201_p2)
}
 0x22b   :  { %s18205_s11 = scalar_lea.vmem %s696_s7, 16  ;;  %s18209_s19 = scalar_lea.vmem %s696_s7, 32 }
 0x22c   :  { %p18206_p3 = scmp.ne.s32.totalorder %s696_s7, %s18205_s11  ;;  %p18210_p4 = scmp.lt.s32.totalorder %s696_s7, %s696_s7 }
 0x22d   :  { %p18211_p5 = scmp.lt.s32.totalorder %s18209_s19, %s18205_s11 }
 0x22f   :  { %p18212_p6 = por %p18211_p5, %p18210_p4 }
 0x231   :  { %p18213_p7 = pnand %p18212_p6, %p18206_p3 }
 0x233   :  { %18216 = shalt.err (!%p18213_p7)
}
 0x234   :  { %s21390_s15 = sld [smem:[#allocation175_spill]]  ;;  %s19352_s6 = smov [#allocation71]  }
 0x235   :  { %698 = dma.hbm_to_vmem [thread:$0]  %s21389_s27, 16, %s696_s7, [#allocation69]  }
 0x236   :  { %s716_s5 = sshll.u32 %s19352_s6, 4  ;;  %s19353_s24 = smov [#allocation74]   ;;  %s717_s5 = int_to_ptr.vmem [resolvable:$true] %s716_s5 }
 0x237   :  { %s738_s26 = sshll.u32 %s19353_s24, 4  ;;  %s19963_s26 = int_to_ptr.vmem [resolvable:$true] %s738_s26 }
 0x23a   :  { %s18217_s28 = scalar_lea.hbm %s21390_s15, 3072 }
 0x23b   :  { %p18218_p8 = scmp.ne.s32.totalorder %s21390_s15, %s18217_s28  ;;  %p18221_p9 = scmp.lt.u32.totalorder %s18217_s28, %s21390_s15 }
 0x23d   :  { %p18223_p10 = pnand %p18221_p9, %p18218_p8 }
 0x23f   :  { %18226 = shalt.err (!%p18223_p10)
}
 0x240   :  { %s18227_s9 = scalar_lea.vmem %s717_s5, 3072  ;;  %p18232_p12 = scmp.lt.s32.totalorder %s717_s5, %s717_s5 }
 0x241   :  { %p18228_p11 = scmp.ne.s32.totalorder %s717_s5, %s18227_s9  ;;  %p18233_p13 = scmp.lt.s32.totalorder %s18227_s9, %s18227_s9 }
 0x243   :  { %p18234_p0 = por %p18233_p13, %p18232_p12 }
 0x245   :  { %p18235_p1 = pnand %p18234_p0, %p18228_p11 }
 0x247   :  { %18238 = shalt.err (!%p18235_p1)
}
 0x248   :  { %s21391_s30 = sld [smem:[#allocation177_spill]] }
 0x249   :  { %722 = dma.hbm_to_vmem [thread:$0]  %s21390_s15, 3072, %s717_s5, [#allocation72], %s19328_s18, %s19328_s18, %s19329_s22  }
 0x24e   :  { %s18239_s17 = scalar_lea.hbm %s21391_s30, 1024 }
 0x24f   :  { %p18240_p2 = scmp.ne.s32.totalorder %s21391_s30, %s18239_s17  ;;  %p18243_p3 = scmp.lt.u32.totalorder %s18239_s17, %s21391_s30 }
 0x251   :  { %p18245_p4 = pnand %p18243_p3, %p18240_p2 }
 0x253   :  { %18248 = shalt.err (!%p18245_p4)
}
 0x254   :  { %s18249_s25 = scalar_lea.vmem %s19963_s26, 1024  ;;  %p18254_p6 = scmp.lt.s32.totalorder %s19963_s26, %s19963_s26 }
 0x255   :  { %p18250_p5 = scmp.ne.s32.totalorder %s19963_s26, %s18249_s25  ;;  %p18255_p7 = scmp.lt.s32.totalorder %s18249_s25, %s18249_s25 }
 0x257   :  { %p18256_p8 = por %p18255_p7, %p18254_p6 }
 0x259   :  { %p18257_p9 = pnand %p18256_p8, %p18250_p5 }
 0x25b   :  { %18260 = shalt.err (!%p18257_p9)
}
 0x25c   :  { %s21392_s29 = sld [smem:[#allocation179_spill]]  ;;  %s19354_s20 = smov [#allocation77]  }
 0x25d   :  { %744 = dma.hbm_to_vmem [thread:$0]  %s21391_s30, 1024, %s19963_s26, [#allocation75], %s19328_s18, %s19328_s18, %s19329_s22  }
 0x25e   :  { %s760_s1 = sshll.u32 %s19354_s20, 4  ;;  %s19355_s2 = smov [#allocation80]   ;;  %s761_s1 = int_to_ptr.vmem [resolvable:$true] %s760_s1 }
 0x25f   :  { %s785_s0 = sshll.u32 %s19355_s2, 4  ;;  %s786_s0 = int_to_ptr.vmem [resolvable:$true] %s785_s0 }
 0x262   :  { %s18261_s12 = scalar_lea.hbm %s21392_s29, 384 }
 0x263   :  { %p18262_p10 = scmp.ne.s32.totalorder %s21392_s29, %s18261_s12  ;;  %p18265_p11 = scmp.lt.u32.totalorder %s18261_s12, %s21392_s29 }
 0x265   :  { %p18267_p12 = pnand %p18265_p11, %p18262_p10 }
 0x267   :  { %18270 = shalt.err (!%p18267_p12)
}
 0x268   :  { %s18271_s7 = scalar_lea.vmem %s761_s1, 384  ;;  %p18276_p0 = scmp.lt.s32.totalorder %s761_s1, %s761_s1 }
 0x269   :  { %p18272_p13 = scmp.ne.s32.totalorder %s761_s1, %s18271_s7  ;;  %p18277_p1 = scmp.lt.s32.totalorder %s18271_s7, %s18271_s7 }
 0x26b   :  { %p18278_p2 = por %p18277_p1, %p18276_p0 }
 0x26d   :  { %p18279_p3 = pnand %p18278_p2, %p18272_p13 }
 0x26f   :  { %18282 = shalt.err (!%p18279_p3)
}
 0x270   :  { %s21393_s10 = sld [smem:[#allocation181_spill]] }
 0x271   :  { %766 = dma.hbm_to_vmem [thread:$0]  %s21392_s29, 384, %s761_s1, [#allocation78], %s19328_s18, %s19328_s18, %s19329_s22  }
 0x276   :  { %s18283_s8 = scalar_lea.hbm %s21393_s10, 16 }
 0x277   :  { %p18284_p4 = scmp.ne.s32.totalorder %s21393_s10, %s18283_s8  ;;  %p18287_p5 = scmp.lt.u32.totalorder %s18283_s8, %s21393_s10 }
 0x279   :  { %p18289_p6 = pnand %p18287_p5, %p18284_p4 }
 0x27b   :  { %18292 = shalt.err (!%p18289_p6)
}
 0x27c   :  { %s18293_s27 = scalar_lea.vmem %s786_s0, 16  ;;  %s18297_s4 = scalar_lea.vmem %s786_s0, 32 }
 0x27d   :  { %p18294_p7 = scmp.ne.s32.totalorder %s786_s0, %s18293_s27  ;;  %p18298_p8 = scmp.lt.s32.totalorder %s786_s0, %s786_s0 }
 0x27e   :  { %p18299_p9 = scmp.lt.s32.totalorder %s18297_s4, %s18293_s27 }
 0x280   :  { %p18300_p10 = por %p18299_p9, %p18298_p8 }
 0x282   :  { %p18301_p11 = pnand %p18300_p10, %p18294_p7 }
 0x284   :  { %18304 = shalt.err (!%p18301_p11)
}
 0x285   :  { %s21394_s11 = sld [smem:[#allocation183_spill]]  ;;  %s19356_s19 = smov [#allocation83]  }
 0x286   :  { %788 = dma.hbm_to_vmem [thread:$0]  %s21393_s10, 16, %s786_s0, [#allocation81]  }
 0x287   :  { %s807_s15 = sshll.u32 %s19356_s19, 4  ;;  %s19357_s6 = smov [#allocation86]   ;;  %s808_s15 = int_to_ptr.vmem [resolvable:$true] %s807_s15 }
 0x288   :  { %s828_s5 = sshll.u32 %s19357_s6, 4  ;;  %s19995_s5 = int_to_ptr.vmem [resolvable:$true] %s828_s5 }
 0x28b   :  { %s18305_s24 = scalar_lea.hbm %s21394_s11, 16 }
 0x28c   :  { %p18306_p12 = scmp.ne.s32.totalorder %s21394_s11, %s18305_s24  ;;  %p18309_p13 = scmp.lt.u32.totalorder %s18305_s24, %s21394_s11 }
 0x28e   :  { %p18311_p0 = pnand %p18309_p13, %p18306_p12 }
 0x290   :  { %18314 = shalt.err (!%p18311_p0)
}
 0x291   :  { %s18315_s26 = scalar_lea.vmem %s808_s15, 16  ;;  %s18319_s28 = scalar_lea.vmem %s808_s15, 32 }
 0x292   :  { %p18316_p1 = scmp.ne.s32.totalorder %s808_s15, %s18315_s26  ;;  %p18320_p2 = scmp.lt.s32.totalorder %s808_s15, %s808_s15 }
 0x293   :  { %p18321_p3 = scmp.lt.s32.totalorder %s18319_s28, %s18315_s26 }
 0x295   :  { %p18322_p4 = por %p18321_p3, %p18320_p2 }
 0x297   :  { %p18323_p5 = pnand %p18322_p4, %p18316_p1 }
 0x299   :  { %18326 = shalt.err (!%p18323_p5)
}
 0x29a   :  { %s21395_s9 = sld [smem:[#allocation185_spill]] }
 0x29b   :  { %810 = dma.hbm_to_vmem [thread:$0]  %s21394_s11, 16, %s808_s15, [#allocation84]  }
 0x2a0   :  { %s18327_s30 = scalar_lea.hbm %s21395_s9, 6144 }
 0x2a1   :  { %p18328_p6 = scmp.ne.s32.totalorder %s21395_s9, %s18327_s30  ;;  %p18331_p7 = scmp.lt.u32.totalorder %s18327_s30, %s21395_s9 }
 0x2a3   :  { %p18333_p8 = pnand %p18331_p7, %p18328_p6 }
 0x2a5   :  { %18336 = shalt.err (!%p18333_p8)
}
 0x2a6   :  { %s18337_s17 = scalar_lea.vmem %s19995_s5, 6144  ;;  %p18342_p10 = scmp.lt.s32.totalorder %s19995_s5, %s19995_s5 }
 0x2a7   :  { %p18338_p9 = scmp.ne.s32.totalorder %s19995_s5, %s18337_s17  ;;  %p18343_p11 = scmp.lt.s32.totalorder %s18337_s17, %s18337_s17 }
 0x2a9   :  { %p18344_p12 = por %p18343_p11, %p18342_p10 }
 0x2ab   :  { %p18345_p13 = pnand %p18344_p12, %p18338_p9 }
 0x2ad   :  { %18348 = shalt.err (!%p18345_p13)
}
 0x2ae   :  { %s21396_s25 = sld [smem:[#allocation187_spill]]  ;;  %s19358_s29 = smov [#allocation89]  }
 0x2af   :  { %834 = dma.hbm_to_vmem [thread:$0]  %s21395_s9, 6144, %s19995_s5, [#allocation87], %s19328_s18, %s19328_s18, %s19329_s22  }
 0x2b0   :  { %s850_s20 = sshll.u32 %s19358_s29, 4  ;;  %s19359_s1 = smov [#allocation92]   ;;  %s851_s20 = int_to_ptr.vmem [resolvable:$true] %s850_s20 }
 0x2b1   :  { %s874_s2 = sshll.u32 %s19359_s1, 4  ;;  %s20013_s2 = int_to_ptr.vmem [resolvable:$true] %s874_s2 }
 0x2b4   :  { %s18349_s0 = scalar_lea.hbm %s21396_s25, 384 }
 0x2b5   :  { %p18350_p0 = scmp.ne.s32.totalorder %s21396_s25, %s18349_s0  ;;  %p18353_p1 = scmp.lt.u32.totalorder %s18349_s0, %s21396_s25 }
 0x2b7   :  { %p18355_p2 = pnand %p18353_p1, %p18350_p0 }
 0x2b9   :  { %18358 = shalt.err (!%p18355_p2)
}
 0x2ba   :  { %s18359_s12 = scalar_lea.vmem %s851_s20, 384  ;;  %p18364_p4 = scmp.lt.s32.totalorder %s851_s20, %s851_s20 }
 0x2bb   :  { %p18360_p3 = scmp.ne.s32.totalorder %s851_s20, %s18359_s12  ;;  %p18365_p5 = scmp.lt.s32.totalorder %s18359_s12, %s18359_s12 }
 0x2bd   :  { %p18366_p6 = por %p18365_p5, %p18364_p4 }
 0x2bf   :  { %p18367_p7 = pnand %p18366_p6, %p18360_p3 }
 0x2c1   :  { %18370 = shalt.err (!%p18367_p7)
}
 0x2c2   :  { %s21397_s7 = sld [smem:[#allocation189_spill]] }
 0x2c3   :  { %856 = dma.hbm_to_vmem [thread:$0]  %s21396_s25, 384, %s851_s20, [#allocation90], %s19328_s18, %s19328_s18, %s19329_s22  }
 0x2c8   :  { %s18371_s10 = scalar_lea.hbm %s21397_s7, 4096 }
 0x2c9   :  { %p18372_p8 = scmp.ne.s32.totalorder %s21397_s7, %s18371_s10  ;;  %p18375_p9 = scmp.lt.u32.totalorder %s18371_s10, %s21397_s7 }
 0x2cb   :  { %p18377_p10 = pnand %p18375_p9, %p18372_p8 }
 0x2cd   :  { %18380 = shalt.err (!%p18377_p10)
}
 0x2ce   :  { %s18381_s8 = scalar_lea.vmem %s20013_s2, 4096  ;;  %p18386_p12 = scmp.lt.s32.totalorder %s20013_s2, %s20013_s2 }
 0x2cf   :  { %p18382_p11 = scmp.ne.s32.totalorder %s20013_s2, %s18381_s8  ;;  %p18387_p13 = scmp.lt.s32.totalorder %s18381_s8, %s18381_s8 }
 0x2d1   :  { %p18388_p0 = por %p18387_p13, %p18386_p12 }
 0x2d3   :  { %p18389_p1 = pnand %p18388_p0, %p18382_p11 }
 0x2d5   :  { %18392 = shalt.err (!%p18389_p1)
}
 0x2d6   :  { %s21398_s27 = sld [smem:[#allocation191_spill]]  ;;  %s19360_s4 = smov [#allocation95]  }
 0x2d7   :  { %880 = dma.hbm_to_vmem [thread:$0]  %s21397_s7, 4096, %s20013_s2, [#allocation93], %s19342_s16, %s19342_s16, %s19343_s23  }
 0x2d8   :  { %s896_s11 = sshll.u32 %s19360_s4, 4  ;;  %s897_s11 = int_to_ptr.vmem [resolvable:$true] %s896_s11 }
 0x2dc   :  { %s18393_s19 = scalar_lea.hbm %s21398_s27, 4096 }
 0x2dd   :  { %p18394_p2 = scmp.ne.s32.totalorder %s21398_s27, %s18393_s19  ;;  %p18397_p3 = scmp.lt.u32.totalorder %s18393_s19, %s21398_s27 }
 0x2df   :  { %p18399_p4 = pnand %p18397_p3, %p18394_p2 }
 0x2e1   :  { %18402 = shalt.err (!%p18399_p4)
}
 0x2e2   :  { %s18403_s15 = scalar_lea.vmem %s897_s11, 4096  ;;  %p18408_p6 = scmp.lt.s32.totalorder %s897_s11, %s897_s11 }
 0x2e3   :  { %p18404_p5 = scmp.ne.s32.totalorder %s897_s11, %s18403_s15  ;;  %p18409_p7 = scmp.lt.s32.totalorder %s18403_s15, %s18403_s15 }
 0x2e5   :  { %p18410_p8 = por %p18409_p7, %p18408_p6 }
 0x2e7   :  { %p18411_p9 = pnand %p18410_p8, %p18404_p5 }
 0x2e9   :  { %18414 = shalt.err (!%p18411_p9)
}
 0x2ea   :  { %s19361_s6 = smov 256   ;;  %s21399_s5 = sld [smem:[#allocation140_spill]] }
 0x2eb   :  { %s19362_s16 = smov 16   ;;  %s19363_s23 = smov [#allocation2]  }
 0x2ec   :  { %902 = dma.hbm_to_vmem [thread:$0]  %s21398_s27, 4096, %s897_s11, [#allocation96], %s19361_s6, %s19361_s6, %s19362_s16  }
 0x2ed   :  { %s200_s24 = sshll.u32 %s19363_s23, 4  ;;  %s19364_s26 = smov [#allocation7]   ;;  %s201_s24 = int_to_ptr.vmem [resolvable:$true] %s200_s24 }
 0x2ee   :  { %s226_s28 = sshll.u32 %s19364_s26, 4  ;;  %s227_s28 = int_to_ptr.vmem [resolvable:$true] %s226_s28 }
 0x2f0   :  { %s18415_s9 = scalar_lea.hbm %s21399_s5, 384 }
 0x2f1   :  { %p18416_p10 = scmp.ne.s32.totalorder %s21399_s5, %s18415_s9  ;;  %p18419_p11 = scmp.lt.u32.totalorder %s18415_s9, %s21399_s5 }
 0x2f3   :  { %p18421_p12 = pnand %p18419_p11, %p18416_p10 }
 0x2f5   :  { %18424 = shalt.err (!%p18421_p12)
}
 0x2f6   :  { %s18425_s30 = scalar_lea.vmem %s201_s24, 384  ;;  %p18430_p0 = scmp.lt.s32.totalorder %s201_s24, %s201_s24 }
 0x2f7   :  { %p18426_p13 = scmp.ne.s32.totalorder %s201_s24, %s18425_s30  ;;  %p18431_p1 = scmp.lt.s32.totalorder %s18425_s30, %s18425_s30 }
 0x2f9   :  { %p18432_p2 = por %p18431_p1, %p18430_p0 }
 0x2fb   :  { %p18433_p3 = pnand %p18432_p2, %p18426_p13 }
 0x2fd   :  { %18436 = shalt.err (!%p18433_p3)
}
 0x2fe   :  { %s21400_s17 = sld [smem:[#allocation142_spill]] }
 0x2ff   :  { %206 = dma.hbm_to_vmem [thread:$0]  %s21399_s5, 384, %s201_s24, [#allocation3], %s19328_s18, %s19328_s18, %s19329_s22  }
 0x304   :  { %s18437_s25 = scalar_lea.hbm %s21400_s17, 1024 }
 0x305   :  { %p18438_p4 = scmp.ne.s32.totalorder %s21400_s17, %s18437_s25  ;;  %p18441_p5 = scmp.lt.u32.totalorder %s18437_s25, %s21400_s17 }
 0x307   :  { %p18443_p6 = pnand %p18441_p5, %p18438_p4 }
 0x309   :  { %18446 = shalt.err (!%p18443_p6)
}
 0x30a   :  { %s18447_s29 = scalar_lea.vmem %s227_s28, 1024  ;;  %p18452_p8 = scmp.lt.s32.totalorder %s227_s28, %s227_s28 }
 0x30b   :  { %p18448_p7 = scmp.ne.s32.totalorder %s227_s28, %s18447_s29  ;;  %p18453_p9 = scmp.lt.s32.totalorder %s18447_s29, %s18447_s29 }
 0x30d   :  { %p18454_p10 = por %p18453_p9, %p18452_p8 }
 0x30f   :  { %p18455_p11 = pnand %p18454_p10, %p18448_p7 }
 0x311   :  { %18458 = shalt.err (!%p18455_p11)
}
 0x312   :  { %s21401_s20 = sld [smem:[#allocation143_spill]]  ;;  %s19365_s1 = smov [#allocation10]  }
 0x313   :  { %232 = dma.hbm_to_vmem [thread:$0]  %s21400_s17, 1024, %s227_s28, [#allocation6], %s19328_s18, %s19328_s18, %s19329_s22  }
 0x314   :  { %s248_s2 = sshll.u32 %s19365_s1, 4  ;;  %s19366_s0 = smov [#allocation13]   ;;  %s249_s2 = int_to_ptr.vmem [resolvable:$true] %s248_s2 }
 0x315   :  { %s273_s12 = sshll.u32 %s19366_s0, 4  ;;  %s274_s12 = int_to_ptr.vmem [resolvable:$true] %s273_s12 }
 0x318   :  { %s18459_s7 = scalar_lea.hbm %s21401_s20, 384 }
 0x319   :  { %p18460_p12 = scmp.ne.s32.totalorder %s21401_s20, %s18459_s7  ;;  %p18463_p13 = scmp.lt.u32.totalorder %s18459_s7, %s21401_s20 }
 0x31b   :  { %p18465_p0 = pnand %p18463_p13, %p18460_p12 }
 0x31d   :  { %18468 = shalt.err (!%p18465_p0)
}
 0x31e   :  { %s18469_s10 = scalar_lea.vmem %s249_s2, 384  ;;  %p18474_p2 = scmp.lt.s32.totalorder %s249_s2, %s249_s2 }
 0x31f   :  { %p18470_p1 = scmp.ne.s32.totalorder %s249_s2, %s18469_s10  ;;  %p18475_p3 = scmp.lt.s32.totalorder %s18469_s10, %s18469_s10 }
 0x321   :  { %p18476_p4 = por %p18475_p3, %p18474_p2 }
 0x323   :  { %p18477_p5 = pnand %p18476_p4, %p18470_p1 }
 0x325   :  { %18480 = shalt.err (!%p18477_p5)
}
 0x326   :  { %s21402_s8 = sld [smem:[#allocation144_spill]] }
 0x327   :  { %254 = dma.hbm_to_vmem [thread:$0]  %s21401_s20, 384, %s249_s2, [#allocation9], %s19328_s18, %s19328_s18, %s19329_s22  }
 0x32c   :  { %s18481_s27 = scalar_lea.hbm %s21402_s8, 16 }
 0x32d   :  { %p18482_p6 = scmp.ne.s32.totalorder %s21402_s8, %s18481_s27  ;;  %p18485_p7 = scmp.lt.u32.totalorder %s18481_s27, %s21402_s8 }
 0x32f   :  { %p18487_p8 = pnand %p18485_p7, %p18482_p6 }
 0x331   :  { %18490 = shalt.err (!%p18487_p8)
}
 0x332   :  { %s18491_s4 = scalar_lea.vmem %s274_s12, 16  ;;  %s18495_s11 = scalar_lea.vmem %s274_s12, 32 }
 0x333   :  { %p18492_p9 = scmp.ne.s32.totalorder %s274_s12, %s18491_s4  ;;  %p18496_p10 = scmp.lt.s32.totalorder %s274_s12, %s274_s12 }
 0x334   :  { %p18497_p11 = scmp.lt.s32.totalorder %s18495_s11, %s18491_s4 }
 0x336   :  { %p18498_p12 = por %p18497_p11, %p18496_p10 }
 0x338   :  { %p18499_p13 = pnand %p18498_p12, %p18492_p9 }
 0x33a   :  { %18502 = shalt.err (!%p18499_p13)
}
 0x33b   :  { %s21403_s19 = sld [smem:[#allocation145_spill]]  ;;  %s19367_s15 = smov [#allocation16]  }
 0x33c   :  { %276 = dma.hbm_to_vmem [thread:$0]  %s21402_s8, 16, %s274_s12, [#allocation12]  }
 0x33d   :  { %s295_s5 = sshll.u32 %s19367_s15, 4  ;;  %s19368_s23 = smov [#allocation19]   ;;  %s296_s5 = int_to_ptr.vmem [resolvable:$true] %s295_s5 }
 0x33e   :  { %s319_s24 = sshll.u32 %s19368_s23, 4  ;;  %s320_s24 = int_to_ptr.vmem [resolvable:$true] %s319_s24 }
 0x341   :  { %s18503_s26 = scalar_lea.hbm %s21403_s19, 16 }
 0x342   :  { %p18504_p0 = scmp.ne.s32.totalorder %s21403_s19, %s18503_s26  ;;  %p18507_p1 = scmp.lt.u32.totalorder %s18503_s26, %s21403_s19 }
 0x344   :  { %p18509_p2 = pnand %p18507_p1, %p18504_p0 }
 0x346   :  { %18512 = shalt.err (!%p18509_p2)
}
 0x347   :  { %s18513_s28 = scalar_lea.vmem %s296_s5, 16  ;;  %s18517_s9 = scalar_lea.vmem %s296_s5, 32 }
 0x348   :  { %p18514_p3 = scmp.ne.s32.totalorder %s296_s5, %s18513_s28  ;;  %p18518_p4 = scmp.lt.s32.totalorder %s296_s5, %s296_s5 }
 0x349   :  { %p18519_p5 = scmp.lt.s32.totalorder %s18517_s9, %s18513_s28 }
 0x34b   :  { %p18520_p6 = por %p18519_p5, %p18518_p4 }
 0x34d   :  { %p18521_p7 = pnand %p18520_p6, %p18514_p3 }
 0x34f   :  { %18524 = shalt.err (!%p18521_p7)
}
 0x350   :  { %s21404_s30 = sld [smem:[#allocation147_spill]] }
 0x351   :  { %298 = dma.hbm_to_vmem [thread:$0]  %s21403_s19, 16, %s296_s5, [#allocation15]  }
 0x356   :  { %s18525_s17 = scalar_lea.hbm %s21404_s30, 16 }
 0x357   :  { %p18526_p8 = scmp.ne.s32.totalorder %s21404_s30, %s18525_s17  ;;  %p18529_p9 = scmp.lt.u32.totalorder %s18525_s17, %s21404_s30 }
 0x359   :  { %p18531_p10 = pnand %p18529_p9, %p18526_p8 }
 0x35b   :  { %18534 = shalt.err (!%p18531_p10)
}
 0x35c   :  { %s18535_s25 = scalar_lea.vmem %s320_s24, 16  ;;  %s18539_s29 = scalar_lea.vmem %s320_s24, 32 }
 0x35d   :  { %p18536_p11 = scmp.ne.s32.totalorder %s320_s24, %s18535_s25  ;;  %p18540_p12 = scmp.lt.s32.totalorder %s320_s24, %s320_s24 }
 0x35e   :  { %p18541_p13 = scmp.lt.s32.totalorder %s18539_s29, %s18535_s25 }
 0x360   :  { %p18542_p0 = por %p18541_p13, %p18540_p12 }
 0x362   :  { %p18543_p1 = pnand %p18542_p0, %p18536_p11 }
 0x364   :  { %18546 = shalt.err (!%p18543_p1)
}
 0x365   :  { %s21405_s20 = sld [smem:[#allocation148_spill]]  ;;  %s19369_s1 = smov [#allocation22]  }
 0x366   :  { %322 = dma.hbm_to_vmem [thread:$0]  %s21404_s30, 16, %s320_s24, [#allocation18]  }
 0x367   :  { %s340_s2 = sshll.u32 %s19369_s1, 4  ;;  %s19370_s0 = smov [#allocation25]   ;;  %s341_s2 = int_to_ptr.vmem [resolvable:$true] %s340_s2 }
 0x368   :  { %s362_s12 = sshll.u32 %s19370_s0, 4  ;;  %s363_s12 = int_to_ptr.vmem [resolvable:$true] %s362_s12 }
 0x36b   :  { %s18547_s7 = scalar_lea.hbm %s21405_s20, 3072 }
 0x36c   :  { %p18548_p2 = scmp.ne.s32.totalorder %s21405_s20, %s18547_s7  ;;  %p18551_p3 = scmp.lt.u32.totalorder %s18547_s7, %s21405_s20 }
 0x36e   :  { %p18553_p4 = pnand %p18551_p3, %p18548_p2 }
 0x370   :  { %18556 = shalt.err (!%p18553_p4)
}
 0x371   :  { %s18557_s10 = scalar_lea.vmem %s341_s2, 3072  ;;  %p18562_p6 = scmp.lt.s32.totalorder %s341_s2, %s341_s2 }
 0x372   :  { %p18558_p5 = scmp.ne.s32.totalorder %s341_s2, %s18557_s10  ;;  %p18563_p7 = scmp.lt.s32.totalorder %s18557_s10, %s18557_s10 }
 0x374   :  { %p18564_p8 = por %p18563_p7, %p18562_p6 }
 0x376   :  { %p18565_p9 = pnand %p18564_p8, %p18558_p5 }
 0x378   :  { %18568 = shalt.err (!%p18565_p9)
}
 0x379   :  { %s21406_s8 = sld [smem:[#allocation149_spill]] }
 0x37a   :  { %346 = dma.hbm_to_vmem [thread:$0]  %s21405_s20, 3072, %s341_s2, [#allocation21], %s19328_s18, %s19328_s18, %s19329_s22  }
 0x37f   :  { %s18569_s27 = scalar_lea.hbm %s21406_s8, 1024 }
 0x380   :  { %p18570_p10 = scmp.ne.s32.totalorder %s21406_s8, %s18569_s27  ;;  %p18573_p11 = scmp.lt.u32.totalorder %s18569_s27, %s21406_s8 }
 0x382   :  { %p18575_p12 = pnand %p18573_p11, %p18570_p10 }
 0x384   :  { %18578 = shalt.err (!%p18575_p12)
}
 0x385   :  { %s18579_s4 = scalar_lea.vmem %s363_s12, 1024  ;;  %p18584_p0 = scmp.lt.s32.totalorder %s363_s12, %s363_s12 }
 0x386   :  { %p18580_p13 = scmp.ne.s32.totalorder %s363_s12, %s18579_s4  ;;  %p18585_p1 = scmp.lt.s32.totalorder %s18579_s4, %s18579_s4 }
 0x388   :  { %p18586_p2 = por %p18585_p1, %p18584_p0 }
 0x38a   :  { %p18587_p3 = pnand %p18586_p2, %p18580_p13 }
 0x38c   :  { %18590 = shalt.err (!%p18587_p3)
}
 0x38d   :  { %s21407_s11 = sld [smem:[#allocation150_spill]]  ;;  %s19371_s19 = smov [#allocation28]  }
 0x38e   :  { %368 = dma.hbm_to_vmem [thread:$0]  %s21406_s8, 1024, %s363_s12, [#allocation24], %s19328_s18, %s19328_s18, %s19329_s22  }
 0x38f   :  { %s384_s15 = sshll.u32 %s19371_s19, 4  ;;  %s19372_s5 = smov [#allocation31]   ;;  %s385_s15 = int_to_ptr.vmem [resolvable:$true] %s384_s15 }
 0x390   :  { %s409_s23 = sshll.u32 %s19372_s5, 4  ;;  %s410_s23 = int_to_ptr.vmem [resolvable:$true] %s409_s23 }
 0x393   :  { %s18591_s24 = scalar_lea.hbm %s21407_s11, 768 }
 0x394   :  { %p18592_p4 = scmp.ne.s32.totalorder %s21407_s11, %s18591_s24  ;;  %p18595_p5 = scmp.lt.u32.totalorder %s18591_s24, %s21407_s11 }
 0x396   :  { %p18597_p6 = pnand %p18595_p5, %p18592_p4 }
 0x398   :  { %18600 = shalt.err (!%p18597_p6)
}
 0x399   :  { %s18601_s26 = scalar_lea.vmem %s385_s15, 768  ;;  %p18606_p8 = scmp.lt.s32.totalorder %s385_s15, %s385_s15 }
 0x39a   :  { %p18602_p7 = scmp.ne.s32.totalorder %s385_s15, %s18601_s26  ;;  %p18607_p9 = scmp.lt.s32.totalorder %s18601_s26, %s18601_s26 }
 0x39c   :  { %p18608_p10 = por %p18607_p9, %p18606_p8 }
 0x39e   :  { %p18609_p11 = pnand %p18608_p10, %p18602_p7 }
 0x3a0   :  { %18612 = shalt.err (!%p18609_p11)
}
 0x3a1   :  { %s21408_s28 = sld [smem:[#allocation151_spill]] }
 0x3a2   :  { %390 = dma.hbm_to_vmem [thread:$0]  %s21407_s11, 768, %s385_s15, [#allocation27], %s19328_s18, %s19328_s18, %s19329_s22  }
 0x3a7   :  { %s18613_s9 = scalar_lea.hbm %s21408_s28, 16 }
 0x3a8   :  { %p18614_p12 = scmp.ne.s32.totalorder %s21408_s28, %s18613_s9  ;;  %p18617_p13 = scmp.lt.u32.totalorder %s18613_s9, %s21408_s28 }
 0x3aa   :  { %p18619_p0 = pnand %p18617_p13, %p18614_p12 }
 0x3ac   :  { %18622 = shalt.err (!%p18619_p0)
}
 0x3ad   :  { %s18623_s30 = scalar_lea.vmem %s410_s23, 16  ;;  %s18627_s17 = scalar_lea.vmem %s410_s23, 32 }
 0x3ae   :  { %p18624_p1 = scmp.ne.s32.totalorder %s410_s23, %s18623_s30  ;;  %p18628_p2 = scmp.lt.s32.totalorder %s410_s23, %s410_s23 }
 0x3af   :  { %p18629_p3 = scmp.lt.s32.totalorder %s18627_s17, %s18623_s30 }
 0x3b1   :  { %p18630_p4 = por %p18629_p3, %p18628_p2 }
 0x3b3   :  { %p18631_p5 = pnand %p18630_p4, %p18624_p1 }
 0x3b5   :  { %18634 = shalt.err (!%p18631_p5)
}
 0x3b6   :  { %s21409_s25 = sld [smem:[#allocation152_spill]]  ;;  %s19373_s29 = smov [#allocation34]  }
 0x3b7   :  { %412 = dma.hbm_to_vmem [thread:$0]  %s21408_s28, 16, %s410_s23, [#allocation30]  }
 0x3b8   :  { %s431_s20 = sshll.u32 %s19373_s29, 4  ;;  %s19374_s1 = smov [#allocation37]   ;;  %s432_s20 = int_to_ptr.vmem [resolvable:$true] %s431_s20 }
 0x3b9   :  { %s452_s2 = sshll.u32 %s19374_s1, 4  ;;  %s453_s2 = int_to_ptr.vmem [resolvable:$true] %s452_s2 }
 0x3bc   :  { %s18635_s0 = scalar_lea.hbm %s21409_s25, 16 }
 0x3bd   :  { %p18636_p6 = scmp.ne.s32.totalorder %s21409_s25, %s18635_s0  ;;  %p18639_p7 = scmp.lt.u32.totalorder %s18635_s0, %s21409_s25 }
 0x3bf   :  { %p18641_p8 = pnand %p18639_p7, %p18636_p6 }
 0x3c1   :  { %18644 = shalt.err (!%p18641_p8)
}
 0x3c2   :  { %s18645_s12 = scalar_lea.vmem %s432_s20, 16  ;;  %s18649_s7 = scalar_lea.vmem %s432_s20, 32 }
 0x3c3   :  { %p18646_p9 = scmp.ne.s32.totalorder %s432_s20, %s18645_s12  ;;  %p18650_p10 = scmp.lt.s32.totalorder %s432_s20, %s432_s20 }
 0x3c4   :  { %p18651_p11 = scmp.lt.s32.totalorder %s18649_s7, %s18645_s12 }
 0x3c6   :  { %p18652_p12 = por %p18651_p11, %p18650_p10 }
 0x3c8   :  { %p18653_p13 = pnand %p18652_p12, %p18646_p9 }
 0x3ca   :  { %18656 = shalt.err (!%p18653_p13)
}
 0x3cb   :  { %s21410_s10 = sld [smem:[#allocation153_spill]] }
 0x3cc   :  { %434 = dma.hbm_to_vmem [thread:$0]  %s21409_s25, 16, %s432_s20, [#allocation33]  }
 0x3d1   :  { %s18657_s8 = scalar_lea.hbm %s21410_s10, 3072 }
 0x3d2   :  { %p18658_p0 = scmp.ne.s32.totalorder %s21410_s10, %s18657_s8  ;;  %p18661_p1 = scmp.lt.u32.totalorder %s18657_s8, %s21410_s10 }
 0x3d4   :  { %p18663_p2 = pnand %p18661_p1, %p18658_p0 }
 0x3d6   :  { %18666 = shalt.err (!%p18663_p2)
}
 0x3d7   :  { %s18667_s27 = scalar_lea.vmem %s453_s2, 3072  ;;  %p18672_p4 = scmp.lt.s32.totalorder %s453_s2, %s453_s2 }
 0x3d8   :  { %p18668_p3 = scmp.ne.s32.totalorder %s453_s2, %s18667_s27  ;;  %p18673_p5 = scmp.lt.s32.totalorder %s18667_s27, %s18667_s27 }
 0x3da   :  { %p18674_p6 = por %p18673_p5, %p18672_p4 }
 0x3dc   :  { %p18675_p7 = pnand %p18674_p6, %p18668_p3 }
 0x3de   :  { %18678 = shalt.err (!%p18675_p7)
}
 0x3df   :  { %s21411_s4 = sld [smem:[#allocation154_spill]]  ;;  %s19375_s11 = smov [#allocation40]  }
 0x3e0   :  { %458 = dma.hbm_to_vmem [thread:$0]  %s21410_s10, 3072, %s453_s2, [#allocation36], %s19328_s18, %s19328_s18, %s19329_s22  }
 0x3e1   :  { %s474_s19 = sshll.u32 %s19375_s11, 4  ;;  %s19376_s15 = smov [#allocation43]   ;;  %s475_s19 = int_to_ptr.vmem [resolvable:$true] %s474_s19 }
 0x3e2   :  { %s500_s5 = sshll.u32 %s19376_s15, 4  ;;  %s501_s5 = int_to_ptr.vmem [resolvable:$true] %s500_s5 }
 0x3e5   :  { %s18679_s23 = scalar_lea.hbm %s21411_s4, 1536 }
 0x3e6   :  { %p18680_p8 = scmp.ne.s32.totalorder %s21411_s4, %s18679_s23  ;;  %p18683_p9 = scmp.lt.u32.totalorder %s18679_s23, %s21411_s4 }
 0x3e8   :  { %p18685_p10 = pnand %p18683_p9, %p18680_p8 }
 0x3ea   :  { %18688 = shalt.err (!%p18685_p10)
}
 0x3eb   :  { %s18689_s24 = scalar_lea.vmem %s475_s19, 1536  ;;  %p18694_p12 = scmp.lt.s32.totalorder %s475_s19, %s475_s19 }
 0x3ec   :  { %p18690_p11 = scmp.ne.s32.totalorder %s475_s19, %s18689_s24  ;;  %p18695_p13 = scmp.lt.s32.totalorder %s18689_s24, %s18689_s24 }
 0x3ee   :  { %p18696_p0 = por %p18695_p13, %p18694_p12 }
 0x3f0   :  { %p18697_p1 = pnand %p18696_p0, %p18690_p11 }
 0x3f2   :  { %18700 = shalt.err (!%p18697_p1)
}
 0x3f3   :  { %s21412_s26 = sld [smem:[#allocation156_spill]] }
 0x3f4   :  { %480 = dma.hbm_to_vmem [thread:$0]  %s21411_s4, 1536, %s475_s19, [#allocation39], %s19328_s18, %s19328_s18, %s19329_s22  }
 0x3f9   :  { %s18701_s28 = scalar_lea.hbm %s21412_s26, 1536 }
 0x3fa   :  { %p18702_p2 = scmp.ne.s32.totalorder %s21412_s26, %s18701_s28  ;;  %p18705_p3 = scmp.lt.u32.totalorder %s18701_s28, %s21412_s26 }
 0x3fc   :  { %p18707_p4 = pnand %p18705_p3, %p18702_p2 }
 0x3fe   :  { %18710 = shalt.err (!%p18707_p4)
}
 0x3ff   :  { %s18711_s9 = scalar_lea.vmem %s501_s5, 1536  ;;  %p18716_p6 = scmp.lt.s32.totalorder %s501_s5, %s501_s5 }
 0x400   :  { %p18712_p5 = scmp.ne.s32.totalorder %s501_s5, %s18711_s9  ;;  %p18717_p7 = scmp.lt.s32.totalorder %s18711_s9, %s18711_s9 }
 0x402   :  { %p18718_p8 = por %p18717_p7, %p18716_p6 }
 0x404   :  { %p18719_p9 = pnand %p18718_p8, %p18712_p5 }
 0x406   :  { %18722 = shalt.err (!%p18719_p9)
}
 0x407   :  { %s21413_s30 = sld [smem:[#allocation157_spill]]  ;;  %s19377_s17 = smov [#allocation46]  }
 0x408   :  { %506 = dma.hbm_to_vmem [thread:$0]  %s21412_s26, 1536, %s501_s5, [#allocation42], %s19328_s18, %s19328_s18, %s19329_s22  }
 0x409   :  { %s525_s25 = sshll.u32 %s19377_s17, 4  ;;  %s19378_s29 = smov [#allocation49]   ;;  %s526_s25 = int_to_ptr.vmem [resolvable:$true] %s525_s25 }
 0x40a   :  { %s549_s20 = sshll.u32 %s19378_s29, 4  ;;  %s550_s20 = int_to_ptr.vmem [resolvable:$true] %s549_s20 }
 0x40d   :  { %s18723_s1 = scalar_lea.hbm %s21413_s30, 16 }
 0x40e   :  { %p18724_p10 = scmp.ne.s32.totalorder %s21413_s30, %s18723_s1  ;;  %p18727_p11 = scmp.lt.u32.totalorder %s18723_s1, %s21413_s30 }
 0x410   :  { %p18729_p12 = pnand %p18727_p11, %p18724_p10 }
 0x412   :  { %18732 = shalt.err (!%p18729_p12)
}
 0x413   :  { %s18733_s2 = scalar_lea.vmem %s526_s25, 16  ;;  %s18737_s0 = scalar_lea.vmem %s526_s25, 32 }
 0x414   :  { %p18734_p13 = scmp.ne.s32.totalorder %s526_s25, %s18733_s2  ;;  %p18738_p0 = scmp.lt.s32.totalorder %s526_s25, %s526_s25 }
 0x415   :  { %p18739_p1 = scmp.lt.s32.totalorder %s18737_s0, %s18733_s2 }
 0x417   :  { %p18740_p2 = por %p18739_p1, %p18738_p0 }
 0x419   :  { %p18741_p3 = pnand %p18740_p2, %p18734_p13 }
 0x41b   :  { %18744 = shalt.err (!%p18741_p3)
}
 0x41c   :  { %s21414_s12 = sld [smem:[#allocation160_spill]] }
 0x41d   :  { %528 = dma.hbm_to_vmem [thread:$0]  %s21413_s30, 16, %s526_s25, [#allocation45]  }
 0x422   :  { %s18745_s7 = scalar_lea.hbm %s21414_s12, 16 }
 0x423   :  { %p18746_p4 = scmp.ne.s32.totalorder %s21414_s12, %s18745_s7  ;;  %p18749_p5 = scmp.lt.u32.totalorder %s18745_s7, %s21414_s12 }
 0x425   :  { %p18751_p6 = pnand %p18749_p5, %p18746_p4 }
 0x427   :  { %18754 = shalt.err (!%p18751_p6)
}
 0x428   :  { %s18755_s10 = scalar_lea.vmem %s550_s20, 16  ;;  %s18759_s8 = scalar_lea.vmem %s550_s20, 32 }
 0x429   :  { %p18756_p7 = scmp.ne.s32.totalorder %s550_s20, %s18755_s10  ;;  %p18760_p8 = scmp.lt.s32.totalorder %s550_s20, %s550_s20 }
 0x42a   :  { %p18761_p9 = scmp.lt.s32.totalorder %s18759_s8, %s18755_s10 }
 0x42c   :  { %p18762_p10 = por %p18761_p9, %p18760_p8 }
 0x42e   :  { %p18763_p11 = pnand %p18762_p10, %p18756_p7 }
 0x430   :  { %18766 = shalt.err (!%p18763_p11)
}
 0x431   :  { %s21415_s27 = sld [smem:[#allocation162_spill]]  ;;  %s19379_s4 = smov [#allocation52]  }
 0x432   :  { %552 = dma.hbm_to_vmem [thread:$0]  %s21414_s12, 16, %s550_s20, [#allocation48]  }
 0x433   :  { %s570_s11 = sshll.u32 %s19379_s4, 4  ;;  %s19380_s19 = smov [#allocation55]   ;;  %s571_s11 = int_to_ptr.vmem [resolvable:$true] %s570_s11 }
 0x434   :  { %s592_s15 = sshll.u32 %s19380_s19, 4  ;;  %s593_s15 = int_to_ptr.vmem [resolvable:$true] %s592_s15 }
 0x437   :  { %s18767_s5 = scalar_lea.hbm %s21415_s27, 3072 }
 0x438   :  { %p18768_p12 = scmp.ne.s32.totalorder %s21415_s27, %s18767_s5  ;;  %p18771_p13 = scmp.lt.u32.totalorder %s18767_s5, %s21415_s27 }
 0x43a   :  { %p18773_p0 = pnand %p18771_p13, %p18768_p12 }
 0x43c   :  { %18776 = shalt.err (!%p18773_p0)
}
 0x43d   :  { %s18777_s23 = scalar_lea.vmem %s571_s11, 3072  ;;  %p18782_p2 = scmp.lt.s32.totalorder %s571_s11, %s571_s11 }
 0x43e   :  { %p18778_p1 = scmp.ne.s32.totalorder %s571_s11, %s18777_s23  ;;  %p18783_p3 = scmp.lt.s32.totalorder %s18777_s23, %s18777_s23 }
 0x440   :  { %p18784_p4 = por %p18783_p3, %p18782_p2 }
 0x442   :  { %p18785_p5 = pnand %p18784_p4, %p18778_p1 }
 0x444   :  { %18788 = shalt.err (!%p18785_p5)
}
 0x445   :  { %s21416_s24 = sld [smem:[#allocation164_spill]] }
 0x446   :  { %576 = dma.hbm_to_vmem [thread:$0]  %s21415_s27, 3072, %s571_s11, [#allocation51], %s19328_s18, %s19328_s18, %s19329_s22  }
 0x44b   :  { %s18789_s26 = scalar_lea.hbm %s21416_s24, 1024 }
 0x44c   :  { %p18790_p6 = scmp.ne.s32.totalorder %s21416_s24, %s18789_s26  ;;  %p18793_p7 = scmp.lt.u32.totalorder %s18789_s26, %s21416_s24 }
 0x44e   :  { %p18795_p8 = pnand %p18793_p7, %p18790_p6 }
 0x450   :  { %18798 = shalt.err (!%p18795_p8)
}
 0x451   :  { %s18799_s28 = scalar_lea.vmem %s593_s15, 1024  ;;  %p18804_p10 = scmp.lt.s32.totalorder %s593_s15, %s593_s15 }
 0x452   :  { %p18800_p9 = scmp.ne.s32.totalorder %s593_s15, %s18799_s28  ;;  %p18805_p11 = scmp.lt.s32.totalorder %s18799_s28, %s18799_s28 }
 0x454   :  { %p18806_p12 = por %p18805_p11, %p18804_p10 }
 0x456   :  { %p18807_p13 = pnand %p18806_p12, %p18800_p9 }
 0x458   :  { %18810 = shalt.err (!%p18807_p13)
}
 0x459   :  { %s21417_s9 = sld [smem:[#allocation166_spill]]  ;;  %s19381_s30 = smov [#allocation58]  }
 0x45a   :  { %598 = dma.hbm_to_vmem [thread:$0]  %s21416_s24, 1024, %s593_s15, [#allocation54], %s19328_s18, %s19328_s18, %s19329_s22  }
 0x45b   :  { %s614_s17 = sshll.u32 %s19381_s30, 4  ;;  %s19382_s25 = smov [#allocation61]   ;;  %s615_s17 = int_to_ptr.vmem [resolvable:$true] %s614_s17 }
 0x45c   :  { %s639_s29 = sshll.u32 %s19382_s25, 4  ;;  %s640_s29 = int_to_ptr.vmem [resolvable:$true] %s639_s29 }
 0x45f   :  { %s18811_s20 = scalar_lea.hbm %s21417_s9, 768 }
 0x460   :  { %p18812_p0 = scmp.ne.s32.totalorder %s21417_s9, %s18811_s20  ;;  %p18815_p1 = scmp.lt.u32.totalorder %s18811_s20, %s21417_s9 }
 0x462   :  { %p18817_p2 = pnand %p18815_p1, %p18812_p0 }
 0x464   :  { %18820 = shalt.err (!%p18817_p2)
}
 0x465   :  { %s18821_s1 = scalar_lea.vmem %s615_s17, 768  ;;  %p18826_p4 = scmp.lt.s32.totalorder %s615_s17, %s615_s17 }
 0x466   :  { %p18822_p3 = scmp.ne.s32.totalorder %s615_s17, %s18821_s1  ;;  %p18827_p5 = scmp.lt.s32.totalorder %s18821_s1, %s18821_s1 }
 0x468   :  { %p18828_p6 = por %p18827_p5, %p18826_p4 }
 0x46a   :  { %p18829_p7 = pnand %p18828_p6, %p18822_p3 }
 0x46c   :  { %18832 = shalt.err (!%p18829_p7)
}
 0x46d   :  { %s21418_s2 = sld [smem:[#allocation168_spill]] }
 0x46e   :  { %620 = dma.hbm_to_vmem [thread:$0]  %s21417_s9, 768, %s615_s17, [#allocation57], %s19328_s18, %s19328_s18, %s19329_s22  }
 0x473   :  { %s18833_s0 = scalar_lea.hbm %s21418_s2, 16 }
 0x474   :  { %p18834_p8 = scmp.ne.s32.totalorder %s21418_s2, %s18833_s0  ;;  %p18837_p9 = scmp.lt.u32.totalorder %s18833_s0, %s21418_s2 }
 0x476   :  { %p18839_p10 = pnand %p18837_p9, %p18834_p8 }
 0x478   :  { %18842 = shalt.err (!%p18839_p10)
}
 0x479   :  { %s18843_s12 = scalar_lea.vmem %s640_s29, 16  ;;  %s18847_s7 = scalar_lea.vmem %s640_s29, 32 }
 0x47a   :  { %p18844_p11 = scmp.ne.s32.totalorder %s640_s29, %s18843_s12  ;;  %p18848_p12 = scmp.lt.s32.totalorder %s640_s29, %s640_s29 }
 0x47b   :  { %p18849_p13 = scmp.lt.s32.totalorder %s18847_s7, %s18843_s12 }
 0x47d   :  { %p18850_p0 = por %p18849_p13, %p18848_p12 }
 0x47f   :  { %p18851_p1 = pnand %p18850_p0, %p18844_p11 }
 0x481   :  { %18854 = shalt.err (!%p18851_p1)
}
 0x482   :  { %s21419_s10 = sld [smem:[#allocation170_spill]]  ;;  %s19383_s8 = smov [#allocation64]  }
 0x483   :  { %642 = dma.hbm_to_vmem [thread:$0]  %s21418_s2, 16, %s640_s29, [#allocation60]  }
 0x484   :  { %s661_s27 = sshll.u32 %s19383_s8, 4  ;;  %s19384_s4 = smov [#allocation67]   ;;  %s662_s27 = int_to_ptr.vmem [resolvable:$true] %s661_s27 }
 0x485   :  { %s682_s11 = sshll.u32 %s19384_s4, 4  ;;  %s683_s11 = int_to_ptr.vmem [resolvable:$true] %s682_s11 }
 0x488   :  { %s18855_s19 = scalar_lea.hbm %s21419_s10, 16 }
 0x489   :  { %p18856_p2 = scmp.ne.s32.totalorder %s21419_s10, %s18855_s19  ;;  %p18859_p3 = scmp.lt.u32.totalorder %s18855_s19, %s21419_s10 }
 0x48b   :  { %p18861_p4 = pnand %p18859_p3, %p18856_p2 }
 0x48d   :  { %18864 = shalt.err (!%p18861_p4)
}
 0x48e   :  { %s18865_s15 = scalar_lea.vmem %s662_s27, 16  ;;  %s18869_s5 = scalar_lea.vmem %s662_s27, 32 }
 0x48f   :  { %p18866_p5 = scmp.ne.s32.totalorder %s662_s27, %s18865_s15  ;;  %p18870_p6 = scmp.lt.s32.totalorder %s662_s27, %s662_s27 }
 0x490   :  { %p18871_p7 = scmp.lt.s32.totalorder %s18869_s5, %s18865_s15 }
 0x492   :  { %p18872_p8 = por %p18871_p7, %p18870_p6 }
 0x494   :  { %p18873_p9 = pnand %p18872_p8, %p18866_p5 }
 0x496   :  { %18876 = shalt.err (!%p18873_p9)
}
 0x497   :  { %s21420_s23 = sld [smem:[#allocation172_spill]] }
 0x498   :  { %664 = dma.hbm_to_vmem [thread:$0]  %s21419_s10, 16, %s662_s27, [#allocation63]  }
 0x49d   :  { %s18877_s24 = scalar_lea.hbm %s21420_s23, 4096 }
 0x49e   :  { %p18878_p10 = scmp.ne.s32.totalorder %s21420_s23, %s18877_s24  ;;  %p18881_p11 = scmp.lt.u32.totalorder %s18877_s24, %s21420_s23 }
 0x4a0   :  { %p18883_p12 = pnand %p18881_p11, %p18878_p10 }
 0x4a2   :  { %18886 = shalt.err (!%p18883_p12)
}
 0x4a3   :  { %s18887_s26 = scalar_lea.vmem %s683_s11, 4096  ;;  %p18892_p0 = scmp.lt.s32.totalorder %s683_s11, %s683_s11 }
 0x4a4   :  { %p18888_p13 = scmp.ne.s32.totalorder %s683_s11, %s18887_s26  ;;  %p18893_p1 = scmp.lt.s32.totalorder %s18887_s26, %s18887_s26 }
 0x4a6   :  { %p18894_p2 = por %p18893_p1, %p18892_p0 }
 0x4a8   :  { %p18895_p3 = pnand %p18894_p2, %p18888_p13 }
 0x4aa   :  { %18898 = shalt.err (!%p18895_p3)
}
 0x4ab   :  { %s21421_s28 = sld [smem:[#allocation174_spill]]  ;;  %s19385_s9 = smov [#allocation70]  }
 0x4ac   :  { %688 = dma.hbm_to_vmem [thread:$0]  %s21420_s23, 4096, %s683_s11, [#allocation66], %s19328_s18, %s19328_s18, %s19329_s22  }
 0x4ad   :  { %s704_s30 = sshll.u32 %s19385_s9, 4  ;;  %s19386_s17 = smov [#allocation73]   ;;  %s705_s30 = int_to_ptr.vmem [resolvable:$true] %s704_s30 }
 0x4ae   :  { %s729_s25 = sshll.u32 %s19386_s17, 4  ;;  %s730_s25 = int_to_ptr.vmem [resolvable:$true] %s729_s25 }
 0x4b1   :  { %s18899_s29 = scalar_lea.hbm %s21421_s28, 384 }
 0x4b2   :  { %p18900_p4 = scmp.ne.s32.totalorder %s21421_s28, %s18899_s29  ;;  %p18903_p5 = scmp.lt.u32.totalorder %s18899_s29, %s21421_s28 }
 0x4b4   :  { %p18905_p6 = pnand %p18903_p5, %p18900_p4 }
 0x4b6   :  { %18908 = shalt.err (!%p18905_p6)
}
 0x4b7   :  { %s18909_s20 = scalar_lea.vmem %s705_s30, 384  ;;  %p18914_p8 = scmp.lt.s32.totalorder %s705_s30, %s705_s30 }
 0x4b8   :  { %p18910_p7 = scmp.ne.s32.totalorder %s705_s30, %s18909_s20  ;;  %p18915_p9 = scmp.lt.s32.totalorder %s18909_s20, %s18909_s20 }
 0x4ba   :  { %p18916_p10 = por %p18915_p9, %p18914_p8 }
 0x4bc   :  { %p18917_p11 = pnand %p18916_p10, %p18910_p7 }
 0x4be   :  { %18920 = shalt.err (!%p18917_p11)
}
 0x4bf   :  { %s21422_s1 = sld [smem:[#allocation176_spill]] }
 0x4c0   :  { %710 = dma.hbm_to_vmem [thread:$0]  %s21421_s28, 384, %s705_s30, [#allocation69], %s19328_s18, %s19328_s18, %s19329_s22  }
 0x4c5   :  { %s18921_s2 = scalar_lea.hbm %s21422_s1, 16 }
 0x4c6   :  { %p18922_p12 = scmp.ne.s32.totalorder %s21422_s1, %s18921_s2  ;;  %p18925_p13 = scmp.lt.u32.totalorder %s18921_s2, %s21422_s1 }
 0x4c8   :  { %p18927_p0 = pnand %p18925_p13, %p18922_p12 }
 0x4ca   :  { %18930 = shalt.err (!%p18927_p0)
}
 0x4cb   :  { %s18931_s0 = scalar_lea.vmem %s730_s25, 16  ;;  %s18935_s12 = scalar_lea.vmem %s730_s25, 32 }
 0x4cc   :  { %p18932_p1 = scmp.ne.s32.totalorder %s730_s25, %s18931_s0  ;;  %p18936_p2 = scmp.lt.s32.totalorder %s730_s25, %s730_s25 }
 0x4cd   :  { %p18937_p3 = scmp.lt.s32.totalorder %s18935_s12, %s18931_s0 }
 0x4cf   :  { %p18938_p4 = por %p18937_p3, %p18936_p2 }
 0x4d1   :  { %p18939_p5 = pnand %p18938_p4, %p18932_p1 }
 0x4d3   :  { %18942 = shalt.err (!%p18939_p5)
}
 0x4d4   :  { %s21423_s7 = sld [smem:[#allocation178_spill]]  ;;  %s19387_s10 = smov [#allocation76]  }
 0x4d5   :  { %732 = dma.hbm_to_vmem [thread:$0]  %s21422_s1, 16, %s730_s25, [#allocation72]  }
 0x4d6   :  { %s751_s8 = sshll.u32 %s19387_s10, 4  ;;  %s19388_s27 = smov [#allocation79]   ;;  %s752_s8 = int_to_ptr.vmem [resolvable:$true] %s751_s8 }
 0x4d7   :  { %s772_s4 = sshll.u32 %s19388_s27, 4  ;;  %s773_s4 = int_to_ptr.vmem [resolvable:$true] %s772_s4 }
 0x4da   :  { %s18943_s11 = scalar_lea.hbm %s21423_s7, 16 }
 0x4db   :  { %p18944_p6 = scmp.ne.s32.totalorder %s21423_s7, %s18943_s11  ;;  %p18947_p7 = scmp.lt.u32.totalorder %s18943_s11, %s21423_s7 }
 0x4dd   :  { %p18949_p8 = pnand %p18947_p7, %p18944_p6 }
 0x4df   :  { %18952 = shalt.err (!%p18949_p8)
}
 0x4e0   :  { %s18953_s19 = scalar_lea.vmem %s752_s8, 16  ;;  %s18957_s15 = scalar_lea.vmem %s752_s8, 32 }
 0x4e1   :  { %p18954_p9 = scmp.ne.s32.totalorder %s752_s8, %s18953_s19  ;;  %p18958_p10 = scmp.lt.s32.totalorder %s752_s8, %s752_s8 }
 0x4e2   :  { %p18959_p11 = scmp.lt.s32.totalorder %s18957_s15, %s18953_s19 }
 0x4e4   :  { %p18960_p12 = por %p18959_p11, %p18958_p10 }
 0x4e6   :  { %p18961_p13 = pnand %p18960_p12, %p18954_p9 }
 0x4e8   :  { %18964 = shalt.err (!%p18961_p13)
}
 0x4e9   :  { %s21424_s5 = sld [smem:[#allocation180_spill]] }
 0x4ea   :  { %754 = dma.hbm_to_vmem [thread:$0]  %s21423_s7, 16, %s752_s8, [#allocation75]  }
 0x4ef   :  { %s18965_s23 = scalar_lea.hbm %s21424_s5, 3072 }
 0x4f0   :  { %p18966_p0 = scmp.ne.s32.totalorder %s21424_s5, %s18965_s23  ;;  %p18969_p1 = scmp.lt.u32.totalorder %s18965_s23, %s21424_s5 }
 0x4f2   :  { %p18971_p2 = pnand %p18969_p1, %p18966_p0 }
 0x4f4   :  { %18974 = shalt.err (!%p18971_p2)
}
 0x4f5   :  { %s18975_s24 = scalar_lea.vmem %s773_s4, 3072  ;;  %p18980_p4 = scmp.lt.s32.totalorder %s773_s4, %s773_s4 }
 0x4f6   :  { %p18976_p3 = scmp.ne.s32.totalorder %s773_s4, %s18975_s24  ;;  %p18981_p5 = scmp.lt.s32.totalorder %s18975_s24, %s18975_s24 }
 0x4f8   :  { %p18982_p6 = por %p18981_p5, %p18980_p4 }
 0x4fa   :  { %p18983_p7 = pnand %p18982_p6, %p18976_p3 }
 0x4fc   :  { %18986 = shalt.err (!%p18983_p7)
}
 0x4fd   :  { %s21425_s26 = sld [smem:[#allocation182_spill]]  ;;  %s19389_s28 = smov [#allocation82]  }
 0x4fe   :  { %778 = dma.hbm_to_vmem [thread:$0]  %s21424_s5, 3072, %s773_s4, [#allocation78], %s19328_s18, %s19328_s18, %s19329_s22  }
 0x4ff   :  { %s794_s9 = sshll.u32 %s19389_s28, 4  ;;  %s19390_s30 = smov [#allocation85]   ;;  %s795_s9 = int_to_ptr.vmem [resolvable:$true] %s794_s9 }
 0x500   :  { %s816_s17 = sshll.u32 %s19390_s30, 4  ;;  %s817_s17 = int_to_ptr.vmem [resolvable:$true] %s816_s17 }
 0x503   :  { %s18987_s25 = scalar_lea.hbm %s21425_s26, 1024 }
 0x504   :  { %p18988_p8 = scmp.ne.s32.totalorder %s21425_s26, %s18987_s25  ;;  %p18991_p9 = scmp.lt.u32.totalorder %s18987_s25, %s21425_s26 }
 0x506   :  { %p18993_p10 = pnand %p18991_p9, %p18988_p8 }
 0x508   :  { %18996 = shalt.err (!%p18993_p10)
}
 0x509   :  { %s18997_s29 = scalar_lea.vmem %s795_s9, 1024  ;;  %p19002_p12 = scmp.lt.s32.totalorder %s795_s9, %s795_s9 }
 0x50a   :  { %p18998_p11 = scmp.ne.s32.totalorder %s795_s9, %s18997_s29  ;;  %p19003_p13 = scmp.lt.s32.totalorder %s18997_s29, %s18997_s29 }
 0x50c   :  { %p19004_p0 = por %p19003_p13, %p19002_p12 }
 0x50e   :  { %p19005_p1 = pnand %p19004_p0, %p18998_p11 }
 0x510   :  { %19008 = shalt.err (!%p19005_p1)
}
 0x511   :  { %s21426_s20 = sld [smem:[#allocation184_spill]] }
 0x512   :  { %800 = dma.hbm_to_vmem [thread:$0]  %s21425_s26, 1024, %s795_s9, [#allocation81], %s19328_s18, %s19328_s18, %s19329_s22  }
 0x517   :  { %s19009_s1 = scalar_lea.hbm %s21426_s20, 1536 }
 0x518   :  { %p19010_p2 = scmp.ne.s32.totalorder %s21426_s20, %s19009_s1  ;;  %p19013_p3 = scmp.lt.u32.totalorder %s19009_s1, %s21426_s20 }
 0x51a   :  { %p19015_p4 = pnand %p19013_p3, %p19010_p2 }
 0x51c   :  { %19018 = shalt.err (!%p19015_p4)
}
 0x51d   :  { %s19019_s2 = scalar_lea.vmem %s817_s17, 1536  ;;  %p19024_p6 = scmp.lt.s32.totalorder %s817_s17, %s817_s17 }
 0x51e   :  { %p19020_p5 = scmp.ne.s32.totalorder %s817_s17, %s19019_s2  ;;  %p19025_p7 = scmp.lt.s32.totalorder %s19019_s2, %s19019_s2 }
 0x520   :  { %p19026_p8 = por %p19025_p7, %p19024_p6 }
 0x522   :  { %p19027_p9 = pnand %p19026_p8, %p19020_p5 }
 0x524   :  { %19030 = shalt.err (!%p19027_p9)
}
 0x525   :  { %s21427_s0 = sld [smem:[#allocation186_spill]]  ;;  %s19391_s12 = smov [#allocation88]  }
 0x526   :  { %822 = dma.hbm_to_vmem [thread:$0]  %s21426_s20, 1536, %s817_s17, [#allocation84], %s19328_s18, %s19328_s18, %s19329_s22  }
 0x527   :  { %s841_s7 = sshll.u32 %s19391_s12, 4  ;;  %s19392_s10 = smov [#allocation91]   ;;  %s842_s7 = int_to_ptr.vmem [resolvable:$true] %s841_s7 }
 0x528   :  { %s862_s8 = sshll.u32 %s19392_s10, 4  ;;  %s863_s8 = int_to_ptr.vmem [resolvable:$true] %s862_s8 }
 0x52b   :  { %s19031_s27 = scalar_lea.hbm %s21427_s0, 16 }
 0x52c   :  { %p19032_p10 = scmp.ne.s32.totalorder %s21427_s0, %s19031_s27  ;;  %p19035_p11 = scmp.lt.u32.totalorder %s19031_s27, %s21427_s0 }
 0x52e   :  { %p19037_p12 = pnand %p19035_p11, %p19032_p10 }
 0x530   :  { %19040 = shalt.err (!%p19037_p12)
}
 0x531   :  { %s19041_s4 = scalar_lea.vmem %s842_s7, 16  ;;  %s19045_s11 = scalar_lea.vmem %s842_s7, 32 }
 0x532   :  { %p19042_p13 = scmp.ne.s32.totalorder %s842_s7, %s19041_s4  ;;  %p19046_p0 = scmp.lt.s32.totalorder %s842_s7, %s842_s7 }
 0x533   :  { %p19047_p1 = scmp.lt.s32.totalorder %s19045_s11, %s19041_s4 }
 0x535   :  { %p19048_p2 = por %p19047_p1, %p19046_p0 }
 0x537   :  { %p19049_p3 = pnand %p19048_p2, %p19042_p13 }
 0x539   :  { %19052 = shalt.err (!%p19049_p3)
}
 0x53a   :  { %s21428_s19 = sld [smem:[#allocation188_spill]] }
 0x53b   :  { %844 = dma.hbm_to_vmem [thread:$0]  %s21427_s0, 16, %s842_s7, [#allocation87]  }
 0x540   :  { %s19053_s15 = scalar_lea.hbm %s21428_s19, 3072 }
 0x541   :  { %p19054_p4 = scmp.ne.s32.totalorder %s21428_s19, %s19053_s15  ;;  %p19057_p5 = scmp.lt.u32.totalorder %s19053_s15, %s21428_s19 }
 0x543   :  { %p19059_p6 = pnand %p19057_p5, %p19054_p4 }
 0x545   :  { %19062 = shalt.err (!%p19059_p6)
}
 0x546   :  { %s19063_s5 = scalar_lea.vmem %s863_s8, 3072  ;;  %p19068_p8 = scmp.lt.s32.totalorder %s863_s8, %s863_s8 }
 0x547   :  { %p19064_p7 = scmp.ne.s32.totalorder %s863_s8, %s19063_s5  ;;  %p19069_p9 = scmp.lt.s32.totalorder %s19063_s5, %s19063_s5 }
 0x549   :  { %p19070_p10 = por %p19069_p9, %p19068_p8 }
 0x54b   :  { %p19071_p11 = pnand %p19070_p10, %p19064_p7 }
 0x54d   :  { %19074 = shalt.err (!%p19071_p11)
}
 0x54e   :  { %s21429_s23 = sld [smem:[#allocation190_spill]]  ;;  %s19393_s24 = smov [#allocation94]  }
 0x54f   :  { %868 = dma.hbm_to_vmem [thread:$0]  %s21428_s19, 3072, %s863_s8, [#allocation90], %s19328_s18, %s19328_s18, %s19329_s22  }
 0x550   :  { %s887_s26 = sshll.u32 %s19393_s24, 4  ;;  %s19394_s28 = smov [#allocation97]   ;;  %s888_s26 = int_to_ptr.vmem [resolvable:$true] %s887_s26 }
 0x551   :  { %s908_s9 = sshll.u32 %s19394_s28, 4  ;;  %s909_s9 = int_to_ptr.vmem [resolvable:$true] %s908_s9 }
 0x554   :  { %s19075_s30 = scalar_lea.hbm %s21429_s23, 32 }
 0x555   :  { %p19076_p12 = scmp.ne.s32.totalorder %s21429_s23, %s19075_s30  ;;  %p19079_p13 = scmp.lt.u32.totalorder %s19075_s30, %s21429_s23 }
 0x557   :  { %p19081_p0 = pnand %p19079_p13, %p19076_p12 }
 0x559   :  { %19084 = shalt.err (!%p19081_p0)
}
 0x55a   :  { %s19085_s17 = scalar_lea.vmem %s888_s26, 32  ;;  %p19090_p2 = scmp.lt.s32.totalorder %s888_s26, %s888_s26 }
 0x55b   :  { %p19086_p1 = scmp.ne.s32.totalorder %s888_s26, %s19085_s17  ;;  %p19091_p3 = scmp.lt.s32.totalorder %s19085_s17, %s19085_s17 }
 0x55d   :  { %p19092_p4 = por %p19091_p3, %p19090_p2 }
 0x55f   :  { %p19093_p5 = pnand %p19092_p4, %p19086_p1 }
 0x561   :  { %19096 = shalt.err (!%p19093_p5)
}
 0x562   :  { %890 = dma.hbm_to_vmem [thread:$0]  %s21429_s23, 32, %s888_s26, [#allocation93]  }
 0x563   :  { %s19097_s18 = scalar_lea.hbm %s19763_s21, 2048 }
 0x564   :  { %p19098_p6 = scmp.ne.s32.totalorder %s19763_s21, %s19097_s18  ;;  %p19101_p7 = scmp.lt.u32.totalorder %s19097_s18, %s19763_s21 }
 0x566   :  { %p19103_p8 = pnand %p19101_p7, %p19098_p6 }
 0x568   :  { %19106 = shalt.err (!%p19103_p8)
}
 0x569   :  { %s19107_s22 = scalar_lea.vmem %s909_s9, 2048  ;;  %p19112_p10 = scmp.lt.s32.totalorder %s909_s9, %s909_s9 }
 0x56a   :  { %p19108_p9 = scmp.ne.s32.totalorder %s909_s9, %s19107_s22  ;;  %p19113_p11 = scmp.lt.s32.totalorder %s19107_s22, %s19107_s22 }
 0x56c   :  { %p19114_p12 = por %p19113_p11, %p19112_p10 }
 0x56e   :  { %p19115_p13 = pnand %p19114_p12, %p19108_p9 }
 0x570   :  { %19118 = shalt.err (!%p19115_p13)
}
 0x571   :  { %914 = dma.hbm_to_vmem [thread:$0]  %s19763_s21, 2048, %s909_s9, [#allocation96], %s19361_s6, %s19361_s6, %s19362_s16  }
 0x572   :  { %19185 = dma.done.wait [#allocation3], 384  }
 0x573   :  { %19186 = vsyncadd [#allocation3], 4294966912 }
 0x574   :  { %19187 = dma.done.wait [#allocation6], 4096  }
 0x575   :  { %19188 = vsyncadd [#allocation6], 4294963200 }
 0x576   :  { %19189 = dma.done.wait [#allocation9], 400  }
 0x577   :  { %19190 = vsyncadd [#allocation9], 4294966896 }
 0x578   :  { %19191 = dma.done.wait [#allocation12], 3088  }
 0x579   :  { %19192 = vsyncadd [#allocation12], 4294964208 }
 0x57a   :  { %19193 = dma.done.wait [#allocation15], 1040  }
 0x57b   :  { %19194 = vsyncadd [#allocation15], 4294966256 }
 0x57c   :  { %19195 = dma.done.wait [#allocation18], 3088  }
 0x57d   :  { %19196 = vsyncadd [#allocation18], 4294964208 }
 0x57e   :  { %19197 = dma.done.wait [#allocation21], 3840  }
 0x57f   :  { %19198 = vsyncadd [#allocation21], 4294963456 }
 0x580   :  { %19199 = dma.done.wait [#allocation24], 1040  }
 0x581   :  { %19200 = vsyncadd [#allocation24], 4294966256 }
 0x582   :  { %19201 = dma.done.wait [#allocation27], 784  }
 0x583   :  { %19202 = vsyncadd [#allocation27], 4294966512 }
 0x584   :  { %19203 = dma.done.wait [#allocation30], 3088  }
 0x585   :  { %19204 = vsyncadd [#allocation30], 4294964208 }
 0x586   :  { %19205 = dma.done.wait [#allocation33], 1040  }
 0x587   :  { %19206 = vsyncadd [#allocation33], 4294966256 }
 0x588   :  { %19207 = dma.done.wait [#allocation36], 3456  }
 0x589   :  { %19208 = vsyncadd [#allocation36], 4294963840 }
 0x58a   :  { %19209 = dma.done.wait [#allocation39], 1552  }
 0x58b   :  { %19210 = vsyncadd [#allocation39], 4294965744 }
 0x58c   :  { %19211 = dma.done.wait [#allocation42], 4608  }
 0x58d   :  { %19212 = vsyncadd [#allocation42], 4294962688 }
 0x58e   :  { %19213 = dma.done.wait [#allocation45], 6160  }
 0x58f   :  { %19214 = vsyncadd [#allocation45], 4294961136 }
 0x590   :  { %19215 = dma.done.wait [#allocation48], 1040  }
 0x591   :  { %19216 = vsyncadd [#allocation48], 4294966256 }
 0x592   :  { %19217 = dma.done.wait [#allocation51], 3840  }
 0x593   :  { %19218 = vsyncadd [#allocation51], 4294963456 }
 0x594   :  { %19219 = dma.done.wait [#allocation54], 1040  }
 0x595   :  { %19220 = vsyncadd [#allocation54], 4294966256 }
 0x596   :  { %19221 = dma.done.wait [#allocation57], 784  }
 0x597   :  { %19222 = vsyncadd [#allocation57], 4294966512 }
 0x598   :  { %19223 = dma.done.wait [#allocation60], 3088  }
 0x599   :  { %19224 = vsyncadd [#allocation60], 4294964208 }
 0x59a   :  { %19225 = dma.done.wait [#allocation63], 1040  }
 0x59b   :  { %19226 = vsyncadd [#allocation63], 4294966256 }
 0x59c   :  { %19227 = dma.done.wait [#allocation66], 4608  }
 0x59d   :  { %19228 = vsyncadd [#allocation66], 4294962688 }
 0x59e   :  { %19229 = dma.done.wait [#allocation69], 400  }
 0x59f   :  { %19230 = vsyncadd [#allocation69], 4294966896 }
 0x5a0   :  { %19231 = dma.done.wait [#allocation72], 3088  }
 0x5a1   :  { %19232 = vsyncadd [#allocation72], 4294964208 }
 0x5a2   :  { %19233 = dma.done.wait [#allocation75], 1040  }
 0x5a3   :  { %19234 = vsyncadd [#allocation75], 4294966256 }
 0x5a4   :  { %19235 = dma.done.wait [#allocation78], 3456  }
 0x5a5   :  { %19236 = vsyncadd [#allocation78], 4294963840 }
 0x5a6   :  { %19237 = dma.done.wait [#allocation81], 1040  }
 0x5a7   :  { %19238 = vsyncadd [#allocation81], 4294966256 }
 0x5a8   :  { %19239 = dma.done.wait [#allocation84], 1552  }
 0x5a9   :  { %19240 = vsyncadd [#allocation84], 4294965744 }
 0x5aa   :  { %19241 = dma.done.wait [#allocation87], 6160  }
 0x5ab   :  { %19242 = vsyncadd [#allocation87], 4294961136 }
 0x5ac   :  { %19243 = dma.done.wait [#allocation90], 3456  }
 0x5ad   :  { %19244 = vsyncadd [#allocation90], 4294963840 }
 0x5ae   :  { %19245 = dma.done.wait [#allocation93], 4128  }
 0x5af   :  { %19246 = vsyncadd [#allocation93], 4294963168 }
 0x5b0   :  { %19247 = dma.done.wait [#allocation96], 6144  }
 0x5b1   :  { %19248 = vsyncadd [#allocation96], 4294961152  ;;  %v19395_v0 = vmov 0   ;;  %v1106_v1 = vld [vmem:[#allocation97 + $0x8] sm:$0xff]  ;;  %v1108_v2 = vld [vmem:[#allocation97 + $0x18] sm:$0xff]  ;;  %vm1157_vm0 = vcmask 523264  }
 0x5b2   :  { %1356 = vmatprep.mubr.bf16.mxu1 %v19395_v0  ;;  %1202 = vmatprep.mubr.bf16.mxu0 %v19395_v0  ;;  %v1105_v3 = vld [vmem:[#allocation97] sm:$0xff]  ;;  %v1122_v4 = vpack.c.bf16 %v1108_v2, %v1106_v1  ;;  %v1107_v5 = vld [vmem:[#allocation97 + $0x10] sm:$0xff]  ;;  %v1110_v6 = vld [vmem:[#allocation97 + $0x28] sm:$0xff]  ;;  %vm1546_vm1 = vcmask 1044480   ;;  %vm1547_vm2 = vcmask 1045504   ;;  %v19396_v52 = vmov 65535  }
 0x5b3   :  { %v1112_v7 = vld [vmem:[#allocation97 + $0x38] sm:$0xff]  ;;  %v1121_v8 = vpack.c.bf16 %v1107_v5, %v1105_v3  ;;  %v1109_v10 = vld [vmem:[#allocation97 + $0x20] sm:$0xff]  ;;  %v1111_v11 = vld [vmem:[#allocation97 + $0x30] sm:$0xff]  ;;  %v1548_v53 = vsel %vm1546_vm1, 4294967295, %v19396_v52  ;;  %vm1533_vm3 = vcmask 1006592   ;;  %s21430_s21 = sld [smem:[#allocation159_spill]] }
 0x5b4   :  { %v1124_v9 = vpack.c.bf16 %v1112_v7, %v1110_v6  ;;  %v1114_v12 = vld [vmem:[#allocation97 + $0x48] sm:$0xff]  ;;  %1324 = vmatprep.subr.bf16.mxu1 %v1122_v4  ;;  %v1116_v13 = vld [vmem:[#allocation97 + $0x58] sm:$0xff]  ;;  %1170 = vmatprep.subr.bf16.mxu0 %v1122_v4  ;;  %v1123_v14 = vpack.c.bf16 %v1111_v11, %v1109_v10  ;;  %v1113_v15 = vld [vmem:[#allocation97 + $0x40] sm:$0xff]  ;;  %v20250_v54 = vsel %vm1547_vm2, %v1548_v53, 0  ;;  %vm2939_vm4 = vcmask 261120   ;;  %s21435_s25 = sld [smem:[#allocation139_spill]] }
 0x5b5   :  { %1325 = vmatpush1.bf16.msra.mxu1 %v1121_v8  ;;  %v1115_v16 = vld [vmem:[#allocation97 + $0x50] sm:$0xff]  ;;  %1171 = vmatpush1.bf16.msra.mxu0 %v1121_v8  ;;  %v1126_v17 = vpack.c.bf16 %v1116_v13, %v1114_v12  ;;  %v1118_v18 = vld [vmem:[#allocation97 + $0x68] sm:$0xff]  ;;  %v1120_v19 = vld [vmem:[#allocation97 + $0x78] sm:$0xff]  ;;  %vm19398_vm5 = vmmov 0   ;;  %vm4993_vm6 = vcmask 130048   ;;  %vm13206_vm2 = vcmask 0  }
 0x5b6   :  { %1326 = vmatprep.subr.bf16.mxu1 %v1124_v9  ;;  %1172 = vmatprep.subr.bf16.mxu0 %v1124_v9  ;;  %v1125_v20 = vpack.c.bf16 %v1115_v16, %v1113_v15  ;;  %v1117_v21 = vld [vmem:[#allocation97 + $0x60] sm:$0xff]  ;;  %v1128_v22 = vpack.c.bf16 %v1120_v19, %v1118_v18  ;;  %v1119_v23 = vld [vmem:[#allocation97 + $0x70] sm:$0xff]  ;;  %s21436_s29 = sld [smem:[#allocation141_spill]]  ;;  %s21437_s20 = sld [smem:[#allocation137_spill]] }
 0x5b7   :  { %v1127_v24 = vpack.c.bf16 %v1119_v23, %v1117_v21  ;;  %v17059_v25 = vld [vmem:[#allocation85 + $0x20] sm:$0xff]   ;;  %v17073_v29 = vld [vmem:[#allocation86 + $0xc8] sm:$0xff]   ;;  %v17075_v33 = vld [vmem:[#allocation86 + $0xd0] sm:$0xff]   ;;  %s21438_s1 = sld [smem:[#allocation138_spill]]  ;;  %s21439_s2 = sld [smem:[#allocation136_spill]] }
 0x5b8   :  { %v17063_v26 = vld [vmem:[#allocation85] sm:$0xff]   ;;  %v17060_v30 = vld [vmem:[#allocation85 + $0x28] sm:$0xff]   ;;  %v17076_v34 = vld [vmem:[#allocation86 + $0x90] sm:$0xff]   ;;  %s21440_s0 = sld [smem:[#allocation146_spill]]  ;;  %s19402_s12 = smov [#allocation99]  }
 0x5b9   :  { %1327 = vmatpush1.bf16.msra.mxu1 %v1123_v14  ;;  %1173 = vmatpush1.bf16.msra.mxu0 %v1123_v14  ;;  %v17071_v27 = vld [vmem:[#allocation86 + $0xc0] sm:$0xff]   ;;  %v17074_v31 = vld [vmem:[#allocation86 + $0x88] sm:$0xff]   ;;  %v17077_v35 = vld [vmem:[#allocation86 + $0xd8] sm:$0xff]   ;;  %s13227_s7 = sshll.u32 %s19402_s12, 4  ;;  %s13228_s7 = int_to_ptr.vmem [resolvable:$true] %s13227_s7 }
 0x5ba   :  { %1328 = vmatprep.subr.bf16.mxu1 %v1126_v17  ;;  %1174 = vmatprep.subr.bf16.mxu0 %v1126_v17  ;;  %v17072_v28 = vld [vmem:[#allocation86 + $0x80] sm:$0xff]   ;;  %v17064_v32 = vld [vmem:[#allocation85 + $0x8] sm:$0xff]   ;;  %v17061_v36 = vld [vmem:[#allocation85 + $0x30] sm:$0xff]   ;;  %s19119_s10 = scalar_lea.vmem %s13228_s7, 16  ;;  %s19123_s8 = scalar_lea.vmem %s13228_s7, 32 }
 0x5bb   :  { %v17065_v37 = vld [vmem:[#allocation85 + $0x10] sm:$0xff]   ;;  %v17078_v38 = vld [vmem:[#allocation86 + $0x98] sm:$0xff]   ;;  %v17079_v39 = vld [vmem:[#allocation86 + $0xe0] sm:$0xff]   ;;  %p19120_p0 = scmp.ne.s32.totalorder %s13228_s7, %s19119_s10  ;;  %p19124_p1 = scmp.lt.s32.totalorder %s13228_s7, %s13228_s7 }
 0x5bc   :  { %v17080_v40 = vld [vmem:[#allocation86 + $0xa0] sm:$0xff]   ;;  %v17081_v41 = vld [vmem:[#allocation86 + $0xe8] sm:$0xff]   ;;  %v17062_v43 = vld [vmem:[#allocation85 + $0x38] sm:$0xff]   ;;  %p19125_p2 = scmp.lt.s32.totalorder %s19123_s8, %s19119_s10 }
 0x5bd   :  { %1329 = vmatpush1.bf16.msra.mxu1 %v1125_v20  ;;  %1175 = vmatpush1.bf16.msra.mxu0 %v1125_v20  ;;  %v17082_v42 = vld [vmem:[#allocation86 + $0xa8] sm:$0xff]   ;;  %v17066_v44 = vld [vmem:[#allocation85 + $0x18] sm:$0xff]   ;;  %v17083_v45 = vld [vmem:[#allocation86 + $0xf0] sm:$0xff]  }
 0x5be   :  { %1330 = vmatprep.subr.bf16.mxu1 %v1128_v22  ;;  %1176 = vmatprep.subr.bf16.mxu0 %v1128_v22  ;;  %v17067_v46 = vld [vmem:[#allocation85 + $0x40] sm:$0xff]   ;;  %v17068_v47 = vld [vmem:[#allocation85 + $0x48] sm:$0xff]   ;;  %v17069_v48 = vld [vmem:[#allocation85 + $0x50] sm:$0xff]   ;;  %p19126_p3 = por %p19125_p2, %p19124_p1 }
 0x5bf   :  { %v17070_v49 = vld [vmem:[#allocation85 + $0x58] sm:$0xff]   ;;  %v17084_v50 = vld [vmem:[#allocation86 + $0xb0] sm:$0xff]   ;;  %v17087_v57 = vld [vmem:[#allocation86 + $0x40] sm:$0xff]  }
 0x5c0   :  { %v17085_v51 = vld [vmem:[#allocation86 + $0xf8] sm:$0x3f]   ;;  %v17088_v63 = vld [vmem:[#allocation86] sm:$0xff]   ;;  %v17091_v10 = vld [vmem:[#allocation86 + $0x50] sm:$0xff]   ;;  %p19127_p4 = pnand %p19126_p3, %p19120_p0 }
 0x5c1   :  { %1331 = vmatpush1.bf16.msra.mxu1 %v1127_v24  ;;  %1177 = vmatpush1.bf16.msra.mxu0 %v1127_v24  ;;  %v1551_v55 = vand.u32 %v17085_v51, %v20250_v54  ;;  %v17086_v56 = vld [vmem:[#allocation86 + $0xb8] sm:$0xff]   ;;  %v17092_v16 = vld [vmem:[#allocation86 + $0x10] sm:$0xff]  }
 0x5c2   :  { %1834 = vmatprep.subr.bf16.mxu0 %v1122_v4  ;;  %14263 = vmatprep.subr.bf16.mxu1 %v17071_v27  ;;  %v17089_v4 = vld [vmem:[#allocation86 + $0x48] sm:$0xff]  }
 0x5c4   :  { %13369 = vmatmul.mubr.msk.bf16.vlgmr.msra.gmra.mrb[0].mxu1 %vm1157_vm0, %v17059_v25  ;;  %13361 = vmatmul.mubr.msk.bf16.vlgmr.msra.gmra.mrb[0].mxu0 %vm1157_vm0, %v17063_v26  ;;  %v17094_v25 = vld [vmem:[#allocation86 + $0x18] sm:$0xff]   ;;  %v17095_v26 = vld [vmem:[#allocation86 + $0x60] sm:$0xff]  }
 0x5c5   :  { %1366 = vmatprep.mubr.bf16.mxu1 %v19395_v0  ;;  %1212 = vmatprep.mubr.bf16.mxu0 %v19395_v0 }
 0x5c6   :  { %1835 = vmatpush1.bf16.msra.mxu0 %v1121_v8  ;;  %14264 = vmatpush3.bf16.msra.mxu1 %v17072_v28 }
 0x5c7   :  { %1836 = vmatprep.subr.bf16.mxu0 %v1124_v9  ;;  %14265 = vmatprep.subr.bf16.mxu1 %v17073_v29  ;;  %v17090_v9 = vld [vmem:[#allocation86 + $0x8] sm:$0xff]  }
 0x5ca   :  { %1837 = vmatpush1.bf16.msra.mxu0 %v1123_v14  ;;  %14266 = vmatpush3.bf16.msra.mxu1 %v17074_v31 }
 0x5cb   :  { %1838 = vmatprep.subr.bf16.mxu0 %v1126_v17  ;;  %14267 = vmatprep.subr.bf16.mxu1 %v17075_v33 }
 0x5cc   :  { %13370 = vmatmul.mubr.msk.bf16.gmra.mrb[4].mxu1 %vm1157_vm0, %v17060_v30  ;;  %13362 = vmatmul.mubr.msk.bf16.gmra.mrb[4].mxu0 %vm1157_vm0, %v17064_v32  ;;  %v17096_v32 = vld [vmem:[#allocation86 + $0x20] sm:$0xff]  }
 0x5cd   :  { %1376 = vmatprep.mubr.bf16.mxu1 %v19395_v0  ;;  %1222 = vmatprep.mubr.bf16.mxu0 %v19395_v0 }
 0x5ce   :  { %1839 = vmatpush1.bf16.msra.mxu0 %v1125_v20  ;;  %14268 = vmatpush3.bf16.msra.mxu1 %v17076_v34  ;;  %v17093_v20 = vld [vmem:[#allocation86 + $0x58] sm:$0xff]  }
 0x5cf   :  { %1840 = vmatprep.subr.bf16.mxu0 %v1128_v22  ;;  %14269 = vmatprep.subr.bf16.mxu1 %v17077_v35 }
 0x5d2   :  { %1841 = vmatpush1.bf16.msra.mxu0 %v1127_v24  ;;  %14270 = vmatpush3.bf16.msra.mxu1 %v17078_v38 }
 0x5d3   :  { %14271 = vmatprep.subr.bf16.mxu1 %v17079_v39 }
 0x5d4   :  { %13371 = vmatmul.mubr.msk.bf16.gmra.mrb[8].mxu1 %vm1157_vm0, %v17061_v36  ;;  %13363 = vmatmul.mubr.msk.bf16.gmra.mrb[8].mxu0 %vm1157_vm0, %v17065_v37  ;;  %v17097_v36 = vld [vmem:[#allocation86 + $0x68] sm:$0xff]  }
 0x5d5   :  { %1386 = vmatprep.mubr.bf16.mxu1 %v19395_v0  ;;  %1232 = vmatprep.mubr.bf16.mxu0 %v19395_v0 }
 0x5d6   :  { %14272 = vmatpush3.bf16.msra.mxu1 %v17080_v40 }
 0x5d7   :  { %14273 = vmatprep.subr.bf16.mxu1 %v17081_v41  ;;  %v17098_v41 = vld [vmem:[#allocation86 + $0x28] sm:$0xff]  }
 0x5da   :  { %14274 = vmatpush3.bf16.msra.mxu1 %v17082_v42  ;;  %v17099_v42 = vld [vmem:[#allocation86 + $0x70] sm:$0xff]  }
 0x5db   :  { %14275 = vmatprep.subr.bf16.mxu1 %v17083_v45 }
 0x5dc   :  { %13372 = vmatmul.mubr.msk.bf16.gmra.mrb[12].mxu1 %vm1157_vm0, %v17062_v43  ;;  %13364 = vmatmul.mubr.msk.bf16.gmra.mrb[12].mxu0 %vm1157_vm0, %v17066_v44  ;;  %v17101_v43 = vld [vmem:[#allocation86 + $0x78] sm:$0x3f]  }
 0x5dd   :  { %1866 = vmatprep.mubr.bf16.mxu0 %v19395_v0 }
 0x5de   :  { %14276 = vmatpush3.bf16.msra.mxu1 %v17084_v50 }
 0x5df   :  { %14277 = vmatprep.subr.bf16.mxu1 %v1551_v55 }
 0x5e2   :  { %14278 = vmatpush3.bf16.msra.mxu1 %v17086_v56 }
 0x5e3   :  { %14303 = vmatprep.subr.bf16.mxu1 %v17087_v57 }
 0x5e4   :  { %13417 = vmatmul.mubr.msk.bf16.vlgmr.msra.gmra.mrb[16].mxu0 %vm1157_vm0, %v17067_v46 }
 0x5e5   :  { %1876 = vmatprep.mubr.bf16.mxu0 %v19395_v0 }
 0x5ec   :  { %13418 = vmatmul.mubr.msk.bf16.gmra.mrb[20].mxu0 %vm1157_vm0, %v17068_v47 }
 0x5ed   :  { %1886 = vmatprep.mubr.bf16.mxu0 %v19395_v0 }
 0x5f4   :  { %13419 = vmatmul.mubr.msk.bf16.gmra.mrb[24].mxu0 %vm1157_vm0, %v17069_v48 }
 0x5f5   :  { %1896 = vmatprep.mubr.bf16.mxu0 %v19395_v0 }
 0x5fc   :  { %13420 = vmatmul.mubr.msk.bf16.gmra.mrb[28].mxu0 %vm1157_vm0, %v17070_v49  ;;  %v17100_v49 = vld [vmem:[#allocation86 + $0x30] sm:$0xff]  }
 0x697   :  { %v1358_v58 = vpop.f32.mrb[0].mxu1  ;;  %v20253_v59 = vpop.f32.mrb[0].mxu0 }
 0x698   :  { %v1360_v60 = vpop.f32.mrb[1].mxu1  ;;  %v20255_v61 = vpop.f32.mrb[1].mxu0 }
 0x699   :  { %v1362_v62 = vpop.f32.mrb[2].mxu1  ;;  %v20257_v1 = vpop.f32.mrb[2].mxu0 }
 0x69a   :  { %v1397_v2 = vpack.c.bf16 %v1362_v62, %v1358_v58  ;;  %v1364_v3 = vpop.f32.mrb[3].mxu1  ;;  %v1243_v5 = vpack.c.bf16 %v20257_v1, %v20253_v59  ;;  %v20261_v6 = vpop.f32.mrb[3].mxu0  ;;  %v1726_v58 = vand.u32 %v17101_v43, %v20250_v54  ;;  %v17103_v62 = vld [vmem:[#allocation86 + $0x140] sm:$0xff]   ;;  %v17110_v59 = vld [vmem:[#allocation86 + $0x118] sm:$0xff]  }
 0x69b   :  { %v1398_v7 = vpack.c.bf16 %v1364_v3, %v1360_v60  ;;  %v1244_v8 = vpack.c.bf16 %v20261_v6, %v20255_v61  ;;  %v17102_v60 = vld [vmem:[#allocation86 + $0x38] sm:$0xff]   ;;  %v17104_v3 = vld [vmem:[#allocation86 + $0x100] sm:$0xff]   ;;  %v17107_v61 = vld [vmem:[#allocation86 + $0x150] sm:$0xff]  }
 0x69c   :  { %v17111_v1 = vld [vmem:[#allocation86 + $0x160] sm:$0xff]  }
 0x69d   :  { %13389 = vmatprep.mubr.msk.bf16.mxu1 %vm1533_vm3, %v1398_v7  ;;  %v17105_v7 = vld [vmem:[#allocation86 + $0x148] sm:$0xff]  }
 0x69e   :  { %1586 = vmatmul.mubr.bf16.vlgmr.msra.gmra.mrb[16].mxu1 %v1397_v2 }
 0x69f   :  { %v1368_v11 = vpop.f32.mrb[4].mxu1  ;;  %14304 = vmatpush3.bf16.msra.mxu1 %v17088_v63  ;;  %v20266_v12 = vpop.f32.mrb[4].mxu0 }
 0x6a0   :  { %v1370_v13 = vpop.f32.mrb[5].mxu1  ;;  %14305 = vmatprep.subr.bf16.mxu1 %v17089_v4  ;;  %v20268_v14 = vpop.f32.mrb[5].mxu0 }
 0x6a1   :  { %v1372_v15 = vpop.f32.mrb[6].mxu1  ;;  %v20270_v17 = vpop.f32.mrb[6].mxu0 }
 0x6a2   :  { %v1399_v18 = vpack.c.bf16 %v1372_v15, %v1368_v11  ;;  %v1374_v19 = vpop.f32.mrb[7].mxu1  ;;  %v20272_v21 = vpop.f32.mrb[7].mxu0  ;;  %v1245_v22 = vpack.c.bf16 %v20270_v17, %v20266_v12  ;;  %v17108_v15 = vld [vmem:[#allocation86 + $0x110] sm:$0xff]   ;;  %v17117_v17 = vld [vmem:[#allocation86 + $0x178] sm:$0x3f]  }
 0x6a3   :  { %v1400_v23 = vpack.c.bf16 %v1374_v19, %v1370_v13  ;;  %14306 = vmatpush3.bf16.msra.mxu1 %v17090_v9  ;;  %v1246_v24 = vpack.c.bf16 %v20272_v21, %v20268_v14  ;;  %v17106_v13 = vld [vmem:[#allocation86 + $0x108] sm:$0xff]   ;;  %v17112_v21 = vld [vmem:[#allocation86 + $0x120] sm:$0xff]   ;;  %v17115_v12 = vld [vmem:[#allocation86 + $0x170] sm:$0xff]  }
 0x6a4   :  { %14307 = vmatprep.subr.bf16.mxu1 %v17091_v10 }
 0x6a5   :  { %13390 = vmatprep.mubr.msk.bf16.mxu1 %vm1533_vm3, %v1400_v23 }
 0x6a6   :  { %1594 = vmatmul.mubr.bf16.gmra.mrb[20].mxu1 %v1399_v18  ;;  %v17109_v18 = vld [vmem:[#allocation86 + $0x158] sm:$0xff]  }
 0x6a7   :  { %v1378_v27 = vpop.f32.mrb[8].mxu1  ;;  %14308 = vmatpush3.bf16.msra.mxu1 %v17092_v16  ;;  %v20279_v28 = vpop.f32.mrb[8].mxu0 }
 0x6a8   :  { %v1380_v29 = vpop.f32.mrb[9].mxu1  ;;  %14309 = vmatprep.subr.bf16.mxu1 %v17093_v20  ;;  %v20281_v30 = vpop.f32.mrb[9].mxu0 }
 0x6a9   :  { %v1382_v31 = vpop.f32.mrb[10].mxu1  ;;  %v20283_v33 = vpop.f32.mrb[10].mxu0 }
 0x6aa   :  { %v1401_v34 = vpack.c.bf16 %v1382_v31, %v1378_v27  ;;  %v1384_v35 = vpop.f32.mrb[11].mxu1  ;;  %v20285_v37 = vpop.f32.mrb[11].mxu0  ;;  %v1247_v38 = vpack.c.bf16 %v20283_v33, %v20279_v28 }
 0x6ab   :  { %v1402_v39 = vpack.c.bf16 %v1384_v35, %v1380_v29  ;;  %14310 = vmatpush3.bf16.msra.mxu1 %v17094_v25  ;;  %v1248_v40 = vpack.c.bf16 %v20285_v37, %v20281_v30  ;;  %v17113_v25 = vld [vmem:[#allocation86 + $0x168] sm:$0xff]  }
 0x6ac   :  { %14311 = vmatprep.subr.bf16.mxu1 %v17095_v26  ;;  %v17114_v30 = vld [vmem:[#allocation86 + $0x128] sm:$0xff]  }
 0x6ad   :  { %13391 = vmatprep.mubr.msk.bf16.mxu1 %vm1533_vm3, %v1402_v39  ;;  %v2056_v39 = vand.u32 %v17117_v17, %v20250_v54  ;;  %v17119_v54 = vld [vmem:[#allocation47 + $0x10] sm:$0xff]  }
 0x6ae   :  { %1602 = vmatmul.mubr.bf16.gmra.mrb[24].mxu1 %v1401_v34 }
 0x6af   :  { %v1388_v44 = vpop.f32.mrb[12].mxu1  ;;  %14312 = vmatpush3.bf16.msra.mxu1 %v17096_v32  ;;  %v20292_v45 = vpop.f32.mrb[12].mxu0  ;;  %v17116_v32 = vld [vmem:[#allocation86 + $0x130] sm:$0xff]  }
 0x6b0   :  { %v1390_v46 = vpop.f32.mrb[13].mxu1  ;;  %14313 = vmatprep.subr.bf16.mxu1 %v17097_v36  ;;  %v20294_v47 = vpop.f32.mrb[13].mxu0 }
 0x6b1   :  { %v1392_v48 = vpop.f32.mrb[14].mxu1  ;;  %v20296_v50 = vpop.f32.mrb[14].mxu0 }
 0x6b2   :  { %v1403_v51 = vpack.c.bf16 %v1392_v48, %v1388_v44  ;;  %v1394_v52 = vpop.f32.mrb[15].mxu1  ;;  %v1249_v53 = vpack.c.bf16 %v20296_v50, %v20292_v45  ;;  %v1240_v55 = vpop.f32.mrb[15].mxu0  ;;  %v17123_v44 = vld [vmem:[#allocation47] sm:$0xff]  }
 0x6b3   :  { %v1404_v56 = vpack.c.bf16 %v1394_v52, %v1390_v46  ;;  %14314 = vmatpush3.bf16.msra.mxu1 %v17098_v41  ;;  %v1250_v57 = vpack.c.bf16 %v1240_v55, %v20294_v47  ;;  %15163 = vmatprep.mubr.msk.bf16.mxu0 %vm1157_vm0, %v17123_v44 }
 0x6b4   :  { %14315 = vmatprep.subr.bf16.mxu1 %v17099_v42 }
 0x6b5   :  { %13392 = vmatprep.mubr.msk.bf16.mxu1 %vm1533_vm3, %v1404_v56 }
 0x6b6   :  { %1610 = vmatmul.mubr.bf16.gmra.mrb[28].mxu1 %v1403_v51 }
 0x6b7   :  { %14316 = vmatpush3.bf16.msra.mxu1 %v17100_v49  ;;  %13409 = vmatprep.mubr.msk.bf16.mxu1 %vm1533_vm3, %v1244_v8  ;;  %v20307_v63 = vpop.f32.mrb[16].mxu0 }
 0x6b8   :  { %14317 = vmatprep.subr.bf16.mxu1 %v1726_v58  ;;  %v1870_v2 = vpop.f32.mrb[17].mxu0 }
 0x6b9   :  { %v1872_v4 = vpop.f32.mrb[18].mxu0 }
 0x6ba   :  { %v1907_v9 = vpack.c.bf16 %v1872_v4, %v20307_v63  ;;  %v1874_v10 = vpop.f32.mrb[19].mxu0 }
 0x6bb   :  { %14318 = vmatpush3.bf16.msra.mxu1 %v17102_v60  ;;  %v1908_v11 = vpack.c.bf16 %v1874_v10, %v1870_v2 }
 0x6bc   :  { %14343 = vmatprep.subr.bf16.mxu1 %v17103_v62 }
 0x6be   :  { %1761 = vmatmul.mubr.bf16.vlgmr.msra.gmra.mrb[32].mxu1 %v1243_v5 }
 0x6bf   :  { %14344 = vmatpush3.bf16.msra.mxu1 %v17104_v3  ;;  %13410 = vmatprep.mubr.msk.bf16.mxu1 %vm1533_vm3, %v1246_v24  ;;  %v1878_v6 = vpop.f32.mrb[20].mxu0 }
 0x6c0   :  { %14345 = vmatprep.subr.bf16.mxu1 %v17105_v7  ;;  %v1880_v8 = vpop.f32.mrb[21].mxu0 }
 0x6c1   :  { %v1882_v16 = vpop.f32.mrb[22].mxu0 }
 0x6c2   :  { %v1909_v19 = vpack.c.bf16 %v1882_v16, %v1878_v6  ;;  %v1884_v20 = vpop.f32.mrb[23].mxu0 }
 0x6c3   :  { %14346 = vmatpush3.bf16.msra.mxu1 %v17106_v13  ;;  %v1910_v23 = vpack.c.bf16 %v1884_v20, %v1880_v8 }
 0x6c4   :  { %14347 = vmatprep.subr.bf16.mxu1 %v17107_v61 }
 0x6c6   :  { %1769 = vmatmul.mubr.bf16.gmra.mrb[36].mxu1 %v1245_v22 }
 0x6c7   :  { %14348 = vmatpush3.bf16.msra.mxu1 %v17108_v15  ;;  %13411 = vmatprep.mubr.msk.bf16.mxu1 %vm1533_vm3, %v1248_v40  ;;  %v1888_v5 = vpop.f32.mrb[24].mxu0  ;;  %v17118_v40 = vld [vmem:[#allocation86 + $0x138] sm:$0xff]  }
 0x6c8   :  { %14349 = vmatprep.subr.bf16.mxu1 %v17109_v18  ;;  %v1890_v14 = vpop.f32.mrb[25].mxu0 }
 0x6c9   :  { %v1892_v24 = vpop.f32.mrb[26].mxu0 }
 0x6ca   :  { %v1911_v26 = vpack.c.bf16 %v1892_v24, %v1888_v5  ;;  %v1894_v27 = vpop.f32.mrb[27].mxu0 }
 0x6cb   :  { %14350 = vmatpush3.bf16.msra.mxu1 %v17110_v59  ;;  %v1912_v29 = vpack.c.bf16 %v1894_v27, %v1890_v14 }
 0x6cc   :  { %14351 = vmatprep.subr.bf16.mxu1 %v17111_v1 }
 0x6ce   :  { %1777 = vmatmul.mubr.bf16.gmra.mrb[40].mxu1 %v1247_v38 }
 0x6cf   :  { %14352 = vmatpush3.bf16.msra.mxu1 %v17112_v21  ;;  %13412 = vmatprep.mubr.msk.bf16.mxu1 %vm1533_vm3, %v1250_v57  ;;  %v1898_v22 = vpop.f32.mrb[28].mxu0 }
 0x6d0   :  { %14353 = vmatprep.subr.bf16.mxu1 %v17113_v25  ;;  %v1900_v31 = vpop.f32.mrb[29].mxu0 }
 0x6d1   :  { %v1902_v34 = vpop.f32.mrb[30].mxu0 }
 0x6d2   :  { %v1913_v35 = vpack.c.bf16 %v1902_v34, %v1898_v22  ;;  %v1904_v36 = vpop.f32.mrb[31].mxu0 }
 0x6d3   :  { %14354 = vmatpush3.bf16.msra.mxu1 %v17114_v30  ;;  %v1914_v37 = vpack.c.bf16 %v1904_v36, %v1900_v31 }
 0x6d4   :  { %14355 = vmatprep.subr.bf16.mxu1 %v17115_v12 }
 0x6d6   :  { %1785 = vmatmul.mubr.bf16.gmra.mrb[44].mxu1 %v1249_v53 }
 0x6d7   :  { %14356 = vmatpush3.bf16.msra.mxu1 %v17116_v32  ;;  %13437 = vmatprep.mubr.msk.bf16.mxu1 %vm1533_vm3, %v1908_v11 }
 0x6d8   :  { %14357 = vmatprep.subr.bf16.mxu1 %v2056_v39 }
 0x6db   :  { %14358 = vmatpush3.bf16.msra.mxu1 %v17118_v40  ;;  %v13441_v40 = vld [vmem:[#allocation83] ss:$0 sm:$0xff] }
 0x6de   :  { %2091 = vmatmul.mubr.bf16.vlgmr.msra.gmra.mrb[48].mxu1 %v1907_v9 }
 0x6df   :  { %13438 = vmatprep.mubr.msk.bf16.mxu1 %vm1533_vm3, %v1910_v23 }
 0x6e6   :  { %2099 = vmatmul.mubr.bf16.gmra.mrb[52].mxu1 %v1909_v19 }
 0x6e7   :  { %13439 = vmatprep.mubr.msk.bf16.mxu1 %vm1533_vm3, %v1912_v29 }
 0x6ee   :  { %2107 = vmatmul.mubr.bf16.gmra.mrb[56].mxu1 %v1911_v26 }
 0x6ef   :  { %13440 = vmatprep.mubr.msk.bf16.mxu1 %vm1533_vm3, %v1914_v37 }
 0x6f6   :  { %2115 = vmatmul.mubr.bf16.gmra.mrb[60].mxu1 %v1913_v35 }
 0x6f7   :  { %15175 = vmatprep.mubr.msk.bf16.mxu1 %vm1157_vm0, %v17119_v54 }
 0x771   :  { %v14279_v28 = vpop.f32.mrb[16].mxu1 }
 0x772   :  { %v14280_v33 = vpop.f32.mrb[17].mxu1 }
 0x773   :  { %v14281_v38 = vadd.f32 %v14280_v33, %v14279_v28  ;;  %v14282_v41 = vpop.f32.mrb[18].mxu1 }
 0x774   :  { %v14283_v42 = vpop.f32.mrb[19].mxu1 }
 0x775   :  { %v14284_v43 = vadd.f32 %v14283_v42, %v14282_v41 }
 0x779   :  { %v14285_v45 = vpop.f32.mrb[20].mxu1 }
 0x77a   :  { %v14286_v46 = vpop.f32.mrb[21].mxu1 }
 0x77b   :  { %v14287_v47 = vadd.f32 %v14286_v46, %v14285_v45  ;;  %v14288_v48 = vpop.f32.mrb[22].mxu1 }
 0x77c   :  { %v14289_v49 = vpop.f32.mrb[23].mxu1 }
 0x77d   :  { %v14290_v50 = vadd.f32 %v14289_v49, %v14288_v48 }
 0x781   :  { %v14291_v51 = vpop.f32.mrb[24].mxu1 }
 0x782   :  { %v14292_v52 = vpop.f32.mrb[25].mxu1 }
 0x783   :  { %v14293_v53 = vadd.f32 %v14292_v52, %v14291_v51  ;;  %v14294_v55 = vpop.f32.mrb[26].mxu1 }
 0x784   :  { %v14295_v56 = vpop.f32.mrb[27].mxu1 }
 0x785   :  { %v14296_v57 = vadd.f32 %v14295_v56, %v14294_v55 }
 0x789   :  { %v14297_v58 = vpop.f32.mrb[28].mxu1 }
 0x78a   :  { %v14298_v60 = vpop.f32.mrb[29].mxu1 }
 0x78b   :  { %v14299_v62 = vadd.f32 %v14298_v60, %v14297_v58  ;;  %v14300_v63 = vpop.f32.mrb[30].mxu1 }
 0x78c   :  { %v14301_v2 = vpop.f32.mrb[31].mxu1 }
 0x78d   :  { %v14302_v3 = vadd.f32 %v14301_v2, %v14300_v63 }
 0x791   :  { %v14319_v4 = vpop.f32.mrb[32].mxu1 }
 0x792   :  { %v14320_v7 = vpop.f32.mrb[33].mxu1 }
 0x793   :  { %v14321_v9 = vadd.f32 %v14320_v7, %v14319_v4  ;;  %v14322_v10 = vpop.f32.mrb[34].mxu1 }
 0x794   :  { %v14323_v11 = vpop.f32.mrb[35].mxu1 }
 0x795   :  { %v1763_v13 = vadd.f32 %v14321_v9, %v14281_v38  ;;  %v14324_v61 = vadd.f32 %v14323_v11, %v14322_v10 }
 0x797   :  { %v1766_v6 = vadd.f32 %v14324_v61, %v14284_v43 }
 0x799   :  { %v14325_v8 = vpop.f32.mrb[36].mxu1 }
 0x79a   :  { %v14326_v15 = vpop.f32.mrb[37].mxu1 }
 0x79b   :  { %v14327_v16 = vadd.f32 %v14326_v15, %v14325_v8  ;;  %v14328_v18 = vpop.f32.mrb[38].mxu1 }
 0x79c   :  { %v14329_v19 = vpop.f32.mrb[39].mxu1 }
 0x79d   :  { %v1771_v20 = vadd.f32 %v14327_v16, %v14287_v47  ;;  %v14330_v23 = vadd.f32 %v14329_v19, %v14328_v18 }
 0x79f   :  { %v1774_v59 = vadd.f32 %v14330_v23, %v14290_v50 }
 0x7a1   :  { %v14331_v1 = vpop.f32.mrb[40].mxu1 }
 0x7a2   :  { %v14332_v5 = vpop.f32.mrb[41].mxu1 }
 0x7a3   :  { %v14333_v14 = vadd.f32 %v14332_v5, %v14331_v1  ;;  %v14334_v21 = vpop.f32.mrb[42].mxu1 }
 0x7a4   :  { %v14335_v24 = vpop.f32.mrb[43].mxu1 }
 0x7a5   :  { %v1779_v25 = vadd.f32 %v14333_v14, %v14293_v53  ;;  %v14336_v26 = vadd.f32 %v14335_v24, %v14334_v21 }
 0x7a7   :  { %v1782_v27 = vadd.f32 %v14336_v26, %v14296_v57  ;;  %v17127_v26 = vld [vmem:[%s21430_s21 + $0x40] sm:$0xff]  }
 0x7a9   :  { %v14337_v29 = vpop.f32.mrb[44].mxu1 }
 0x7aa   :  { %v14338_v30 = vpop.f32.mrb[45].mxu1 }
 0x7ab   :  { %v14339_v12 = vadd.f32 %v14338_v30, %v14337_v29  ;;  %v14340_v17 = vpop.f32.mrb[46].mxu1  ;;  %v17124_v29 = vld [vmem:[#allocation47 + $0x8] sm:$0xff]   ;;  %v17121_v30 = vld [vmem:[#allocation47 + $0x20] sm:$0xff]  }
 0x7ac   :  { %v14341_v22 = vpop.f32.mrb[47].mxu1 }
 0x7ad   :  { %v1787_v31 = vadd.f32 %v14339_v12, %v14299_v62  ;;  %v14342_v32 = vadd.f32 %v14341_v22, %v14340_v17  ;;  %v17128_v12 = vld [vmem:[%s21430_s21 + $0x48] sm:$0xff]   ;;  %v17129_v17 = vld [vmem:[%s21430_s21 + $0x50] sm:$0xff]   ;;  %v17130_v22 = vld [vmem:[%s21430_s21 + $0x58] sm:$0xff]  }
 0x7af   :  { %v1790_v34 = vadd.f32 %v14342_v32, %v14302_v3  ;;  %v17122_v32 = vld [vmem:[#allocation47 + $0x28] sm:$0xff]  }
 0x7b1   :  { %v14359_v35 = vpop.f32.mrb[48].mxu1 }
 0x7b2   :  { %v14360_v36 = vpop.f32.mrb[49].mxu1 }
 0x7b3   :  { %v14361_v37 = vadd.f32 %v14360_v36, %v14359_v35  ;;  %v14362_v39 = vpop.f32.mrb[50].mxu1  ;;  %v17132_v35 = vld [vmem:[%s21430_s21 + $0x68] sm:$0xff]   ;;  %v17133_v36 = vld [vmem:[%s21430_s21 + $0x70] sm:$0xff]  }
 0x7b4   :  { %v14363_v54 = vpop.f32.mrb[51].mxu1 }
 0x7b5   :  { %v2123_v28 = vadd.f32 %v14361_v37, %v1763_v13  ;;  %v14364_v33 = vadd.f32 %v14363_v54, %v14362_v39  ;;  %v17126_v37 = vld [vmem:[#allocation47 + $0x38] sm:$0xff]  }
 0x7b6   :  { %v17134_v39 = vld [vmem:[%s21430_s21 + $0x78] sm:$0xff]  }
 0x7b7   :  { %v2138_v38 = vadd.f32 %v13441_v40, %v2123_v28  ;;  %v2124_v41 = vadd.f32 %v14364_v33, %v1766_v6 }
 0x7b9   :  { %v2139_v42 = vadd.f32 %v13441_v40, %v2124_v41  ;;  %v14365_v43 = vpop.f32.mrb[52].mxu1  ;;  %v2146_v45 = vmax.f32 %v2138_v38, 0.0 }
 0x7ba   :  { %v14366_v44 = vpop.f32.mrb[53].mxu1 }
 0x7bb   :  { %v2147_v46 = vmax.f32 %v2139_v42, 0.0  ;;  %v14367_v47 = vadd.f32 %v14366_v44, %v14365_v43  ;;  %v14368_v48 = vpop.f32.mrb[54].mxu1 }
 0x7bc   :  { %v14369_v49 = vpop.f32.mrb[55].mxu1 }
 0x7bd   :  { %v20335_v50 = vpack.c.bf16 %v2147_v46, %v2146_v45  ;;  %v2125_v51 = vadd.f32 %v14367_v47, %v1771_v20  ;;  %v14370_v52 = vadd.f32 %v14369_v49, %v14368_v48  ;;  %v17136_v49 = vld [vmem:[%s21430_s21 + $0x8] sm:$0xff]  }
 0x7bf   :  { %v2140_v53 = vadd.f32 %v13441_v40, %v2125_v51  ;;  %v2126_v55 = vadd.f32 %v14370_v52, %v1774_v59  ;;  %15155 = vmatprep.subr.bf16.mxu0 %v20335_v50  ;;  %15167 = vmatprep.subr.bf16.mxu1 %v20335_v50  ;;  %v17138_v51 = vld [vmem:[%s21430_s21 + $0x18] sm:$0xff]  }
 0x7c0   :  { %15156 = vmatpush3.bf16.msra.mxu0 %v20335_v50  ;;  %15168 = vmatpush3.bf16.msra.mxu1 %v20335_v50 }
 0x7c1   :  { %v2141_v56 = vadd.f32 %v13441_v40, %v2126_v55  ;;  %v14371_v57 = vpop.f32.mrb[56].mxu1  ;;  %v2148_v60 = vmax.f32 %v2140_v53, 0.0  ;;  %v17139_v53 = vld [vmem:[%s21430_s21 + $0x20] sm:$0xff]  }
 0x7c2   :  { %v14372_v58 = vpop.f32.mrb[57].mxu1 }
 0x7c3   :  { %v2149_v62 = vmax.f32 %v2141_v56, 0.0  ;;  %v14373_v63 = vadd.f32 %v14372_v58, %v14371_v57  ;;  %v14374_v2 = vpop.f32.mrb[58].mxu1 }
 0x7c4   :  { %v14375_v3 = vpop.f32.mrb[59].mxu1 }
 0x7c5   :  { %v20341_v4 = vpack.c.bf16 %v2149_v62, %v2148_v60  ;;  %v2127_v7 = vadd.f32 %v14373_v63, %v1779_v25  ;;  %v14376_v9 = vadd.f32 %v14375_v3, %v14374_v2  ;;  %v17140_v62 = vld [vmem:[%s21430_s21 + $0x28] sm:$0xff]   ;;  %v17141_v63 = vld [vmem:[%s21430_s21 + $0x30] sm:$0xff]   ;;  %v17142_v2 = vld [vmem:[%s21430_s21 + $0x38] sm:$0xff]  }
 0x7c7   :  { %v2142_v10 = vadd.f32 %v13441_v40, %v2127_v7  ;;  %v2128_v11 = vadd.f32 %v14376_v9, %v1782_v27  ;;  %15157 = vmatprep.subr.bf16.mxu0 %v20341_v4  ;;  %15169 = vmatprep.subr.bf16.mxu1 %v20341_v4  ;;  %v17120_v27 = vld [vmem:[#allocation47 + $0x18] sm:$0xff]  }
 0x7c8   :  { %15158 = vmatpush3.bf16.msra.mxu0 %v20341_v4  ;;  %15170 = vmatpush3.bf16.msra.mxu1 %v20341_v4 }
 0x7c9   :  { %v2143_v13 = vadd.f32 %v13441_v40, %v2128_v11  ;;  %v14377_v61 = vpop.f32.mrb[60].mxu1  ;;  %v2150_v8 = vmax.f32 %v2142_v10, 0.0 }
 0x7ca   :  { %v14378_v6 = vpop.f32.mrb[61].mxu1 }
 0x7cb   :  { %v2151_v15 = vmax.f32 %v2143_v13, 0.0  ;;  %v14379_v16 = vadd.f32 %v14378_v6, %v14377_v61  ;;  %v14380_v18 = vpop.f32.mrb[62].mxu1  ;;  %v17144_v61 = vld [vmem:[%s21430_s21 + $0x88] sm:$0xff]   ;;  %v17145_v6 = vld [vmem:[%s21430_s21 + $0x90] sm:$0xff]  }
 0x7cc   :  { %v14381_v19 = vpop.f32.mrb[63].mxu1 }
 0x7cd   :  { %v2156_v20 = vpack.c.bf16 %v2151_v15, %v2150_v8  ;;  %v2129_v23 = vadd.f32 %v14379_v16, %v1787_v31  ;;  %v14382_v59 = vadd.f32 %v14381_v19, %v14380_v18  ;;  %v17131_v31 = vld [vmem:[%s21430_s21 + $0x60] sm:$0xff]   ;;  %v17146_v8 = vld [vmem:[%s21430_s21 + $0x98] sm:$0xff]   ;;  %v17148_v16 = vld [vmem:[%s21430_s21 + $0xa8] sm:$0xff]  }
 0x7ce   :  { %v17147_v15 = vld [vmem:[%s21430_s21 + $0xa0] sm:$0xff]   ;;  %v17149_v18 = vld [vmem:[%s21430_s21 + $0xb0] sm:$0xff]   ;;  %v17150_v19 = vld [vmem:[%s21430_s21 + $0xb8] sm:$0xff]  }
 0x7cf   :  { %v2144_v1 = vadd.f32 %v13441_v40, %v2129_v23  ;;  %v2130_v5 = vadd.f32 %v14382_v59, %v1790_v34  ;;  %15159 = vmatprep.subr.bf16.mxu0 %v2156_v20  ;;  %15171 = vmatprep.subr.bf16.mxu1 %v2156_v20  ;;  %v17125_v34 = vld [vmem:[#allocation47 + $0x30] sm:$0xff]  }
 0x7d0   :  { %15160 = vmatpush3.bf16.msra.mxu0 %v2156_v20  ;;  %15172 = vmatpush3.bf16.msra.mxu1 %v2156_v20  ;;  %v17152_v23 = vld [vmem:[%s21430_s21 + $0xc8] sm:$0xff]   ;;  %v17153_v59 = vld [vmem:[%s21430_s21 + $0xd0] sm:$0xff]  }
 0x7d1   :  { %v2145_v14 = vadd.f32 %v13441_v40, %v2130_v5  ;;  %v2152_v21 = vmax.f32 %v2144_v1, 0.0  ;;  %v17135_v40 = vld [vmem:[%s21430_s21] sm:$0xff]   ;;  %v17154_v1 = vld [vmem:[%s21430_s21 + $0xd8] sm:$0xff]  }
 0x7d2   :  { %v17155_v5 = vld [vmem:[%s21430_s21 + $0xe0] sm:$0xff]  }
 0x7d3   :  { %v2153_v24 = vmax.f32 %v2145_v14, 0.0  ;;  %v17156_v14 = vld [vmem:[%s21430_s21 + $0xe8] sm:$0xff]  }
 0x7d5   :  { %v2157_v25 = vpack.c.bf16 %v2153_v24, %v2152_v21  ;;  %v17157_v21 = vld [vmem:[%s21430_s21 + $0xf0] sm:$0xff]   ;;  %v17158_v24 = vld [vmem:[%s21430_s21 + $0xf8] sm:$0xff]  }
 0x7d7   :  { %15161 = vmatprep.subr.bf16.mxu0 %v2157_v25  ;;  %15173 = vmatprep.subr.bf16.mxu1 %v2157_v25 }
 0x7d8   :  { %15162 = vmatpush3.bf16.msra.mxu0 %v2157_v25  ;;  %15174 = vmatpush3.bf16.msra.mxu1 %v2157_v25 }
 0x7d9   :  { %15219 = vmatprep.subr.bf16.mxu1 %v20335_v50  ;;  %15179 = vmatprep.subr.bf16.mxu0 %v17127_v26 }
 0x7db   :  { %15176 = vmatmul.mubr.msk.bf16.vlgmr.msra.gmra.mrb[64].mxu1 %vm1157_vm0, %v17120_v27  ;;  %15164 = vmatmul.mubr.msk.bf16.vlgmr.msra.gmra.mrb[32].mxu0 %vm1157_vm0, %v17124_v29 }
 0x7dc   :  { %15220 = vmatpush3.bf16.msra.mxu1 %v20335_v50  ;;  %15227 = vmatprep.mubr.msk.bf16.mxu1 %vm1157_vm0, %v17121_v30 }
 0x7dd   :  { %15221 = vmatprep.subr.bf16.mxu1 %v20341_v4  ;;  %15180 = vmatpush3.bf16.msra.mxu0 %v17127_v26  ;;  %v13538_v26 = vld [vmem:[#allocation46] ss:$0 sm:$0xff] }
 0x7de   :  { %15181 = vmatprep.subr.bf16.mxu0 %v17128_v12 }
 0x7e0   :  { %15222 = vmatpush3.bf16.msra.mxu1 %v20341_v4 }
 0x7e1   :  { %15223 = vmatprep.subr.bf16.mxu1 %v2156_v20  ;;  %15182 = vmatpush3.bf16.msra.mxu0 %v17128_v12 }
 0x7e2   :  { %15183 = vmatprep.subr.bf16.mxu0 %v17129_v17 }
 0x7e4   :  { %15224 = vmatpush3.bf16.msra.mxu1 %v2156_v20 }
 0x7e5   :  { %15225 = vmatprep.subr.bf16.mxu1 %v2157_v25  ;;  %15184 = vmatpush3.bf16.msra.mxu0 %v17129_v17 }
 0x7e6   :  { %15185 = vmatprep.subr.bf16.mxu0 %v17130_v22 }
 0x7e8   :  { %15226 = vmatpush3.bf16.msra.mxu1 %v2157_v25 }
 0x7e9   :  { %15251 = vmatprep.subr.bf16.mxu1 %v20335_v50  ;;  %15186 = vmatpush3.bf16.msra.mxu0 %v17130_v22 }
 0x7ea   :  { %15187 = vmatprep.subr.bf16.mxu0 %v17131_v31 }
 0x7eb   :  { %15228 = vmatmul.mubr.msk.bf16.vlgmr.msra.gmra.mrb[68].mxu1 %vm1157_vm0, %v17122_v32 }
 0x7ec   :  { %15252 = vmatpush3.bf16.msra.mxu1 %v20335_v50  ;;  %15259 = vmatprep.mubr.msk.bf16.mxu1 %vm1157_vm0, %v17125_v34  ;;  %v17137_v50 = vld [vmem:[%s21430_s21 + $0x10] sm:$0xff]  }
 0x7ed   :  { %15253 = vmatprep.subr.bf16.mxu1 %v20341_v4  ;;  %15188 = vmatpush3.bf16.msra.mxu0 %v17131_v31 }
 0x7ee   :  { %15189 = vmatprep.subr.bf16.mxu0 %v17132_v35 }
 0x7f0   :  { %15254 = vmatpush3.bf16.msra.mxu1 %v20341_v4  ;;  %v17143_v4 = vld [vmem:[%s21430_s21 + $0x80] sm:$0xff]  }
 0x7f1   :  { %15255 = vmatprep.subr.bf16.mxu1 %v2156_v20  ;;  %15190 = vmatpush3.bf16.msra.mxu0 %v17132_v35 }
 0x7f2   :  { %15191 = vmatprep.subr.bf16.mxu0 %v17133_v36 }
 0x7f4   :  { %15256 = vmatpush3.bf16.msra.mxu1 %v2156_v20  ;;  %v17151_v20 = vld [vmem:[%s21430_s21 + $0xc0] sm:$0xff]  }
 0x7f5   :  { %15257 = vmatprep.subr.bf16.mxu1 %v2157_v25  ;;  %15192 = vmatpush3.bf16.msra.mxu0 %v17133_v36 }
 0x7f6   :  { %15193 = vmatprep.subr.bf16.mxu0 %v17134_v39 }
 0x7f8   :  { %15258 = vmatpush3.bf16.msra.mxu1 %v2157_v25  ;;  %v17159_v25 = vld [vmem:[#allocation50] sm:$0xff]  }
 0x7f9   :  { %15194 = vmatpush3.bf16.msra.mxu0 %v17134_v39 }
 0x7fa   :  { %15199 = vmatprep.subr.bf16.mxu0 %v17135_v40 }
 0x7fb   :  { %15260 = vmatmul.mubr.msk.bf16.vlgmr.msra.gmra.mrb[72].mxu1 %vm1157_vm0, %v17126_v37 }
 0x7fc   :  { %15287 = vmatprep.mubr.msk.bf16.mxu1 %vm2939_vm4, %v17159_v25 }
 0x8ae   :  { %v15177_v54 = vpop.f32.mrb[64].mxu1  ;;  %v15165_v28 = vpop.f32.mrb[32].mxu0 }
 0x8af   :  { %v2300_v33 = vpop.f32.mrb[65].mxu1  ;;  %v2212_v38 = vpop.f32.mrb[33].mxu0 }
 0x8b0   :  { %v15178_v41 = vpop.f32.mrb[66].mxu1  ;;  %v15166_v42 = vpop.f32.mrb[34].mxu0 }
 0x8b1   :  { %v2316_v43 = vpack.c.bf16 %v15178_v41, %v15177_v54  ;;  %v2303_v44 = vpop.f32.mrb[67].mxu1  ;;  %v2228_v45 = vpack.c.bf16 %v15166_v42, %v15165_v28  ;;  %v2215_v46 = vpop.f32.mrb[35].mxu0  ;;  %v17160_v54 = vld [vmem:[#allocation50 + $0x8] sm:$0xff]   ;;  %v17161_v28 = vld [vmem:[#allocation50 + $0x10] sm:$0xff]   ;;  %v17164_v41 = vld [vmem:[#allocation52 + $0x48] sm:$0xff]  }
 0x8b2   :  { %v2315_v47 = vpack.c.bf16 %v2303_v44, %v2300_v33  ;;  %v2227_v48 = vpack.c.bf16 %v2215_v46, %v2212_v38  ;;  %v17163_v33 = vld [vmem:[#allocation52 + $0x40] sm:$0xff]   ;;  %v17162_v38 = vld [vmem:[#allocation50 + $0x18] sm:$0xff]   ;;  %v17165_v42 = vld [vmem:[#allocation52 + $0x50] sm:$0xff]  }
 0x8b3   :  { %v17167_v44 = vld [vmem:[#allocation52 + $0x60] sm:$0xff]   ;;  %v17169_v46 = vld [vmem:[#allocation52 + $0x70] sm:$0xff]  }
 0x8b4   :  { %15195 = vmatprep.mubr.bf16.mxu0 %v2315_v47  ;;  %v17170_v47 = vld [vmem:[#allocation52 + $0x78] sm:$0xff]  }
 0x8b5   :  { %15196 = vmatmul.mubr.bf16.vlgmr.msra.gmra.mrb[36].mxu0 %v2316_v43  ;;  %v17166_v43 = vld [vmem:[#allocation52 + $0x58] sm:$0xff]  }
 0x8b6   :  { %15200 = vmatpush3.bf16.msra.mxu0 %v17135_v40  ;;  %15215 = vmatprep.mubr.bf16.mxu0 %v2227_v48  ;;  %v17171_v48 = vld [vmem:[#allocation52] sm:$0xff]  }
 0x8b7   :  { %15201 = vmatprep.subr.bf16.mxu0 %v17136_v49 }
 0x8ba   :  { %15202 = vmatpush3.bf16.msra.mxu0 %v17136_v49 }
 0x8bb   :  { %15203 = vmatprep.subr.bf16.mxu0 %v17137_v50 }
 0x8be   :  { %15204 = vmatpush3.bf16.msra.mxu0 %v17137_v50  ;;  %v15229_v52 = vpop.f32.mrb[68].mxu1 }
 0x8bf   :  { %15205 = vmatprep.subr.bf16.mxu0 %v17138_v51  ;;  %v2583_v55 = vpop.f32.mrb[69].mxu1 }
 0x8c0   :  { %v15230_v56 = vpop.f32.mrb[70].mxu1 }
 0x8c1   :  { %v2599_v57 = vpack.c.bf16 %v15230_v56, %v15229_v52  ;;  %v2586_v58 = vpop.f32.mrb[71].mxu1 }
 0x8c2   :  { %15206 = vmatpush3.bf16.msra.mxu0 %v17138_v51  ;;  %v2598_v60 = vpack.c.bf16 %v2586_v58, %v2583_v55 }
 0x8c3   :  { %15207 = vmatprep.subr.bf16.mxu0 %v17139_v53 }
 0x8c6   :  { %15208 = vmatpush3.bf16.msra.mxu0 %v17139_v53 }
 0x8c7   :  { %15209 = vmatprep.subr.bf16.mxu0 %v17140_v62 }
 0x8ca   :  { %15210 = vmatpush3.bf16.msra.mxu0 %v17140_v62 }
 0x8cb   :  { %15211 = vmatprep.subr.bf16.mxu0 %v17141_v63 }
 0x8ce   :  { %15212 = vmatpush3.bf16.msra.mxu0 %v17141_v63  ;;  %v15261_v3 = vpop.f32.mrb[72].mxu1 }
 0x8cf   :  { %15213 = vmatprep.subr.bf16.mxu0 %v17142_v2  ;;  %v2773_v7 = vpop.f32.mrb[73].mxu1 }
 0x8d0   :  { %v15262_v9 = vpop.f32.mrb[74].mxu1 }
 0x8d1   :  { %v2789_v10 = vpack.c.bf16 %v15262_v9, %v15261_v3  ;;  %v2776_v11 = vpop.f32.mrb[75].mxu1  ;;  %v17173_v3 = vld [vmem:[#allocation52 + $0x10] sm:$0xff]   ;;  %v17176_v9 = vld [vmem:[#allocation52 + $0x28] sm:$0xff]  }
 0x8d2   :  { %15214 = vmatpush3.bf16.msra.mxu0 %v17142_v2  ;;  %v2788_v13 = vpack.c.bf16 %v2776_v11, %v2773_v7  ;;  %v17172_v2 = vld [vmem:[#allocation52 + $0x8] sm:$0xff]   ;;  %v17175_v7 = vld [vmem:[#allocation52 + $0x20] sm:$0xff]   ;;  %v17178_v11 = vld [vmem:[#allocation52 + $0x38] sm:$0xff]  }
 0x8d3   :  { %15231 = vmatprep.subr.bf16.mxu0 %v17143_v4 }
 0x8d5   :  { %15216 = vmatmul.mubr.bf16.vlgmr.msra.gmra.mrb[36].mxu0 %v2228_v45  ;;  %v17168_v45 = vld [vmem:[#allocation52 + $0x68] sm:$0xff]  }
 0x8d6   :  { %15232 = vmatpush3.bf16.msra.mxu0 %v17143_v4  ;;  %15247 = vmatprep.mubr.bf16.mxu0 %v2598_v60  ;;  %v17174_v4 = vld [vmem:[#allocation52 + $0x18] sm:$0xff]  }
 0x8d7   :  { %15233 = vmatprep.subr.bf16.mxu0 %v17144_v61 }
 0x8da   :  { %15234 = vmatpush3.bf16.msra.mxu0 %v17144_v61  ;;  %v17181_v61 = vld [vmem:[#allocation52 + $0x80] sm:$0xff]  }
 0x8db   :  { %15235 = vmatprep.subr.bf16.mxu0 %v17145_v6 }
 0x8de   :  { %15236 = vmatpush3.bf16.msra.mxu0 %v17145_v6  ;;  %v17180_v6 = vld [vmem:[#allocation50 + $0x28] sm:$0xff]  }
 0x8df   :  { %15237 = vmatprep.subr.bf16.mxu0 %v17146_v8 }
 0x8e2   :  { %15238 = vmatpush3.bf16.msra.mxu0 %v17146_v8  ;;  %v17182_v8 = vld [vmem:[#allocation52 + $0x88] sm:$0xff]  }
 0x8e3   :  { %15239 = vmatprep.subr.bf16.mxu0 %v17147_v15 }
 0x8e6   :  { %15240 = vmatpush3.bf16.msra.mxu0 %v17147_v15  ;;  %v17183_v15 = vld [vmem:[#allocation52 + $0x90] sm:$0xff]  }
 0x8e7   :  { %15241 = vmatprep.subr.bf16.mxu0 %v17148_v16 }
 0x8ea   :  { %15242 = vmatpush3.bf16.msra.mxu0 %v17148_v16  ;;  %v17184_v16 = vld [vmem:[#allocation52 + $0x98] sm:$0xff]  }
 0x8eb   :  { %15243 = vmatprep.subr.bf16.mxu0 %v17149_v18 }
 0x8ee   :  { %15244 = vmatpush3.bf16.msra.mxu0 %v17149_v18  ;;  %v17185_v18 = vld [vmem:[#allocation52 + $0xa0] sm:$0xff]  }
 0x8ef   :  { %15245 = vmatprep.subr.bf16.mxu0 %v17150_v19 }
 0x8f2   :  { %15246 = vmatpush3.bf16.msra.mxu0 %v17150_v19  ;;  %v17186_v19 = vld [vmem:[#allocation52 + $0xa8] sm:$0xff]  }
 0x8f3   :  { %15263 = vmatprep.subr.bf16.mxu0 %v17151_v20 }
 0x8f5   :  { %15248 = vmatmul.mubr.bf16.vlgmr.msra.gmra.mrb[36].mxu0 %v2599_v57 }
 0x8f6   :  { %15264 = vmatpush3.bf16.msra.mxu0 %v17151_v20  ;;  %15279 = vmatprep.mubr.bf16.mxu0 %v2788_v13  ;;  %v17179_v13 = vld [vmem:[#allocation50 + $0x20] sm:$0xff]  }
 0x8f7   :  { %15265 = vmatprep.subr.bf16.mxu0 %v17152_v23  ;;  %v17187_v20 = vld [vmem:[#allocation52 + $0xb0] sm:$0xff]  }
 0x8fa   :  { %15266 = vmatpush3.bf16.msra.mxu0 %v17152_v23  ;;  %v17188_v23 = vld [vmem:[#allocation52 + $0xb8] sm:$0xff]  }
 0x8fb   :  { %15267 = vmatprep.subr.bf16.mxu0 %v17153_v59 }
 0x8fe   :  { %15268 = vmatpush3.bf16.msra.mxu0 %v17153_v59  ;;  %v17189_v59 = vld [vmem:[#allocation55] sm:$0xff]  }
 0x8ff   :  { %15269 = vmatprep.subr.bf16.mxu0 %v17154_v1 }
 0x902   :  { %15270 = vmatpush3.bf16.msra.mxu0 %v17154_v1  ;;  %v17190_v1 = vld [vmem:[#allocation55 + $0x8] sm:$0xff]  }
 0x903   :  { %15271 = vmatprep.subr.bf16.mxu0 %v17155_v5 }
 0x906   :  { %15272 = vmatpush3.bf16.msra.mxu0 %v17155_v5  ;;  %v17191_v5 = vld [vmem:[#allocation55 + $0x10] sm:$0xff]  }
 0x907   :  { %15273 = vmatprep.subr.bf16.mxu0 %v17156_v14 }
 0x90a   :  { %15274 = vmatpush3.bf16.msra.mxu0 %v17156_v14  ;;  %v17192_v14 = vld [vmem:[#allocation55 + $0x18] sm:$0xff]  }
 0x90b   :  { %15275 = vmatprep.subr.bf16.mxu0 %v17157_v21 }
 0x90e   :  { %15276 = vmatpush3.bf16.msra.mxu0 %v17157_v21  ;;  %v17193_v21 = vld [vmem:[#allocation55 + $0x20] sm:$0xff]  }
 0x90f   :  { %15277 = vmatprep.subr.bf16.mxu0 %v17158_v24 }
 0x912   :  { %15278 = vmatpush3.bf16.msra.mxu0 %v17158_v24  ;;  %v17194_v24 = vld [vmem:[#allocation55 + $0x28] sm:$0xff]  }
 0x913   :  { %15367 = vmatprep.subr.bf16.mxu0 %v17189_v59 }
 0x915   :  { %15280 = vmatmul.mubr.bf16.vlgmr.msra.gmra.mrb[36].mxu0 %v2789_v10  ;;  %v17177_v10 = vld [vmem:[#allocation52 + $0x30] sm:$0xff]  }
 0x916   :  { %15368 = vmatpush3.bf16.msra.mxu0 %v17189_v59  ;;  %v17227_v59 = vld [vmem:[#allocation62] sm:$0xff]  }
 0x917   :  { %15369 = vmatprep.subr.bf16.mxu0 %v17190_v1 }
 0x91a   :  { %15370 = vmatpush3.bf16.msra.mxu0 %v17190_v1  ;;  %v17228_v1 = vld [vmem:[#allocation62 + $0x8] sm:$0xff]  }
 0x91b   :  { %15371 = vmatprep.subr.bf16.mxu0 %v17191_v5 }
 0x91e   :  { %15372 = vmatpush3.bf16.msra.mxu0 %v17191_v5  ;;  %v17229_v5 = vld [vmem:[#allocation62 + $0x10] sm:$0xff]  }
 0x91f   :  { %15373 = vmatprep.subr.bf16.mxu0 %v17192_v14 }
 0x922   :  { %15374 = vmatpush3.bf16.msra.mxu0 %v17192_v14  ;;  %v17230_v14 = vld [vmem:[#allocation62 + $0x18] sm:$0xff]  }
 0x923   :  { %15375 = vmatprep.subr.bf16.mxu0 %v17193_v21 }
 0x926   :  { %15376 = vmatpush3.bf16.msra.mxu0 %v17193_v21  ;;  %v17231_v21 = vld [vmem:[#allocation62 + $0x20] sm:$0xff]  }
 0x927   :  { %15377 = vmatprep.subr.bf16.mxu0 %v17194_v24 }
 0x92a   :  { %15378 = vmatpush3.bf16.msra.mxu0 %v17194_v24  ;;  %v17232_v24 = vld [vmem:[#allocation62 + $0x28] sm:$0xff]  }
 0x9e8   :  { %v15281_v27 = vpop.f32.mrb[36].mxu0 }
 0x9e9   :  { %v2889_v29 = vpop.f32.mrb[37].mxu0  ;;  %v20398_v31 = vadd.f32 %v15281_v27, %v13538_v26 }
 0x9ea   :  { %v20394_v30 = vadd.f32 %v13538_v26, %v2889_v29  ;;  %v15282_v12 = vpop.f32.mrb[38].mxu0 }
 0x9eb   :  { %v20396_v17 = vadd.f32 %v15282_v12, %v13538_v26  ;;  %v2892_v22 = vpop.f32.mrb[39].mxu0  ;;  %v2921_v37 = vmax.f32 %v20398_v31, 0.0 }
 0x9ec   :  { %v20400_v32 = vadd.f32 %v13538_v26, %v2892_v22  ;;  %v2919_v34 = vmax.f32 %v20394_v30, 0.0 }
 0x9ed   :  { %v2922_v35 = vmax.f32 %v20396_v17, 0.0 }
 0x9ee   :  { %v2920_v36 = vmax.f32 %v20400_v32, 0.0 }
 0x9ef   :  { %v20408_v40 = vpack.c.bf16 %v2922_v35, %v2921_v37  ;;  %v17196_v35 = vld [vmem:[#allocation55 + $0x38] sm:$0xff]  }
 0x9f0   :  { %v20406_v39 = vpack.c.bf16 %v2920_v36, %v2919_v34  ;;  %v17195_v34 = vld [vmem:[#allocation55 + $0x30] sm:$0xff]   ;;  %v13575_v36 = vld [vmem:[#allocation49] ss:$0 sm:$0xff] }
 0x9f1   :  { %15379 = vmatprep.subr.bf16.mxu0 %v17195_v34 }
 0x9f2   :  { %15283 = vmatprep.subr.bf16.mxu1 %v20406_v39  ;;  %15380 = vmatpush3.bf16.msra.mxu0 %v17195_v34 }
 0x9f3   :  { %15284 = vmatpush3.bf16.msra.mxu1 %v20406_v39  ;;  %15381 = vmatprep.subr.bf16.mxu0 %v17196_v35 }
 0x9f4   :  { %15285 = vmatprep.subr.bf16.mxu1 %v20408_v40 }
 0x9f6   :  { %15382 = vmatpush3.bf16.msra.mxu0 %v17196_v35 }
 0x9f7   :  { %15286 = vmatpush3.bf16.msra.mxu1 %v20408_v40 }
 0x9f8   :  { %15291 = vmatprep.subr.bf16.mxu1 %v20406_v39 }
 0x9fa   :  { %15288 = vmatmul.mubr.msk.bf16.vlgmr.msra.gmra.mrb[76].mxu1 %vm2939_vm4, %v17160_v54 }
 0x9fb   :  { %15292 = vmatpush3.bf16.msra.mxu1 %v20406_v39  ;;  %15295 = vmatprep.mubr.msk.bf16.mxu1 %vm2939_vm4, %v17161_v28 }
 0x9fc   :  { %15293 = vmatprep.subr.bf16.mxu1 %v20408_v40 }
 0x9ff   :  { %15294 = vmatpush3.bf16.msra.mxu1 %v20408_v40 }
 0xa00   :  { %15299 = vmatprep.subr.bf16.mxu1 %v17163_v33 }
 0xa02   :  { %15296 = vmatmul.mubr.msk.bf16.vlgmr.msra.gmra.mrb[80].mxu1 %vm2939_vm4, %v17162_v38 }
 0xa03   :  { %15300 = vmatpush3.bf16.msra.mxu1 %v17163_v33 }
 0xa04   :  { %15301 = vmatprep.subr.bf16.mxu1 %v17164_v41 }
 0xa07   :  { %15302 = vmatpush3.bf16.msra.mxu1 %v17164_v41 }
 0xa08   :  { %15303 = vmatprep.subr.bf16.mxu1 %v17165_v42 }
 0xa0b   :  { %15304 = vmatpush3.bf16.msra.mxu1 %v17165_v42 }
 0xa0c   :  { %15305 = vmatprep.subr.bf16.mxu1 %v17166_v43 }
 0xa0f   :  { %15306 = vmatpush3.bf16.msra.mxu1 %v17166_v43 }
 0xa10   :  { %15307 = vmatprep.subr.bf16.mxu1 %v17167_v44 }
 0xa13   :  { %15308 = vmatpush3.bf16.msra.mxu1 %v17167_v44 }
 0xa14   :  { %15309 = vmatprep.subr.bf16.mxu1 %v17168_v45 }
 0xa17   :  { %15310 = vmatpush3.bf16.msra.mxu1 %v17168_v45 }
 0xa18   :  { %15311 = vmatprep.subr.bf16.mxu1 %v17169_v46 }
 0xa1b   :  { %15312 = vmatpush3.bf16.msra.mxu1 %v17169_v46 }
 0xa1c   :  { %15313 = vmatprep.subr.bf16.mxu1 %v17170_v47 }
 0xa1f   :  { %15314 = vmatpush3.bf16.msra.mxu1 %v17170_v47 }
 0xa20   :  { %15319 = vmatprep.subr.bf16.mxu1 %v17171_v48 }
 0xacd   :  { %v15289_v49 = vpop.f32.mrb[76].mxu1 }
 0xace   :  { %v2980_v50 = vpop.f32.mrb[77].mxu1 }
 0xacf   :  { %v15290_v51 = vpop.f32.mrb[78].mxu1 }
 0xad0   :  { %v2996_v52 = vpack.c.bf16 %v15290_v51, %v15289_v49  ;;  %v2983_v53 = vpop.f32.mrb[79].mxu1  ;;  %v17201_v49 = vld [vmem:[#allocation58 + $0x20] sm:$0xff]  }
 0xad1   :  { %v2995_v55 = vpack.c.bf16 %v2983_v53, %v2980_v50  ;;  %v13576_v50 = vld [vmem:[#allocation53] ss:$0 sm:$0xff] }
 0xad5   :  { %v15297_v56 = vpop.f32.mrb[80].mxu1 }
 0xad6   :  { %v3068_v57 = vpop.f32.mrb[81].mxu1 }
 0xad7   :  { %v15298_v58 = vpop.f32.mrb[82].mxu1 }
 0xad8   :  { %v3084_v60 = vpack.c.bf16 %v15298_v58, %v15297_v56  ;;  %v3071_v62 = vpop.f32.mrb[83].mxu1 }
 0xad9   :  { %v3083_v63 = vpack.c.bf16 %v3071_v62, %v3068_v57 }
 0xadb   :  { %15315 = vmatprep.mubr.bf16.mxu1 %v3083_v63 }
 0xadc   :  { %15316 = vmatmul.mubr.bf16.vlgmr.msra.gmra.mrb[84].mxu1 %v3084_v60 }
 0xadd   :  { %15320 = vmatpush3.bf16.msra.mxu1 %v17171_v48  ;;  %15335 = vmatprep.mubr.bf16.mxu1 %v2995_v55  ;;  %v17197_v48 = vld [vmem:[#allocation58] sm:$0xff]  }
 0xade   :  { %15321 = vmatprep.subr.bf16.mxu1 %v17172_v2 }
 0xae1   :  { %15322 = vmatpush3.bf16.msra.mxu1 %v17172_v2 }
 0xae2   :  { %15323 = vmatprep.subr.bf16.mxu1 %v17173_v3 }
 0xae5   :  { %15324 = vmatpush3.bf16.msra.mxu1 %v17173_v3 }
 0xae6   :  { %15325 = vmatprep.subr.bf16.mxu1 %v17174_v4 }
 0xae9   :  { %15326 = vmatpush3.bf16.msra.mxu1 %v17174_v4 }
 0xaea   :  { %15327 = vmatprep.subr.bf16.mxu1 %v17175_v7 }
 0xaed   :  { %15328 = vmatpush3.bf16.msra.mxu1 %v17175_v7 }
 0xaee   :  { %15329 = vmatprep.subr.bf16.mxu1 %v17176_v9 }
 0xaf1   :  { %15330 = vmatpush3.bf16.msra.mxu1 %v17176_v9 }
 0xaf2   :  { %15331 = vmatprep.subr.bf16.mxu1 %v17177_v10 }
 0xaf5   :  { %15332 = vmatpush3.bf16.msra.mxu1 %v17177_v10 }
 0xaf6   :  { %15333 = vmatprep.subr.bf16.mxu1 %v17178_v11 }
 0xaf9   :  { %15334 = vmatpush3.bf16.msra.mxu1 %v17178_v11 }
 0xafa   :  { %15339 = vmatprep.subr.bf16.mxu1 %v20406_v39 }
 0xafc   :  { %15336 = vmatmul.mubr.bf16.vlgmr.msra.gmra.mrb[84].mxu1 %v2996_v52 }
 0xafd   :  { %15340 = vmatpush3.bf16.msra.mxu1 %v20406_v39  ;;  %15343 = vmatprep.mubr.msk.bf16.mxu1 %vm2939_vm4, %v17179_v13  ;;  %v17203_v13 = vld [vmem:[#allocation59 + $0x40] sm:$0xff]  }
 0xafe   :  { %15341 = vmatprep.subr.bf16.mxu1 %v20408_v40 }
 0xb01   :  { %15342 = vmatpush3.bf16.msra.mxu1 %v20408_v40 }
 0xb02   :  { %15347 = vmatprep.subr.bf16.mxu1 %v17181_v61 }
 0xb04   :  { %15344 = vmatmul.mubr.msk.bf16.vlgmr.msra.gmra.mrb[88].mxu1 %vm2939_vm4, %v17180_v6  ;;  %v17204_v6 = vld [vmem:[#allocation59 + $0x48] sm:$0xff]  }
 0xb05   :  { %15348 = vmatpush3.bf16.msra.mxu1 %v17181_v61  ;;  %v17200_v61 = vld [vmem:[#allocation58 + $0x18] sm:$0xff]  }
 0xb06   :  { %15349 = vmatprep.subr.bf16.mxu1 %v17182_v8 }
 0xb09   :  { %15350 = vmatpush3.bf16.msra.mxu1 %v17182_v8  ;;  %v17205_v8 = vld [vmem:[#allocation59 + $0x50] sm:$0xff]  }
 0xb0a   :  { %15351 = vmatprep.subr.bf16.mxu1 %v17183_v15 }
 0xb0d   :  { %15352 = vmatpush3.bf16.msra.mxu1 %v17183_v15  ;;  %v17206_v15 = vld [vmem:[#allocation59 + $0x58] sm:$0xff]  }
 0xb0e   :  { %15353 = vmatprep.subr.bf16.mxu1 %v17184_v16 }
 0xb11   :  { %15354 = vmatpush3.bf16.msra.mxu1 %v17184_v16  ;;  %v17207_v16 = vld [vmem:[#allocation59 + $0x60] sm:$0xff]  }
 0xb12   :  { %15355 = vmatprep.subr.bf16.mxu1 %v17185_v18 }
 0xb15   :  { %15356 = vmatpush3.bf16.msra.mxu1 %v17185_v18  ;;  %v17208_v18 = vld [vmem:[#allocation59 + $0x68] sm:$0xff]  }
 0xb16   :  { %15357 = vmatprep.subr.bf16.mxu1 %v17186_v19 }
 0xb19   :  { %15358 = vmatpush3.bf16.msra.mxu1 %v17186_v19  ;;  %v17209_v19 = vld [vmem:[#allocation59 + $0x70] sm:$0xff]  }
 0xb1a   :  { %15359 = vmatprep.subr.bf16.mxu1 %v17187_v20 }
 0xb1d   :  { %15360 = vmatpush3.bf16.msra.mxu1 %v17187_v20  ;;  %v17210_v20 = vld [vmem:[#allocation59 + $0x78] sm:$0xff]  }
 0xb1e   :  { %15361 = vmatprep.subr.bf16.mxu1 %v17188_v23 }
 0xb21   :  { %15362 = vmatpush3.bf16.msra.mxu1 %v17188_v23  ;;  %v17211_v23 = vld [vmem:[#allocation59] sm:$0xff]  }
 0xbd7   :  { %v15345_v25 = vpop.f32.mrb[88].mxu1 }
 0xbd8   :  { %v3351_v26 = vpop.f32.mrb[89].mxu1 }
 0xbd9   :  { %v15346_v27 = vpop.f32.mrb[90].mxu1 }
 0xbda   :  { %v3367_v29 = vpack.c.bf16 %v15346_v27, %v15345_v25  ;;  %v3354_v12 = vpop.f32.mrb[91].mxu1 }
 0xbdb   :  { %v3366_v22 = vpack.c.bf16 %v3354_v12, %v3351_v26 }
 0xbdd   :  { %15363 = vmatprep.mubr.bf16.mxu1 %v3366_v22 }
 0xbde   :  { %15364 = vmatmul.mubr.bf16.vlgmr.msra.gmra.mrb[84].mxu1 %v3367_v29 }
 0xbdf   :  { %15391 = vmatprep.mubr.msk.bf16.mxu1 %vm2939_vm4, %v17197_v48  ;;  %v17217_v48 = vld [vmem:[#allocation59 + $0x30] sm:$0xff]  }
 0xcb1   :  { %v15365_v37 = vpop.f32.mrb[84].mxu1 }
 0xcb2   :  { %v3495_v39 = vadd.f32 %v15365_v37, %v13575_v36  ;;  %v3467_v40 = vpop.f32.mrb[85].mxu1 }
 0xcb3   :  { %v3493_v54 = vadd.f32 %v13575_v36, %v3467_v40  ;;  %v15366_v28 = vpop.f32.mrb[86].mxu1 }
 0xcb4   :  { %v3496_v33 = vadd.f32 %v15366_v28, %v13575_v36  ;;  %v3470_v38 = vpop.f32.mrb[87].mxu1  ;;  %v3499_v42 = vmax.f32 %v3495_v39, 0.0 }
 0xcb5   :  { %v3494_v41 = vadd.f32 %v13575_v36, %v3470_v38  ;;  %v3497_v44 = vmax.f32 %v3493_v54, 0.0 }
 0xcb6   :  { %v3500_v43 = vmax.f32 %v3496_v33, 0.0 }
 0xcb7   :  { %v3498_v45 = vmax.f32 %v3494_v41, 0.0 }
 0xcb8   :  { %v3502_v46 = vpack.c.bf16 %v3500_v43, %v3499_v42  ;;  %v17212_v43 = vld [vmem:[#allocation59 + $0x8] sm:$0xff]  }
 0xcb9   :  { %v3501_v47 = vpack.c.bf16 %v3498_v45, %v3497_v44  ;;  %v17213_v44 = vld [vmem:[#allocation59 + $0x10] sm:$0xff]   ;;  %v17214_v45 = vld [vmem:[#allocation59 + $0x18] sm:$0xff]  }
 0xcbb   :  { %15383 = vmatprep.mubr.bf16.mxu0 %v3501_v47  ;;  %v17216_v47 = vld [vmem:[#allocation59 + $0x28] sm:$0xff]  }
 0xcbc   :  { %15384 = vmatmul.mubr.bf16.vlgmr.msra.gmra.mrb[40].mxu0 %v3502_v46  ;;  %v17215_v46 = vld [vmem:[#allocation59 + $0x20] sm:$0xff]  }
 0xcbd   :  { %15447 = vmatprep.mubr.msk.bf16.mxu0 %vm2939_vm4, %v17201_v49  ;;  %v17218_v49 = vld [vmem:[#allocation59 + $0x38] sm:$0xff]  }
 0xd8f   :  { %v15385_v51 = vpop.f32.mrb[40].mxu0 }
 0xd90   :  { %v3608_v52 = vpop.f32.mrb[41].mxu0  ;;  %v3617_v53 = vadd.f32 %v15385_v51, %v13576_v50  ;;  %v17220_v51 = vld [vmem:[#allocation59 + $0x88] sm:$0xff]  }
 0xd91   :  { %v3609_v55 = vadd.f32 %v13576_v50, %v3608_v52  ;;  %v15386_v56 = vpop.f32.mrb[42].mxu0  ;;  %v17221_v52 = vld [vmem:[#allocation59 + $0x90] sm:$0xff]  }
 0xd92   :  { %v3620_v57 = vadd.f32 %v15386_v56, %v13576_v50  ;;  %v3611_v58 = vpop.f32.mrb[43].mxu0  ;;  %v20436_v2 = vadd.f32 %v3617_v53, %v20398_v31  ;;  %v17202_v31 = vld [vmem:[#allocation58 + $0x28] sm:$0xff]   ;;  %v17224_v56 = vld [vmem:[#allocation59 + $0xa8] sm:$0xff]  }
 0xd93   :  { %v20430_v60 = vadd.f32 %v3609_v55, %v20394_v30  ;;  %v3612_v62 = vadd.f32 %v13576_v50, %v3611_v58  ;;  %v17219_v50 = vld [vmem:[#allocation59 + $0x80] sm:$0xff]   ;;  %v17222_v53 = vld [vmem:[#allocation59 + $0x98] sm:$0xff]  }
 0xd94   :  { %v20433_v63 = vadd.f32 %v3620_v57, %v20396_v17  ;;  %v3629_v10 = vmax.f32 %v20436_v2, 0.0  ;;  %v17198_v17 = vld [vmem:[#allocation58 + $0x8] sm:$0xff]   ;;  %v17223_v55 = vld [vmem:[#allocation59 + $0xa0] sm:$0xff]   ;;  %v17225_v57 = vld [vmem:[#allocation59 + $0xb0] sm:$0xff]  }
 0xd95   :  { %v20439_v3 = vadd.f32 %v3612_v62, %v20400_v32  ;;  %v3627_v4 = vmax.f32 %v20430_v60, 0.0  ;;  %v17199_v32 = vld [vmem:[#allocation58 + $0x10] sm:$0xff]   ;;  %v17226_v58 = vld [vmem:[#allocation59 + $0xb8] sm:$0xff]  }
 0xd96   :  { %v3630_v7 = vmax.f32 %v20433_v63, 0.0  ;;  %v17233_v62 = vld [vmem:[#allocation62 + $0x30] sm:$0xff]  }
 0xd97   :  { %v3628_v9 = vmax.f32 %v20439_v3, 0.0 }
 0xd98   :  { %v3632_v11 = vpack.c.bf16 %v3630_v7, %v3629_v10  ;;  %v13621_v7 = vld [vmem:[#allocation56] ss:$0 sm:$0xff] }
 0xd99   :  { %v3631_v30 = vpack.c.bf16 %v3628_v9, %v3627_v4  ;;  %v17234_v4 = vld [vmem:[#allocation62 + $0x38] sm:$0xff]  }
 0xd9b   :  { %15387 = vmatprep.subr.bf16.mxu1 %v3631_v30  ;;  %15443 = vmatprep.subr.bf16.mxu0 %v3631_v30 }
 0xd9c   :  { %15388 = vmatpush3.bf16.msra.mxu1 %v3631_v30  ;;  %15444 = vmatpush3.bf16.msra.mxu0 %v3631_v30 }
 0xd9d   :  { %15389 = vmatprep.subr.bf16.mxu1 %v3632_v11  ;;  %15445 = vmatprep.subr.bf16.mxu0 %v3632_v11 }
 0xda0   :  { %15390 = vmatpush3.bf16.msra.mxu1 %v3632_v11  ;;  %15446 = vmatpush3.bf16.msra.mxu0 %v3632_v11 }
 0xda1   :  { %15395 = vmatprep.subr.bf16.mxu1 %v3631_v30  ;;  %15471 = vmatprep.subr.bf16.mxu0 %v17227_v59 }
 0xda3   :  { %15392 = vmatmul.mubr.msk.bf16.vlgmr.msra.gmra.mrb[92].mxu1 %vm2939_vm4, %v17198_v17  ;;  %15448 = vmatmul.mubr.msk.bf16.vlgmr.msra.gmra.mrb[44].mxu0 %vm2939_vm4, %v17202_v31 }
 0xda4   :  { %15396 = vmatpush3.bf16.msra.mxu1 %v3631_v30  ;;  %15399 = vmatprep.mubr.msk.bf16.mxu1 %vm2939_vm4, %v17199_v32 }
 0xda5   :  { %15397 = vmatprep.subr.bf16.mxu1 %v3632_v11  ;;  %15472 = vmatpush3.bf16.msra.mxu0 %v17227_v59 }
 0xda6   :  { %15473 = vmatprep.subr.bf16.mxu0 %v17228_v1 }
 0xda8   :  { %15398 = vmatpush3.bf16.msra.mxu1 %v3632_v11 }
 0xda9   :  { %15403 = vmatprep.subr.bf16.mxu1 %v17203_v13  ;;  %15474 = vmatpush3.bf16.msra.mxu0 %v17228_v1 }
 0xdaa   :  { %15475 = vmatprep.subr.bf16.mxu0 %v17229_v5 }
 0xdab   :  { %15400 = vmatmul.mubr.msk.bf16.vlgmr.msra.gmra.mrb[96].mxu1 %vm2939_vm4, %v17200_v61 }
 0xdac   :  { %15404 = vmatpush3.bf16.msra.mxu1 %v17203_v13 }
 0xdad   :  { %15405 = vmatprep.subr.bf16.mxu1 %v17204_v6  ;;  %15476 = vmatpush3.bf16.msra.mxu0 %v17229_v5 }
 0xdae   :  { %15477 = vmatprep.subr.bf16.mxu0 %v17230_v14 }
 0xdb0   :  { %15406 = vmatpush3.bf16.msra.mxu1 %v17204_v6 }
 0xdb1   :  { %15407 = vmatprep.subr.bf16.mxu1 %v17205_v8  ;;  %15478 = vmatpush3.bf16.msra.mxu0 %v17230_v14 }
 0xdb2   :  { %15479 = vmatprep.subr.bf16.mxu0 %v17231_v21 }
 0xdb4   :  { %15408 = vmatpush3.bf16.msra.mxu1 %v17205_v8 }
 0xdb5   :  { %15409 = vmatprep.subr.bf16.mxu1 %v17206_v15  ;;  %15480 = vmatpush3.bf16.msra.mxu0 %v17231_v21 }
 0xdb6   :  { %15481 = vmatprep.subr.bf16.mxu0 %v17232_v24 }
 0xdb8   :  { %15410 = vmatpush3.bf16.msra.mxu1 %v17206_v15 }
 0xdb9   :  { %15411 = vmatprep.subr.bf16.mxu1 %v17207_v16  ;;  %15482 = vmatpush3.bf16.msra.mxu0 %v17232_v24 }
 0xdba   :  { %15483 = vmatprep.subr.bf16.mxu0 %v17233_v62 }
 0xdbc   :  { %15412 = vmatpush3.bf16.msra.mxu1 %v17207_v16 }
 0xdbd   :  { %15413 = vmatprep.subr.bf16.mxu1 %v17208_v18  ;;  %15484 = vmatpush3.bf16.msra.mxu0 %v17233_v62 }
 0xdbe   :  { %15485 = vmatprep.subr.bf16.mxu0 %v17234_v4 }
 0xdc0   :  { %15414 = vmatpush3.bf16.msra.mxu1 %v17208_v18 }
 0xdc1   :  { %15415 = vmatprep.subr.bf16.mxu1 %v17209_v19  ;;  %15486 = vmatpush3.bf16.msra.mxu0 %v17234_v4 }
 0xdc4   :  { %15416 = vmatpush3.bf16.msra.mxu1 %v17209_v19  ;;  %v19397_v19 = vmov 0.0  }
 0xdc5   :  { %15417 = vmatprep.subr.bf16.mxu1 %v17210_v20  ;;  %15491 = vmatprep.subr.bf16.mxu0 %v19397_v19 }
 0xdc8   :  { %15418 = vmatpush3.bf16.msra.mxu1 %v17210_v20  ;;  %v13622_v20 = vld [vmem:[#allocation61] ss:$0 sm:$0xff] }
 0xdc9   :  { %15423 = vmatprep.subr.bf16.mxu1 %v17211_v23 }
 0xe76   :  { %v15393_v25 = vpop.f32.mrb[92].mxu1  ;;  %v20449_v26 = vpop.f32.mrb[44].mxu0 }
 0xe77   :  { %v3687_v27 = vpop.f32.mrb[93].mxu1  ;;  %v4058_v29 = vpop.f32.mrb[45].mxu0 }
 0xe78   :  { %v15394_v12 = vpop.f32.mrb[94].mxu1  ;;  %v20451_v22 = vpop.f32.mrb[46].mxu0 }
 0xe79   :  { %v3703_v34 = vpack.c.bf16 %v15394_v12, %v15393_v25  ;;  %v3690_v35 = vpop.f32.mrb[95].mxu1  ;;  %v4074_v36 = vpack.c.bf16 %v20451_v22, %v20449_v26  ;;  %v4061_v37 = vpop.f32.mrb[47].mxu0 }
 0xe7a   :  { %v3702_v39 = vpack.c.bf16 %v3690_v35, %v3687_v27  ;;  %v4073_v40 = vpack.c.bf16 %v4061_v37, %v4058_v29  ;;  %v17235_v35 = vld [vmem:[#allocation65] sm:$0xff]   ;;  %v17241_v37 = vld [vmem:[#allocation67 + $0x58] sm:$0xff]  }
 0xe7e   :  { %v15401_v54 = vpop.f32.mrb[96].mxu1 }
 0xe7f   :  { %v3775_v28 = vpop.f32.mrb[97].mxu1 }
 0xe80   :  { %v15402_v33 = vpop.f32.mrb[98].mxu1 }
 0xe81   :  { %v3791_v38 = vpack.c.bf16 %v15402_v33, %v15401_v54  ;;  %v3778_v41 = vpop.f32.mrb[99].mxu1  ;;  %v17244_v54 = vld [vmem:[#allocation67 + $0x70] sm:$0xff]   ;;  %v17247_v33 = vld [vmem:[#allocation67 + $0x80] sm:$0xff]  }
 0xe82   :  { %v3790_v42 = vpack.c.bf16 %v3778_v41, %v3775_v28  ;;  %v17245_v28 = vld [vmem:[#allocation67 + $0x78] sm:$0xff]   ;;  %v17251_v41 = vld [vmem:[#allocation67 + $0x90] sm:$0xff]  }
 0xe84   :  { %15419 = vmatprep.mubr.bf16.mxu1 %v3790_v42  ;;  %v17253_v42 = vld [vmem:[#allocation67 + $0x98] sm:$0xff]  }
 0xe85   :  { %15420 = vmatmul.mubr.bf16.vlgmr.msra.gmra.mrb[100].mxu1 %v3791_v38  ;;  %v17249_v38 = vld [vmem:[#allocation67 + $0x88] sm:$0xff]  }
 0xe86   :  { %15424 = vmatpush3.bf16.msra.mxu1 %v17211_v23  ;;  %15439 = vmatprep.mubr.bf16.mxu1 %v3702_v39  ;;  %v17242_v39 = vld [vmem:[#allocation67 + $0x60] sm:$0xff]  }
 0xe87   :  { %15425 = vmatprep.subr.bf16.mxu1 %v17212_v43 }
 0xe8a   :  { %15426 = vmatpush3.bf16.msra.mxu1 %v17212_v43  ;;  %v17255_v43 = vld [vmem:[#allocation67 + $0xa0] sm:$0xff]  }
 0xe8b   :  { %15427 = vmatprep.subr.bf16.mxu1 %v17213_v44 }
 0xe8e   :  { %15428 = vmatpush3.bf16.msra.mxu1 %v17213_v44  ;;  %v17257_v44 = vld [vmem:[#allocation67 + $0xa8] sm:$0xff]  }
 0xe8f   :  { %15429 = vmatprep.subr.bf16.mxu1 %v17214_v45 }
 0xe92   :  { %15430 = vmatpush3.bf16.msra.mxu1 %v17214_v45  ;;  %v17259_v45 = vld [vmem:[#allocation67 + $0xb0] sm:$0xff]  }
 0xe93   :  { %15431 = vmatprep.subr.bf16.mxu1 %v17215_v46 }
 0xe96   :  { %15432 = vmatpush3.bf16.msra.mxu1 %v17215_v46  ;;  %v17261_v46 = vld [vmem:[#allocation67 + $0xb8] sm:$0xff]  }
 0xe97   :  { %15433 = vmatprep.subr.bf16.mxu1 %v17216_v47 }
 0xe9a   :  { %15434 = vmatpush3.bf16.msra.mxu1 %v17216_v47 }
 0xe9b   :  { %15435 = vmatprep.subr.bf16.mxu1 %v17217_v48 }
 0xe9e   :  { %15436 = vmatpush3.bf16.msra.mxu1 %v17217_v48 }
 0xe9f   :  { %15437 = vmatprep.subr.bf16.mxu1 %v17218_v49 }
 0xea2   :  { %15438 = vmatpush3.bf16.msra.mxu1 %v17218_v49 }
 0xea3   :  { %15451 = vmatprep.subr.bf16.mxu1 %v17219_v50 }
 0xea5   :  { %15440 = vmatmul.mubr.bf16.vlgmr.msra.gmra.mrb[100].mxu1 %v3703_v34 }
 0xea6   :  { %15452 = vmatpush3.bf16.msra.mxu1 %v17219_v50  ;;  %15467 = vmatprep.mubr.bf16.mxu1 %v4073_v40  ;;  %v17243_v40 = vld [vmem:[#allocation67 + $0x68] sm:$0xff]  }
 0xea7   :  { %15453 = vmatprep.subr.bf16.mxu1 %v17220_v51 }
 0xeaa   :  { %15454 = vmatpush3.bf16.msra.mxu1 %v17220_v51 }
 0xeab   :  { %15455 = vmatprep.subr.bf16.mxu1 %v17221_v52 }
 0xeae   :  { %15456 = vmatpush3.bf16.msra.mxu1 %v17221_v52 }
 0xeaf   :  { %15457 = vmatprep.subr.bf16.mxu1 %v17222_v53 }
 0xeb2   :  { %15458 = vmatpush3.bf16.msra.mxu1 %v17222_v53 }
 0xeb3   :  { %15459 = vmatprep.subr.bf16.mxu1 %v17223_v55 }
 0xeb6   :  { %15460 = vmatpush3.bf16.msra.mxu1 %v17223_v55 }
 0xeb7   :  { %15461 = vmatprep.subr.bf16.mxu1 %v17224_v56 }
 0xeba   :  { %15462 = vmatpush3.bf16.msra.mxu1 %v17224_v56 }
 0xebb   :  { %15463 = vmatprep.subr.bf16.mxu1 %v17225_v57 }
 0xebe   :  { %15464 = vmatpush3.bf16.msra.mxu1 %v17225_v57 }
 0xebf   :  { %15465 = vmatprep.subr.bf16.mxu1 %v17226_v58 }
 0xec2   :  { %15466 = vmatpush3.bf16.msra.mxu1 %v17226_v58 }
 0xec3   :  { %15547 = vmatprep.subr.bf16.mxu1 %v19397_v19 }
 0xec5   :  { %15468 = vmatmul.mubr.bf16.vlgmr.msra.gmra.mrb[100].mxu1 %v4074_v36  ;;  %v17240_v36 = vld [vmem:[#allocation67 + $0x50] sm:$0xff]  }
 0xec6   :  { %15551 = vmatprep.mubr.msk.bf16.mxu1 %vm19398_vm5, %v19397_v19 }
 0xf98   :  { %v15469_v9 = vpop.f32.mrb[100].mxu1 }
 0xf99   :  { %v4202_v10 = vadd.f32 %v15469_v9, %v13621_v7  ;;  %v4174_v30 = vpop.f32.mrb[101].mxu1 }
 0xf9a   :  { %v4200_v11 = vadd.f32 %v13621_v7, %v4174_v30  ;;  %v15470_v17 = vpop.f32.mrb[102].mxu1  ;;  %v17248_v30 = vld [vmem:[#allocation67 + $0x8] sm:$0xff]  }
 0xf9b   :  { %v4203_v31 = vadd.f32 %v15470_v17, %v13621_v7  ;;  %v4177_v32 = vpop.f32.mrb[103].mxu1  ;;  %v4206_v61 = vmax.f32 %v4202_v10, 0.0  ;;  %v17252_v17 = vld [vmem:[#allocation67 + $0x18] sm:$0xff]  }
 0xf9c   :  { %v4201_v13 = vadd.f32 %v13621_v7, %v4177_v32  ;;  %v4204_v8 = vmax.f32 %v4200_v11, 0.0  ;;  %v17246_v7 = vld [vmem:[#allocation67] sm:$0xff]   ;;  %v17250_v11 = vld [vmem:[#allocation67 + $0x10] sm:$0xff]   ;;  %v17256_v32 = vld [vmem:[#allocation67 + $0x28] sm:$0xff]  }
 0xf9d   :  { %v4207_v6 = vmax.f32 %v4203_v31, 0.0  ;;  %v17254_v31 = vld [vmem:[#allocation67 + $0x20] sm:$0xff]  }
 0xf9e   :  { %v4205_v15 = vmax.f32 %v4201_v13, 0.0  ;;  %v17258_v13 = vld [vmem:[#allocation67 + $0x30] sm:$0xff]  }
 0xf9f   :  { %v4209_v16 = vpack.c.bf16 %v4207_v6, %v4206_v61  ;;  %v17260_v61 = vld [vmem:[#allocation67 + $0x38] sm:$0xff]  }
 0xfa0   :  { %v4208_v18 = vpack.c.bf16 %v4205_v15, %v4204_v8  ;;  %v17262_v6 = vld [vmem:[#allocation65 + $0x18] sm:$0xff]   ;;  %v17263_v8 = vld [vmem:[#allocation67 + $0xc0] sm:$0xff]   ;;  %v17264_v15 = vld [vmem:[#allocation67 + $0xc8] sm:$0xff]  }
 0xfa2   :  { %15487 = vmatprep.mubr.bf16.mxu0 %v4208_v18  ;;  %v17266_v18 = vld [vmem:[#allocation67 + $0xd8] sm:$0xff]  }
 0xfa3   :  { %15488 = vmatmul.mubr.bf16.vlgmr.msra.gmra.mrb[48].mxu0 %v4209_v16  ;;  %v17265_v16 = vld [vmem:[#allocation67 + $0xd0] sm:$0xff]  }
 0xfa4   :  { %15495 = vmatprep.mubr.msk.bf16.mxu0 %vm19398_vm5, %v19397_v19 }
0x1076   :  { %v15489_v23 = vpop.f32.mrb[48].mxu0 }
0x1077   :  { %v4324_v59 = vadd.f32 %v15489_v23, %v13622_v20  ;;  %v4315_v1 = vpop.f32.mrb[49].mxu0  ;;  %v17268_v23 = vld [vmem:[#allocation67 + $0xe8] sm:$0xff]  }
0x1078   :  { %v4316_v5 = vadd.f32 %v13622_v20, %v4315_v1  ;;  %v15490_v14 = vpop.f32.mrb[50].mxu0  ;;  %v17270_v1 = vld [vmem:[#allocation67 + $0xf8] sm:$0xff]  }
0x1079   :  { %v4327_v21 = vadd.f32 %v15490_v14, %v13622_v20  ;;  %v4318_v24 = vpop.f32.mrb[51].mxu0  ;;  %v4332_v26 = vadd.f32 %v4324_v59, %v20436_v2  ;;  %v17237_v2 = vld [vmem:[#allocation65 + $0x10] sm:$0xff]  }
0x107a   :  { %v4319_v25 = vadd.f32 %v13622_v20, %v4318_v24  ;;  %v4330_v29 = vadd.f32 %v4316_v5, %v20430_v60  ;;  %v17236_v60 = vld [vmem:[#allocation65 + $0x8] sm:$0xff]   ;;  %v17267_v20 = vld [vmem:[#allocation67 + $0xe0] sm:$0xff]   ;;  %v17269_v59 = vld [vmem:[#allocation67 + $0xf0] sm:$0xff]  }
0x107b   :  { %v4333_v27 = vadd.f32 %v4327_v21, %v20433_v63  ;;  %v17238_v63 = vld [vmem:[#allocation67 + $0x40] sm:$0xff]  }
0x107c   :  { %v4331_v12 = vadd.f32 %v4319_v25, %v20439_v3  ;;  %v17239_v3 = vld [vmem:[#allocation67 + $0x48] sm:$0xff]  }
0x107d   :  { %v20465_v22 = vpack.c.bf16 %v4333_v27, %v4332_v26 }
0x107e   :  { %v20467_v34 = vpack.c.bf16 %v4331_v12, %v4330_v29 }
0x1080   :  { %15492 = vmatpush3.bf16.msra.mxu0 %v20467_v34  ;;  %15548 = vmatpush3.bf16.msra.mxu1 %v20467_v34 }
0x1081   :  { %15493 = vmatprep.subr.bf16.mxu0 %v19397_v19  ;;  %15549 = vmatprep.subr.bf16.mxu1 %v19397_v19 }
0x1084   :  { %15494 = vmatpush3.bf16.msra.mxu0 %v20465_v22  ;;  %15550 = vmatpush3.bf16.msra.mxu1 %v20465_v22 }
0x1085   :  { %15499 = vmatprep.subr.bf16.mxu0 %v19397_v19  ;;  %15555 = vmatprep.subr.bf16.mxu1 %v19397_v19 }
0x1087   :  { %15496 = vmatmul.mubr.msk.bf16.vlgmr.msra.gmra.mrb[52].mxu0 %vm2939_vm4, %v17235_v35  ;;  %15552 = vmatmul.mubr.msk.bf16.vlgmr.msra.gmra.mrb[104].mxu1 %vm2939_vm4, %v17237_v2 }
0x1088   :  { %15500 = vmatpush3.bf16.msra.mxu0 %v20467_v34  ;;  %15503 = vmatprep.mubr.msk.bf16.mxu0 %vm19398_vm5, %v19397_v19 }
0x1089   :  { %15501 = vmatprep.subr.bf16.mxu0 %v19397_v19  ;;  %15571 = vmatprep.mubr.msk.bf16.mxu1 %vm19398_vm5, %v19397_v19 }
0x108a   :  { %15556 = vmatpush3.bf16.msra.mxu1 %v17247_v33  ;;  %v17274_v33 = vld [vmem:[#allocation71 + $0x8] sm:$0xff]  }
0x108b   :  { %15557 = vmatprep.subr.bf16.mxu1 %v19397_v19 }
0x108c   :  { %15502 = vmatpush3.bf16.msra.mxu0 %v20465_v22 }
0x108d   :  { %15507 = vmatprep.subr.bf16.mxu0 %v19397_v19 }
0x108e   :  { %15558 = vmatpush3.bf16.msra.mxu1 %v17249_v38  ;;  %v17276_v38 = vld [vmem:[#allocation71 + $0x10] sm:$0xff]  }
0x108f   :  { %15504 = vmatmul.mubr.msk.bf16.vlgmr.msra.gmra.mrb[56].mxu0 %vm2939_vm4, %v17236_v60  ;;  %15559 = vmatprep.subr.bf16.mxu1 %v19397_v19 }
0x1090   :  { %15508 = vmatpush3.bf16.msra.mxu0 %v17238_v63  ;;  %15523 = vmatprep.mubr.msk.bf16.mxu0 %vm19398_vm5, %v19397_v19 }
0x1091   :  { %15509 = vmatprep.subr.bf16.mxu0 %v19397_v19 }
0x1092   :  { %15560 = vmatpush3.bf16.msra.mxu1 %v17251_v41  ;;  %v17278_v41 = vld [vmem:[#allocation71 + $0x18] sm:$0xff]  }
0x1093   :  { %15561 = vmatprep.subr.bf16.mxu1 %v19397_v19 }
0x1094   :  { %15510 = vmatpush3.bf16.msra.mxu0 %v17239_v3 }
0x1095   :  { %15511 = vmatprep.subr.bf16.mxu0 %v19397_v19 }
0x1096   :  { %15562 = vmatpush3.bf16.msra.mxu1 %v17253_v42  ;;  %v17280_v42 = vld [vmem:[#allocation71 + $0x20] sm:$0xff]  }
0x1097   :  { %15563 = vmatprep.subr.bf16.mxu1 %v19397_v19 }
0x1098   :  { %15512 = vmatpush3.bf16.msra.mxu0 %v17240_v36 }
0x1099   :  { %15513 = vmatprep.subr.bf16.mxu0 %v19397_v19 }
0x109a   :  { %15564 = vmatpush3.bf16.msra.mxu1 %v17255_v43  ;;  %v17282_v43 = vld [vmem:[#allocation71 + $0x28] sm:$0xff]  }
0x109b   :  { %15565 = vmatprep.subr.bf16.mxu1 %v19397_v19 }
0x109c   :  { %15514 = vmatpush3.bf16.msra.mxu0 %v17241_v37 }
0x109d   :  { %15515 = vmatprep.subr.bf16.mxu0 %v19397_v19 }
0x109e   :  { %15566 = vmatpush3.bf16.msra.mxu1 %v17257_v44  ;;  %v17284_v44 = vld [vmem:[#allocation71 + $0x30] sm:$0xff]  }
0x109f   :  { %15567 = vmatprep.subr.bf16.mxu1 %v19397_v19 }
0x10a0   :  { %15516 = vmatpush3.bf16.msra.mxu0 %v17242_v39 }
0x10a1   :  { %15517 = vmatprep.subr.bf16.mxu0 %v19397_v19 }
0x10a2   :  { %15568 = vmatpush3.bf16.msra.mxu1 %v17259_v45 }
0x10a3   :  { %15569 = vmatprep.subr.bf16.mxu1 %v19397_v19 }
0x10a4   :  { %15518 = vmatpush3.bf16.msra.mxu0 %v17243_v40 }
0x10a5   :  { %15519 = vmatprep.subr.bf16.mxu0 %v19397_v19 }
0x10a6   :  { %15570 = vmatpush3.bf16.msra.mxu1 %v17261_v46  ;;  %v13671_v46 = vld [vmem:[#allocation64] ss:$0 sm:$0xff] }
0x10a7   :  { %15603 = vmatprep.subr.bf16.mxu1 %v19397_v19 }
0x10a8   :  { %15520 = vmatpush3.bf16.msra.mxu0 %v17244_v54 }
0x10a9   :  { %15521 = vmatprep.subr.bf16.mxu0 %v19397_v19 }
0x10ac   :  { %15522 = vmatpush3.bf16.msra.mxu0 %v17245_v28  ;;  %v17273_v28 = vld [vmem:[#allocation71] sm:$0xff]  }
0x10ad   :  { %15527 = vmatprep.subr.bf16.mxu0 %v19397_v19 }
0x115a   :  { %v4380_v47 = vpop.f32.mrb[52].mxu0  ;;  %v4697_v48 = vpop.f32.mrb[104].mxu1 }
0x115b   :  { %v15497_v49 = vpop.f32.mrb[53].mxu0  ;;  %v15553_v50 = vpop.f32.mrb[105].mxu1 }
0x115c   :  { %v4383_v51 = vpop.f32.mrb[54].mxu0  ;;  %v4700_v52 = vpop.f32.mrb[106].mxu1 }
0x115d   :  { %v4387_v53 = vpack.c.bf16 %v4383_v51, %v4380_v47  ;;  %v15498_v55 = vpop.f32.mrb[55].mxu0  ;;  %v4704_v56 = vpack.c.bf16 %v4700_v52, %v4697_v48  ;;  %v15554_v57 = vpop.f32.mrb[107].mxu1 }
0x115f   :  { %15572 = vmatmul.mubr.bf16.vlgmr.msra.gmra.mrb[108].mxu1 %v4704_v56 }
0x1160   :  { %15605 = vmatprep.mubr.msk.bf16.mxu1 %vm19398_vm5, %v19397_v19 }
0x1162   :  { %v4449_v58 = vpop.f32.mrb[56].mxu0 }
0x1163   :  { %v15505_v62 = vpop.f32.mrb[57].mxu0 }
0x1164   :  { %v4452_v4 = vpop.f32.mrb[58].mxu0  ;;  %v17272_v62 = vld [vmem:[#allocation70 + $0x8] sm:$0xff]  }
0x1165   :  { %v4456_v9 = vpack.c.bf16 %v4452_v4, %v4449_v58  ;;  %v15506_v10 = vpop.f32.mrb[59].mxu0  ;;  %v17271_v58 = vld [vmem:[#allocation70] sm:$0xff]   ;;  %v17275_v4 = vld [vmem:[#allocation71 + $0x40] sm:$0xff]  }
0x1166   :  { %v17281_v10 = vld [vmem:[#allocation71 + $0x58] sm:$0xff]  }
0x1167   :  { %15524 = vmatmul.mubr.bf16.vlgmr.msra.gmra.mrb[60].mxu0 %v4456_v9  ;;  %v17279_v9 = vld [vmem:[#allocation71 + $0x50] sm:$0xff]  }
0x1168   :  { %15528 = vmatpush3.bf16.msra.mxu0 %v17246_v7  ;;  %15543 = vmatprep.mubr.msk.bf16.mxu0 %vm19398_vm5, %v19397_v19  ;;  %v17277_v7 = vld [vmem:[#allocation71 + $0x48] sm:$0xff]  }
0x1169   :  { %15529 = vmatprep.subr.bf16.mxu0 %v19397_v19 }
0x116c   :  { %15530 = vmatpush3.bf16.msra.mxu0 %v17248_v30  ;;  %v17283_v30 = vld [vmem:[#allocation71 + $0x60] sm:$0xff]  }
0x116d   :  { %15531 = vmatprep.subr.bf16.mxu0 %v19397_v19 }
0x1170   :  { %15532 = vmatpush3.bf16.msra.mxu0 %v17250_v11  ;;  %v17285_v11 = vld [vmem:[#allocation71 + $0x68] sm:$0xff]  }
0x1171   :  { %15533 = vmatprep.subr.bf16.mxu0 %v19397_v19 }
0x1174   :  { %15534 = vmatpush3.bf16.msra.mxu0 %v17252_v17  ;;  %v17286_v17 = vld [vmem:[#allocation71 + $0x38] sm:$0xff]  }
0x1175   :  { %15535 = vmatprep.subr.bf16.mxu0 %v19397_v19 }
0x1178   :  { %15536 = vmatpush3.bf16.msra.mxu0 %v17254_v31  ;;  %v17287_v31 = vld [vmem:[#allocation71 + $0x70] sm:$0xff]  }
0x1179   :  { %15537 = vmatprep.subr.bf16.mxu0 %v19397_v19 }
0x117c   :  { %15538 = vmatpush3.bf16.msra.mxu0 %v17256_v32  ;;  %v17288_v32 = vld [vmem:[#allocation71 + $0x78] sm:$0xff]  }
0x117d   :  { %15539 = vmatprep.subr.bf16.mxu0 %v19397_v19 }
0x1180   :  { %15540 = vmatpush3.bf16.msra.mxu0 %v17258_v13 }
0x1181   :  { %15541 = vmatprep.subr.bf16.mxu0 %v19397_v19 }
0x1184   :  { %15542 = vmatpush3.bf16.msra.mxu0 %v17260_v61 }
0x1185   :  { %15575 = vmatprep.subr.bf16.mxu0 %v19397_v19 }
0x1187   :  { %15544 = vmatmul.mubr.bf16.vlgmr.msra.gmra.mrb[64].mxu0 %v4387_v53 }
0x1188   :  { %15576 = vmatpush3.bf16.msra.mxu0 %v20467_v34  ;;  %15579 = vmatprep.mubr.msk.bf16.mxu0 %vm19398_vm5, %v19397_v19 }
0x1189   :  { %15577 = vmatprep.subr.bf16.mxu0 %v19397_v19 }
0x118c   :  { %15578 = vmatpush3.bf16.msra.mxu0 %v20465_v22 }
0x118d   :  { %15583 = vmatprep.subr.bf16.mxu0 %v19397_v19 }
0x118f   :  { %15580 = vmatmul.mubr.msk.bf16.vlgmr.msra.gmra.mrb[68].mxu0 %vm2939_vm4, %v17262_v6 }
0x1190   :  { %15599 = vmatprep.mubr.msk.bf16.mxu0 %vm19398_vm5, %v19397_v19  ;;  %15584 = vmatpush3.bf16.msra.mxu0 %v17263_v8 }
0x1191   :  { %15585 = vmatprep.subr.bf16.mxu0 %v19397_v19 }
0x1194   :  { %15586 = vmatpush3.bf16.msra.mxu0 %v17264_v15 }
0x1195   :  { %15587 = vmatprep.subr.bf16.mxu0 %v19397_v19 }
0x1198   :  { %15588 = vmatpush3.bf16.msra.mxu0 %v17265_v16 }
0x1199   :  { %15589 = vmatprep.subr.bf16.mxu0 %v19397_v19 }
0x119c   :  { %15590 = vmatpush3.bf16.msra.mxu0 %v17266_v18 }
0x119d   :  { %15591 = vmatprep.subr.bf16.mxu0 %v19397_v19 }
0x11a0   :  { %15592 = vmatpush3.bf16.msra.mxu0 %v17267_v20 }
0x11a1   :  { %15593 = vmatprep.subr.bf16.mxu0 %v19397_v19 }
0x11a4   :  { %15594 = vmatpush3.bf16.msra.mxu0 %v17268_v23 }
0x11a5   :  { %15595 = vmatprep.subr.bf16.mxu0 %v19397_v19 }
0x11a8   :  { %15596 = vmatpush3.bf16.msra.mxu0 %v17269_v59 }
0x11a9   :  { %15597 = vmatprep.subr.bf16.mxu0 %v19397_v19 }
0x11ac   :  { %15598 = vmatpush3.bf16.msra.mxu0 %v17270_v1  ;;  %v17289_v1 = vld [vmem:[#allocation70 + $0x10] sm:$0xff]  }
0x11ad   :  { %15635 = vmatprep.subr.bf16.mxu0 %v19397_v19 }
0x1232   :  { %v4804_v5 = vpop.f32.mrb[108].mxu1 }
0x1233   :  { %v15573_v14 = vpop.f32.mrb[109].mxu1 }
0x1234   :  { %v4807_v21 = vpop.f32.mrb[110].mxu1  ;;  %v17291_v14 = vld [vmem:[#allocation71 + $0x88] sm:$0xff]  }
0x1235   :  { %v15574_v24 = vpop.f32.mrb[111].mxu1 }
0x1236   :  { %v17293_v24 = vld [vmem:[#allocation71 + $0x98] sm:$0xff]  }
0x123a   :  { %v4556_v25 = vpop.f32.mrb[60].mxu0 }
0x123b   :  { %v15525_v26 = vpop.f32.mrb[61].mxu0 }
0x123c   :  { %v4559_v27 = vpop.f32.mrb[62].mxu0  ;;  %v17295_v26 = vld [vmem:[#allocation71 + $0xa8] sm:$0xff]  }
0x123d   :  { %v15526_v29 = vpop.f32.mrb[63].mxu0 }
0x123e   :  { %v17297_v29 = vld [vmem:[#allocation71 + $0xb8] sm:$0xff]  }
0x125a   :  { %v4645_v12 = vpop.f32.mrb[64].mxu0 }
0x125b   :  { %v4646_v22 = vadd.f32 %v4645_v12, %v4556_v25  ;;  %v15545_v34 = vpop.f32.mrb[65].mxu0  ;;  %v17294_v25 = vld [vmem:[#allocation71 + $0xa0] sm:$0xff]  }
0x125c   :  { %v4648_v35 = vpop.f32.mrb[66].mxu0  ;;  %v17298_v12 = vld [vmem:[#allocation74] sm:$0xff]   ;;  %v17300_v34 = vld [vmem:[#allocation74 + $0x10] sm:$0xff]  }
0x125d   :  { %v4649_v2 = vadd.f32 %v4648_v35, %v4559_v27  ;;  %v4811_v60 = vadd.f32 %v4804_v5, %v4646_v22  ;;  %v15546_v63 = vpop.f32.mrb[67].mxu0  ;;  %v17290_v5 = vld [vmem:[#allocation71 + $0x80] sm:$0xff]   ;;  %v17296_v27 = vld [vmem:[#allocation71 + $0xb0] sm:$0xff]  }
0x125e   :  { %v17299_v22 = vld [vmem:[#allocation74 + $0x8] sm:$0xff]   ;;  %v17301_v35 = vld [vmem:[#allocation74 + $0x18] sm:$0xff]  }
0x125f   :  { %v4812_v3 = vadd.f32 %v4807_v21, %v4649_v2  ;;  %v17292_v21 = vld [vmem:[#allocation71 + $0x90] sm:$0xff]   ;;  %v17302_v2 = vld [vmem:[#allocation74 + $0x20] sm:$0xff]  }
0x1262   :  { %v4858_v36 = vpop.f32.mrb[68].mxu0 }
0x1263   :  { %v15581_v37 = vpop.f32.mrb[69].mxu0 }
0x1264   :  { %v4861_v39 = vpop.f32.mrb[70].mxu0 }
0x1265   :  { %v4865_v40 = vpack.c.bf16 %v4861_v39, %v4858_v36  ;;  %v15582_v54 = vpop.f32.mrb[71].mxu0 }
0x1267   :  { %15600 = vmatmul.mubr.bf16.vlgmr.msra.gmra.mrb[72].mxu0 %v4865_v40 }
0x1268   :  { %15651 = vmatprep.mubr.msk.bf16.mxu0 %vm19398_vm5, %v19397_v19  ;;  %15636 = vmatpush3.bf16.msra.mxu0 %v17273_v28 }
0x1269   :  { %15637 = vmatprep.subr.bf16.mxu0 %v19397_v19 }
0x126c   :  { %15638 = vmatpush3.bf16.msra.mxu0 %v17274_v33 }
0x126d   :  { %15639 = vmatprep.subr.bf16.mxu0 %v19397_v19 }
0x1270   :  { %15640 = vmatpush3.bf16.msra.mxu0 %v17276_v38 }
0x1271   :  { %15641 = vmatprep.subr.bf16.mxu0 %v19397_v19 }
0x1274   :  { %15642 = vmatpush3.bf16.msra.mxu0 %v17278_v41 }
0x1275   :  { %15643 = vmatprep.subr.bf16.mxu0 %v19397_v19 }
0x1278   :  { %15644 = vmatpush3.bf16.msra.mxu0 %v17280_v42 }
0x1279   :  { %15645 = vmatprep.subr.bf16.mxu0 %v19397_v19 }
0x127c   :  { %15646 = vmatpush3.bf16.msra.mxu0 %v17282_v43 }
0x127d   :  { %15647 = vmatprep.subr.bf16.mxu0 %v19397_v19 }
0x1280   :  { %15648 = vmatpush3.bf16.msra.mxu0 %v17284_v44 }
0x1281   :  { %15649 = vmatprep.subr.bf16.mxu0 %v19397_v19 }
0x1284   :  { %15650 = vmatpush3.bf16.msra.mxu0 %v17286_v17 }
0x1285   :  { %15681 = vmatprep.subr.bf16.mxu0 %v19397_v19 }
0x133a   :  { %v4965_v45 = vpop.f32.mrb[72].mxu0 }
0x133b   :  { %v4972_v47 = vadd.f32 %v4965_v45, %v4811_v60  ;;  %v15601_v48 = vpop.f32.mrb[73].mxu0  ;;  %v17303_v45 = vld [vmem:[#allocation74 + $0x28] sm:$0xff]  }
0x133c   :  { %v4968_v49 = vpop.f32.mrb[74].mxu0 }
0x133d   :  { %v20544_v50 = vadd.f32 %v13671_v46, %v4972_v47  ;;  %v4973_v51 = vadd.f32 %v4968_v49, %v4812_v3  ;;  %v15602_v52 = vpop.f32.mrb[75].mxu0  ;;  %v17305_v47 = vld [vmem:[#allocation74 + $0x38] sm:$0xff]   ;;  %v13702_v49 = vld [vmem:[#allocation68] ss:$0 sm:$0xff] }
0x133f   :  { %v20546_v53 = vadd.f32 %v13671_v46, %v4973_v51  ;;  %v4983_v55 = vmax.f32 %v20544_v50, 0.0  ;;  %v17304_v46 = vld [vmem:[#allocation74 + $0x30] sm:$0xff]  }
0x1341   :  { %v4984_v56 = vmax.f32 %v20546_v53, 0.0 }
0x1343   :  { %v4985_v57 = vpack.c.bf16 %v4984_v56, %v4983_v55 }
0x1345   :  { %15604 = vmatpush3.bf16.msra.mxu1 %v4985_v57 }
0x1346   :  { %15609 = vmatprep.subr.bf16.mxu1 %v19397_v19 }
0x1348   :  { %15606 = vmatmul.mubr.msk.bf16.vlgmr.msra.gmra.mrb[112].mxu1 %vm4993_vm6, %v17271_v58 }
0x1349   :  { %15610 = vmatpush3.bf16.msra.mxu1 %v4985_v57  ;;  %15611 = vmatprep.mubr.msk.bf16.mxu1 %vm19398_vm5, %v19397_v19 }
0x134a   :  { %15615 = vmatprep.subr.bf16.mxu1 %v19397_v19 }
0x1350   :  { %15612 = vmatmul.mubr.msk.bf16.vlgmr.msra.gmra.mrb[116].mxu1 %vm4993_vm6, %v17272_v62 }
0x1351   :  { %15616 = vmatpush3.bf16.msra.mxu1 %v17275_v4  ;;  %15631 = vmatprep.mubr.msk.bf16.mxu1 %vm19398_vm5, %v19397_v19 }
0x1352   :  { %15617 = vmatprep.subr.bf16.mxu1 %v19397_v19 }
0x1355   :  { %15618 = vmatpush3.bf16.msra.mxu1 %v17277_v7 }
0x1356   :  { %15619 = vmatprep.subr.bf16.mxu1 %v19397_v19 }
0x1359   :  { %15620 = vmatpush3.bf16.msra.mxu1 %v17279_v9 }
0x135a   :  { %15621 = vmatprep.subr.bf16.mxu1 %v19397_v19 }
0x135d   :  { %15622 = vmatpush3.bf16.msra.mxu1 %v17281_v10  ;;  %v13703_v10 = vld [vmem:[#allocation73] ss:$0 sm:$0xff] }
0x135e   :  { %15623 = vmatprep.subr.bf16.mxu1 %v19397_v19 }
0x1361   :  { %15624 = vmatpush3.bf16.msra.mxu1 %v17283_v30 }
0x1362   :  { %15625 = vmatprep.subr.bf16.mxu1 %v19397_v19 }
0x1365   :  { %15626 = vmatpush3.bf16.msra.mxu1 %v17285_v11 }
0x1366   :  { %15627 = vmatprep.subr.bf16.mxu1 %v19397_v19 }
0x1369   :  { %15628 = vmatpush3.bf16.msra.mxu1 %v17287_v31 }
0x136a   :  { %15629 = vmatprep.subr.bf16.mxu1 %v19397_v19 }
0x136d   :  { %15630 = vmatpush3.bf16.msra.mxu1 %v17288_v32 }
0x136e   :  { %15655 = vmatprep.subr.bf16.mxu1 %v19397_v19 }
0x141b   :  { %v5031_v13 = vpop.f32.mrb[112].mxu1 }
0x141c   :  { %v15607_v61 = vpop.f32.mrb[113].mxu1 }
0x141d   :  { %v5034_v6 = vpop.f32.mrb[114].mxu1 }
0x141e   :  { %v5038_v8 = vpack.c.bf16 %v5034_v6, %v5031_v13  ;;  %v15608_v15 = vpop.f32.mrb[115].mxu1 }
0x1420   :  { %15652 = vmatmul.mubr.bf16.vlgmr.msra.gmra.mrb[76].mxu0 %v5038_v8 }
0x1421   :  { %15697 = vmatprep.mubr.msk.bf16.mxu0 %vm19398_vm5, %v19397_v19  ;;  %15682 = vmatpush3.bf16.msra.mxu0 %v17298_v12  ;;  %v17321_v12 = vld [vmem:[#allocation79 + $0x30] sm:$0xff]  }
0x1422   :  { %15683 = vmatprep.subr.bf16.mxu0 %v19397_v19 }
0x1423   :  { %v5100_v16 = vpop.f32.mrb[116].mxu1 }
0x1424   :  { %v15613_v18 = vpop.f32.mrb[117].mxu1 }
0x1425   :  { %v5103_v20 = vpop.f32.mrb[118].mxu1  ;;  %15684 = vmatpush3.bf16.msra.mxu0 %v17299_v22  ;;  %v17306_v18 = vld [vmem:[#allocation77] sm:$0xff]   ;;  %v17322_v22 = vld [vmem:[#allocation79 + $0x78] sm:$0xff]  }
0x1426   :  { %v5107_v23 = vpack.c.bf16 %v5103_v20, %v5100_v16  ;;  %v15614_v59 = vpop.f32.mrb[119].mxu1  ;;  %15685 = vmatprep.subr.bf16.mxu0 %v19397_v19  ;;  %v17307_v20 = vld [vmem:[#allocation77 + $0x8] sm:$0xff]  }
0x1427   :  { %v17311_v59 = vld [vmem:[#allocation79 + $0x8] sm:$0xff]  }
0x1428   :  { %15632 = vmatmul.mubr.bf16.vlgmr.msra.gmra.mrb[120].mxu1 %v5107_v23  ;;  %v17308_v23 = vld [vmem:[#allocation79 + $0x40] sm:$0xff]  }
0x1429   :  { %15656 = vmatpush3.bf16.msra.mxu1 %v4985_v57  ;;  %15657 = vmatprep.mubr.msk.bf16.mxu1 %vm19398_vm5, %v19397_v19 }
0x142a   :  { %15661 = vmatprep.subr.bf16.mxu1 %v19397_v19  ;;  %15686 = vmatpush3.bf16.msra.mxu0 %v17300_v34  ;;  %v17323_v34 = vld [vmem:[#allocation79 + $0x38] sm:$0xff]  }
0x142b   :  { %15687 = vmatprep.subr.bf16.mxu0 %v19397_v19 }
0x142e   :  { %15688 = vmatpush3.bf16.msra.mxu0 %v17301_v35 }
0x142f   :  { %15689 = vmatprep.subr.bf16.mxu0 %v19397_v19 }
0x1430   :  { %15658 = vmatmul.mubr.msk.bf16.vlgmr.msra.gmra.mrb[124].mxu1 %vm4993_vm6, %v17289_v1  ;;  %v17312_v1 = vld [vmem:[#allocation79 + $0x50] sm:$0xff]  }
0x1431   :  { %15662 = vmatpush3.bf16.msra.mxu1 %v17290_v5  ;;  %15677 = vmatprep.mubr.msk.bf16.mxu1 %vm19398_vm5, %v19397_v19  ;;  %v17313_v5 = vld [vmem:[#allocation79 + $0x10] sm:$0xff]  }
0x1432   :  { %15663 = vmatprep.subr.bf16.mxu1 %v19397_v19  ;;  %15690 = vmatpush3.bf16.msra.mxu0 %v17302_v2 }
0x1433   :  { %15691 = vmatprep.subr.bf16.mxu0 %v19397_v19 }
0x1435   :  { %15664 = vmatpush3.bf16.msra.mxu1 %v17291_v14  ;;  %v17314_v14 = vld [vmem:[#allocation79 + $0x58] sm:$0xff]  }
0x1436   :  { %15665 = vmatprep.subr.bf16.mxu1 %v19397_v19  ;;  %15692 = vmatpush3.bf16.msra.mxu0 %v17303_v45  ;;  %v17331_v45 = vld [vmem:[#allocation79 + $0xb0] sm:$0xff]  }
0x1437   :  { %15693 = vmatprep.subr.bf16.mxu0 %v19397_v19 }
0x1439   :  { %15666 = vmatpush3.bf16.msra.mxu1 %v17292_v21  ;;  %v17315_v21 = vld [vmem:[#allocation79 + $0x18] sm:$0xff]  }
0x143a   :  { %15667 = vmatprep.subr.bf16.mxu1 %v19397_v19  ;;  %15694 = vmatpush3.bf16.msra.mxu0 %v17304_v46  ;;  %v17332_v46 = vld [vmem:[#allocation79 + $0xb8] sm:$0xff]  }
0x143b   :  { %15695 = vmatprep.subr.bf16.mxu0 %v19397_v19 }
0x143d   :  { %15668 = vmatpush3.bf16.msra.mxu1 %v17293_v24  ;;  %v17316_v24 = vld [vmem:[#allocation79 + $0x60] sm:$0xff]  }
0x143e   :  { %15669 = vmatprep.subr.bf16.mxu1 %v19397_v19  ;;  %15696 = vmatpush3.bf16.msra.mxu0 %v17305_v47  ;;  %v17333_v47 = vld [vmem:[#allocation82] sm:$0xff]  }
0x143f   :  { %15707 = vmatprep.subr.bf16.mxu0 %v19397_v19 }
0x1441   :  { %15670 = vmatpush3.bf16.msra.mxu1 %v17294_v25  ;;  %v17317_v25 = vld [vmem:[#allocation79 + $0x20] sm:$0xff]  }
0x1442   :  { %15671 = vmatprep.subr.bf16.mxu1 %v19397_v19 }
0x1445   :  { %15672 = vmatpush3.bf16.msra.mxu1 %v17295_v26  ;;  %v17318_v26 = vld [vmem:[#allocation79 + $0x68] sm:$0xff]  }
0x1446   :  { %15673 = vmatprep.subr.bf16.mxu1 %v19397_v19 }
0x1449   :  { %15674 = vmatpush3.bf16.msra.mxu1 %v17296_v27  ;;  %v17319_v27 = vld [vmem:[#allocation79 + $0x28] sm:$0xff]  }
0x144a   :  { %15675 = vmatprep.subr.bf16.mxu1 %v19397_v19 }
0x144d   :  { %15676 = vmatpush3.bf16.msra.mxu1 %v17297_v29  ;;  %v17320_v29 = vld [vmem:[#allocation79 + $0x70] sm:$0xff]  }
0x144e   :  { %15701 = vmatprep.subr.bf16.mxu1 %v19397_v19 }
0x14f3   :  { %v5296_v60 = vpop.f32.mrb[76].mxu0 }
0x14f4   :  { %v15653_v63 = vpop.f32.mrb[77].mxu0 }
0x14f5   :  { %v5299_v3 = vpop.f32.mrb[78].mxu0 }
0x14f6   :  { %v15654_v36 = vpop.f32.mrb[79].mxu0 }
0x14fb   :  { %v5207_v37 = vpop.f32.mrb[120].mxu1 }
0x14fc   :  { %v5297_v39 = vadd.f32 %v5296_v60, %v5207_v37  ;;  %v15633_v40 = vpop.f32.mrb[121].mxu1 }
0x14fd   :  { %v5210_v54 = vpop.f32.mrb[122].mxu1 }
0x14fe   :  { %v5300_v28 = vadd.f32 %v5299_v3, %v5210_v54  ;;  %v15634_v33 = vpop.f32.mrb[123].mxu1 }
0x14ff   :  { %v17326_v33 = vld [vmem:[#allocation79 + $0x88] sm:$0xff]  }
0x1503   :  { %v5348_v38 = vpop.f32.mrb[124].mxu1 }
0x1504   :  { %v15659_v41 = vpop.f32.mrb[125].mxu1 }
0x1505   :  { %v5351_v42 = vpop.f32.mrb[126].mxu1  ;;  %v17327_v41 = vld [vmem:[#allocation79 + $0x90] sm:$0xff]  }
0x1506   :  { %v5355_v43 = vpack.c.bf16 %v5351_v42, %v5348_v38  ;;  %v15660_v44 = vpop.f32.mrb[127].mxu1  ;;  %v17324_v38 = vld [vmem:[#allocation77 + $0x10] sm:$0xff]  }
0x1507   :  { %v17328_v42 = vld [vmem:[#allocation79 + $0x98] sm:$0xff]   ;;  %v17330_v44 = vld [vmem:[#allocation79 + $0xa8] sm:$0xff]  }
0x1508   :  { %15678 = vmatmul.mubr.bf16.vlgmr.msra.gmra.mrb[128].mxu1 %v5355_v43  ;;  %v17329_v43 = vld [vmem:[#allocation79 + $0xa0] sm:$0xff]  }
0x1509   :  { %15703 = vmatprep.mubr.msk.bf16.mxu1 %vm19398_vm5, %v19397_v19 }
0x15db   :  { %v5455_v48 = vpop.f32.mrb[128].mxu1 }
0x15dc   :  { %v5462_v51 = vadd.f32 %v5455_v48, %v5297_v39  ;;  %v15679_v52 = vpop.f32.mrb[129].mxu1  ;;  %v17334_v48 = vld [vmem:[#allocation82 + $0x8] sm:$0xff]  }
0x15dd   :  { %v5458_v55 = vpop.f32.mrb[130].mxu1  ;;  %v17337_v52 = vld [vmem:[#allocation82 + $0x20] sm:$0xff]  }
0x15de   :  { %v5471_v56 = vadd.f32 %v13702_v49, %v5462_v51  ;;  %v5463_v57 = vadd.f32 %v5458_v55, %v5300_v28  ;;  %v15680_v58 = vpop.f32.mrb[131].mxu1  ;;  %v17325_v28 = vld [vmem:[#allocation79 + $0x80] sm:$0xff]  }
0x15df   :  { %v17336_v51 = vld [vmem:[#allocation82 + $0x18] sm:$0xff]  }
0x15e0   :  { %v5472_v62 = vadd.f32 %v13702_v49, %v5463_v57  ;;  %v5473_v4 = vmax.f32 %v5471_v56, 0.0  ;;  %v17335_v49 = vld [vmem:[#allocation82 + $0x10] sm:$0xff]  }
0x15e2   :  { %v5474_v7 = vmax.f32 %v5472_v62, 0.0 }
0x15e4   :  { %v5475_v9 = vpack.c.bf16 %v5474_v7, %v5473_v4 }
0x15e6   :  { %15698 = vmatmul.mubr.bf16.vlgmr.msra.gmra.mrb[80].mxu0 %v5475_v9 }
0x15e7   :  { %15709 = vmatprep.mubr.msk.bf16.mxu0 %vm19398_vm5, %v19397_v19 }
0x16b9   :  { %v5581_v30 = vpop.f32.mrb[80].mxu0 }
0x16ba   :  { %v5582_v11 = vadd.f32 %v13703_v10, %v5581_v30  ;;  %v15699_v17 = vpop.f32.mrb[81].mxu0 }
0x16bb   :  { %v5584_v31 = vpop.f32.mrb[82].mxu0 }
0x16bc   :  { %v20596_v32 = vadd.f32 %v5582_v11, %v20544_v50  ;;  %v5585_v13 = vadd.f32 %v13703_v10, %v5584_v31  ;;  %v15700_v61 = vpop.f32.mrb[83].mxu0  ;;  %v17309_v50 = vld [vmem:[#allocation79] sm:$0xff]  }
0x16be   :  { %v20599_v6 = vadd.f32 %v5585_v13, %v20546_v53  ;;  %v5590_v8 = vmax.f32 %v20596_v32, 0.0  ;;  %v17310_v53 = vld [vmem:[#allocation79 + $0x48] sm:$0xff]  }
0x16c0   :  { %v5591_v15 = vmax.f32 %v20599_v6, 0.0 }
0x16c2   :  { %v20603_v16 = vpack.c.bf16 %v5591_v15, %v5590_v8  ;;  %v17338_v8 = vld [vmem:[#allocation82 + $0x28] sm:$0xff]   ;;  %v17339_v15 = vld [vmem:[#allocation82 + $0x30] sm:$0xff]  }
0x16c4   :  { %15702 = vmatpush3.bf16.msra.mxu1 %v20603_v16  ;;  %15708 = vmatpush3.bf16.msra.mxu0 %v20603_v16 }
0x16c5   :  { %15713 = vmatprep.subr.bf16.mxu1 %v19397_v19  ;;  %15733 = vmatprep.subr.bf16.mxu0 %v19397_v19 }
0x16c7   :  { %15704 = vmatmul.mubr.msk.bf16.vlgmr.msra.gmra.mrb[132].mxu1 %vm4993_vm6, %v17306_v18  ;;  %15710 = vmatmul.mubr.msk.bf16.vlgmr.msra.gmra.mrb[84].mxu0 %vm4993_vm6, %v17307_v20  ;;  %v13742_v20 = vld [vmem:[#allocation76] ss:$0 sm:$0xff] }
0x16c8   :  { %15714 = vmatpush3.bf16.msra.mxu1 %v17308_v23  ;;  %15734 = vmatpush3.bf16.msra.mxu0 %v17309_v50 }
0x16c9   :  { %15715 = vmatprep.subr.bf16.mxu1 %v19397_v19  ;;  %15735 = vmatprep.subr.bf16.mxu0 %v19397_v19 }
0x16ca   :  { %15729 = vmatprep.mubr.msk.bf16.mxu1 %vm19398_vm5, %v19397_v19  ;;  %15749 = vmatprep.mubr.msk.bf16.mxu0 %vm19398_vm5, %v19397_v19 }
0x16cc   :  { %15716 = vmatpush3.bf16.msra.mxu1 %v17310_v53  ;;  %15736 = vmatpush3.bf16.msra.mxu0 %v17311_v59 }
0x16cd   :  { %15717 = vmatprep.subr.bf16.mxu1 %v19397_v19  ;;  %15737 = vmatprep.subr.bf16.mxu0 %v19397_v19 }
0x16d0   :  { %15718 = vmatpush3.bf16.msra.mxu1 %v17312_v1  ;;  %15738 = vmatpush3.bf16.msra.mxu0 %v17313_v5 }
0x16d1   :  { %15719 = vmatprep.subr.bf16.mxu1 %v19397_v19  ;;  %15739 = vmatprep.subr.bf16.mxu0 %v19397_v19 }
0x16d4   :  { %15720 = vmatpush3.bf16.msra.mxu1 %v17314_v14  ;;  %15740 = vmatpush3.bf16.msra.mxu0 %v17315_v21 }
0x16d5   :  { %15721 = vmatprep.subr.bf16.mxu1 %v19397_v19  ;;  %15741 = vmatprep.subr.bf16.mxu0 %v19397_v19 }
0x16d8   :  { %15722 = vmatpush3.bf16.msra.mxu1 %v17316_v24  ;;  %15742 = vmatpush3.bf16.msra.mxu0 %v17317_v25 }
0x16d9   :  { %15723 = vmatprep.subr.bf16.mxu1 %v19397_v19  ;;  %15743 = vmatprep.subr.bf16.mxu0 %v19397_v19 }
0x16dc   :  { %15724 = vmatpush3.bf16.msra.mxu1 %v17318_v26  ;;  %15744 = vmatpush3.bf16.msra.mxu0 %v17319_v27  ;;  %v13743_v26 = vld [vmem:[#allocation80] ss:$0 sm:$0xff] }
0x16dd   :  { %15725 = vmatprep.subr.bf16.mxu1 %v19397_v19  ;;  %15745 = vmatprep.subr.bf16.mxu0 %v19397_v19 }
0x16e0   :  { %15726 = vmatpush3.bf16.msra.mxu1 %v17320_v29  ;;  %15746 = vmatpush3.bf16.msra.mxu0 %v17321_v12 }
0x16e1   :  { %15727 = vmatprep.subr.bf16.mxu1 %v19397_v19  ;;  %15747 = vmatprep.subr.bf16.mxu0 %v19397_v19 }
0x16e4   :  { %15728 = vmatpush3.bf16.msra.mxu1 %v17322_v22  ;;  %15748 = vmatpush3.bf16.msra.mxu0 %v17323_v34 }
0x16e5   :  { %15753 = vmatprep.subr.bf16.mxu1 %v19397_v19  ;;  %15759 = vmatprep.subr.bf16.mxu0 %v19397_v19 }
0x179a   :  { %v5637_v35 = vpop.f32.mrb[132].mxu1  ;;  %v5706_v2 = vpop.f32.mrb[84].mxu0 }
0x179b   :  { %v15705_v60 = vpop.f32.mrb[133].mxu1  ;;  %v15711_v63 = vpop.f32.mrb[85].mxu0 }
0x179c   :  { %v5640_v3 = vpop.f32.mrb[134].mxu1  ;;  %v5709_v36 = vpop.f32.mrb[86].mxu0 }
0x179d   :  { %v5644_v37 = vpack.c.bf16 %v5640_v3, %v5637_v35  ;;  %v5713_v39 = vpack.c.bf16 %v5709_v36, %v5706_v2  ;;  %v15712_v40 = vpop.f32.mrb[87].mxu0  ;;  %v15706_v54 = vpop.f32.mrb[135].mxu1  ;;  %v17341_v3 = vld [vmem:[#allocation89] sm:$0xff]   ;;  %v17342_v36 = vld [vmem:[#allocation89 + $0x8] sm:$0xff]  }
0x179e   :  { %v17347_v40 = vld [vmem:[#allocation91 + $0x50] sm:$0xff]  }
0x179f   :  { %15730 = vmatmul.mubr.bf16.vlgmr.msra.gmra.mrb[136].mxu1 %v5713_v39  ;;  %15750 = vmatmul.mubr.bf16.vlgmr.msra.gmra.mrb[88].mxu0 %v5644_v37  ;;  %v17343_v37 = vld [vmem:[#allocation91 + $0x40] sm:$0xff]   ;;  %v17348_v54 = vld [vmem:[#allocation91 + $0x10] sm:$0xff]  }
0x17a0   :  { %15754 = vmatpush3.bf16.msra.mxu1 %v20603_v16  ;;  %15755 = vmatprep.mubr.msk.bf16.mxu1 %vm19398_vm5, %v19397_v19  ;;  %v17340_v16 = vld [vmem:[#allocation82 + $0x38] sm:$0xff]  }
0x17a1   :  { %15760 = vmatpush3.bf16.msra.mxu0 %v17325_v28  ;;  %15775 = vmatprep.mubr.msk.bf16.mxu0 %vm19398_vm5, %v19397_v19  ;;  %v17344_v39 = vld [vmem:[#allocation91] sm:$0xff]   ;;  %v17349_v28 = vld [vmem:[#allocation91 + $0x58] sm:$0xff]  }
0x17a2   :  { %15761 = vmatprep.subr.bf16.mxu0 %v19397_v19  ;;  %15779 = vmatprep.subr.bf16.mxu1 %v19397_v19 }
0x17a5   :  { %15762 = vmatpush3.bf16.msra.mxu0 %v17326_v33  ;;  %v17350_v33 = vld [vmem:[#allocation91 + $0x18] sm:$0xff]  }
0x17a6   :  { %15763 = vmatprep.subr.bf16.mxu0 %v19397_v19 }
0x17a7   :  { %15756 = vmatmul.mubr.msk.bf16.vlgmr.msra.gmra.mrb[140].mxu1 %vm4993_vm6, %v17324_v38  ;;  %v17351_v38 = vld [vmem:[#allocation91 + $0x60] sm:$0xff]  }
0x17a8   :  { %15795 = vmatprep.mubr.msk.bf16.mxu1 %vm19398_vm5, %v19397_v19  ;;  %15780 = vmatpush3.bf16.msra.mxu1 %v17333_v47  ;;  %v17358_v47 = vld [vmem:[#allocation91 + $0x38] sm:$0xff]  }
0x17a9   :  { %15764 = vmatpush3.bf16.msra.mxu0 %v17327_v41  ;;  %15781 = vmatprep.subr.bf16.mxu1 %v19397_v19  ;;  %v17352_v41 = vld [vmem:[#allocation91 + $0x20] sm:$0xff]  }
0x17aa   :  { %15765 = vmatprep.subr.bf16.mxu0 %v19397_v19 }
0x17ac   :  { %15782 = vmatpush3.bf16.msra.mxu1 %v17334_v48 }
0x17ad   :  { %15766 = vmatpush3.bf16.msra.mxu0 %v17328_v42  ;;  %15783 = vmatprep.subr.bf16.mxu1 %v19397_v19  ;;  %v17353_v42 = vld [vmem:[#allocation91 + $0x68] sm:$0xff]  }
0x17ae   :  { %15767 = vmatprep.subr.bf16.mxu0 %v19397_v19 }
0x17b0   :  { %15784 = vmatpush3.bf16.msra.mxu1 %v17335_v49 }
0x17b1   :  { %15768 = vmatpush3.bf16.msra.mxu0 %v17329_v43  ;;  %15785 = vmatprep.subr.bf16.mxu1 %v19397_v19  ;;  %v17354_v43 = vld [vmem:[#allocation91 + $0x28] sm:$0xff]  }
0x17b2   :  { %15769 = vmatprep.subr.bf16.mxu0 %v19397_v19 }
0x17b4   :  { %15786 = vmatpush3.bf16.msra.mxu1 %v17336_v51 }
0x17b5   :  { %15770 = vmatpush3.bf16.msra.mxu0 %v17330_v44  ;;  %15787 = vmatprep.subr.bf16.mxu1 %v19397_v19  ;;  %v17355_v44 = vld [vmem:[#allocation91 + $0x70] sm:$0xff]  }
0x17b6   :  { %15771 = vmatprep.subr.bf16.mxu0 %v19397_v19 }
0x17b8   :  { %15788 = vmatpush3.bf16.msra.mxu1 %v17337_v52 }
0x17b9   :  { %15772 = vmatpush3.bf16.msra.mxu0 %v17331_v45  ;;  %15789 = vmatprep.subr.bf16.mxu1 %v19397_v19  ;;  %v17356_v45 = vld [vmem:[#allocation91 + $0x30] sm:$0xff]  }
0x17ba   :  { %15773 = vmatprep.subr.bf16.mxu0 %v19397_v19 }
0x17bc   :  { %15790 = vmatpush3.bf16.msra.mxu1 %v17338_v8  ;;  %v6684_v8 = vld [vmem:[#allocation95 + $0x8] sm:$0xff] }
0x17bd   :  { %15774 = vmatpush3.bf16.msra.mxu0 %v17332_v46  ;;  %15791 = vmatprep.subr.bf16.mxu1 %v19397_v19  ;;  %v17357_v46 = vld [vmem:[#allocation91 + $0x78] sm:$0xff]  }
0x17be   :  { %15799 = vmatprep.subr.bf16.mxu0 %v19397_v19 }
0x17c0   :  { %15792 = vmatpush3.bf16.msra.mxu1 %v17339_v15  ;;  %v6686_v15 = vld [vmem:[#allocation95 + $0x18] sm:$0xff] }
0x17c1   :  { %15793 = vmatprep.subr.bf16.mxu1 %v19397_v19 }
0x17c4   :  { %15794 = vmatpush3.bf16.msra.mxu1 %v17340_v16  ;;  %v6683_v16 = vld [vmem:[#allocation95] sm:$0xff] }
0x17c5   :  { %15805 = vmatprep.subr.bf16.mxu1 %v19397_v19 }
0x1872   :  { %v5813_v55 = vpop.f32.mrb[136].mxu1  ;;  %v5902_v56 = vpop.f32.mrb[88].mxu0 }
0x1873   :  { %v5903_v57 = vadd.f32 %v5902_v56, %v5813_v55  ;;  %v15731_v58 = vpop.f32.mrb[137].mxu1  ;;  %v15751_v62 = vpop.f32.mrb[89].mxu0 }
0x1874   :  { %v5816_v4 = vpop.f32.mrb[138].mxu1  ;;  %v5905_v7 = vpop.f32.mrb[90].mxu0 }
0x1875   :  { %v5906_v9 = vadd.f32 %v5905_v7, %v5816_v4  ;;  %v15732_v10 = vpop.f32.mrb[139].mxu1  ;;  %v15752_v30 = vpop.f32.mrb[91].mxu0  ;;  %v17360_v7 = vld [vmem:[#allocation91 + $0x80] sm:$0xff]  }
0x1876   :  { %v17359_v10 = vld [vmem:[#allocation89 + $0x10] sm:$0xff]   ;;  %v17362_v30 = vld [vmem:[#allocation91 + $0x90] sm:$0xff]  }
0x187a   :  { %v5954_v11 = vpop.f32.mrb[140].mxu1 }
0x187b   :  { %v15757_v17 = vpop.f32.mrb[141].mxu1 }
0x187c   :  { %v5957_v31 = vpop.f32.mrb[142].mxu1  ;;  %v17364_v17 = vld [vmem:[#allocation91 + $0xa0] sm:$0xff]  }
0x187d   :  { %v5961_v13 = vpack.c.bf16 %v5957_v31, %v5954_v11  ;;  %v15758_v61 = vpop.f32.mrb[143].mxu1  ;;  %v17363_v11 = vld [vmem:[#allocation91 + $0x98] sm:$0xff]   ;;  %v17365_v31 = vld [vmem:[#allocation91 + $0xa8] sm:$0xff]  }
0x187e   :  { %v17367_v61 = vld [vmem:[#allocation91 + $0xb8] sm:$0xff]  }
0x187f   :  { %15776 = vmatmul.mubr.bf16.vlgmr.msra.gmra.mrb[92].mxu0 %v5961_v13  ;;  %v17366_v13 = vld [vmem:[#allocation91 + $0xb0] sm:$0xff]  }
0x1880   :  { %15801 = vmatprep.mubr.msk.bf16.mxu0 %vm19398_vm5, %v19397_v19 }
0x1952   :  { %v6061_v18 = vpop.f32.mrb[92].mxu0 }
0x1953   :  { %v6068_v23 = vadd.f32 %v6061_v18, %v5903_v57  ;;  %v15777_v50 = vpop.f32.mrb[93].mxu0  ;;  %v16720_v18 = vpack.c.bf16 %v6686_v15, %v6684_v8 }
0x1954   :  { %v6064_v53 = vpop.f32.mrb[94].mxu0  ;;  %v6690_v50 = vld [vmem:[#allocation95 + $0x38] sm:$0xff] }
0x1955   :  { %v6077_v59 = vadd.f32 %v13742_v20, %v6068_v23  ;;  %v6069_v1 = vadd.f32 %v6064_v53, %v5906_v9  ;;  %v15778_v5 = vpop.f32.mrb[95].mxu0  ;;  %v17361_v9 = vld [vmem:[#allocation91 + $0x88] sm:$0xff]  }
0x1956   :  { %v6688_v23 = vld [vmem:[#allocation95 + $0x28] sm:$0xff]  ;;  %v6689_v5 = vld [vmem:[#allocation95 + $0x30] sm:$0xff] }
0x1957   :  { %v6078_v14 = vadd.f32 %v13742_v20, %v6069_v1  ;;  %v6079_v21 = vmax.f32 %v6077_v59, 0.0  ;;  %v6685_v20 = vld [vmem:[#allocation95 + $0x10] sm:$0xff]  ;;  %v16724_v59 = vpack.c.bf16 %v6690_v50, %v6688_v23  ;;  %v6687_v1 = vld [vmem:[#allocation95 + $0x20] sm:$0xff] }
0x1958   :  { %v16722_v53 = vpack.c.bf16 %v6685_v20, %v6683_v16  ;;  %v13782_v16 = vld [vmem:[#allocation88] ss:$0 sm:$0xff] }
0x1959   :  { %v6080_v24 = vmax.f32 %v6078_v14, 0.0  ;;  %v6692_v14 = vld [vmem:[#allocation95 + $0x48] sm:$0xff] }
0x195b   :  { %v6081_v25 = vpack.c.bf16 %v6080_v24, %v6079_v21  ;;  %v6694_v21 = vld [vmem:[#allocation95 + $0x58] sm:$0xff]  ;;  %v16726_v24 = vpack.c.bf16 %v6689_v5, %v6687_v1  ;;  %v6717_v5 = vlaneseq }
0x195d   :  { %15796 = vmatmul.mubr.bf16.vlgmr.msra.gmra.mrb[144].mxu1 %v6081_v25  ;;  %v16728_v25 = vpack.c.bf16 %v6694_v21, %v6692_v14  ;;  %v20714_v14 = vshrl.u32 %v6717_v5, 7 }
0x195e   :  { %15807 = vmatprep.mubr.msk.bf16.mxu1 %vm19398_vm5, %v19397_v19 }
0x195f   :  { %v6719_v21 = vsub.s32 0, %v20714_v14 }
0x1a30   :  { %v6187_v27 = vpop.f32.mrb[144].mxu1 }
0x1a31   :  { %v6188_v29 = vadd.f32 %v13743_v26, %v6187_v27  ;;  %v15797_v12 = vpop.f32.mrb[145].mxu1  ;;  %v6693_v27 = vld [vmem:[#allocation95 + $0x50] sm:$0xff] }
0x1a32   :  { %v6190_v22 = vpop.f32.mrb[146].mxu1  ;;  %v6698_v12 = vld [vmem:[#allocation95 + $0x78] sm:$0xff] }
0x1a33   :  { %v6191_v34 = vadd.f32 %v13743_v26, %v6190_v22  ;;  %v15798_v35 = vpop.f32.mrb[147].mxu1  ;;  %v6194_v2 = vadd.f32 %v6188_v29, %v20596_v32  ;;  %v17345_v32 = vld [vmem:[#allocation91 + $0x48] sm:$0xff]  }
0x1a34   :  { %v6691_v26 = vld [vmem:[#allocation95 + $0x40] sm:$0xff]  ;;  %v6696_v29 = vld [vmem:[#allocation95 + $0x68] sm:$0xff] }
0x1a35   :  { %v6195_v60 = vadd.f32 %v6191_v34, %v20599_v6  ;;  %v17346_v6 = vld [vmem:[#allocation91 + $0x8] sm:$0xff]   ;;  %v16730_v22 = vpack.c.bf16 %v6693_v27, %v6691_v26  ;;  %v16732_v34 = vpack.c.bf16 %v6698_v12, %v6696_v29 }
0x1a36   :  { %v6695_v35 = vld [vmem:[#allocation95 + $0x60] sm:$0xff] }
0x1a37   :  { %v20662_v63 = vpack.c.bf16 %v6195_v60, %v6194_v2  ;;  %v6697_v2 = vld [vmem:[#allocation95 + $0x70] sm:$0xff]  ;;  %v6700_v60 = vld [vmem:[#allocation95 + $0x88] sm:$0xff] }
0x1a39   :  { %15800 = vmatpush3.bf16.msra.mxu0 %v20662_v63  ;;  %15806 = vmatpush3.bf16.msra.mxu1 %v20662_v63 }
0x1a3a   :  { %15811 = vmatprep.subr.bf16.mxu0 %v19397_v19  ;;  %15831 = vmatprep.subr.bf16.mxu1 %v19397_v19 }
0x1a3c   :  { %15802 = vmatmul.mubr.msk.bf16.vlgmr.msra.gmra.mrb[96].mxu0 %vm4993_vm6, %v17341_v3  ;;  %15808 = vmatmul.mubr.msk.bf16.vlgmr.msra.gmra.mrb[148].mxu1 %vm4993_vm6, %v17342_v36  ;;  %v16734_v3 = vpack.c.bf16 %v6697_v2, %v6695_v35 }
0x1a3d   :  { %15812 = vmatpush3.bf16.msra.mxu0 %v17343_v37  ;;  %15832 = vmatpush3.bf16.msra.mxu1 %v17344_v39  ;;  %v6699_v37 = vld [vmem:[#allocation95 + $0x80] sm:$0xff]  ;;  %v6701_v39 = vld [vmem:[#allocation95 + $0x90] sm:$0xff] }
0x1a3e   :  { %15813 = vmatprep.subr.bf16.mxu0 %v19397_v19  ;;  %15833 = vmatprep.subr.bf16.mxu1 %v19397_v19 }
0x1a3f   :  { %15827 = vmatprep.mubr.msk.bf16.mxu0 %vm19398_vm5, %v19397_v19  ;;  %15847 = vmatprep.mubr.msk.bf16.mxu1 %vm19398_vm5, %v19397_v19 }
0x1a41   :  { %15814 = vmatpush3.bf16.msra.mxu0 %v17345_v32  ;;  %15834 = vmatpush3.bf16.msra.mxu1 %v17346_v6  ;;  %v6704_v32 = vld [vmem:[#allocation95 + $0xa8] sm:$0xff]  ;;  %v6706_v6 = vld [vmem:[#allocation95 + $0xb8] sm:$0xff] }
0x1a42   :  { %15815 = vmatprep.subr.bf16.mxu0 %v19397_v19  ;;  %15835 = vmatprep.subr.bf16.mxu1 %v19397_v19 }
0x1a45   :  { %15816 = vmatpush3.bf16.msra.mxu0 %v17347_v40  ;;  %15836 = vmatpush3.bf16.msra.mxu1 %v17348_v54  ;;  %v16738_v40 = vpack.c.bf16 %v6701_v39, %v6699_v37  ;;  %v16740_v54 = vpack.c.bf16 %v6706_v6, %v6704_v32  ;;  %v6857_v37 = vld [vmem:[#allocation92 + $0x80] sm:$0xff]  ;;  %v6858_v39 = vld [vmem:[#allocation92 + $0x88] sm:$0xff] }
0x1a46   :  { %15817 = vmatprep.subr.bf16.mxu0 %v19397_v19  ;;  %15837 = vmatprep.subr.bf16.mxu1 %v19397_v19  ;;  %v6841_v32 = vld [vmem:[#allocation92] sm:$0xff]  ;;  %v16752_v6 = vpack.c.bf16 %v6858_v39, %v6857_v37 }
0x1a49   :  { %15818 = vmatpush3.bf16.msra.mxu0 %v17349_v28  ;;  %15838 = vmatpush3.bf16.msra.mxu1 %v17350_v33  ;;  %v6703_v28 = vld [vmem:[#allocation95 + $0xa0] sm:$0xff]  ;;  %v6705_v33 = vld [vmem:[#allocation95 + $0xb0] sm:$0xff] }
0x1a4a   :  { %15819 = vmatprep.subr.bf16.mxu0 %v19397_v19  ;;  %15839 = vmatprep.subr.bf16.mxu1 %v19397_v19 }
0x1a4d   :  { %15820 = vmatpush3.bf16.msra.mxu0 %v17351_v38  ;;  %15840 = vmatpush3.bf16.msra.mxu1 %v17352_v41  ;;  %v6708_v38 = vld [vmem:[#allocation95 + $0xc8] sm:$0xff]  ;;  %v6710_v41 = vld [vmem:[#allocation95 + $0xd8] sm:$0xff] }
0x1a4e   :  { %15821 = vmatprep.subr.bf16.mxu0 %v19397_v19  ;;  %15841 = vmatprep.subr.bf16.mxu1 %v19397_v19 }
0x1a51   :  { %15822 = vmatpush3.bf16.msra.mxu0 %v17353_v42  ;;  %15842 = vmatpush3.bf16.msra.mxu1 %v17354_v43  ;;  %v16742_v42 = vpack.c.bf16 %v6705_v33, %v6703_v28  ;;  %v16744_v43 = vpack.c.bf16 %v6710_v41, %v6708_v38  ;;  %v6860_v28 = vld [vmem:[#allocation92 + $0x98] sm:$0xff]  ;;  %v6843_v41 = vld [vmem:[#allocation92 + $0x10] sm:$0xff] }
0x1a52   :  { %15823 = vmatprep.subr.bf16.mxu0 %v19397_v19  ;;  %15843 = vmatprep.subr.bf16.mxu1 %v19397_v19 }
0x1a55   :  { %15824 = vmatpush3.bf16.msra.mxu0 %v17355_v44  ;;  %15844 = vmatpush3.bf16.msra.mxu1 %v17356_v45  ;;  %v6707_v44 = vld [vmem:[#allocation95 + $0xc0] sm:$0xff]  ;;  %v6709_v45 = vld [vmem:[#allocation95 + $0xd0] sm:$0xff] }
0x1a56   :  { %15825 = vmatprep.subr.bf16.mxu0 %v19397_v19  ;;  %15845 = vmatprep.subr.bf16.mxu1 %v19397_v19 }
0x1a59   :  { %15826 = vmatpush3.bf16.msra.mxu0 %v17357_v46  ;;  %15846 = vmatpush3.bf16.msra.mxu1 %v17358_v47  ;;  %v16746_v46 = vpack.c.bf16 %v6709_v45, %v6707_v44  ;;  %v6862_v44 = vld [vmem:[#allocation92 + $0xa8] sm:$0xff] }
0x1a5a   :  { %15851 = vmatprep.subr.bf16.mxu0 %v19397_v19  ;;  %15857 = vmatprep.subr.bf16.mxu1 %v19397_v19 }
0x1b0f   :  { %v6241_v48 = vpop.f32.mrb[96].mxu0  ;;  %v6310_v49 = vpop.f32.mrb[148].mxu1 }
0x1b10   :  { %v15803_v51 = vpop.f32.mrb[97].mxu0  ;;  %v15809_v52 = vpop.f32.mrb[149].mxu1 }
0x1b11   :  { %v6244_v55 = vpop.f32.mrb[98].mxu0  ;;  %v6313_v56 = vpop.f32.mrb[150].mxu1 }
0x1b12   :  { %v6248_v57 = vpack.c.bf16 %v6244_v55, %v6241_v48  ;;  %v6317_v58 = vpack.c.bf16 %v6313_v56, %v6310_v49  ;;  %v15810_v62 = vpop.f32.mrb[151].mxu1  ;;  %v15804_v4 = vpop.f32.mrb[99].mxu0 }
0x1b14   :  { %15828 = vmatmul.mubr.bf16.vlgmr.msra.gmra.mrb[100].mxu0 %v6317_v58  ;;  %15848 = vmatmul.mubr.bf16.vlgmr.msra.gmra.mrb[152].mxu1 %v6248_v57 }
0x1b15   :  { %15852 = vmatpush3.bf16.msra.mxu0 %v20662_v63  ;;  %15853 = vmatprep.mubr.msk.bf16.mxu0 %vm19398_vm5, %v19397_v19  ;;  %v6702_v63 = vld [vmem:[#allocation95 + $0x98] sm:$0xff] }
0x1b16   :  { %15858 = vmatpush3.bf16.msra.mxu1 %v17360_v7  ;;  %15873 = vmatprep.mubr.msk.bf16.mxu1 %vm19398_vm5, %v19397_v19  ;;  %v16736_v36 = vpack.c.bf16 %v6702_v63, %v6700_v60 }
0x1b17   :  { %15859 = vmatprep.subr.bf16.mxu1 %v19397_v19  ;;  %16721 = vmatprep.subr.bf16.mxu0 %v16720_v18 }
0x1b1a   :  { %15860 = vmatpush3.bf16.msra.mxu1 %v17361_v9 }
0x1b1b   :  { %15861 = vmatprep.subr.bf16.mxu1 %v19397_v19 }
0x1b1c   :  { %15854 = vmatmul.mubr.msk.bf16.vlgmr.msra.gmra.mrb[104].mxu0 %vm4993_vm6, %v17359_v10 }
0x1b1d   :  { %6791 = vmatprep.mubr.f32.mxu0 %v19397_v19  ;;  %16723 = vmatpush1.bf16.msra.mxu0 %v16722_v53 }
0x1b1e   :  { %15862 = vmatpush3.bf16.msra.mxu1 %v17362_v30  ;;  %16725 = vmatprep.subr.bf16.mxu0 %v16724_v59 }
0x1b1f   :  { %15863 = vmatprep.subr.bf16.mxu1 %v19397_v19 }
0x1b21   :  { %16727 = vmatpush1.bf16.msra.mxu0 %v16726_v24  ;;  %v6715_v24 = vld [vmem:[#allocation94] sm:$0x3] }
0x1b22   :  { %15864 = vmatpush3.bf16.msra.mxu1 %v17363_v11  ;;  %16729 = vmatprep.subr.bf16.mxu0 %v16728_v25  ;;  %v6712_v11 = vld [vmem:[#allocation95 + $0xe8] sm:$0xff]  ;;  %v6723_v25 = vsub.s32 1, %v20714_v14  ;;  %v6720_v26 = vrot.slane %v6715_v24, %v6719_v21 }
0x1b23   :  { %15865 = vmatprep.subr.bf16.mxu1 %v19397_v19 }
0x1b24   :  { %v6724_v27 = vrot.slane %v6715_v24, %v6723_v25 }
0x1b25   :  { %16731 = vmatpush1.bf16.msra.mxu0 %v16730_v22 }
0x1b26   :  { %15866 = vmatpush3.bf16.msra.mxu1 %v17364_v17  ;;  %16733 = vmatprep.subr.bf16.mxu0 %v16732_v34  ;;  %v6714_v17 = vld [vmem:[#allocation95 + $0xf8] sm:$0xff] }
0x1b27   :  { %15867 = vmatprep.subr.bf16.mxu1 %v19397_v19 }
0x1b29   :  { %16735 = vmatpush1.bf16.msra.mxu0 %v16734_v3 }
0x1b2a   :  { %15868 = vmatpush3.bf16.msra.mxu1 %v17365_v31  ;;  %16737 = vmatprep.subr.bf16.mxu0 %v16736_v36  ;;  %v16748_v31 = vpack.c.bf16 %v6714_v17, %v6712_v11  ;;  %v6868_v11 = vld [vmem:[#allocation92 + $0xd8] sm:$0xff] }
0x1b2b   :  { %15869 = vmatprep.subr.bf16.mxu1 %v19397_v19 }
0x1b2d   :  { %16739 = vmatpush1.bf16.msra.mxu0 %v16738_v40  ;;  %v6842_v40 = vld [vmem:[#allocation92 + $0x8] sm:$0xff] }
0x1b2e   :  { %15870 = vmatpush3.bf16.msra.mxu1 %v17366_v13  ;;  %16741 = vmatprep.subr.bf16.mxu0 %v16740_v54  ;;  %v6711_v13 = vld [vmem:[#allocation95 + $0xe0] sm:$0xff]  ;;  %v6859_v54 = vld [vmem:[#allocation92 + $0x90] sm:$0xff]  ;;  %v16754_v33 = vpack.c.bf16 %v6842_v40, %v6841_v32 }
0x1b2f   :  { %15871 = vmatprep.subr.bf16.mxu1 %v19397_v19  ;;  %v16756_v38 = vpack.c.bf16 %v6860_v28, %v6859_v54 }
0x1b31   :  { %16743 = vmatpush1.bf16.msra.mxu0 %v16742_v42  ;;  %v6844_v42 = vld [vmem:[#allocation92 + $0x18] sm:$0xff] }
0x1b32   :  { %15872 = vmatpush3.bf16.msra.mxu1 %v17367_v61  ;;  %16745 = vmatprep.subr.bf16.mxu0 %v16744_v43  ;;  %v6713_v61 = vld [vmem:[#allocation95 + $0xf0] sm:$0xff]  ;;  %v6861_v43 = vld [vmem:[#allocation92 + $0xa0] sm:$0xff]  ;;  %v16758_v45 = vpack.c.bf16 %v6844_v42, %v6843_v41 }
0x1b33   :  { %v16750_v8 = vpack.c.bf16 %v6713_v61, %v6711_v13  ;;  %16753 = vmatprep.subr.bf16.mxu1 %v16752_v6  ;;  %v6851_v13 = vld [vmem:[#allocation92 + $0x50] sm:$0xff]  ;;  %v6852_v61 = vld [vmem:[#allocation92 + $0x58] sm:$0xff] }
0x1b35   :  { %16747 = vmatpush1.bf16.msra.mxu0 %v16746_v46  ;;  %v16760_v46 = vpack.c.bf16 %v6862_v44, %v6861_v43 }
0x1b36   :  { %16749 = vmatprep.subr.bf16.mxu0 %v16748_v31 }
0x1b39   :  { %16751 = vmatpush1.bf16.msra.mxu0 %v16750_v8  ;;  %v6869_v8 = vld [vmem:[#allocation92 + $0xe0] sm:$0xff] }
0x1be7   :  { %v6417_v47 = vpop.f32.mrb[100].mxu0  ;;  %v6506_v48 = vpop.f32.mrb[152].mxu1 }
0x1be8   :  { %v6507_v49 = vadd.f32 %v6506_v48, %v6417_v47  ;;  %v15829_v51 = vpop.f32.mrb[101].mxu0  ;;  %v15849_v52 = vpop.f32.mrb[153].mxu1  ;;  %v6845_v47 = vld [vmem:[#allocation92 + $0x20] sm:$0xff]  ;;  %v6846_v48 = vld [vmem:[#allocation92 + $0x28] sm:$0xff] }
0x1be9   :  { %v6420_v55 = vpop.f32.mrb[102].mxu0  ;;  %v6509_v56 = vpop.f32.mrb[154].mxu1  ;;  %v6864_v51 = vld [vmem:[#allocation92 + $0xb8] sm:$0xff]  ;;  %v16762_v52 = vpack.c.bf16 %v6846_v48, %v6845_v47 }
0x1bea   :  { %v6510_v57 = vadd.f32 %v6509_v56, %v6420_v55  ;;  %v15830_v58 = vpop.f32.mrb[103].mxu0  ;;  %v15850_v62 = vpop.f32.mrb[155].mxu1  ;;  %v6847_v56 = vld [vmem:[#allocation92 + $0x30] sm:$0xff] }
0x1beb   :  { %v6865_v58 = vld [vmem:[#allocation92 + $0xc0] sm:$0xff]  ;;  %v6866_v62 = vld [vmem:[#allocation92 + $0xc8] sm:$0xff] }
0x1bef   :  { %v6558_v4 = vpop.f32.mrb[104].mxu0 }
0x1bf0   :  { %v15855_v7 = vpop.f32.mrb[105].mxu0 }
0x1bf1   :  { %v6561_v9 = vpop.f32.mrb[106].mxu0  ;;  %v16768_v7 = vpack.c.bf16 %v6866_v62, %v6865_v58  ;;  %v17377_v58 = vld [vmem:[#allocation37 + $0x20] sm:$0xff]  }
0x1bf2   :  { %v6565_v10 = vpack.c.bf16 %v6561_v9, %v6558_v4  ;;  %v15856_v30 = vpop.f32.mrb[107].mxu0  ;;  %v6849_v9 = vld [vmem:[#allocation92 + $0x40] sm:$0xff] }
0x1bf3   :  { %v6867_v30 = vld [vmem:[#allocation92 + $0xd0] sm:$0xff] }
0x1bf4   :  { %15874 = vmatmul.mubr.bf16.vlgmr.msra.gmra.mrb[156].mxu1 %v6565_v10  ;;  %v6850_v10 = vld [vmem:[#allocation92 + $0x48] sm:$0xff]  ;;  %v16772_v31 = vpack.c.bf16 %v6868_v11, %v6867_v30  ;;  %v17372_v30 = vld [vmem:[#allocation37 + $0x40] sm:$0xff]  }
0x1bf5   :  { %16755 = vmatpush3.bf16.msra.mxu1 %v16754_v33  ;;  %v16770_v17 = vpack.c.bf16 %v6850_v10, %v6849_v9  ;;  %v17368_v9 = vld [vmem:[#allocation35] sm:$0xff]   ;;  %v17369_v10 = vld [vmem:[#allocation35 + $0x8] sm:$0xff]  }
0x1bf6   :  { %16757 = vmatprep.subr.bf16.mxu1 %v16756_v38  ;;  %v19399_v38 = vmov 1.0   ;;  %v17374_v11 = vld [vmem:[#allocation37 + $0x48] sm:$0xff]  }
0x1bf9   :  { %16759 = vmatpush3.bf16.msra.mxu1 %v16758_v45 }
0x1bfa   :  { %16761 = vmatprep.subr.bf16.mxu1 %v16760_v46 }
0x1bfd   :  { %16763 = vmatpush3.bf16.msra.mxu1 %v16762_v52  ;;  %v19400_v52 = vmov 0.0|0.0  }
0x1bfe   :  { %16784 = vmatprep.subr.bf16.mxu0 %v19400_v52  ;;  %v17394_v52 = vld [vmem:[#allocation37 + $0xb8] sm:$0xff]  }
0x1cc7   :  { %v6665_v15 = vpop.f32.mrb[156].mxu1 }
0x1cc8   :  { %v6672_v18 = vadd.f32 %v6665_v15, %v6507_v49  ;;  %v15875_v20 = vpop.f32.mrb[157].mxu1  ;;  %v6863_v49 = vld [vmem:[#allocation92 + $0xb0] sm:$0xff]  ;;  %v6870_v15 = vld [vmem:[#allocation92 + $0xe8] sm:$0xff] }
0x1cc9   :  { %v6668_v23 = vpop.f32.mrb[158].mxu1  ;;  %v16764_v55 = vpack.c.bf16 %v6864_v51, %v6863_v49  ;;  %v6853_v20 = vld [vmem:[#allocation92 + $0x60] sm:$0xff] }
0x1cca   :  { %v20704_v50 = vadd.f32 %v13782_v16, %v6672_v18  ;;  %v6673_v53 = vadd.f32 %v6668_v23, %v6510_v57  ;;  %v15876_v59 = vpop.f32.mrb[159].mxu1  ;;  %v6848_v57 = vld [vmem:[#allocation92 + $0x38] sm:$0xff]  ;;  %v16776_v18 = vpack.c.bf16 %v6870_v15, %v6869_v8  ;;  %v6854_v23 = vld [vmem:[#allocation92 + $0x68] sm:$0xff] }
0x1ccb   :  { %v16766_v4 = vpack.c.bf16 %v6848_v57, %v6847_v56  ;;  %16765 = vmatprep.subr.bf16.mxu1 %v16764_v55  ;;  %v6872_v59 = vld [vmem:[#allocation92 + $0xf8] sm:$0xff]  ;;  %v16778_v24 = vpack.c.bf16 %v6854_v23, %v6853_v20  ;;  %v17371_v56 = vld [vmem:[#allocation37 + $0x8] sm:$0xff]   ;;  %v17373_v57 = vld [vmem:[#allocation37 + $0x10] sm:$0xff]  }
0x1ccc   :  { %6792 = vmatmul.mubr.f32.vlgmr.msra.gmra.mrb[108].mxu0 %v20704_v50  ;;  %v20708_v1 = vadd.f32 %v13782_v16, %v6673_v53  ;;  %v16774_v16 = vpack.c.bf16 %v6852_v61, %v6851_v13  ;;  %v6871_v53 = vld [vmem:[#allocation92 + $0xf0] sm:$0xff]  ;;  %v17370_v55 = vld [vmem:[#allocation37] sm:$0xff]   ;;  %v17379_v13 = vld [vmem:[#allocation37 + $0x28] sm:$0xff]  }
0x1ccd   :  { %6797 = vmatprep.mubr.f32.mxu0 %v19397_v19  ;;  %16767 = vmatpush3.bf16.msra.mxu1 %v16766_v4  ;;  %v17380_v61 = vld [vmem:[#allocation37 + $0x60] sm:$0xff]   ;;  %v17381_v8 = vld [vmem:[#allocation37 + $0x30] sm:$0xff]   ;;  %v17382_v15 = vld [vmem:[#allocation37 + $0x68] sm:$0xff]  }
0x1cce   :  { %16769 = vmatprep.subr.bf16.mxu1 %v16768_v7  ;;  %v19401_v7 = vmov 1.0|1.0   ;;  %v17385_v20 = vld [vmem:[#allocation37 + $0x78] sm:$0xff]  }
0x1cd0   :  { %6798 = vmatmul.mubr.f32.gmra.mrb[110].mxu0 %v20708_v1 }
0x1cd1   :  { %15881 = vmatprep.mubr.msk.f32.mxu0 %vm19398_vm5, %v19397_v19  ;;  %16771 = vmatpush3.bf16.msra.mxu1 %v16770_v17  ;;  %v17376_v17 = vld [vmem:[#allocation37 + $0x50] sm:$0xff]  }
0x1cd2   :  { %16773 = vmatprep.subr.bf16.mxu1 %v16772_v31  ;;  %v17378_v31 = vld [vmem:[#allocation37 + $0x58] sm:$0xff]  }
0x1cd5   :  { %16775 = vmatpush3.bf16.msra.mxu1 %v16774_v16  ;;  %v17383_v16 = vld [vmem:[#allocation37 + $0x38] sm:$0xff]  }
0x1cd6   :  { %16777 = vmatprep.subr.bf16.mxu1 %v16776_v18  ;;  %v17384_v18 = vld [vmem:[#allocation37 + $0x70] sm:$0xff]  }
0x1cd9   :  { %16779 = vmatpush3.bf16.msra.mxu1 %v16778_v24 }
0x1d9f   :  { %v6793_v29 = vpop.f32.mrb[108].mxu0 }
0x1da0   :  { %v20722_v12 = vadd.f32 %v6793_v29, %v6720_v26  ;;  %v6795_v22 = vpop.f32.mrb[109].mxu0  ;;  %v6856_v29 = vld [vmem:[#allocation92 + $0x78] sm:$0xff] }
0x1da1   :  { %v20724_v34 = vadd.f32 %v6795_v22, %v6724_v27 }
0x1da3   :  { %v6799_v35 = vpop.f32.mrb[110].mxu0  ;;  %v6809_v2 = vmin.f32 %v20722_v12, %v20724_v34 }
0x1da4   :  { %v20728_v60 = vadd.f32 %v6799_v35, %v6720_v26  ;;  %v6801_v63 = vpop.f32.mrb[111].mxu0  ;;  %v16780_v26 = vpack.c.bf16 %v6872_v59, %v6871_v53  ;;  %v6805_v35 = vand.u32 127, %v6717_v5 }
0x1da5   :  { %v20730_v3 = vadd.f32 %v6801_v63, %v6724_v27  ;;  %6810 = vmin.xlane.f32.xlu0 %v6809_v2  ;;  %v6855_v27 = vld [vmem:[#allocation92 + $0x70] sm:$0xff] }
0x1da6   :  { %v16782_v22 = vpack.c.bf16 %v6856_v29, %v6855_v27  ;;  %16781 = vmatprep.subr.bf16.mxu1 %v16780_v26  ;;  %v6806_v2 = vadd.s32 128, %v6805_v35  ;;  %v6807_v63 = vcvt.s32.f32 %v6805_v35 }
0x1da7   :  { %v6812_v36 = vmin.f32 %v20728_v60, %v20730_v3 }
0x1da8   :  { %16783 = vmatpush3.bf16.msra.mxu1 %v16782_v22 }
0x1da9   :  { %6813 = vmin.xlane.f32.xlu0 %v6812_v36  ;;  %15916 = vmatprep.subr.bf16.mxu1 %v19397_v19  ;;  %v6808_v36 = vcvt.s32.f32 %v6806_v2 }
0x1e32   :  { %v6811_v37 = vpop.xlane.xlu0 %6810 }
0x1e33   :  { %vm6815_vm7 = vcmp.le.f32.partialorder %v20722_v12, %v6811_v37  ;;  %vm6816_vm8 = vcmp.le.f32.partialorder %v20724_v34, %v6811_v37 }
0x1e34   :  { %v6819_v39 = vsel %vm6815_vm7, %v6807_v63, 256.0  ;;  %v6820_v32 = vsel %vm6816_vm8, %v6808_v36, 256.0  ;;  %vm7112_vm7 = vcmask 1040384  }
0x1e35   :  { %v6823_v6 = vmin.f32 %v6819_v39, %v6820_v32 }
0x1e36   :  { %v6814_v40 = vpop.xlane.xlu0 %6813 }
0x1e37   :  { %vm6817_vm9 = vcmp.le.f32.partialorder %v20728_v60, %v6814_v40  ;;  %vm6818_vm10 = vcmp.le.f32.partialorder %v20730_v3, %v6814_v40  ;;  %6824 = vmin.xlane.f32.xlu1 %v6823_v6 }
0x1e38   :  { %v6821_v54 = vsel %vm6817_vm9, %v6807_v63, 256.0  ;;  %v6822_v28 = vsel %vm6818_vm10, %v6808_v36, 256.0 }
0x1e39   :  { %v6826_v5 = vmin.f32 %v6821_v54, %v6822_v28 }
0x1e3b   :  { %6827 = vmin.xlane.f32.xlu1 %v6826_v5 }
0x1ec4   :  { %v6825_v33 = vpop.xlane.xlu1 %6824 }
0x1ec5   :  { %vm6829_vm11 = vcmp.eq.f32.partialorder %v6807_v63, %v6825_v33  ;;  %vm6830_vm12 = vcmp.eq.f32.partialorder %v6808_v36, %v6825_v33 }
0x1ec6   :  { %13787 = vmatprep.mubr.msk.f32.mxu1 %vm6830_vm12, %v19399_v38 }
0x1ec7   :  { %13788 = vmatmul.mubr.msk.f32.vlgmr.msra.gmra.mrb[160].mxu1 %vm6829_vm11, %v19399_v38 }
0x1ec8   :  { %v6828_v12 = vpop.xlane.xlu1 %6827  ;;  %15917 = vmatpush3.bf16.msra.mxu1 %v17370_v55 }
0x1ec9   :  { %vm6831_vm13 = vcmp.eq.f32.partialorder %v6807_v63, %v6828_v12  ;;  %vm6832_vm14 = vcmp.eq.f32.partialorder %v6808_v36, %v6828_v12  ;;  %15918 = vmatprep.subr.bf16.mxu1 %v19397_v19 }
0x1eca   :  { %vm20740_vm15 = vmpackc.low %vm6832_vm14, %vm6830_vm12  ;;  %13789 = vmatprep.mubr.msk.f32.mxu1 %vm6832_vm14, %v19399_v38 }
0x1ecb   :  { %vm20744_vm1 = vmpackc.low %vm6831_vm13, %vm6829_vm11  ;;  %13790 = vmatmul.mubr.msk.f32.gmra.mrb[162].mxu1 %vm6831_vm13, %v19399_v38 }
0x1ecc   :  { %15932 = vmatprep.mubr.msk.bf16.mxu1 %vm19398_vm5, %v19397_v19  ;;  %15919 = vmatpush3.bf16.msra.mxu1 %v17371_v56 }
0x1ecd   :  { %15920 = vmatprep.subr.bf16.mxu1 %v19397_v19 }
0x1ed0   :  { %15921 = vmatpush3.bf16.msra.mxu1 %v17373_v57 }
0x1ed1   :  { %15922 = vmatprep.subr.bf16.mxu1 %v19397_v19 }
0x1f9a   :  { %v14748_v3 = vpop.f32.mrb[160].mxu1 }
0x1f9b   :  { %v14749_v41 = vpop.f32.mrb[161].mxu1 }
0x1f9c   :  { %v14750_v42 = vadd.f32 %v14749_v41, %v14748_v3 }
0x1f9e   :  { %v14751_v43 = vpop.f32.mrb[162].mxu1  ;;  %v6948_v44 = vsub.f32 %v20704_v50, %v14750_v42  ;;  %v17375_v50 = vld [vmem:[#allocation37 + $0x18] sm:$0xff]  }
0x1f9f   :  { %v14752_v45 = vpop.f32.mrb[163].mxu1  ;;  %15923 = vmatpush3.bf16.msra.mxu1 %v17375_v50 }
0x1fa0   :  { %v14753_v46 = vadd.f32 %v14752_v45, %v14751_v43  ;;  %v6950_v47 = vmul.f32 %v6948_v44, %v6948_v44  ;;  %15924 = vmatprep.subr.bf16.mxu1 %v19397_v19  ;;  %v17387_v44 = vld [vmem:[#allocation37 + $0x80] sm:$0xff]   ;;  %v17388_v45 = vld [vmem:[#allocation37 + $0x88] sm:$0xff]  }
0x1fa2   :  { %v20751_v48 = vpack.c.bf16 %v14753_v46, %v14750_v42  ;;  %6952 = vadd.xlane.f32.xlu0 %v6950_v47  ;;  %v6949_v49 = vsub.f32 %v20708_v1, %v14753_v46  ;;  %v17386_v42 = vld [vmem:[#allocation35 + $0x10] sm:$0xff]   ;;  %v17389_v46 = vld [vmem:[#allocation37 + $0x90] sm:$0xff]  }
0x1fa3   :  { %15925 = vmatpush3.bf16.msra.mxu1 %v17377_v58  ;;  %v17390_v47 = vld [vmem:[#allocation37 + $0x98] sm:$0xff]  }
0x1fa4   :  { %v6951_v51 = vmul.f32 %v6949_v49, %v6949_v49  ;;  %15926 = vmatprep.subr.bf16.mxu1 %v19397_v19  ;;  %v17392_v49 = vld [vmem:[#allocation37 + $0xa8] sm:$0xff]  }
0x1fa6   :  { %6954 = vadd.xlane.f32.xlu1 %v6951_v51  ;;  %v17393_v51 = vld [vmem:[#allocation37 + $0xb0] sm:$0xff]  }
0x1fa7   :  { %15927 = vmatpush3.bf16.msra.mxu1 %v17379_v13 }
0x1fa8   :  { %15928 = vmatprep.subr.bf16.mxu1 %v19397_v19 }
0x1fab   :  { %15929 = vmatpush3.bf16.msra.mxu1 %v17381_v8 }
0x1fac   :  { %15930 = vmatprep.subr.bf16.mxu1 %v19397_v19 }
0x1faf   :  { %15931 = vmatpush3.bf16.msra.mxu1 %v17383_v16  ;;  %v17397_v16 = vld [vmem:[#allocation5] sm:$0xff]  }
0x1fb0   :  { %15942 = vmatprep.subr.bf16.mxu1 %v19397_v19 }
0x202f   :  { %v6953_v1 = vpop.xlane.xlu0 %6952 }
0x2033   :  { %v6955_v62 = vpop.xlane.xlu1 %6954 }
0x2034   :  { %v16785_v4 = vpack.c.bf16 %v6955_v62, %v6953_v1 }
0x2036   :  { %16786 = vmatpush3.bf16.msra.mxu0 %v16785_v4 }
0x2037   :  { %16788 = vmatprep.subr.msk.bf16.mxu0 %vm20740_vm15, %v19401_v7 }
0x2039   :  { %15882 = vmatmul.mubr.msk.f32.vlgmr.msra.gmra.mrb[112].mxu0 %vm4993_vm6, %v19399_v38 }
0x203a   :  { %16790 = vmatpush1.bf16.msk.msra.mxu0 %vm20744_vm1, %v19401_v7  ;;  %7095 = vmatprep.mubr.f32.mxu0 %v19397_v19 }
0x203b   :  { %15884 = vmatprep.subr.bf16.mxu0 %v19397_v19 }
0x203d   :  { %13796 = vmatmul.mubr.msk.f32.vlgmr.msra.gmra.mrb[114].mxu0 %vm4993_vm6, %v19399_v38 }
0x203e   :  { %15885 = vmatpush3.bf16.msra.mxu0 %v20751_v48  ;;  %15886 = vmatprep.mubr.msk.bf16.mxu0 %vm19398_vm5, %v19397_v19 }
0x203f   :  { %15890 = vmatprep.subr.bf16.mxu0 %v19397_v19 }
0x2041   :  { %15887 = vmatmul.mubr.msk.bf16.vlgmr.msra.gmra.mrb[116].mxu0 %vm4993_vm6, %v17368_v9 }
0x2042   :  { %15891 = vmatpush3.bf16.msra.mxu0 %v20751_v48  ;;  %15892 = vmatprep.mubr.msk.bf16.mxu0 %vm19398_vm5, %v19397_v19 }
0x2043   :  { %15896 = vmatprep.subr.bf16.mxu0 %v19397_v19 }
0x2049   :  { %15893 = vmatmul.mubr.msk.bf16.vlgmr.msra.gmra.mrb[120].mxu0 %vm4993_vm6, %v17369_v10 }
0x204a   :  { %15897 = vmatpush3.bf16.msra.mxu0 %v17372_v30  ;;  %15912 = vmatprep.mubr.msk.bf16.mxu0 %vm19398_vm5, %v19397_v19 }
0x204b   :  { %15898 = vmatprep.subr.bf16.mxu0 %v19397_v19 }
0x204e   :  { %15899 = vmatpush3.bf16.msra.mxu0 %v17374_v11 }
0x204f   :  { %15900 = vmatprep.subr.bf16.mxu0 %v19397_v19 }
0x2052   :  { %15901 = vmatpush3.bf16.msra.mxu0 %v17376_v17 }
0x2053   :  { %15902 = vmatprep.subr.bf16.mxu0 %v19397_v19 }
0x2056   :  { %15903 = vmatpush3.bf16.msra.mxu0 %v17378_v31 }
0x2057   :  { %15904 = vmatprep.subr.bf16.mxu0 %v19397_v19 }
0x205a   :  { %15905 = vmatpush3.bf16.msra.mxu0 %v17380_v61 }
0x205b   :  { %15906 = vmatprep.subr.bf16.mxu0 %v19397_v19 }
0x205e   :  { %15907 = vmatpush3.bf16.msra.mxu0 %v17382_v15 }
0x205f   :  { %15908 = vmatprep.subr.bf16.mxu0 %v19397_v19 }
0x2062   :  { %15909 = vmatpush3.bf16.msra.mxu0 %v17384_v18  ;;  %v17398_v18 = vld [vmem:[#allocation5 + $0x8] sm:$0xff]  }
0x2063   :  { %15910 = vmatprep.subr.bf16.mxu0 %v19397_v19 }
0x2066   :  { %15911 = vmatpush3.bf16.msra.mxu0 %v17385_v20  ;;  %v17400_v20 = vld [vmem:[#allocation5 + $0x10] sm:$0xff]  }
0x2067   :  { %15936 = vmatprep.subr.bf16.mxu0 %v19397_v19 }
0x210c   :  { %v7025_v23 = vpop.f32.mrb[112].mxu0 }
0x210d   :  { %v7030_v53 = vmul.f32 0.00048828125, %v7025_v23  ;;  %v15883_v59 = vpop.f32.mrb[113].mxu0  ;;  %v17402_v23 = vld [vmem:[#allocation5 + $0x18] sm:$0xff]  }
0x210e   :  { %v17406_v59 = vld [vmem:[#allocation5 + $0x28] sm:$0xff]  }
0x210f   :  { %13207 = vst.msk [vmem:[#allocation99] sm:$0x1] %vm13206_vm2, %v7030_v53  ;;  %v17404_v53 = vld [vmem:[#allocation5 + $0x20] sm:$0xff]  }
0x2110   :  { %v7097_v24 = vpop.f32.mrb[114].mxu0 }
0x2111   :  { %v7102_v26 = vmul.f32 0.0625, %v7097_v24  ;;  %v7099_v27 = vpop.f32.mrb[115].mxu0  ;;  %v17408_v24 = vld [vmem:[#allocation5 + $0x30] sm:$0xff]  }
0x2112   :  { %v7103_v29 = vmul.f32 0.0625, %v7099_v27  ;;  %v13827_v27 = vld [vmem:[#allocation34] ss:$0 sm:$0xff] }
0x2113   :  { %v7104_v22 = vadd.f32 1e-07, %v7102_v26 }
0x2114   :  { %v7105_v35 = vadd.f32 1e-07, %v7103_v29  ;;  %v7166_v2 = vpop.f32.mrb[116].mxu0 }
0x2115   :  { %17727 = vlog2.f32 %v7104_v22  ;;  %v15888_v63 = vpop.f32.mrb[117].mxu0 }
0x2116   :  { %17729 = vlog2.f32 %v7105_v35  ;;  %v7169_v36 = vpop.f32.mrb[118].mxu0 }
0x2117   :  { %v7173_v37 = vpack.c.bf16 %v7169_v36, %v7166_v2  ;;  %v15889_v39 = vpop.f32.mrb[119].mxu0 }
0x2119   :  { %15933 = vmatmul.mubr.bf16.vlgmr.msra.gmra.mrb[164].mxu1 %v7173_v37 }
0x211a   :  { %15958 = vmatprep.mubr.msk.bf16.mxu1 %vm19398_vm5, %v19397_v19  ;;  %15943 = vmatpush3.bf16.msra.mxu1 %v17387_v44 }
0x211b   :  { %15944 = vmatprep.subr.bf16.mxu1 %v19397_v19 }
0x211c   :  { %v7235_v32 = vpop.f32.mrb[120].mxu0 }
0x211d   :  { %v15894_v6 = vpop.f32.mrb[121].mxu0 }
0x211e   :  { %v7238_v40 = vpop.f32.mrb[122].mxu0  ;;  %15945 = vmatpush3.bf16.msra.mxu1 %v17388_v45 }
0x211f   :  { %v17728_v54 = vpop.eup %17727  ;;  %v7242_v28 = vpack.c.bf16 %v7238_v40, %v7235_v32  ;;  %v15895_v5 = vpop.f32.mrb[123].mxu0  ;;  %15946 = vmatprep.subr.bf16.mxu1 %v19397_v19 }
0x2120   :  { %v17730_v33 = vpop.eup %17729  ;;  %v7107_v38 = vmul.f32 0.6931472, %v17728_v54  ;;  %v17396_v5 = vld [vmem:[#allocation2 + $0x8] sm:$0xff]  }
0x2121   :  { %v7109_v12 = vmul.f32 0.6931472, %v17730_v33  ;;  %15913 = vmatmul.mubr.bf16.vlgmr.msra.gmra.mrb[124].mxu0 %v7242_v28  ;;  %v17395_v28 = vld [vmem:[#allocation2] sm:$0xff]   ;;  %v17399_v33 = vld [vmem:[#allocation5 + $0x40] sm:$0xff]  }
0x2122   :  { %v7110_v34 = vmul.f32 %v7107_v38, %v7102_v26  ;;  %15937 = vmatpush3.bf16.msra.mxu0 %v20751_v48  ;;  %15938 = vmatprep.mubr.msk.bf16.mxu0 %vm19398_vm5, %v19397_v19  ;;  %v17391_v48 = vld [vmem:[#allocation37 + $0xa0] sm:$0xff]   ;;  %v17401_v38 = vld [vmem:[#allocation5 + $0x48] sm:$0xff]  }
0x2123   :  { %v7111_v60 = vmul.f32 %v7109_v12, %v7103_v29  ;;  %15962 = vmatprep.subr.bf16.mxu0 %v19397_v19  ;;  %15947 = vmatpush3.bf16.msra.mxu1 %v17389_v46  ;;  %v17403_v12 = vld [vmem:[#allocation5 + $0x50] sm:$0xff]  }
0x2124   :  { %v7113_v3 = vsel %vm7112_vm7, %v7110_v34, 0.0  ;;  %15948 = vmatprep.subr.bf16.mxu1 %v19397_v19  ;;  %v17405_v34 = vld [vmem:[#allocation5 + $0x58] sm:$0xff]  }
0x2125   :  { %v7114_v41 = vsel %vm7112_vm7, %v7111_v60, 0.0  ;;  %v17407_v60 = vld [vmem:[#allocation5 + $0x60] sm:$0xff]  }
0x2126   :  { %v7115_v43 = vadd.f32 %v7114_v41, %v7113_v3  ;;  %v17409_v3 = vld [vmem:[#allocation5 + $0x68] sm:$0xff]   ;;  %v17410_v41 = vld [vmem:[#allocation5 + $0x38] sm:$0xff]  }
0x2127   :  { %15949 = vmatpush3.bf16.msra.mxu1 %v17390_v47 }
0x2128   :  { %7116 = vadd.xlane.f32.xlu0 %v7115_v43  ;;  %15950 = vmatprep.subr.bf16.mxu1 %v19397_v19  ;;  %v17412_v43 = vld [vmem:[#allocation5 + $0x78] sm:$0xff]  }
0x2129   :  { %15939 = vmatmul.mubr.msk.bf16.vlgmr.msra.gmra.mrb[128].mxu0 %vm4993_vm6, %v17386_v42  ;;  %v17411_v42 = vld [vmem:[#allocation5 + $0x70] sm:$0xff]  }
0x212a   :  { %15964 = vmatprep.mubr.msk.bf16.mxu0 %vm19398_vm5, %v19397_v19 }
0x212b   :  { %15951 = vmatpush3.bf16.msra.mxu1 %v17391_v48 }
0x212c   :  { %15952 = vmatprep.subr.bf16.mxu1 %v19397_v19 }
0x212f   :  { %15953 = vmatpush3.bf16.msra.mxu1 %v17392_v49 }
0x2130   :  { %15954 = vmatprep.subr.bf16.mxu1 %v19397_v19 }
0x2133   :  { %15955 = vmatpush3.bf16.msra.mxu1 %v17393_v51 }
0x2134   :  { %15956 = vmatprep.subr.bf16.mxu1 %v19397_v19 }
0x2137   :  { %15957 = vmatpush3.bf16.msra.mxu1 %v17394_v52 }
0x2138   :  { %15994 = vmatprep.subr.bf16.mxu1 %v19397_v19 }
0x21b5   :  { %v7117_v55 = vpop.xlane.xlu0 %7116 }
0x21b6   :  { %v7118_v56 = vsub.f32 0.0, %v7117_v55 }
0x21b8   :  { %v7119_v57 = vmul.f32 1.442695, %v7118_v56 }
0x21ba   :  { %17731 = vpow2.f32 %v7119_v57  ;;  %v17413_v57 = vld [vmem:[#allocation2 + $0x10] sm:$0xff]  }
0x21c4   :  { %v17732_v50 = vpop.eup %17731 }
0x21c5   :  { %13208 = vst.msk [vmem:[#allocation101] sm:$0x1] %vm13206_vm2, %v17732_v50  ;;  %v17414_v50 = vld [vmem:[#allocation5 + $0x80] sm:$0xff]  }
0x21ec   :  { %v7431_v58 = vpop.f32.mrb[164].mxu1 }
0x21ed   :  { %v15934_v1 = vpop.f32.mrb[165].mxu1 }
0x21ee   :  { %v7434_v62 = vpop.f32.mrb[166].mxu1  ;;  %v17416_v1 = vld [vmem:[#allocation5 + $0x90] sm:$0xff]  }
0x21ef   :  { %v15935_v4 = vpop.f32.mrb[167].mxu1 }
0x21f0   :  { %v17418_v4 = vld [vmem:[#allocation5 + $0xa0] sm:$0xff]  }
0x21f4   :  { %v7342_v7 = vpop.f32.mrb[124].mxu0 }
0x21f5   :  { %v7432_v9 = vadd.f32 %v7431_v58, %v7342_v7  ;;  %v15914_v10 = vpop.f32.mrb[125].mxu0  ;;  %v17415_v58 = vld [vmem:[#allocation5 + $0x88] sm:$0xff]  }
0x21f6   :  { %v7345_v30 = vpop.f32.mrb[126].mxu0  ;;  %v17419_v7 = vld [vmem:[#allocation5 + $0xa8] sm:$0xff]   ;;  %v17421_v10 = vld [vmem:[#allocation5 + $0xb8] sm:$0xff]  }
0x21f7   :  { %v7435_v11 = vadd.f32 %v7434_v62, %v7345_v30  ;;  %v15915_v17 = vpop.f32.mrb[127].mxu0  ;;  %v17417_v62 = vld [vmem:[#allocation5 + $0x98] sm:$0xff]   ;;  %v17422_v30 = vld [vmem:[#allocation7] sm:$0xff]  }
0x21f8   :  { %v17424_v17 = vld [vmem:[#allocation7 + $0x10] sm:$0xff]  }
0x21fc   :  { %v7483_v31 = vpop.f32.mrb[128].mxu0 }
0x21fd   :  { %v15940_v13 = vpop.f32.mrb[129].mxu0 }
0x21fe   :  { %v7486_v61 = vpop.f32.mrb[130].mxu0  ;;  %v17426_v13 = vld [vmem:[#allocation7 + $0x20] sm:$0xff]  }
0x21ff   :  { %v7490_v8 = vpack.c.bf16 %v7486_v61, %v7483_v31  ;;  %v15941_v15 = vpop.f32.mrb[131].mxu0  ;;  %v17425_v31 = vld [vmem:[#allocation7 + $0x18] sm:$0xff]  }
0x2201   :  { %15959 = vmatmul.mubr.bf16.vlgmr.msra.gmra.mrb[168].mxu1 %v7490_v8 }
0x2202   :  { %16010 = vmatprep.mubr.msk.bf16.mxu1 %vm19398_vm5, %v19397_v19  ;;  %15995 = vmatpush3.bf16.msra.mxu1 %v17397_v16 }
0x2203   :  { %15996 = vmatprep.subr.bf16.mxu1 %v19397_v19 }
0x2206   :  { %15997 = vmatpush3.bf16.msra.mxu1 %v17398_v18 }
0x2207   :  { %15998 = vmatprep.subr.bf16.mxu1 %v19397_v19 }
0x220a   :  { %15999 = vmatpush3.bf16.msra.mxu1 %v17400_v20 }
0x220b   :  { %16000 = vmatprep.subr.bf16.mxu1 %v19397_v19 }
0x220e   :  { %16001 = vmatpush3.bf16.msra.mxu1 %v17402_v23 }
0x220f   :  { %16002 = vmatprep.subr.bf16.mxu1 %v19397_v19 }
0x2212   :  { %16003 = vmatpush3.bf16.msra.mxu1 %v17404_v53 }
0x2213   :  { %16004 = vmatprep.subr.bf16.mxu1 %v19397_v19 }
0x2216   :  { %16005 = vmatpush3.bf16.msra.mxu1 %v17406_v59 }
0x2217   :  { %16006 = vmatprep.subr.bf16.mxu1 %v19397_v19 }
0x221a   :  { %16007 = vmatpush3.bf16.msra.mxu1 %v17408_v24 }
0x221b   :  { %16008 = vmatprep.subr.bf16.mxu1 %v19397_v19 }
0x221e   :  { %16009 = vmatpush3.bf16.msra.mxu1 %v17410_v41 }
0x221f   :  { %16040 = vmatprep.subr.bf16.mxu1 %v19397_v19 }
0x22d4   :  { %v7590_v26 = vpop.f32.mrb[168].mxu1 }
0x22d5   :  { %v7597_v29 = vadd.f32 %v7590_v26, %v7432_v9  ;;  %v15960_v22 = vpop.f32.mrb[169].mxu1  ;;  %v17420_v9 = vld [vmem:[#allocation5 + $0xb0] sm:$0xff]  }
0x22d6   :  { %v7593_v35 = vpop.f32.mrb[170].mxu1 }
0x22d7   :  { %v20818_v2 = vadd.f32 %v13827_v27, %v7597_v29  ;;  %v7598_v63 = vadd.f32 %v7593_v35, %v7435_v11  ;;  %v15961_v36 = vpop.f32.mrb[171].mxu1  ;;  %v17423_v11 = vld [vmem:[#allocation7 + $0x8] sm:$0xff]  }
0x22d8   :  { %v17428_v36 = vld [vmem:[#allocation7 + $0x30] sm:$0xff]  }
0x22d9   :  { %v7608_v37 = vmax.f32 %v20818_v2, 0.0  ;;  %v20821_v39 = vadd.f32 %v13827_v27, %v7598_v63  ;;  %v17427_v63 = vld [vmem:[#allocation7 + $0x28] sm:$0xff]   ;;  %v17432_v2 = vld [vmem:[#allocation11 + $0x40] sm:$0xff]  }
0x22db   :  { %v7609_v32 = vmax.f32 %v20821_v39, 0.0  ;;  %v7610_v6 = vmax.f32 %v7608_v37, 0.0  ;;  %v17434_v39 = vld [vmem:[#allocation11 + $0x48] sm:$0xff]  }
0x22dd   :  { %v7611_v40 = vmax.f32 %v7609_v32, 0.0 }
0x22df   :  { %v7612_v54 = vpack.c.bf16 %v7611_v40, %v7610_v6  ;;  %v17429_v6 = vld [vmem:[#allocation7 + $0x38] sm:$0xff]  }
0x22e1   :  { %15963 = vmatpush3.bf16.msra.mxu0 %v7612_v54 }
0x22e2   :  { %15968 = vmatprep.subr.bf16.mxu0 %v19397_v19 }
0x22e4   :  { %15965 = vmatmul.mubr.msk.bf16.vlgmr.msra.gmra.mrb[132].mxu0 %vm4993_vm6, %v17395_v28 }
0x22e5   :  { %15969 = vmatpush3.bf16.msra.mxu0 %v7612_v54  ;;  %15970 = vmatprep.mubr.msk.bf16.mxu0 %vm19398_vm5, %v19397_v19 }
0x22e6   :  { %15974 = vmatprep.subr.bf16.mxu0 %v19397_v19 }
0x22ec   :  { %15971 = vmatmul.mubr.msk.bf16.vlgmr.msra.gmra.mrb[136].mxu0 %vm4993_vm6, %v17396_v5 }
0x22ed   :  { %15975 = vmatpush3.bf16.msra.mxu0 %v17399_v33  ;;  %15990 = vmatprep.mubr.msk.bf16.mxu0 %vm19398_vm5, %v19397_v19 }
0x22ee   :  { %15976 = vmatprep.subr.bf16.mxu0 %v19397_v19 }
0x22f1   :  { %15977 = vmatpush3.bf16.msra.mxu0 %v17401_v38 }
0x22f2   :  { %15978 = vmatprep.subr.bf16.mxu0 %v19397_v19 }
0x22f5   :  { %15979 = vmatpush3.bf16.msra.mxu0 %v17403_v12 }
0x22f6   :  { %15980 = vmatprep.subr.bf16.mxu0 %v19397_v19 }
0x22f9   :  { %15981 = vmatpush3.bf16.msra.mxu0 %v17405_v34 }
0x22fa   :  { %15982 = vmatprep.subr.bf16.mxu0 %v19397_v19 }
0x22fd   :  { %15983 = vmatpush3.bf16.msra.mxu0 %v17407_v60 }
0x22fe   :  { %15984 = vmatprep.subr.bf16.mxu0 %v19397_v19 }
0x2301   :  { %15985 = vmatpush3.bf16.msra.mxu0 %v17409_v3 }
0x2302   :  { %15986 = vmatprep.subr.bf16.mxu0 %v19397_v19 }
0x2305   :  { %15987 = vmatpush3.bf16.msra.mxu0 %v17411_v42 }
0x2306   :  { %15988 = vmatprep.subr.bf16.mxu0 %v19397_v19 }
0x2309   :  { %15989 = vmatpush3.bf16.msra.mxu0 %v17412_v43  ;;  %v13859_v43 = vld [vmem:[%s21436_s29] ss:$0 sm:$0xff] }
0x230a   :  { %16014 = vmatprep.subr.bf16.mxu0 %v19397_v19 }
0x23b7   :  { %v7657_v44 = vpop.f32.mrb[132].mxu0 }
0x23b8   :  { %v15966_v45 = vpop.f32.mrb[133].mxu0 }
0x23b9   :  { %v7660_v46 = vpop.f32.mrb[134].mxu0 }
0x23ba   :  { %v7664_v47 = vpack.c.bf16 %v7660_v46, %v7657_v44  ;;  %v15967_v48 = vpop.f32.mrb[135].mxu0 }
0x23bc   :  { %16011 = vmatmul.mubr.bf16.vlgmr.msra.gmra.mrb[172].mxu1 %v7664_v47 }
0x23bd   :  { %16056 = vmatprep.mubr.msk.bf16.mxu1 %vm19398_vm5, %v19397_v19  ;;  %16041 = vmatpush3.bf16.msra.mxu1 %v17422_v30  ;;  %v17442_v30 = vld [vmem:[#allocation11 + $0x68] sm:$0xff]  }
0x23be   :  { %16042 = vmatprep.subr.bf16.mxu1 %v19397_v19 }
0x23bf   :  { %v7726_v49 = vpop.f32.mrb[136].mxu0 }
0x23c0   :  { %v15972_v51 = vpop.f32.mrb[137].mxu0 }
0x23c1   :  { %v7729_v52 = vpop.f32.mrb[138].mxu0  ;;  %16043 = vmatpush3.bf16.msra.mxu1 %v17423_v11  ;;  %v17443_v11 = vld [vmem:[#allocation11 + $0x28] sm:$0xff]  }
0x23c2   :  { %v7733_v55 = vpack.c.bf16 %v7729_v52, %v7726_v49  ;;  %v15973_v56 = vpop.f32.mrb[139].mxu0  ;;  %16044 = vmatprep.subr.bf16.mxu1 %v19397_v19 }
0x23c4   :  { %15991 = vmatmul.mubr.bf16.vlgmr.msra.gmra.mrb[140].mxu0 %v7733_v55 }
0x23c5   :  { %16015 = vmatpush3.bf16.msra.mxu0 %v7612_v54  ;;  %16016 = vmatprep.mubr.msk.bf16.mxu0 %vm19398_vm5, %v19397_v19  ;;  %v13858_v54 = vld [vmem:[%s21435_s25] ss:$0 sm:$0xff] }
0x23c6   :  { %16020 = vmatprep.subr.bf16.mxu0 %v19397_v19  ;;  %16045 = vmatpush3.bf16.msra.mxu1 %v17424_v17  ;;  %v17444_v17 = vld [vmem:[#allocation11 + $0x70] sm:$0xff]  }
0x23c7   :  { %16046 = vmatprep.subr.bf16.mxu1 %v19397_v19 }
0x23ca   :  { %16047 = vmatpush3.bf16.msra.mxu1 %v17425_v31  ;;  %v17445_v31 = vld [vmem:[#allocation11 + $0x30] sm:$0xff]  }
0x23cb   :  { %16048 = vmatprep.subr.bf16.mxu1 %v19397_v19 }
0x23cc   :  { %16017 = vmatmul.mubr.msk.bf16.vlgmr.msra.gmra.mrb[144].mxu0 %vm4993_vm6, %v17413_v57 }
0x23cd   :  { %16021 = vmatpush3.bf16.msra.mxu0 %v17414_v50  ;;  %16036 = vmatprep.mubr.msk.bf16.mxu0 %vm19398_vm5, %v19397_v19  ;;  %v17430_v50 = vld [vmem:[#allocation10] sm:$0xff]  }
0x23ce   :  { %16022 = vmatprep.subr.bf16.mxu0 %v19397_v19  ;;  %16049 = vmatpush3.bf16.msra.mxu1 %v17426_v13  ;;  %v17446_v13 = vld [vmem:[#allocation11 + $0x78] sm:$0xff]  }
0x23cf   :  { %16050 = vmatprep.subr.bf16.mxu1 %v19397_v19 }
0x23d1   :  { %16023 = vmatpush3.bf16.msra.mxu0 %v17415_v58  ;;  %v17431_v58 = vld [vmem:[#allocation10 + $0x8] sm:$0xff]  }
0x23d2   :  { %16024 = vmatprep.subr.bf16.mxu0 %v19397_v19  ;;  %16051 = vmatpush3.bf16.msra.mxu1 %v17427_v63  ;;  %v17452_v63 = vld [vmem:[#allocation11 + $0x98] sm:$0xff]  }
0x23d3   :  { %16052 = vmatprep.subr.bf16.mxu1 %v19397_v19 }
0x23d5   :  { %16025 = vmatpush3.bf16.msra.mxu0 %v17416_v1  ;;  %v17436_v1 = vld [vmem:[#allocation11 + $0x50] sm:$0xff]  }
0x23d6   :  { %16026 = vmatprep.subr.bf16.mxu0 %v19397_v19  ;;  %16053 = vmatpush3.bf16.msra.mxu1 %v17428_v36  ;;  %v17453_v36 = vld [vmem:[#allocation11 + $0xa0] sm:$0xff]  }
0x23d7   :  { %16054 = vmatprep.subr.bf16.mxu1 %v19397_v19 }
0x23d9   :  { %16027 = vmatpush3.bf16.msra.mxu0 %v17417_v62  ;;  %v17437_v62 = vld [vmem:[#allocation11 + $0x10] sm:$0xff]  }
0x23da   :  { %16028 = vmatprep.subr.bf16.mxu0 %v19397_v19  ;;  %16055 = vmatpush3.bf16.msra.mxu1 %v17429_v6  ;;  %v17454_v6 = vld [vmem:[#allocation11 + $0xa8] sm:$0xff]  }
0x23db   :  { %16066 = vmatprep.subr.bf16.mxu1 %v19397_v19 }
0x23dd   :  { %16029 = vmatpush3.bf16.msra.mxu0 %v17418_v4  ;;  %v17438_v4 = vld [vmem:[#allocation11 + $0x58] sm:$0xff]  }
0x23de   :  { %16030 = vmatprep.subr.bf16.mxu0 %v19397_v19 }
0x23e1   :  { %16031 = vmatpush3.bf16.msra.mxu0 %v17419_v7  ;;  %v17439_v7 = vld [vmem:[#allocation11 + $0x18] sm:$0xff]  }
0x23e2   :  { %16032 = vmatprep.subr.bf16.mxu0 %v19397_v19 }
0x23e5   :  { %16033 = vmatpush3.bf16.msra.mxu0 %v17420_v9  ;;  %v17440_v9 = vld [vmem:[#allocation11 + $0x60] sm:$0xff]  }
0x23e6   :  { %16034 = vmatprep.subr.bf16.mxu0 %v19397_v19 }
0x23e9   :  { %16035 = vmatpush3.bf16.msra.mxu0 %v17421_v10  ;;  %v17441_v10 = vld [vmem:[#allocation11 + $0x20] sm:$0xff]  }
0x23ea   :  { %16060 = vmatprep.subr.bf16.mxu0 %v19397_v19 }
0x248f   :  { %v7922_v61 = vpop.f32.mrb[172].mxu1 }
0x2490   :  { %v16012_v8 = vpop.f32.mrb[173].mxu1 }
0x2491   :  { %v7925_v15 = vpop.f32.mrb[174].mxu1 }
0x2492   :  { %v16013_v16 = vpop.f32.mrb[175].mxu1 }
0x2497   :  { %v7833_v18 = vpop.f32.mrb[140].mxu0 }
0x2498   :  { %v7923_v20 = vadd.f32 %v7922_v61, %v7833_v18  ;;  %v15992_v23 = vpop.f32.mrb[141].mxu0  ;;  %v17447_v61 = vld [vmem:[#allocation11 + $0x38] sm:$0xff]  }
0x2499   :  { %v7836_v53 = vpop.f32.mrb[142].mxu0 }
0x249a   :  { %v7926_v59 = vadd.f32 %v7925_v15, %v7836_v53  ;;  %v15993_v24 = vpop.f32.mrb[143].mxu0 }
0x249f   :  { %v7974_v26 = vpop.f32.mrb[144].mxu0 }
0x24a0   :  { %v16018_v27 = vpop.f32.mrb[145].mxu0 }
0x24a1   :  { %v7977_v29 = vpop.f32.mrb[146].mxu0  ;;  %v17449_v27 = vld [vmem:[#allocation11 + $0x80] sm:$0xff]  }
0x24a2   :  { %v7981_v22 = vpack.c.bf16 %v7977_v29, %v7974_v26  ;;  %v16019_v35 = vpop.f32.mrb[147].mxu0  ;;  %v17450_v29 = vld [vmem:[#allocation11 + $0x88] sm:$0xff]  }
0x24a3   :  { %v17451_v35 = vld [vmem:[#allocation11 + $0x90] sm:$0xff]  }
0x24a4   :  { %16037 = vmatmul.mubr.bf16.vlgmr.msra.gmra.mrb[148].mxu0 %v7981_v22  ;;  %v17448_v22 = vld [vmem:[#allocation10 + $0x10] sm:$0xff]  }
0x24a5   :  { %16062 = vmatprep.mubr.msk.bf16.mxu0 %vm19398_vm5, %v19397_v19 }
0x2577   :  { %v8081_v40 = vpop.f32.mrb[148].mxu0 }
0x2578   :  { %v8088_v28 = vadd.f32 %v8081_v40, %v7923_v20  ;;  %v16038_v5 = vpop.f32.mrb[149].mxu0  ;;  %v17455_v40 = vld [vmem:[#allocation11 + $0xb0] sm:$0xff]  }
0x2579   :  { %v8084_v33 = vpop.f32.mrb[150].mxu0  ;;  %v17458_v5 = vld [vmem:[#allocation14 + $0x8] sm:$0xff]  }
0x257a   :  { %v8097_v38 = vadd.f32 %v13858_v54, %v8088_v28  ;;  %v8089_v12 = vadd.f32 %v8084_v33, %v7926_v59  ;;  %v16039_v34 = vpop.f32.mrb[151].mxu0  ;;  %v17457_v28 = vld [vmem:[#allocation14] sm:$0xff]   ;;  %v17459_v33 = vld [vmem:[#allocation14 + $0x10] sm:$0xff]  }
0x257c   :  { %v8098_v60 = vadd.f32 %v13858_v54, %v8089_v12  ;;  %v8099_v3 = vmax.f32 %v8097_v38, 0.0  ;;  %v17456_v54 = vld [vmem:[#allocation11 + $0xb8] sm:$0xff]   ;;  %v17461_v12 = vld [vmem:[#allocation14 + $0x20] sm:$0xff]  }
0x257d   :  { %v17460_v38 = vld [vmem:[#allocation14 + $0x18] sm:$0xff]  }
0x257e   :  { %v8100_v41 = vmax.f32 %v8098_v60, 0.0 }
0x2580   :  { %v8101_v42 = vpack.c.bf16 %v8100_v41, %v8099_v3 }
0x2582   :  { %16057 = vmatmul.mubr.bf16.vlgmr.msra.gmra.mrb[176].mxu1 %v8101_v42 }
0x2583   :  { %16068 = vmatprep.mubr.msk.bf16.mxu1 %vm19398_vm5, %v19397_v19 }
0x2655   :  { %v8207_v44 = vpop.f32.mrb[176].mxu1 }
0x2656   :  { %v8208_v45 = vadd.f32 %v13859_v43, %v8207_v44  ;;  %v16058_v46 = vpop.f32.mrb[177].mxu1 }
0x2657   :  { %v8210_v47 = vpop.f32.mrb[178].mxu1 }
0x2658   :  { %v20877_v48 = vadd.f32 %v8208_v45, %v7608_v37  ;;  %v8211_v49 = vadd.f32 %v13859_v43, %v8210_v47  ;;  %v16059_v51 = vpop.f32.mrb[179].mxu1  ;;  %v17433_v37 = vld [vmem:[#allocation11] sm:$0xff]  }
0x265a   :  { %v20881_v52 = vadd.f32 %v8211_v49, %v7609_v32  ;;  %v8216_v55 = vmax.f32 %v20877_v48, 0.0  ;;  %v17435_v32 = vld [vmem:[#allocation11 + $0x8] sm:$0xff]  }
0x265c   :  { %v8217_v56 = vmax.f32 %v20881_v52, 0.0 }
0x265e   :  { %v20885_v57 = vpack.c.bf16 %v8217_v56, %v8216_v55 }
0x2660   :  { %16061 = vmatpush3.bf16.msra.mxu0 %v20885_v57  ;;  %16067 = vmatpush3.bf16.msra.mxu1 %v20885_v57 }
0x2661   :  { %16072 = vmatprep.subr.bf16.mxu0 %v19397_v19  ;;  %16092 = vmatprep.subr.bf16.mxu1 %v19397_v19 }
0x2663   :  { %16063 = vmatmul.mubr.msk.bf16.vlgmr.msra.gmra.mrb[152].mxu0 %vm4993_vm6, %v17430_v50  ;;  %16069 = vmatmul.mubr.msk.bf16.vlgmr.msra.gmra.mrb[180].mxu1 %vm4993_vm6, %v17431_v58  ;;  %v17462_v50 = vld [vmem:[#allocation14 + $0x28] sm:$0xff]   ;;  %v17463_v58 = vld [vmem:[#allocation14 + $0x30] sm:$0xff]  }
0x2664   :  { %16073 = vmatpush3.bf16.msra.mxu0 %v17432_v2  ;;  %16093 = vmatpush3.bf16.msra.mxu1 %v17433_v37  ;;  %v17464_v2 = vld [vmem:[#allocation14 + $0x38] sm:$0xff]  }
0x2665   :  { %16074 = vmatprep.subr.bf16.mxu0 %v19397_v19  ;;  %16094 = vmatprep.subr.bf16.mxu1 %v19397_v19 }
0x2666   :  { %16088 = vmatprep.mubr.msk.bf16.mxu0 %vm19398_vm5, %v19397_v19  ;;  %16108 = vmatprep.mubr.msk.bf16.mxu1 %vm19398_vm5, %v19397_v19 }
0x2668   :  { %16075 = vmatpush3.bf16.msra.mxu0 %v17434_v39  ;;  %16095 = vmatpush3.bf16.msra.mxu1 %v17435_v32  ;;  %v13898_v39 = vld [vmem:[#allocation8] ss:$0 sm:$0xff] }
0x2669   :  { %16076 = vmatprep.subr.bf16.mxu0 %v19397_v19  ;;  %16096 = vmatprep.subr.bf16.mxu1 %v19397_v19 }
0x266c   :  { %16077 = vmatpush3.bf16.msra.mxu0 %v17436_v1  ;;  %16097 = vmatpush3.bf16.msra.mxu1 %v17437_v62 }
0x266d   :  { %16078 = vmatprep.subr.bf16.mxu0 %v19397_v19  ;;  %16098 = vmatprep.subr.bf16.mxu1 %v19397_v19 }
0x2670   :  { %16079 = vmatpush3.bf16.msra.mxu0 %v17438_v4  ;;  %16099 = vmatpush3.bf16.msra.mxu1 %v17439_v7 }
0x2671   :  { %16080 = vmatprep.subr.bf16.mxu0 %v19397_v19  ;;  %16100 = vmatprep.subr.bf16.mxu1 %v19397_v19 }
0x2674   :  { %16081 = vmatpush3.bf16.msra.mxu0 %v17440_v9  ;;  %16101 = vmatpush3.bf16.msra.mxu1 %v17441_v10 }
0x2675   :  { %16082 = vmatprep.subr.bf16.mxu0 %v19397_v19  ;;  %16102 = vmatprep.subr.bf16.mxu1 %v19397_v19 }
0x2678   :  { %16083 = vmatpush3.bf16.msra.mxu0 %v17442_v30  ;;  %16103 = vmatpush3.bf16.msra.mxu1 %v17443_v11 }
0x2679   :  { %16084 = vmatprep.subr.bf16.mxu0 %v19397_v19  ;;  %16104 = vmatprep.subr.bf16.mxu1 %v19397_v19 }
0x267c   :  { %16085 = vmatpush3.bf16.msra.mxu0 %v17444_v17  ;;  %16105 = vmatpush3.bf16.msra.mxu1 %v17445_v31  ;;  %v17465_v31 = vld [vmem:[%s21437_s20 + $0x10] sm:$0xff]  }
0x267d   :  { %16086 = vmatprep.subr.bf16.mxu0 %v19397_v19  ;;  %16106 = vmatprep.subr.bf16.mxu1 %v19397_v19 }
0x2680   :  { %16087 = vmatpush3.bf16.msra.mxu0 %v17446_v13  ;;  %16107 = vmatpush3.bf16.msra.mxu1 %v17447_v61  ;;  %v13899_v13 = vld [vmem:[#allocation13] ss:$0 sm:$0xff] }
0x2681   :  { %16112 = vmatprep.subr.bf16.mxu0 %v19397_v19  ;;  %16118 = vmatprep.subr.bf16.mxu1 %v19397_v19 }
0x2736   :  { %v8263_v8 = vpop.f32.mrb[152].mxu0  ;;  %v8332_v15 = vpop.f32.mrb[180].mxu1 }
0x2737   :  { %v16064_v16 = vpop.f32.mrb[153].mxu0  ;;  %v16070_v18 = vpop.f32.mrb[181].mxu1 }
0x2738   :  { %v8266_v20 = vpop.f32.mrb[154].mxu0  ;;  %v8335_v23 = vpop.f32.mrb[182].mxu1 }
0x2739   :  { %v8270_v53 = vpack.c.bf16 %v8266_v20, %v8263_v8  ;;  %v8339_v59 = vpack.c.bf16 %v8335_v23, %v8332_v15  ;;  %v16071_v24 = vpop.f32.mrb[183].mxu1  ;;  %v16065_v26 = vpop.f32.mrb[155].mxu0 }
0x273a   :  { %v17471_v24 = vld [vmem:[%s21438_s1 + $0x40] sm:$0xff]   ;;  %v17466_v26 = vld [vmem:[%s21437_s20 + $0x18] sm:$0xff]  }
0x273b   :  { %16089 = vmatmul.mubr.bf16.vlgmr.msra.gmra.mrb[156].mxu0 %v8339_v59  ;;  %16109 = vmatmul.mubr.bf16.vlgmr.msra.gmra.mrb[184].mxu1 %v8270_v53 }
0x273c   :  { %16113 = vmatpush3.bf16.msra.mxu0 %v20885_v57  ;;  %16114 = vmatprep.mubr.msk.bf16.mxu0 %vm19398_vm5, %v19397_v19 }
0x273d   :  { %16119 = vmatpush3.bf16.msra.mxu1 %v17449_v27  ;;  %16134 = vmatprep.mubr.msk.bf16.mxu1 %vm19398_vm5, %v19397_v19  ;;  %v17468_v27 = vld [vmem:[%s21437_s20 + $0x8] sm:$0xff]  }
0x273e   :  { %16120 = vmatprep.subr.bf16.mxu1 %v19397_v19  ;;  %16138 = vmatprep.subr.bf16.mxu0 %v19397_v19 }
0x2741   :  { %16121 = vmatpush3.bf16.msra.mxu1 %v17450_v29  ;;  %v17469_v29 = vld [vmem:[%s21437_s20 + $0x20] sm:$0xff]  }
0x2742   :  { %16122 = vmatprep.subr.bf16.mxu1 %v19397_v19 }
0x2743   :  { %16115 = vmatmul.mubr.msk.bf16.vlgmr.msra.gmra.mrb[160].mxu0 %vm4993_vm6, %v17448_v22  ;;  %v17472_v22 = vld [vmem:[%s21438_s1 + $0x48] sm:$0xff]  }
0x2744   :  { %16154 = vmatprep.mubr.msk.bf16.mxu0 %vm19398_vm5, %v19397_v19  ;;  %16139 = vmatpush3.bf16.msra.mxu0 %v17457_v28 }
0x2745   :  { %16123 = vmatpush3.bf16.msra.mxu1 %v17451_v35  ;;  %16140 = vmatprep.subr.bf16.mxu0 %v19397_v19  ;;  %v17474_v35 = vld [vmem:[%s21438_s1 + $0x58] sm:$0xff]  }
0x2746   :  { %16124 = vmatprep.subr.bf16.mxu1 %v19397_v19 }
0x2748   :  { %16141 = vmatpush3.bf16.msra.mxu0 %v17458_v5 }
0x2749   :  { %16125 = vmatpush3.bf16.msra.mxu1 %v17452_v63  ;;  %16142 = vmatprep.subr.bf16.mxu0 %v19397_v19  ;;  %v17475_v63 = vld [vmem:[%s21438_s1 + $0x60] sm:$0xff]  }
0x274a   :  { %16126 = vmatprep.subr.bf16.mxu1 %v19397_v19 }
0x274c   :  { %16143 = vmatpush3.bf16.msra.mxu0 %v17459_v33 }
0x274d   :  { %16127 = vmatpush3.bf16.msra.mxu1 %v17453_v36  ;;  %16144 = vmatprep.subr.bf16.mxu0 %v19397_v19  ;;  %v17476_v36 = vld [vmem:[%s21438_s1 + $0x68] sm:$0xff]  }
0x274e   :  { %16128 = vmatprep.subr.bf16.mxu1 %v19397_v19 }
0x2750   :  { %16145 = vmatpush3.bf16.msra.mxu0 %v17460_v38 }
0x2751   :  { %16129 = vmatpush3.bf16.msra.mxu1 %v17454_v6  ;;  %16146 = vmatprep.subr.bf16.mxu0 %v19397_v19  ;;  %v17477_v6 = vld [vmem:[%s21438_s1 + $0x70] sm:$0xff]  }
0x2752   :  { %16130 = vmatprep.subr.bf16.mxu1 %v19397_v19 }
0x2754   :  { %16147 = vmatpush3.bf16.msra.mxu0 %v17461_v12 }
0x2755   :  { %16131 = vmatpush3.bf16.msra.mxu1 %v17455_v40  ;;  %16148 = vmatprep.subr.bf16.mxu0 %v19397_v19  ;;  %v17478_v40 = vld [vmem:[%s21438_s1 + $0x78] sm:$0xff]  }
0x2756   :  { %16132 = vmatprep.subr.bf16.mxu1 %v19397_v19 }
0x2758   :  { %16149 = vmatpush3.bf16.msra.mxu0 %v17462_v50  ;;  %v17482_v50 = vld [vmem:[%s21438_s1 + $0x18] sm:$0xff]  }
0x2759   :  { %16133 = vmatpush3.bf16.msra.mxu1 %v17456_v54  ;;  %16150 = vmatprep.subr.bf16.mxu0 %v19397_v19  ;;  %v17479_v54 = vld [vmem:[%s21438_s1] sm:$0xff]  }
0x275c   :  { %16151 = vmatpush3.bf16.msra.mxu0 %v17463_v58  ;;  %v17483_v58 = vld [vmem:[%s21438_s1 + $0x20] sm:$0xff]  }
0x275d   :  { %16152 = vmatprep.subr.bf16.mxu0 %v19397_v19  ;;  %v17467_v19 = vld [vmem:[%s21437_s20] sm:$0xff]  }
0x2760   :  { %16153 = vmatpush3.bf16.msra.mxu0 %v17464_v2  ;;  %v17484_v2 = vld [vmem:[%s21438_s1 + $0x28] sm:$0xff]  }
0x280e   :  { %v8439_v34 = vpop.f32.mrb[156].mxu0  ;;  %v8528_v60 = vpop.f32.mrb[184].mxu1 }
0x280f   :  { %v8529_v3 = vadd.f32 %v8528_v60, %v8439_v34  ;;  %v16090_v41 = vpop.f32.mrb[157].mxu0  ;;  %v16110_v42 = vpop.f32.mrb[185].mxu1 }
0x2810   :  { %v8442_v43 = vpop.f32.mrb[158].mxu0  ;;  %v8531_v44 = vpop.f32.mrb[186].mxu1 }
0x2811   :  { %v8532_v45 = vadd.f32 %v8531_v44, %v8442_v43  ;;  %v16091_v46 = vpop.f32.mrb[159].mxu0  ;;  %v16111_v47 = vpop.f32.mrb[187].mxu1 }
0x2812   :  { %v17481_v47 = vld [vmem:[%s21438_s1 + $0x10] sm:$0xff]  }
0x2816   :  { %v8580_v49 = vpop.f32.mrb[160].mxu0 }
0x2817   :  { %v16116_v51 = vpop.f32.mrb[161].mxu0 }
0x2818   :  { %v8583_v55 = vpop.f32.mrb[162].mxu0 }
0x2819   :  { %v8587_v56 = vpack.c.bf16 %v8583_v55, %v8580_v49  ;;  %v16117_v57 = vpop.f32.mrb[163].mxu0 }
0x281b   :  { %16135 = vmatmul.mubr.bf16.vlgmr.msra.gmra.mrb[188].mxu1 %v8587_v56 }
0x281c   :  { %16160 = vmatprep.mubr.msk.bf16.mxu1 %vm4993_vm6, %v17467_v19 }
0x28ee   :  { %v8687_v37 = vpop.f32.mrb[188].mxu1 }
0x28ef   :  { %v8694_v32 = vadd.f32 %v8687_v37, %v8529_v3  ;;  %v16136_v1 = vpop.f32.mrb[189].mxu1  ;;  %v17485_v37 = vld [vmem:[%s21438_s1 + $0x30] sm:$0xff]  }
0x28f0   :  { %v8690_v62 = vpop.f32.mrb[190].mxu1  ;;  %v17488_v1 = vld [vmem:[%s21438_s1 + $0x88] sm:$0xff]  }
0x28f1   :  { %v8703_v4 = vadd.f32 %v13898_v39, %v8694_v32  ;;  %v8695_v7 = vadd.f32 %v8690_v62, %v8532_v45  ;;  %v16137_v9 = vpop.f32.mrb[191].mxu1  ;;  %v17480_v45 = vld [vmem:[%s21438_s1 + $0x8] sm:$0xff]   ;;  %v17487_v32 = vld [vmem:[%s21438_s1 + $0x80] sm:$0xff]   ;;  %v17489_v62 = vld [vmem:[%s21438_s1 + $0x90] sm:$0xff]  }
0x28f2   :  { %v17492_v9 = vld [vmem:[%s21438_s1 + $0xa8] sm:$0xff]  }
0x28f3   :  { %v8704_v10 = vadd.f32 %v13898_v39, %v8695_v7  ;;  %v8705_v30 = vmax.f32 %v8703_v4, 0.0  ;;  %v17486_v39 = vld [vmem:[%s21438_s1 + $0x38] sm:$0xff]   ;;  %v17491_v7 = vld [vmem:[%s21438_s1 + $0xa0] sm:$0xff]  }
0x28f4   :  { %v17490_v4 = vld [vmem:[%s21438_s1 + $0x98] sm:$0xff]  }
0x28f5   :  { %v8706_v11 = vmax.f32 %v8704_v10, 0.0  ;;  %v17493_v10 = vld [vmem:[%s21438_s1 + $0xb0] sm:$0xff]  }
0x28f7   :  { %v8707_v17 = vpack.c.bf16 %v8706_v11, %v8705_v30  ;;  %v17494_v30 = vld [vmem:[%s21438_s1 + $0xb8] sm:$0xff]  }
0x28f8   :  { %v17495_v11 = vld [vmem:[#allocation20] sm:$0xff]  }
0x28f9   :  { %16155 = vmatmul.mubr.bf16.vlgmr.msra.gmra.mrb[164].mxu0 %v8707_v17  ;;  %v13984_v17 = vld [vmem:[%s21439_s2] ss:$0 sm:$0xff] }
0x28fa   :  { %16166 = vmatprep.mubr.msk.bf16.mxu0 %vm4993_vm6, %v17465_v31 }
0x29cc   :  { %v8813_v61 = vpop.f32.mrb[164].mxu0 }
0x29cd   :  { %v8814_v8 = vadd.f32 %v13899_v13, %v8813_v61  ;;  %v16156_v15 = vpop.f32.mrb[165].mxu0 }
0x29ce   :  { %v8816_v16 = vpop.f32.mrb[166].mxu0 }
0x29cf   :  { %v8817_v18 = vadd.f32 %v13899_v13, %v8816_v16  ;;  %v16157_v20 = vpop.f32.mrb[167].mxu0  ;;  %v8820_v23 = vadd.f32 %v8814_v8, %v20877_v48  ;;  %v17473_v48 = vld [vmem:[%s21438_s1 + $0x50] sm:$0xff]  }
0x29d1   :  { %v8821_v53 = vadd.f32 %v8817_v18, %v20881_v52  ;;  %v17470_v52 = vld [vmem:[%s21437_s20 + $0x28] sm:$0xff]  }
0x29d3   :  { %v8822_v59 = vpack.c.bf16 %v8821_v53, %v8820_v23 }
0x29d5   :  { %16158 = vmatprep.subr.bf16.mxu1 %v8822_v59  ;;  %16164 = vmatprep.subr.bf16.mxu0 %v8822_v59 }
0x29d6   :  { %16159 = vmatpush3.bf16.msra.mxu1 %v8822_v59  ;;  %16165 = vmatpush3.bf16.msra.mxu0 %v8822_v59 }
0x29d7   :  { %16210 = vmatprep.subr.bf16.mxu0 %v8822_v59  ;;  %16170 = vmatprep.subr.bf16.mxu1 %v17471_v24 }
0x29d9   :  { %16167 = vmatmul.mubr.msk.bf16.vlgmr.msra.gmra.mrb[168].mxu0 %vm4993_vm6, %v17466_v26  ;;  %16161 = vmatmul.mubr.msk.bf16.vlgmr.msra.gmra.mrb[192].mxu1 %vm4993_vm6, %v17468_v27  ;;  %v17496_v27 = vld [vmem:[#allocation20 + $0x8] sm:$0xff]  }
0x29da   :  { %16211 = vmatpush3.bf16.msra.mxu0 %v8822_v59  ;;  %16212 = vmatprep.mubr.msk.bf16.mxu0 %vm4993_vm6, %v17469_v29  ;;  %v17497_v29 = vld [vmem:[#allocation20 + $0x10] sm:$0xff]  }
0x29db   :  { %16171 = vmatpush3.bf16.msra.mxu1 %v17471_v24 }
0x29dc   :  { %16172 = vmatprep.subr.bf16.mxu1 %v17472_v22 }
0x29df   :  { %16173 = vmatpush3.bf16.msra.mxu1 %v17472_v22  ;;  %v17499_v22 = vld [vmem:[#allocation22 + $0x40] sm:$0xff]  }
0x29e0   :  { %16174 = vmatprep.subr.bf16.mxu1 %v17473_v48 }
0x29e1   :  { %16213 = vmatmul.mubr.msk.bf16.vlgmr.msra.gmra.mrb[172].mxu0 %vm4993_vm6, %v17470_v52  ;;  %v17500_v52 = vld [vmem:[#allocation22 + $0x48] sm:$0xff]  }
0x29e2   :  { %16240 = vmatprep.mubr.msk.bf16.mxu0 %vm2939_vm4, %v17495_v11  ;;  %v17528_v11 = vld [vmem:[#allocation25 + $0x18] sm:$0xff]  }
0x29e3   :  { %16175 = vmatpush3.bf16.msra.mxu1 %v17473_v48  ;;  %v17498_v48 = vld [vmem:[#allocation20 + $0x18] sm:$0xff]  }
0x29e4   :  { %16176 = vmatprep.subr.bf16.mxu1 %v17474_v35 }
0x29e7   :  { %16177 = vmatpush3.bf16.msra.mxu1 %v17474_v35  ;;  %v17501_v35 = vld [vmem:[#allocation22 + $0x50] sm:$0xff]  }
0x29e8   :  { %16178 = vmatprep.subr.bf16.mxu1 %v17475_v63 }
0x29eb   :  { %16179 = vmatpush3.bf16.msra.mxu1 %v17475_v63  ;;  %v17502_v63 = vld [vmem:[#allocation22 + $0x58] sm:$0xff]  }
0x29ec   :  { %16180 = vmatprep.subr.bf16.mxu1 %v17476_v36 }
0x29ef   :  { %16181 = vmatpush3.bf16.msra.mxu1 %v17476_v36  ;;  %v17503_v36 = vld [vmem:[#allocation22 + $0x60] sm:$0xff]  }
0x29f0   :  { %16182 = vmatprep.subr.bf16.mxu1 %v17477_v6 }
0x29f3   :  { %16183 = vmatpush3.bf16.msra.mxu1 %v17477_v6  ;;  %v17504_v6 = vld [vmem:[#allocation22 + $0x68] sm:$0xff]  }
0x29f4   :  { %16184 = vmatprep.subr.bf16.mxu1 %v17478_v40 }
0x29f7   :  { %16185 = vmatpush3.bf16.msra.mxu1 %v17478_v40  ;;  %v17505_v40 = vld [vmem:[#allocation22 + $0x70] sm:$0xff]  }
0x29f8   :  { %16190 = vmatprep.subr.bf16.mxu1 %v17479_v54 }
0x2aac   :  { %v16168_v28 = vpop.f32.mrb[168].mxu0  ;;  %v16162_v5 = vpop.f32.mrb[192].mxu1 }
0x2aad   :  { %v8965_v33 = vpop.f32.mrb[169].mxu0  ;;  %v8877_v38 = vpop.f32.mrb[193].mxu1 }
0x2aae   :  { %v16169_v12 = vpop.f32.mrb[170].mxu0  ;;  %v16163_v34 = vpop.f32.mrb[194].mxu1 }
0x2aaf   :  { %v8981_v60 = vpack.c.bf16 %v16169_v12, %v16168_v28  ;;  %v8968_v3 = vpop.f32.mrb[171].mxu0  ;;  %v8893_v41 = vpack.c.bf16 %v16163_v34, %v16162_v5  ;;  %v8880_v42 = vpop.f32.mrb[195].mxu1  ;;  %v17507_v28 = vld [vmem:[#allocation22] sm:$0xff]  }
0x2ab0   :  { %v8980_v43 = vpack.c.bf16 %v8968_v3, %v8965_v33  ;;  %v8892_v44 = vpack.c.bf16 %v8880_v42, %v8877_v38 }
0x2ab2   :  { %16186 = vmatprep.mubr.bf16.mxu1 %v8980_v43 }
0x2ab3   :  { %16187 = vmatmul.mubr.bf16.vlgmr.msra.gmra.mrb[196].mxu1 %v8981_v60 }
0x2ab4   :  { %16191 = vmatpush3.bf16.msra.mxu1 %v17479_v54  ;;  %16206 = vmatprep.mubr.bf16.mxu1 %v8892_v44  ;;  %v16214_v46 = vpop.f32.mrb[172].mxu0  ;;  %v17506_v54 = vld [vmem:[#allocation22 + $0x78] sm:$0xff]  }
0x2ab5   :  { %16192 = vmatprep.subr.bf16.mxu1 %v17480_v45  ;;  %v9248_v49 = vpop.f32.mrb[173].mxu0 }
0x2ab6   :  { %v16215_v51 = vpop.f32.mrb[174].mxu0 }
0x2ab7   :  { %v9264_v55 = vpack.c.bf16 %v16215_v51, %v16214_v46  ;;  %v9251_v56 = vpop.f32.mrb[175].mxu0  ;;  %v17508_v46 = vld [vmem:[#allocation22 + $0x8] sm:$0xff]   ;;  %v17511_v51 = vld [vmem:[#allocation22 + $0x20] sm:$0xff]  }
0x2ab8   :  { %16193 = vmatpush3.bf16.msra.mxu1 %v17480_v45  ;;  %v9263_v57 = vpack.c.bf16 %v9251_v56, %v9248_v49  ;;  %v17510_v49 = vld [vmem:[#allocation22 + $0x18] sm:$0xff]   ;;  %v17513_v56 = vld [vmem:[#allocation22 + $0x30] sm:$0xff]  }
0x2ab9   :  { %16194 = vmatprep.subr.bf16.mxu1 %v17481_v47 }
0x2abc   :  { %16195 = vmatpush3.bf16.msra.mxu1 %v17481_v47  ;;  %v17509_v47 = vld [vmem:[#allocation22 + $0x10] sm:$0xff]  }
0x2abd   :  { %16196 = vmatprep.subr.bf16.mxu1 %v17482_v50 }
0x2ac0   :  { %16197 = vmatpush3.bf16.msra.mxu1 %v17482_v50  ;;  %v17515_v50 = vld [vmem:[#allocation20 + $0x20] sm:$0xff]  }
0x2ac1   :  { %16198 = vmatprep.subr.bf16.mxu1 %v17483_v58 }
0x2ac4   :  { %16199 = vmatpush3.bf16.msra.mxu1 %v17483_v58  ;;  %v17517_v58 = vld [vmem:[#allocation22 + $0x80] sm:$0xff]  }
0x2ac5   :  { %16200 = vmatprep.subr.bf16.mxu1 %v17484_v2 }
0x2ac8   :  { %16201 = vmatpush3.bf16.msra.mxu1 %v17484_v2  ;;  %v17516_v2 = vld [vmem:[#allocation20 + $0x28] sm:$0xff]  }
0x2ac9   :  { %16202 = vmatprep.subr.bf16.mxu1 %v17485_v37 }
0x2acc   :  { %16203 = vmatpush3.bf16.msra.mxu1 %v17485_v37  ;;  %v17518_v37 = vld [vmem:[#allocation22 + $0x88] sm:$0xff]  }
0x2acd   :  { %16204 = vmatprep.subr.bf16.mxu1 %v17486_v39 }
0x2ad0   :  { %16205 = vmatpush3.bf16.msra.mxu1 %v17486_v39  ;;  %v17519_v39 = vld [vmem:[#allocation22 + $0x90] sm:$0xff]  }
0x2ad1   :  { %16216 = vmatprep.subr.bf16.mxu1 %v17487_v32 }
0x2ad3   :  { %16207 = vmatmul.mubr.bf16.vlgmr.msra.gmra.mrb[196].mxu1 %v8893_v41 }
0x2ad4   :  { %16217 = vmatpush3.bf16.msra.mxu1 %v17487_v32  ;;  %16232 = vmatprep.mubr.bf16.mxu1 %v9263_v57  ;;  %v17514_v57 = vld [vmem:[#allocation22 + $0x38] sm:$0xff]  }
0x2ad5   :  { %16218 = vmatprep.subr.bf16.mxu1 %v17488_v1  ;;  %v17520_v32 = vld [vmem:[#allocation22 + $0x98] sm:$0xff]  }
0x2ad8   :  { %16219 = vmatpush3.bf16.msra.mxu1 %v17488_v1  ;;  %v17521_v1 = vld [vmem:[#allocation22 + $0xa0] sm:$0xff]  }
0x2ad9   :  { %16220 = vmatprep.subr.bf16.mxu1 %v17489_v62 }
0x2adc   :  { %16221 = vmatpush3.bf16.msra.mxu1 %v17489_v62  ;;  %v17522_v62 = vld [vmem:[#allocation22 + $0xa8] sm:$0xff]  }
0x2add   :  { %16222 = vmatprep.subr.bf16.mxu1 %v17490_v4 }
0x2ae0   :  { %16223 = vmatpush3.bf16.msra.mxu1 %v17490_v4  ;;  %v17523_v4 = vld [vmem:[#allocation22 + $0xb0] sm:$0xff]  }
0x2ae1   :  { %16224 = vmatprep.subr.bf16.mxu1 %v17491_v7 }
0x2ae4   :  { %16225 = vmatpush3.bf16.msra.mxu1 %v17491_v7  ;;  %v17524_v7 = vld [vmem:[#allocation22 + $0xb8] sm:$0xff]  }
0x2ae5   :  { %16226 = vmatprep.subr.bf16.mxu1 %v17492_v9 }
0x2ae8   :  { %16227 = vmatpush3.bf16.msra.mxu1 %v17492_v9  ;;  %v17525_v9 = vld [vmem:[#allocation25] sm:$0xff]  }
0x2ae9   :  { %16228 = vmatprep.subr.bf16.mxu1 %v17493_v10 }
0x2aec   :  { %16229 = vmatpush3.bf16.msra.mxu1 %v17493_v10  ;;  %v17526_v10 = vld [vmem:[#allocation25 + $0x8] sm:$0xff]  }
0x2aed   :  { %16230 = vmatprep.subr.bf16.mxu1 %v17494_v30 }
0x2af0   :  { %16231 = vmatpush3.bf16.msra.mxu1 %v17494_v30  ;;  %v17527_v30 = vld [vmem:[#allocation25 + $0x10] sm:$0xff]  }
0x2af1   :  { %16320 = vmatprep.subr.bf16.mxu1 %v17525_v9 }
0x2af3   :  { %16233 = vmatmul.mubr.bf16.vlgmr.msra.gmra.mrb[196].mxu1 %v9264_v55  ;;  %v17512_v55 = vld [vmem:[#allocation22 + $0x28] sm:$0xff]  }
0x2af4   :  { %16321 = vmatpush3.bf16.msra.mxu1 %v17525_v9  ;;  %v17545_v9 = vld [vmem:[#allocation29 + $0x70] sm:$0xff]  }
0x2af5   :  { %16322 = vmatprep.subr.bf16.mxu1 %v17526_v10 }
0x2af8   :  { %16323 = vmatpush3.bf16.msra.mxu1 %v17526_v10  ;;  %v17546_v10 = vld [vmem:[#allocation29 + $0x78] sm:$0xff]  }
0x2af9   :  { %16324 = vmatprep.subr.bf16.mxu1 %v17527_v30 }
0x2afc   :  { %16325 = vmatpush3.bf16.msra.mxu1 %v17527_v30  ;;  %v17547_v30 = vld [vmem:[#allocation29] sm:$0xff]  }
0x2afd   :  { %16326 = vmatprep.subr.bf16.mxu1 %v17528_v11 }
0x2b00   :  { %16327 = vmatpush3.bf16.msra.mxu1 %v17528_v11  ;;  %v17563_v11 = vld [vmem:[#allocation32] sm:$0xff]  }
0x2bc6   :  { %v16234_v31 = vpop.f32.mrb[196].mxu1 }
0x2bc7   :  { %v9364_v19 = vpop.f32.mrb[197].mxu1  ;;  %v20980_v16 = vadd.f32 %v16234_v31, %v13984_v17  ;;  %v17530_v31 = vld [vmem:[#allocation25 + $0x28] sm:$0xff]  }
0x2bc8   :  { %v20976_v13 = vadd.f32 %v13984_v17, %v9364_v19  ;;  %v16235_v61 = vpop.f32.mrb[198].mxu1 }
0x2bc9   :  { %v20978_v8 = vadd.f32 %v16235_v61, %v13984_v17  ;;  %v9367_v15 = vpop.f32.mrb[199].mxu1  ;;  %v9396_v59 = vmax.f32 %v20980_v16, 0.0 }
0x2bca   :  { %v20982_v18 = vadd.f32 %v13984_v17, %v9367_v15  ;;  %v9394_v20 = vmax.f32 %v20976_v13, 0.0  ;;  %v17529_v17 = vld [vmem:[#allocation25 + $0x20] sm:$0xff]  }
0x2bcb   :  { %v9397_v23 = vmax.f32 %v20978_v8, 0.0  ;;  %16328 = vmatprep.subr.bf16.mxu1 %v17529_v17 }
0x2bcc   :  { %v9395_v53 = vmax.f32 %v20982_v18, 0.0  ;;  %16329 = vmatpush3.bf16.msra.mxu1 %v17529_v17  ;;  %v17564_v17 = vld [vmem:[#allocation32 + $0x8] sm:$0xff]  }
0x2bcd   :  { %v20990_v26 = vpack.c.bf16 %v9397_v23, %v9396_v59  ;;  %16330 = vmatprep.subr.bf16.mxu1 %v17530_v31  ;;  %v17531_v59 = vld [vmem:[#allocation25 + $0x30] sm:$0xff]  }
0x2bce   :  { %v20988_v24 = vpack.c.bf16 %v9395_v53, %v9394_v20 }
0x2bd0   :  { %16236 = vmatprep.subr.bf16.mxu0 %v20988_v24  ;;  %16331 = vmatpush3.bf16.msra.mxu1 %v17530_v31  ;;  %v17565_v31 = vld [vmem:[#allocation32 + $0x10] sm:$0xff]  }
0x2bd1   :  { %16237 = vmatpush3.bf16.msra.mxu0 %v20988_v24  ;;  %16332 = vmatprep.subr.bf16.mxu1 %v17531_v59 }
0x2bd2   :  { %16238 = vmatprep.subr.bf16.mxu0 %v20990_v26 }
0x2bd4   :  { %16333 = vmatpush3.bf16.msra.mxu1 %v17531_v59 }
0x2bd5   :  { %16239 = vmatpush3.bf16.msra.mxu0 %v20990_v26 }
0x2bd6   :  { %16244 = vmatprep.subr.bf16.mxu0 %v20988_v24 }
0x2bd8   :  { %16241 = vmatmul.mubr.msk.bf16.vlgmr.msra.gmra.mrb[176].mxu0 %vm2939_vm4, %v17496_v27 }
0x2bd9   :  { %16245 = vmatpush3.bf16.msra.mxu0 %v20988_v24  ;;  %16248 = vmatprep.mubr.msk.bf16.mxu0 %vm2939_vm4, %v17497_v29 }
0x2bda   :  { %16246 = vmatprep.subr.bf16.mxu0 %v20990_v26 }
0x2bdd   :  { %16247 = vmatpush3.bf16.msra.mxu0 %v20990_v26 }
0x2bde   :  { %16252 = vmatprep.subr.bf16.mxu0 %v17499_v22 }
0x2be0   :  { %16249 = vmatmul.mubr.msk.bf16.vlgmr.msra.gmra.mrb[180].mxu0 %vm2939_vm4, %v17498_v48 }
0x2be1   :  { %16253 = vmatpush3.bf16.msra.mxu0 %v17499_v22 }
0x2be2   :  { %16254 = vmatprep.subr.bf16.mxu0 %v17500_v52 }
0x2be5   :  { %16255 = vmatpush3.bf16.msra.mxu0 %v17500_v52 }
0x2be6   :  { %16256 = vmatprep.subr.bf16.mxu0 %v17501_v35 }
0x2be9   :  { %16257 = vmatpush3.bf16.msra.mxu0 %v17501_v35 }
0x2bea   :  { %16258 = vmatprep.subr.bf16.mxu0 %v17502_v63 }
0x2bed   :  { %16259 = vmatpush3.bf16.msra.mxu0 %v17502_v63 }
0x2bee   :  { %16260 = vmatprep.subr.bf16.mxu0 %v17503_v36 }
0x2bf1   :  { %16261 = vmatpush3.bf16.msra.mxu0 %v17503_v36 }
0x2bf2   :  { %16262 = vmatprep.subr.bf16.mxu0 %v17504_v6 }
0x2bf5   :  { %16263 = vmatpush3.bf16.msra.mxu0 %v17504_v6 }
0x2bf6   :  { %16264 = vmatprep.subr.bf16.mxu0 %v17505_v40 }
0x2bf9   :  { %16265 = vmatpush3.bf16.msra.mxu0 %v17505_v40 }
0x2bfa   :  { %16266 = vmatprep.subr.bf16.mxu0 %v17506_v54 }
0x2bfd   :  { %16267 = vmatpush3.bf16.msra.mxu0 %v17506_v54 }
0x2bfe   :  { %16272 = vmatprep.subr.bf16.mxu0 %v17507_v28 }
0x2cab   :  { %v16242_v5 = vpop.f32.mrb[176].mxu0 }
0x2cac   :  { %v9454_v33 = vpop.f32.mrb[177].mxu0 }
0x2cad   :  { %v16243_v38 = vpop.f32.mrb[178].mxu0 }
0x2cae   :  { %v9470_v12 = vpack.c.bf16 %v16243_v38, %v16242_v5  ;;  %v9457_v34 = vpop.f32.mrb[179].mxu0  ;;  %v17533_v38 = vld [vmem:[#allocation28 + $0x10] sm:$0xff]  }
0x2caf   :  { %v9469_v60 = vpack.c.bf16 %v9457_v34, %v9454_v33  ;;  %v14022_v34 = vld [vmem:[#allocation23] ss:$0 sm:$0xff] }
0x2cb3   :  { %v16250_v3 = vpop.f32.mrb[180].mxu0 }
0x2cb4   :  { %v9542_v41 = vpop.f32.mrb[181].mxu0 }
0x2cb5   :  { %v16251_v42 = vpop.f32.mrb[182].mxu0 }
0x2cb6   :  { %v9558_v43 = vpack.c.bf16 %v16251_v42, %v16250_v3  ;;  %v9545_v44 = vpop.f32.mrb[183].mxu0 }
0x2cb7   :  { %v9557_v45 = vpack.c.bf16 %v9545_v44, %v9542_v41 }
0x2cb9   :  { %16268 = vmatprep.mubr.bf16.mxu0 %v9557_v45 }
0x2cba   :  { %16269 = vmatmul.mubr.bf16.vlgmr.msra.gmra.mrb[184].mxu0 %v9558_v43 }
0x2cbb   :  { %16273 = vmatpush3.bf16.msra.mxu0 %v17507_v28  ;;  %16288 = vmatprep.mubr.bf16.mxu0 %v9469_v60 }
0x2cbc   :  { %16274 = vmatprep.subr.bf16.mxu0 %v17508_v46 }
0x2cbf   :  { %16275 = vmatpush3.bf16.msra.mxu0 %v17508_v46 }
0x2cc0   :  { %16276 = vmatprep.subr.bf16.mxu0 %v17509_v47 }
0x2cc3   :  { %16277 = vmatpush3.bf16.msra.mxu0 %v17509_v47 }
0x2cc4   :  { %16278 = vmatprep.subr.bf16.mxu0 %v17510_v49 }
0x2cc7   :  { %16279 = vmatpush3.bf16.msra.mxu0 %v17510_v49 }
0x2cc8   :  { %16280 = vmatprep.subr.bf16.mxu0 %v17511_v51 }
0x2ccb   :  { %16281 = vmatpush3.bf16.msra.mxu0 %v17511_v51 }
0x2ccc   :  { %16282 = vmatprep.subr.bf16.mxu0 %v17512_v55 }
0x2ccf   :  { %16283 = vmatpush3.bf16.msra.mxu0 %v17512_v55 }
0x2cd0   :  { %16284 = vmatprep.subr.bf16.mxu0 %v17513_v56 }
0x2cd3   :  { %16285 = vmatpush3.bf16.msra.mxu0 %v17513_v56 }
0x2cd4   :  { %16286 = vmatprep.subr.bf16.mxu0 %v17514_v57 }
0x2cd7   :  { %16287 = vmatpush3.bf16.msra.mxu0 %v17514_v57 }
0x2cd8   :  { %16292 = vmatprep.subr.bf16.mxu0 %v20988_v24 }
0x2cda   :  { %16289 = vmatmul.mubr.bf16.vlgmr.msra.gmra.mrb[184].mxu0 %v9470_v12  ;;  %v17535_v12 = vld [vmem:[#allocation28] sm:$0xff]  }
0x2cdb   :  { %16293 = vmatpush3.bf16.msra.mxu0 %v20988_v24  ;;  %16296 = vmatprep.mubr.msk.bf16.mxu0 %vm2939_vm4, %v17515_v50  ;;  %v17532_v24 = vld [vmem:[#allocation25 + $0x38] sm:$0xff]  }
0x2cdc   :  { %16294 = vmatprep.subr.bf16.mxu0 %v20990_v26  ;;  %16334 = vmatprep.subr.bf16.mxu1 %v17532_v24 }
0x2cdd   :  { %16335 = vmatpush3.bf16.msra.mxu1 %v17532_v24 }
0x2cdf   :  { %16295 = vmatpush3.bf16.msra.mxu0 %v20990_v26  ;;  %v14021_v26 = vld [vmem:[#allocation19] ss:$0 sm:$0xff] }
0x2ce0   :  { %16300 = vmatprep.subr.bf16.mxu0 %v17517_v58 }
0x2ce2   :  { %16297 = vmatmul.mubr.msk.bf16.vlgmr.msra.gmra.mrb[188].mxu0 %vm2939_vm4, %v17516_v2 }
0x2ce3   :  { %16301 = vmatpush3.bf16.msra.mxu0 %v17517_v58 }
0x2ce4   :  { %16302 = vmatprep.subr.bf16.mxu0 %v17518_v37 }
0x2ce7   :  { %16303 = vmatpush3.bf16.msra.mxu0 %v17518_v37  ;;  %v17537_v37 = vld [vmem:[#allocation28 + $0x20] sm:$0xff]  }
0x2ce8   :  { %16304 = vmatprep.subr.bf16.mxu0 %v17519_v39 }
0x2ceb   :  { %16305 = vmatpush3.bf16.msra.mxu0 %v17519_v39  ;;  %v17540_v39 = vld [vmem:[#allocation29 + $0x48] sm:$0xff]  }
0x2cec   :  { %16306 = vmatprep.subr.bf16.mxu0 %v17520_v32 }
0x2cef   :  { %16307 = vmatpush3.bf16.msra.mxu0 %v17520_v32  ;;  %v17541_v32 = vld [vmem:[#allocation29 + $0x50] sm:$0xff]  }
0x2cf0   :  { %16308 = vmatprep.subr.bf16.mxu0 %v17521_v1 }
0x2cf3   :  { %16309 = vmatpush3.bf16.msra.mxu0 %v17521_v1  ;;  %v17538_v1 = vld [vmem:[#allocation28 + $0x28] sm:$0xff]  }
0x2cf4   :  { %16310 = vmatprep.subr.bf16.mxu0 %v17522_v62 }
0x2cf7   :  { %16311 = vmatpush3.bf16.msra.mxu0 %v17522_v62  ;;  %v17542_v62 = vld [vmem:[#allocation29 + $0x58] sm:$0xff]  }
0x2cf8   :  { %16312 = vmatprep.subr.bf16.mxu0 %v17523_v4 }
0x2cfb   :  { %16313 = vmatpush3.bf16.msra.mxu0 %v17523_v4  ;;  %v17543_v4 = vld [vmem:[#allocation29 + $0x60] sm:$0xff]  }
0x2cfc   :  { %16314 = vmatprep.subr.bf16.mxu0 %v17524_v7 }
0x2cff   :  { %16315 = vmatpush3.bf16.msra.mxu0 %v17524_v7  ;;  %v17544_v7 = vld [vmem:[#allocation29 + $0x68] sm:$0xff]  }
0x2db5   :  { %v16298_v19 = vpop.f32.mrb[188].mxu0 }
0x2db6   :  { %v9825_v61 = vpop.f32.mrb[189].mxu0 }
0x2db7   :  { %v16299_v15 = vpop.f32.mrb[190].mxu0 }
0x2db8   :  { %v9841_v20 = vpack.c.bf16 %v16299_v15, %v16298_v19  ;;  %v9828_v23 = vpop.f32.mrb[191].mxu0  ;;  %v17566_v19 = vld [vmem:[#allocation32 + $0x18] sm:$0xff]   ;;  %v17568_v15 = vld [vmem:[#allocation32 + $0x28] sm:$0xff]  }
0x2db9   :  { %v9840_v53 = vpack.c.bf16 %v9828_v23, %v9825_v61  ;;  %v17567_v61 = vld [vmem:[#allocation32 + $0x20] sm:$0xff]  }
0x2dbb   :  { %16316 = vmatprep.mubr.bf16.mxu0 %v9840_v53 }
0x2dbc   :  { %16317 = vmatmul.mubr.bf16.vlgmr.msra.gmra.mrb[184].mxu0 %v9841_v20 }
0x2dbd   :  { %16352 = vmatprep.mubr.msk.bf16.mxu0 %vm2939_vm4, %v17533_v38  ;;  %v17550_v38 = vld [vmem:[#allocation29 + $0x18] sm:$0xff]  }
0x2e8f   :  { %v16318_v27 = vpop.f32.mrb[184].mxu0 }
0x2e90   :  { %v9969_v29 = vadd.f32 %v16318_v27, %v14021_v26  ;;  %v9941_v22 = vpop.f32.mrb[185].mxu0 }
0x2e91   :  { %v9967_v48 = vadd.f32 %v14021_v26, %v9941_v22  ;;  %v16319_v52 = vpop.f32.mrb[186].mxu0 }
0x2e92   :  { %v9970_v35 = vadd.f32 %v16319_v52, %v14021_v26  ;;  %v9944_v63 = vpop.f32.mrb[187].mxu0  ;;  %v9973_v6 = vmax.f32 %v9969_v29, 0.0 }
0x2e93   :  { %v9968_v36 = vadd.f32 %v14021_v26, %v9944_v63  ;;  %v9971_v54 = vmax.f32 %v9967_v48, 0.0  ;;  %v17548_v63 = vld [vmem:[#allocation29 + $0x8] sm:$0xff]  }
0x2e94   :  { %v9974_v40 = vmax.f32 %v9970_v35, 0.0 }
0x2e95   :  { %v9972_v28 = vmax.f32 %v9968_v36, 0.0 }
0x2e96   :  { %v9976_v5 = vpack.c.bf16 %v9974_v40, %v9973_v6  ;;  %v17549_v6 = vld [vmem:[#allocation29 + $0x10] sm:$0xff]  }
0x2e97   :  { %v9975_v33 = vpack.c.bf16 %v9972_v28, %v9971_v54 }
0x2e99   :  { %16336 = vmatprep.mubr.bf16.mxu1 %v9975_v33 }
0x2e9a   :  { %16337 = vmatmul.mubr.bf16.vlgmr.msra.gmra.mrb[200].mxu1 %v9976_v5 }
0x2e9b   :  { %16344 = vmatprep.mubr.msk.bf16.mxu1 %vm2939_vm4, %v17535_v12  ;;  %v17551_v12 = vld [vmem:[#allocation29 + $0x20] sm:$0xff]  }
0x2f6d   :  { %v16338_v60 = vpop.f32.mrb[200].mxu1 }
0x2f6e   :  { %v10082_v3 = vpop.f32.mrb[201].mxu1  ;;  %v10091_v41 = vadd.f32 %v16338_v60, %v14022_v34  ;;  %v17553_v60 = vld [vmem:[#allocation29 + $0x30] sm:$0xff]  }
0x2f6f   :  { %v10083_v42 = vadd.f32 %v14022_v34, %v10082_v3  ;;  %v16339_v43 = vpop.f32.mrb[202].mxu1  ;;  %v17554_v3 = vld [vmem:[#allocation29 + $0x38] sm:$0xff]  }
0x2f70   :  { %v10094_v44 = vadd.f32 %v16339_v43, %v14022_v34  ;;  %v10085_v45 = vpop.f32.mrb[203].mxu1  ;;  %v21018_v51 = vadd.f32 %v10091_v41, %v20980_v16  ;;  %v17534_v16 = vld [vmem:[#allocation28 + $0x18] sm:$0xff]   ;;  %v17555_v41 = vld [vmem:[#allocation29 + $0x80] sm:$0xff]   ;;  %v17557_v43 = vld [vmem:[#allocation29 + $0x90] sm:$0xff]  }
0x2f71   :  { %v21012_v46 = vadd.f32 %v10083_v42, %v20976_v13  ;;  %v10086_v47 = vadd.f32 %v14022_v34, %v10085_v45  ;;  %v17552_v34 = vld [vmem:[#allocation29 + $0x28] sm:$0xff]   ;;  %v17559_v45 = vld [vmem:[#allocation29 + $0xa0] sm:$0xff]  }
0x2f72   :  { %v21015_v49 = vadd.f32 %v10094_v44, %v20978_v8  ;;  %v10103_v58 = vmax.f32 %v21018_v51, 0.0  ;;  %v17539_v8 = vld [vmem:[#allocation29 + $0x40] sm:$0xff]   ;;  %v17556_v42 = vld [vmem:[#allocation29 + $0x88] sm:$0xff]   ;;  %v17558_v44 = vld [vmem:[#allocation29 + $0x98] sm:$0xff]  }
0x2f73   :  { %v21021_v55 = vadd.f32 %v10086_v47, %v20982_v18  ;;  %v10101_v56 = vmax.f32 %v21012_v46, 0.0  ;;  %v17536_v18 = vld [vmem:[#allocation28 + $0x8] sm:$0xff]   ;;  %v17560_v47 = vld [vmem:[#allocation29 + $0xa8] sm:$0xff]  }
0x2f74   :  { %v10104_v57 = vmax.f32 %v21015_v49, 0.0 }
0x2f75   :  { %v10102_v50 = vmax.f32 %v21021_v55, 0.0 }
0x2f76   :  { %v10106_v2 = vpack.c.bf16 %v10104_v57, %v10103_v58  ;;  %v17562_v57 = vld [vmem:[#allocation29 + $0xb8] sm:$0xff]  }
0x2f77   :  { %v10105_v13 = vpack.c.bf16 %v10102_v50, %v10101_v56  ;;  %v17561_v56 = vld [vmem:[#allocation29 + $0xb0] sm:$0xff]   ;;  %v17570_v58 = vld [vmem:[#allocation32 + $0x38] sm:$0xff]  }
0x2f78   :  { %v17569_v50 = vld [vmem:[#allocation32 + $0x30] sm:$0xff]  }
0x2f79   :  { %16340 = vmatprep.subr.bf16.mxu1 %v10105_v13  ;;  %16348 = vmatprep.subr.bf16.mxu0 %v10105_v13 }
0x2f7a   :  { %16341 = vmatpush3.bf16.msra.mxu1 %v10105_v13  ;;  %16349 = vmatpush3.bf16.msra.mxu0 %v10105_v13 }
0x2f7b   :  { %16342 = vmatprep.subr.bf16.mxu1 %v10106_v2  ;;  %16350 = vmatprep.subr.bf16.mxu0 %v10106_v2 }
0x2f7e   :  { %16343 = vmatpush3.bf16.msra.mxu1 %v10106_v2  ;;  %16351 = vmatpush3.bf16.msra.mxu0 %v10106_v2 }
0x2f7f   :  { %16396 = vmatprep.subr.bf16.mxu0 %v10105_v13  ;;  %16356 = vmatprep.subr.bf16.mxu1 %v17539_v8 }
0x2f81   :  { %16353 = vmatmul.mubr.msk.bf16.vlgmr.msra.gmra.mrb[192].mxu0 %vm2939_vm4, %v17534_v16  ;;  %16345 = vmatmul.mubr.msk.bf16.vlgmr.msra.gmra.mrb[204].mxu1 %vm2939_vm4, %v17536_v18 }
0x2f82   :  { %16397 = vmatpush3.bf16.msra.mxu0 %v10105_v13  ;;  %16400 = vmatprep.mubr.msk.bf16.mxu0 %vm2939_vm4, %v17537_v37  ;;  %v14067_v13 = vld [vmem:[#allocation26] ss:$0 sm:$0xff] }
0x2f83   :  { %16398 = vmatprep.subr.bf16.mxu0 %v10106_v2  ;;  %16357 = vmatpush3.bf16.msra.mxu1 %v17539_v8 }
0x2f84   :  { %16358 = vmatprep.subr.bf16.mxu1 %v17540_v39 }
0x2f86   :  { %16399 = vmatpush3.bf16.msra.mxu0 %v10106_v2 }
0x2f87   :  { %16359 = vmatpush3.bf16.msra.mxu1 %v17540_v39  ;;  %16424 = vmatprep.subr.bf16.mxu0 %v17563_v11 }
0x2f88   :  { %16360 = vmatprep.subr.bf16.mxu1 %v17541_v32 }
0x2f89   :  { %16401 = vmatmul.mubr.msk.bf16.vlgmr.msra.gmra.mrb[196].mxu0 %vm2939_vm4, %v17538_v1 }
0x2f8a   :  { %16425 = vmatpush3.bf16.msra.mxu0 %v17563_v11  ;;  %v17571_v11 = vld [vmem:[%s21440_s0] sm:$0xff]  }
0x2f8b   :  { %16361 = vmatpush3.bf16.msra.mxu1 %v17541_v32  ;;  %16426 = vmatprep.subr.bf16.mxu0 %v17564_v17 }
0x2f8c   :  { %16362 = vmatprep.subr.bf16.mxu1 %v17542_v62 }
0x2f8e   :  { %16427 = vmatpush3.bf16.msra.mxu0 %v17564_v17  ;;  %v17579_v17 = vld [vmem:[%s21440_s0 + $0x40] sm:$0xff]  }
0x2f8f   :  { %16363 = vmatpush3.bf16.msra.mxu1 %v17542_v62  ;;  %16428 = vmatprep.subr.bf16.mxu0 %v17565_v31 }
0x2f90   :  { %16364 = vmatprep.subr.bf16.mxu1 %v17543_v4 }
0x2f92   :  { %16429 = vmatpush3.bf16.msra.mxu0 %v17565_v31  ;;  %v14068_v31 = vld [vmem:[#allocation31] ss:$0 sm:$0xff] }
0x2f93   :  { %16365 = vmatpush3.bf16.msra.mxu1 %v17543_v4  ;;  %16430 = vmatprep.subr.bf16.mxu0 %v17566_v19 }
0x2f94   :  { %16366 = vmatprep.subr.bf16.mxu1 %v17544_v7 }
0x2f96   :  { %16431 = vmatpush3.bf16.msra.mxu0 %v17566_v19 }
0x2f97   :  { %16367 = vmatpush3.bf16.msra.mxu1 %v17544_v7  ;;  %16432 = vmatprep.subr.bf16.mxu0 %v17567_v61 }
0x2f98   :  { %16368 = vmatprep.subr.bf16.mxu1 %v17545_v9 }
0x2f9a   :  { %16433 = vmatpush3.bf16.msra.mxu0 %v17567_v61 }
0x2f9b   :  { %16369 = vmatpush3.bf16.msra.mxu1 %v17545_v9  ;;  %16434 = vmatprep.subr.bf16.mxu0 %v17568_v15 }
0x2f9c   :  { %16370 = vmatprep.subr.bf16.mxu1 %v17546_v10 }
0x2f9e   :  { %16435 = vmatpush3.bf16.msra.mxu0 %v17568_v15 }
0x2f9f   :  { %16371 = vmatpush3.bf16.msra.mxu1 %v17546_v10  ;;  %16436 = vmatprep.subr.bf16.mxu0 %v17569_v50 }
0x2fa0   :  { %16376 = vmatprep.subr.bf16.mxu1 %v17547_v30 }
0x2fa2   :  { %16437 = vmatpush3.bf16.msra.mxu0 %v17569_v50 }
0x2fa3   :  { %16438 = vmatprep.subr.bf16.mxu0 %v17570_v58 }
0x2fa6   :  { %16439 = vmatpush3.bf16.msra.mxu0 %v17570_v58 }
0x3054   :  { %v16354_v20 = vpop.f32.mrb[192].mxu0  ;;  %v16346_v23 = vpop.f32.mrb[204].mxu1 }
0x3055   :  { %v10249_v53 = vpop.f32.mrb[193].mxu0  ;;  %v10161_v59 = vpop.f32.mrb[205].mxu1 }
0x3056   :  { %v16355_v24 = vpop.f32.mrb[194].mxu0  ;;  %v16347_v26 = vpop.f32.mrb[206].mxu1 }
0x3057   :  { %v10265_v27 = vpack.c.bf16 %v16355_v24, %v16354_v20  ;;  %v10252_v29 = vpop.f32.mrb[195].mxu0  ;;  %v10177_v22 = vpack.c.bf16 %v16347_v26, %v16346_v23  ;;  %v10164_v48 = vpop.f32.mrb[207].mxu1 }
0x3058   :  { %v10264_v52 = vpack.c.bf16 %v10252_v29, %v10249_v53  ;;  %v10176_v35 = vpack.c.bf16 %v10164_v48, %v10161_v59 }
0x305a   :  { %16372 = vmatprep.mubr.bf16.mxu1 %v10264_v52 }
0x305b   :  { %16373 = vmatmul.mubr.bf16.vlgmr.msra.gmra.mrb[208].mxu1 %v10265_v27 }
0x305c   :  { %16377 = vmatpush3.bf16.msra.mxu1 %v17547_v30  ;;  %16392 = vmatprep.mubr.bf16.mxu1 %v10176_v35  ;;  %v16402_v36 = vpop.f32.mrb[196].mxu0  ;;  %v17572_v35 = vld [vmem:[%s21440_s0 + $0x8] sm:$0xff]  }
0x305d   :  { %16378 = vmatprep.subr.bf16.mxu1 %v17548_v63  ;;  %v10532_v40 = vpop.f32.mrb[197].mxu0 }
0x305e   :  { %v16403_v54 = vpop.f32.mrb[198].mxu0 }
0x305f   :  { %v10548_v28 = vpack.c.bf16 %v16403_v54, %v16402_v36  ;;  %v10535_v5 = vpop.f32.mrb[199].mxu0  ;;  %v17582_v36 = vld [vmem:[%s21440_s0 + $0x58] sm:$0xff]   ;;  %v17577_v54 = vld [vmem:[%s21440_s0 + $0x30] sm:$0xff]  }
0x3060   :  { %16379 = vmatpush3.bf16.msra.mxu1 %v17548_v63  ;;  %v10547_v33 = vpack.c.bf16 %v10535_v5, %v10532_v40  ;;  %v17574_v63 = vld [vmem:[%s21440_s0 + $0x18] sm:$0xff]   ;;  %v17576_v40 = vld [vmem:[%s21440_s0 + $0x28] sm:$0xff]  }
0x3061   :  { %16380 = vmatprep.subr.bf16.mxu1 %v17549_v6  ;;  %v17585_v5 = vld [vmem:[#allocation17 + $0x50] sm:$0xff]  }
0x3064   :  { %16381 = vmatpush3.bf16.msra.mxu1 %v17549_v6  ;;  %v17575_v6 = vld [vmem:[%s21440_s0 + $0x20] sm:$0xff]  }
0x3065   :  { %16382 = vmatprep.subr.bf16.mxu1 %v17550_v38 }
0x3068   :  { %16383 = vmatpush3.bf16.msra.mxu1 %v17550_v38  ;;  %v17586_v38 = vld [vmem:[#allocation17 + $0x58] sm:$0xff]  }
0x3069   :  { %16384 = vmatprep.subr.bf16.mxu1 %v17551_v12 }
0x306c   :  { %16385 = vmatpush3.bf16.msra.mxu1 %v17551_v12  ;;  %v17587_v12 = vld [vmem:[#allocation17 + $0x60] sm:$0xff]  }
0x306d   :  { %16386 = vmatprep.subr.bf16.mxu1 %v17552_v34 }
0x3070   :  { %16387 = vmatpush3.bf16.msra.mxu1 %v17552_v34  ;;  %v17588_v34 = vld [vmem:[#allocation17 + $0x68] sm:$0xff]  }
0x3071   :  { %16388 = vmatprep.subr.bf16.mxu1 %v17553_v60 }
0x3074   :  { %16389 = vmatpush3.bf16.msra.mxu1 %v17553_v60  ;;  %v17589_v60 = vld [vmem:[#allocation17 + $0x70] sm:$0xff]  }
0x3075   :  { %16390 = vmatprep.subr.bf16.mxu1 %v17554_v3 }
0x3078   :  { %16391 = vmatpush3.bf16.msra.mxu1 %v17554_v3  ;;  %v17590_v3 = vld [vmem:[#allocation17 + $0x78] sm:$0xff]  }
0x3079   :  { %16404 = vmatprep.subr.bf16.mxu1 %v17555_v41 }
0x307b   :  { %16393 = vmatmul.mubr.bf16.vlgmr.msra.gmra.mrb[208].mxu1 %v10177_v22 }
0x307c   :  { %16405 = vmatpush3.bf16.msra.mxu1 %v17555_v41  ;;  %16420 = vmatprep.mubr.bf16.mxu1 %v10547_v33  ;;  %v17578_v33 = vld [vmem:[%s21440_s0 + $0x38] sm:$0xff]  }
0x307d   :  { %16406 = vmatprep.subr.bf16.mxu1 %v17556_v42  ;;  %v17591_v41 = vld [vmem:[#allocation17] sm:$0xff]  }
0x3080   :  { %16407 = vmatpush3.bf16.msra.mxu1 %v17556_v42 }
0x3081   :  { %16408 = vmatprep.subr.bf16.mxu1 %v17557_v43 }
0x3084   :  { %16409 = vmatpush3.bf16.msra.mxu1 %v17557_v43 }
0x3085   :  { %16410 = vmatprep.subr.bf16.mxu1 %v17558_v44 }
0x3088   :  { %16411 = vmatpush3.bf16.msra.mxu1 %v17558_v44 }
0x3089   :  { %16412 = vmatprep.subr.bf16.mxu1 %v17559_v45 }
0x308c   :  { %16413 = vmatpush3.bf16.msra.mxu1 %v17559_v45 }
0x308d   :  { %16414 = vmatprep.subr.bf16.mxu1 %v17560_v47 }
0x3090   :  { %16415 = vmatpush3.bf16.msra.mxu1 %v17560_v47 }
0x3091   :  { %16416 = vmatprep.subr.bf16.mxu1 %v17561_v56 }
0x3094   :  { %16417 = vmatpush3.bf16.msra.mxu1 %v17561_v56 }
0x3095   :  { %16418 = vmatprep.subr.bf16.mxu1 %v17562_v57 }
0x3098   :  { %16419 = vmatpush3.bf16.msra.mxu1 %v17562_v57 }
0x309b   :  { %16421 = vmatmul.mubr.bf16.vlgmr.msra.gmra.mrb[208].mxu1 %v10548_v28  ;;  %v17584_v28 = vld [vmem:[#allocation17 + $0x48] sm:$0xff]  }
0x309c   :  { %16520 = vmatprep.mubr.msk.bf16.mxu1 %vm2939_vm4, %v17579_v17 }
0x316e   :  { %v16422_v2 = vpop.f32.mrb[208].mxu1 }
0x316f   :  { %v10676_v8 = vadd.f32 %v16422_v2, %v14067_v13  ;;  %v10648_v16 = vpop.f32.mrb[209].mxu1 }
0x3170   :  { %v10674_v18 = vadd.f32 %v14067_v13, %v10648_v16  ;;  %v16423_v37 = vpop.f32.mrb[210].mxu1 }
0x3171   :  { %v10677_v39 = vadd.f32 %v16423_v37, %v14067_v13  ;;  %v10651_v32 = vpop.f32.mrb[211].mxu1  ;;  %v10680_v62 = vmax.f32 %v10676_v8, 0.0 }
0x3172   :  { %v10675_v1 = vadd.f32 %v14067_v13, %v10651_v32  ;;  %v10678_v7 = vmax.f32 %v10674_v18, 0.0 }
0x3173   :  { %v10681_v4 = vmax.f32 %v10677_v39, 0.0 }
0x3174   :  { %v10679_v9 = vmax.f32 %v10675_v1, 0.0 }
0x3175   :  { %v10683_v10 = vpack.c.bf16 %v10681_v4, %v10680_v62 }
0x3176   :  { %v10682_v30 = vpack.c.bf16 %v10679_v9, %v10678_v7 }
0x3178   :  { %16440 = vmatprep.mubr.bf16.mxu0 %v10682_v30 }
0x3179   :  { %16441 = vmatmul.mubr.bf16.vlgmr.msra.gmra.mrb[200].mxu0 %v10683_v10 }
0x317a   :  { %16448 = vmatprep.mubr.msk.bf16.mxu0 %vm2939_vm4, %v17571_v11 }
0x324c   :  { %v16442_v19 = vpop.f32.mrb[200].mxu0 }
0x324d   :  { %v10798_v61 = vadd.f32 %v16442_v19, %v14068_v31  ;;  %v10789_v15 = vpop.f32.mrb[201].mxu0 }
0x324e   :  { %v10790_v20 = vadd.f32 %v14068_v31, %v10789_v15  ;;  %v16443_v23 = vpop.f32.mrb[202].mxu0 }
0x324f   :  { %v10801_v53 = vadd.f32 %v16443_v23, %v14068_v31  ;;  %v10792_v59 = vpop.f32.mrb[203].mxu0  ;;  %v10806_v26 = vadd.f32 %v10798_v61, %v21018_v51  ;;  %v17580_v51 = vld [vmem:[%s21440_s0 + $0x48] sm:$0xff]  }
0x3250   :  { %v10793_v24 = vadd.f32 %v14068_v31, %v10792_v59  ;;  %v10804_v29 = vadd.f32 %v10790_v20, %v21012_v46  ;;  %v17581_v46 = vld [vmem:[%s21440_s0 + $0x50] sm:$0xff]   ;;  %v17592_v20 = vld [vmem:[#allocation17 + $0x8] sm:$0xff]   ;;  %v17593_v59 = vld [vmem:[#allocation17 + $0x10] sm:$0xff]  }
0x3251   :  { %v10807_v27 = vadd.f32 %v10801_v53, %v21015_v49  ;;  %v17573_v49 = vld [vmem:[%s21440_s0 + $0x10] sm:$0xff]  }
0x3252   :  { %v10805_v22 = vadd.f32 %v10793_v24, %v21021_v55  ;;  %v17583_v55 = vld [vmem:[#allocation17 + $0x40] sm:$0xff]  }
0x3253   :  { %v10809_v48 = vpack.c.bf16 %v10807_v27, %v10806_v26 }
0x3254   :  { %v10808_v52 = vpack.c.bf16 %v10805_v22, %v10804_v29  ;;  %v17594_v22 = vld [vmem:[#allocation17 + $0x18] sm:$0xff]  }
0x3256   :  { %16444 = vmatprep.subr.bf16.mxu0 %v10808_v52  ;;  %16516 = vmatprep.subr.bf16.mxu1 %v10808_v52 }
0x3257   :  { %16445 = vmatpush3.bf16.msra.mxu0 %v10808_v52  ;;  %16517 = vmatpush3.bf16.msra.mxu1 %v10808_v52 }
0x3258   :  { %16446 = vmatprep.subr.bf16.mxu0 %v10809_v48  ;;  %16518 = vmatprep.subr.bf16.mxu1 %v10809_v48 }
0x325b   :  { %16447 = vmatpush3.bf16.msra.mxu0 %v10809_v48  ;;  %16519 = vmatpush3.bf16.msra.mxu1 %v10809_v48 }
0x325c   :  { %16456 = vmatprep.subr.bf16.mxu0 %v10808_v52 }
0x325e   :  { %16449 = vmatmul.mubr.msk.bf16.vlgmr.msra.gmra.mrb[204].mxu0 %vm2939_vm4, %v17572_v35  ;;  %16521 = vmatmul.mubr.msk.bf16.vlgmr.msra.gmra.mrb[212].mxu1 %vm2939_vm4, %v17580_v51  ;;  %v17597_v35 = vld [vmem:[#allocation17 + $0x30] sm:$0xff]   ;;  %v17598_v51 = vld [vmem:[#allocation17 + $0x38] sm:$0xff]  }
0x325f   :  { %16457 = vmatpush3.bf16.msra.mxu0 %v10808_v52  ;;  %16452 = vmatprep.mubr.msk.bf16.mxu0 %vm2939_vm4, %v17573_v49  ;;  %v17596_v52 = vld [vmem:[#allocation17 + $0x28] sm:$0xff]   ;;  %v17599_v49 = vld [vmem:[#allocation17 + $0x80] sm:$0xff]  }
0x3260   :  { %16458 = vmatprep.subr.bf16.mxu0 %v10809_v48  ;;  %16524 = vmatprep.mubr.msk.bf16.mxu1 %vm2939_vm4, %v17581_v46  ;;  %v17600_v46 = vld [vmem:[#allocation17 + $0x88] sm:$0xff]  }
0x3263   :  { %16459 = vmatpush3.bf16.msra.mxu0 %v10809_v48  ;;  %v17595_v48 = vld [vmem:[#allocation17 + $0x20] sm:$0xff]  }
0x3264   :  { %16468 = vmatprep.subr.bf16.mxu0 %v17583_v55 }
0x3266   :  { %16453 = vmatmul.mubr.msk.bf16.gmra.mrb[208].mxu0 %vm2939_vm4, %v17574_v63  ;;  %16525 = vmatmul.mubr.msk.bf16.gmra.mrb[216].mxu1 %vm2939_vm4, %v17582_v36  ;;  %v17602_v63 = vld [vmem:[#allocation17 + $0x98] sm:$0xff]   ;;  %v17603_v36 = vld [vmem:[#allocation17 + $0xa0] sm:$0xff]  }
0x3267   :  { %16460 = vmatprep.mubr.msk.bf16.mxu0 %vm2939_vm4, %v17575_v6  ;;  %v17604_v6 = vld [vmem:[#allocation17 + $0xa8] sm:$0xff]  }
0x326e   :  { %16461 = vmatmul.mubr.msk.bf16.vlgmr.msra.gmra.mrb[212].mxu0 %vm2939_vm4, %v17576_v40  ;;  %v17605_v40 = vld [vmem:[#allocation17 + $0xb0] sm:$0xff]  }
0x326f   :  { %16464 = vmatprep.mubr.msk.bf16.mxu0 %vm2939_vm4, %v17577_v54  ;;  %16469 = vmatpush3.bf16.msra.mxu0 %v17583_v55  ;;  %v17601_v55 = vld [vmem:[#allocation17 + $0x90] sm:$0xff]   ;;  %v17606_v54 = vld [vmem:[#allocation17 + $0xb8] sm:$0xff]  }
0x3270   :  { %16470 = vmatprep.subr.bf16.mxu0 %v17584_v28 }
0x3273   :  { %16471 = vmatpush3.bf16.msra.mxu0 %v17584_v28  ;;  %v17607_v28 = vld [vmem:[#allocation40] sm:$0xff]  }
0x3274   :  { %16472 = vmatprep.subr.bf16.mxu0 %v17585_v5  ;;  %16560 = vmatprep.mubr.msk.bf16.mxu1 %vm1157_vm0, %v17607_v28 }
0x3276   :  { %16465 = vmatmul.mubr.msk.bf16.gmra.mrb[216].mxu0 %vm2939_vm4, %v17578_v33 }
0x3277   :  { %16473 = vmatpush3.bf16.msra.mxu0 %v17585_v5  ;;  %v17615_v5 = vld [vmem:[#allocation40 + $0x40] sm:$0xff]  }
0x3278   :  { %16474 = vmatprep.subr.bf16.mxu0 %v17586_v38 }
0x327b   :  { %16475 = vmatpush3.bf16.msra.mxu0 %v17586_v38  ;;  %v14141_v38 = vld [vmem:[#allocation16] ss:$0 sm:$0xff] }
0x327c   :  { %16476 = vmatprep.subr.bf16.mxu0 %v17587_v12 }
0x327f   :  { %16477 = vmatpush3.bf16.msra.mxu0 %v17587_v12 }
0x3280   :  { %16478 = vmatprep.subr.bf16.mxu0 %v17588_v34 }
0x3283   :  { %16479 = vmatpush3.bf16.msra.mxu0 %v17588_v34 }
0x3284   :  { %16480 = vmatprep.subr.bf16.mxu0 %v17589_v60 }
0x3287   :  { %16481 = vmatpush3.bf16.msra.mxu0 %v17589_v60 }
0x3288   :  { %16482 = vmatprep.subr.bf16.mxu0 %v17590_v3 }
0x328b   :  { %16483 = vmatpush3.bf16.msra.mxu0 %v17590_v3 }
0x328c   :  { %16492 = vmatprep.subr.bf16.mxu0 %v17591_v41 }
0x3331   :  { %v21059_v42 = vpop.f32.mrb[204].mxu0  ;;  %v21061_v43 = vpop.f32.mrb[212].mxu1 }
0x3332   :  { %v10884_v44 = vpop.f32.mrb[205].mxu0  ;;  %v21063_v45 = vpop.f32.mrb[213].mxu1 }
0x3333   :  { %v16451_v47 = vpop.f32.mrb[206].mxu0  ;;  %v21065_v56 = vpop.f32.mrb[214].mxu1 }
0x3334   :  { %v10916_v57 = vpack.c.bf16 %v16451_v47, %v21059_v42  ;;  %v10887_v50 = vpop.f32.mrb[207].mxu0  ;;  %v11395_v58 = vpack.c.bf16 %v21065_v56, %v21061_v43  ;;  %v21070_v13 = vpop.f32.mrb[215].mxu1 }
0x3335   :  { %v10915_v2 = vpack.c.bf16 %v10887_v50, %v10884_v44  ;;  %v11394_v8 = vpack.c.bf16 %v21070_v13, %v21063_v45 }
0x3339   :  { %v16454_v16 = vpop.f32.mrb[208].mxu0  ;;  %v21074_v18 = vpop.f32.mrb[216].mxu1 }
0x333a   :  { %v10900_v37 = vpop.f32.mrb[209].mxu0  ;;  %v21076_v39 = vpop.f32.mrb[217].mxu1 }
0x333b   :  { %v16455_v32 = vpop.f32.mrb[210].mxu0  ;;  %v21078_v1 = vpop.f32.mrb[218].mxu1 }
0x333c   :  { %v10918_v62 = vpack.c.bf16 %v16455_v32, %v16454_v16  ;;  %v10903_v4 = vpop.f32.mrb[211].mxu0  ;;  %v11397_v7 = vpack.c.bf16 %v21078_v1, %v21074_v18  ;;  %v21082_v9 = vpop.f32.mrb[219].mxu1  ;;  %v17609_v32 = vld [vmem:[#allocation40 + $0x10] sm:$0xff]  }
0x333d   :  { %v10917_v10 = vpack.c.bf16 %v10903_v4, %v10900_v37  ;;  %v11396_v30 = vpack.c.bf16 %v21082_v9, %v21076_v39  ;;  %v17608_v37 = vld [vmem:[#allocation40 + $0x8] sm:$0xff]   ;;  %v17617_v1 = vld [vmem:[#allocation40 + $0x50] sm:$0xff]   ;;  %v17618_v4 = vld [vmem:[#allocation40 + $0x58] sm:$0xff]  }
0x333e   :  { %v17616_v39 = vld [vmem:[#allocation40 + $0x48] sm:$0xff]   ;;  %v17619_v9 = vld [vmem:[#allocation41 + $0x40] sm:$0xff]  }
0x3341   :  { %v16462_v11 = vpop.f32.mrb[212].mxu0 }
0x3342   :  { %v11010_v17 = vpop.f32.mrb[213].mxu0 }
0x3343   :  { %v16463_v31 = vpop.f32.mrb[214].mxu0 }
0x3344   :  { %v11042_v19 = vpack.c.bf16 %v16463_v31, %v16462_v11  ;;  %v11013_v61 = vpop.f32.mrb[215].mxu0  ;;  %v17620_v11 = vld [vmem:[#allocation41 + $0x48] sm:$0xff]   ;;  %v17614_v31 = vld [vmem:[#allocation40 + $0x38] sm:$0xff]  }
0x3345   :  { %v11041_v15 = vpack.c.bf16 %v11013_v61, %v11010_v17  ;;  %v17621_v17 = vld [vmem:[#allocation41 + $0x50] sm:$0xff]   ;;  %v17623_v61 = vld [vmem:[#allocation41 + $0x60] sm:$0xff]  }
0x3347   :  { %16484 = vmatprep.mubr.bf16.mxu0 %v11041_v15  ;;  %v17624_v15 = vld [vmem:[#allocation41 + $0x68] sm:$0xff]  }
0x3348   :  { %16485 = vmatmul.mubr.bf16.vlgmr.msra.gmra.mrb[220].mxu0 %v11042_v19  ;;  %v17622_v19 = vld [vmem:[#allocation41 + $0x58] sm:$0xff]  }
0x3349   :  { %16493 = vmatpush3.bf16.msra.mxu0 %v17591_v41  ;;  %v16466_v23 = vpop.f32.mrb[216].mxu0 }
0x334a   :  { %v11026_v53 = vpop.f32.mrb[217].mxu0  ;;  %16494 = vmatprep.subr.bf16.mxu0 %v17592_v20 }
0x334b   :  { %v16467_v24 = vpop.f32.mrb[218].mxu0 }
0x334c   :  { %v11044_v26 = vpack.c.bf16 %v16467_v24, %v16466_v23  ;;  %v11029_v27 = vpop.f32.mrb[219].mxu0  ;;  %v17626_v23 = vld [vmem:[#allocation41 + $0x78] sm:$0xff]  }
0x334d   :  { %v11043_v29 = vpack.c.bf16 %v11029_v27, %v11026_v53  ;;  %16495 = vmatpush3.bf16.msra.mxu0 %v17592_v20  ;;  %v17625_v20 = vld [vmem:[#allocation41 + $0x70] sm:$0xff]   ;;  %v17627_v53 = vld [vmem:[#allocation41] sm:$0xff]  }
0x334e   :  { %16496 = vmatprep.subr.bf16.mxu0 %v17593_v59 }
0x334f   :  { %16488 = vmatprep.mubr.bf16.mxu0 %v11043_v29 }
0x3350   :  { %16489 = vmatmul.mubr.bf16.gmra.mrb[224].mxu0 %v11044_v26 }
0x3351   :  { %16497 = vmatpush3.bf16.msra.mxu0 %v17593_v59  ;;  %16508 = vmatprep.mubr.bf16.mxu0 %v10915_v2 }
0x3352   :  { %16498 = vmatprep.subr.bf16.mxu0 %v17594_v22 }
0x3355   :  { %16499 = vmatpush3.bf16.msra.mxu0 %v17594_v22 }
0x3356   :  { %16500 = vmatprep.subr.bf16.mxu0 %v17595_v48 }
0x3359   :  { %16501 = vmatpush3.bf16.msra.mxu0 %v17595_v48 }
0x335a   :  { %16502 = vmatprep.subr.bf16.mxu0 %v17596_v52 }
0x335d   :  { %16503 = vmatpush3.bf16.msra.mxu0 %v17596_v52 }
0x335e   :  { %16504 = vmatprep.subr.bf16.mxu0 %v17597_v35 }
0x3361   :  { %16505 = vmatpush3.bf16.msra.mxu0 %v17597_v35 }
0x3362   :  { %16506 = vmatprep.subr.bf16.mxu0 %v17598_v51 }
0x3365   :  { %16507 = vmatpush3.bf16.msra.mxu0 %v17598_v51 }
0x3366   :  { %16528 = vmatprep.subr.bf16.mxu0 %v17599_v49 }
0x3368   :  { %16509 = vmatmul.mubr.bf16.vlgmr.msra.gmra.mrb[220].mxu0 %v10916_v57 }
0x3369   :  { %16512 = vmatprep.mubr.bf16.mxu0 %v10917_v10  ;;  %16529 = vmatpush3.bf16.msra.mxu0 %v17599_v49  ;;  %v17612_v10 = vld [vmem:[#allocation40 + $0x28] sm:$0xff]  }
0x336a   :  { %16530 = vmatprep.subr.bf16.mxu0 %v17600_v46 }
0x336d   :  { %16531 = vmatpush3.bf16.msra.mxu0 %v17600_v46 }
0x336e   :  { %16532 = vmatprep.subr.bf16.mxu0 %v17601_v55 }
0x3370   :  { %16513 = vmatmul.mubr.bf16.gmra.mrb[224].mxu0 %v10918_v62  ;;  %v17610_v62 = vld [vmem:[#allocation40 + $0x18] sm:$0xff]  }
0x3371   :  { %16533 = vmatpush3.bf16.msra.mxu0 %v17601_v55  ;;  %16544 = vmatprep.mubr.bf16.mxu0 %v11394_v8 }
0x3372   :  { %16534 = vmatprep.subr.bf16.mxu0 %v17602_v63 }
0x3375   :  { %16535 = vmatpush3.bf16.msra.mxu0 %v17602_v63 }
0x3376   :  { %16536 = vmatprep.subr.bf16.mxu0 %v17603_v36 }
0x3379   :  { %16537 = vmatpush3.bf16.msra.mxu0 %v17603_v36 }
0x337a   :  { %16538 = vmatprep.subr.bf16.mxu0 %v17604_v6 }
0x337d   :  { %16539 = vmatpush3.bf16.msra.mxu0 %v17604_v6 }
0x337e   :  { %16540 = vmatprep.subr.bf16.mxu0 %v17605_v40 }
0x3381   :  { %16541 = vmatpush3.bf16.msra.mxu0 %v17605_v40 }
0x3382   :  { %16542 = vmatprep.subr.bf16.mxu0 %v17606_v54 }
0x3385   :  { %16543 = vmatpush3.bf16.msra.mxu0 %v17606_v54 }
0x3388   :  { %16545 = vmatmul.mubr.bf16.vlgmr.msra.gmra.mrb[220].mxu0 %v11395_v58 }
0x3389   :  { %16548 = vmatprep.mubr.bf16.mxu0 %v11396_v30  ;;  %v17613_v30 = vld [vmem:[#allocation40 + $0x30] sm:$0xff]  }
0x3390   :  { %16549 = vmatmul.mubr.bf16.gmra.mrb[224].mxu0 %v11397_v7  ;;  %v17611_v7 = vld [vmem:[#allocation40 + $0x20] sm:$0xff]  }
0x3391   :  { %16640 = vmatprep.mubr.msk.bf16.mxu0 %vm1157_vm0, %v17615_v5 }
0x345b   :  { %v16546_v33 = vpop.f32.mrb[220].mxu0 }
0x345c   :  { %v11497_v12 = vpop.f32.mrb[221].mxu0  ;;  %v11545_v60 = vadd.f32 %v16546_v33, %v14141_v38 }
0x345d   :  { %v16547_v34 = vpop.f32.mrb[222].mxu0  ;;  %v11543_v42 = vadd.f32 %v14141_v38, %v11497_v12 }
0x345e   :  { %v11546_v3 = vadd.f32 %v16547_v34, %v14141_v38  ;;  %v11500_v41 = vpop.f32.mrb[223].mxu0 }
0x345f   :  { %v11544_v43 = vadd.f32 %v14141_v38, %v11500_v41 }
0x3460   :  { %v11552_v44 = vpack.c.bf16 %v11546_v3, %v11545_v60 }
0x3461   :  { %v11551_v45 = vpack.c.bf16 %v11544_v43, %v11543_v42 }
0x3463   :  { %v16550_v47 = vpop.f32.mrb[224].mxu0  ;;  %16552 = vmatprep.subr.bf16.mxu1 %v11551_v45  ;;  %16632 = vmatprep.subr.bf16.mxu0 %v11551_v45 }
0x3464   :  { %v11513_v56 = vpop.f32.mrb[225].mxu0  ;;  %16553 = vmatpush3.bf16.msra.mxu1 %v11551_v45  ;;  %16633 = vmatpush3.bf16.msra.mxu0 %v11551_v45  ;;  %v11549_v50 = vadd.f32 %v16550_v47, %v14141_v38 }
0x3465   :  { %v16551_v57 = vpop.f32.mrb[226].mxu0  ;;  %16554 = vmatprep.subr.bf16.mxu1 %v11552_v44  ;;  %16634 = vmatprep.subr.bf16.mxu0 %v11552_v44  ;;  %v11547_v2 = vadd.f32 %v14141_v38, %v11513_v56 }
0x3466   :  { %v11550_v58 = vadd.f32 %v16551_v57, %v14141_v38  ;;  %v11516_v13 = vpop.f32.mrb[227].mxu0  ;;  %v17629_v57 = vld [vmem:[#allocation41 + $0x10] sm:$0xff]  }
0x3467   :  { %v11548_v8 = vadd.f32 %v14141_v38, %v11516_v13 }
0x3468   :  { %v11554_v16 = vpack.c.bf16 %v11550_v58, %v11549_v50  ;;  %16555 = vmatpush3.bf16.msra.mxu1 %v11552_v44  ;;  %16635 = vmatpush3.bf16.msra.mxu0 %v11552_v44 }
0x3469   :  { %v11553_v18 = vpack.c.bf16 %v11548_v8, %v11547_v2  ;;  %v17630_v8 = vld [vmem:[#allocation41 + $0x18] sm:$0xff]  }
0x346b   :  { %16556 = vmatprep.subr.bf16.mxu1 %v11553_v18  ;;  %16636 = vmatprep.subr.bf16.mxu0 %v11553_v18 }
0x346c   :  { %16557 = vmatpush3.bf16.msra.mxu1 %v11553_v18  ;;  %16637 = vmatpush3.bf16.msra.mxu0 %v11553_v18 }
0x346d   :  { %16558 = vmatprep.subr.bf16.mxu1 %v11554_v16  ;;  %16638 = vmatprep.subr.bf16.mxu0 %v11554_v16 }
0x3470   :  { %16559 = vmatpush3.bf16.msra.mxu1 %v11554_v16  ;;  %16639 = vmatpush3.bf16.msra.mxu0 %v11554_v16 }
0x3471   :  { %16568 = vmatprep.subr.bf16.mxu1 %v11551_v45 }
0x3473   :  { %16561 = vmatmul.mubr.msk.bf16.vlgmr.msra.gmra.mrb[220].mxu1 %vm1157_vm0, %v17608_v37  ;;  %16641 = vmatmul.mubr.msk.bf16.vlgmr.msra.gmra.mrb[228].mxu0 %vm1157_vm0, %v17616_v39  ;;  %v17633_v37 = vld [vmem:[#allocation41 + $0x30] sm:$0xff]   ;;  %v17634_v39 = vld [vmem:[#allocation41 + $0x38] sm:$0xff]  }
0x3474   :  { %16569 = vmatpush3.bf16.msra.mxu1 %v11551_v45  ;;  %16564 = vmatprep.mubr.msk.bf16.mxu1 %vm1157_vm0, %v17609_v32  ;;  %v17628_v45 = vld [vmem:[#allocation41 + $0x8] sm:$0xff]   ;;  %v17635_v32 = vld [vmem:[#allocation41 + $0x80] sm:$0xff]  }
0x3475   :  { %16570 = vmatprep.subr.bf16.mxu1 %v11552_v44  ;;  %16644 = vmatprep.mubr.msk.bf16.mxu0 %vm1157_vm0, %v17617_v1  ;;  %v17636_v1 = vld [vmem:[#allocation41 + $0x88] sm:$0xff]  }
0x3478   :  { %16571 = vmatpush3.bf16.msra.mxu1 %v11552_v44 }
0x3479   :  { %16572 = vmatprep.subr.bf16.mxu1 %v11553_v18 }
0x347b   :  { %16565 = vmatmul.mubr.msk.bf16.gmra.mrb[224].mxu1 %vm1157_vm0, %v17610_v62  ;;  %16645 = vmatmul.mubr.msk.bf16.gmra.mrb[232].mxu0 %vm1157_vm0, %v17618_v4  ;;  %v17637_v62 = vld [vmem:[#allocation41 + $0x90] sm:$0xff]   ;;  %v17638_v4 = vld [vmem:[#allocation41 + $0x98] sm:$0xff]  }
0x347c   :  { %16573 = vmatpush3.bf16.msra.mxu1 %v11553_v18  ;;  %16576 = vmatprep.mubr.msk.bf16.mxu1 %vm1157_vm0, %v17611_v7  ;;  %v17632_v18 = vld [vmem:[#allocation41 + $0x28] sm:$0xff]   ;;  %v17639_v7 = vld [vmem:[#allocation41 + $0xa0] sm:$0xff]  }
0x347d   :  { %16574 = vmatprep.subr.bf16.mxu1 %v11554_v16 }
0x3480   :  { %16575 = vmatpush3.bf16.msra.mxu1 %v11554_v16  ;;  %v17631_v16 = vld [vmem:[#allocation41 + $0x20] sm:$0xff]  }
0x3481   :  { %16584 = vmatprep.subr.bf16.mxu1 %v17619_v9 }
0x3483   :  { %16577 = vmatmul.mubr.msk.bf16.vlgmr.msra.gmra.mrb[228].mxu1 %vm1157_vm0, %v17612_v10  ;;  %v17641_v10 = vld [vmem:[#allocation41 + $0xb0] sm:$0xff]  }
0x3484   :  { %16580 = vmatprep.mubr.msk.bf16.mxu1 %vm1157_vm0, %v17613_v30  ;;  %16585 = vmatpush3.bf16.msra.mxu1 %v17619_v9  ;;  %v17640_v9 = vld [vmem:[#allocation41 + $0xa8] sm:$0xff]   ;;  %v17642_v30 = vld [vmem:[#allocation41 + $0xb8] sm:$0xff]  }
0x3485   :  { %16586 = vmatprep.subr.bf16.mxu1 %v17620_v11 }
0x3488   :  { %16587 = vmatpush3.bf16.msra.mxu1 %v17620_v11  ;;  %v17643_v11 = vld [vmem:[#allocation43] sm:$0xff]  }
0x3489   :  { %16588 = vmatprep.subr.bf16.mxu1 %v17621_v17  ;;  %16680 = vmatprep.mubr.msk.bf16.mxu0 %vm1157_vm0, %v17643_v11 }
0x348b   :  { %16581 = vmatmul.mubr.msk.bf16.gmra.mrb[232].mxu1 %vm1157_vm0, %v17614_v31  ;;  %v14190_v31 = vld [vmem:[#allocation38] ss:$0 sm:$0xff] }
0x348c   :  { %16589 = vmatpush3.bf16.msra.mxu1 %v17621_v17  ;;  %v17651_v17 = vld [vmem:[#allocation43 + $0x40] sm:$0xff]  }
0x348d   :  { %16590 = vmatprep.subr.bf16.mxu1 %v17622_v19 }
0x3490   :  { %16591 = vmatpush3.bf16.msra.mxu1 %v17622_v19 }
0x3491   :  { %16592 = vmatprep.subr.bf16.mxu1 %v17623_v61 }
0x3494   :  { %16593 = vmatpush3.bf16.msra.mxu1 %v17623_v61 }
0x3495   :  { %16594 = vmatprep.subr.bf16.mxu1 %v17624_v15 }
0x3498   :  { %16595 = vmatpush3.bf16.msra.mxu1 %v17624_v15 }
0x3499   :  { %16596 = vmatprep.subr.bf16.mxu1 %v17625_v20 }
0x349c   :  { %16597 = vmatpush3.bf16.msra.mxu1 %v17625_v20 }
0x349d   :  { %16598 = vmatprep.subr.bf16.mxu1 %v17626_v23 }
0x34a0   :  { %16599 = vmatpush3.bf16.msra.mxu1 %v17626_v23 }
0x34a1   :  { %16608 = vmatprep.subr.bf16.mxu1 %v17627_v53 }
0x3546   :  { %v21110_v59 = vpop.f32.mrb[220].mxu1  ;;  %v21112_v24 = vpop.f32.mrb[228].mxu0 }
0x3547   :  { %v11629_v26 = vpop.f32.mrb[221].mxu1  ;;  %v21114_v27 = vpop.f32.mrb[229].mxu0 }
0x3548   :  { %v16563_v29 = vpop.f32.mrb[222].mxu1  ;;  %v21116_v22 = vpop.f32.mrb[230].mxu0 }
0x3549   :  { %v11661_v48 = vpack.c.bf16 %v16563_v29, %v21110_v59  ;;  %v11632_v52 = vpop.f32.mrb[223].mxu1  ;;  %v12140_v35 = vpack.c.bf16 %v21116_v22, %v21112_v24  ;;  %v21121_v51 = vpop.f32.mrb[231].mxu0 }
0x354a   :  { %v11660_v49 = vpack.c.bf16 %v11632_v52, %v11629_v26  ;;  %v12139_v46 = vpack.c.bf16 %v21121_v51, %v21114_v27 }
0x354e   :  { %v16566_v55 = vpop.f32.mrb[224].mxu1  ;;  %v21125_v63 = vpop.f32.mrb[232].mxu0 }
0x354f   :  { %v11645_v36 = vpop.f32.mrb[225].mxu1  ;;  %v21127_v6 = vpop.f32.mrb[233].mxu0 }
0x3550   :  { %v16567_v40 = vpop.f32.mrb[226].mxu1  ;;  %v21129_v54 = vpop.f32.mrb[234].mxu0 }
0x3551   :  { %v11663_v28 = vpack.c.bf16 %v16567_v40, %v16566_v55  ;;  %v11648_v5 = vpop.f32.mrb[227].mxu1  ;;  %v12142_v33 = vpack.c.bf16 %v21129_v54, %v21125_v63  ;;  %v21133_v38 = vpop.f32.mrb[235].mxu0 }
0x3552   :  { %v11662_v12 = vpack.c.bf16 %v11648_v5, %v11645_v36  ;;  %v12141_v34 = vpack.c.bf16 %v21133_v38, %v21127_v6 }
0x3556   :  { %v16578_v60 = vpop.f32.mrb[228].mxu1 }
0x3557   :  { %v11755_v3 = vpop.f32.mrb[229].mxu1 }
0x3558   :  { %v16579_v41 = vpop.f32.mrb[230].mxu1 }
0x3559   :  { %v11787_v42 = vpack.c.bf16 %v16579_v41, %v16578_v60  ;;  %v11758_v43 = vpop.f32.mrb[231].mxu1  ;;  %v17645_v60 = vld [vmem:[#allocation43 + $0x10] sm:$0xff]   ;;  %v17646_v41 = vld [vmem:[#allocation43 + $0x18] sm:$0xff]  }
0x355a   :  { %v11786_v44 = vpack.c.bf16 %v11758_v43, %v11755_v3  ;;  %v17653_v3 = vld [vmem:[#allocation43 + $0x50] sm:$0xff]   ;;  %v17647_v43 = vld [vmem:[#allocation43 + $0x20] sm:$0xff]  }
0x355c   :  { %16600 = vmatprep.mubr.bf16.mxu1 %v11786_v44  ;;  %v17657_v44 = vld [vmem:[#allocation44 + $0x84] ss:$8 sps:$4 sm:$0xff]  }
0x355d   :  { %16601 = vmatmul.mubr.bf16.vlgmr.msra.gmra.mrb[236].mxu1 %v11787_v42  ;;  %v17654_v42 = vld [vmem:[#allocation43 + $0x58] sm:$0xff]  }
0x355e   :  { %16609 = vmatpush3.bf16.msra.mxu1 %v17627_v53  ;;  %v16582_v47 = vpop.f32.mrb[232].mxu1 }
0x355f   :  { %v11771_v56 = vpop.f32.mrb[233].mxu1  ;;  %16610 = vmatprep.subr.bf16.mxu1 %v17628_v45 }
0x3560   :  { %v16583_v50 = vpop.f32.mrb[234].mxu1 }
0x3561   :  { %v11789_v58 = vpack.c.bf16 %v16583_v50, %v16582_v47  ;;  %v11774_v13 = vpop.f32.mrb[235].mxu1  ;;  %v17649_v47 = vld [vmem:[#allocation43 + $0x30] sm:$0xff]  }
0x3562   :  { %v11788_v2 = vpack.c.bf16 %v11774_v13, %v11771_v56  ;;  %16611 = vmatpush3.bf16.msra.mxu1 %v17628_v45  ;;  %v17648_v45 = vld [vmem:[#allocation43 + $0x28] sm:$0xff]   ;;  %v17658_v50 = vld [vmem:[#allocation44 + $0x90] ss:$8 sps:$4 sm:$0xff]  }
0x3563   :  { %16612 = vmatprep.subr.bf16.mxu1 %v17629_v57  ;;  %v17655_v56 = vld [vmem:[#allocation44 + $0x80] ss:$8 sps:$4 sm:$0xff]   ;;  %v17650_v13 = vld [vmem:[#allocation43 + $0x38] sm:$0xff]  }
0x3564   :  { %16604 = vmatprep.mubr.bf16.mxu1 %v11788_v2  ;;  %v17661_v2 = vld [vmem:[#allocation44 + $0xa0] ss:$8 sps:$4 sm:$0xff]  }
0x3565   :  { %16605 = vmatmul.mubr.bf16.gmra.mrb[240].mxu1 %v11789_v58  ;;  %v17663_v58 = vld [vmem:[#allocation44 + $0xa4] ss:$8 sps:$4 sm:$0xff]  }
0x3566   :  { %16613 = vmatpush3.bf16.msra.mxu1 %v17629_v57  ;;  %16624 = vmatprep.mubr.bf16.mxu1 %v11660_v49  ;;  %v17660_v57 = vld [vmem:[#allocation44 + $0x94] ss:$8 sps:$4 sm:$0xff]  }
0x3567   :  { %16614 = vmatprep.subr.bf16.mxu1 %v17630_v8 }
0x356a   :  { %16615 = vmatpush3.bf16.msra.mxu1 %v17630_v8  ;;  %v17664_v8 = vld [vmem:[#allocation44 + $0xb0] ss:$8 sps:$4 sm:$0xff]  }
0x356b   :  { %16616 = vmatprep.subr.bf16.mxu1 %v17631_v16 }
0x356e   :  { %16617 = vmatpush3.bf16.msra.mxu1 %v17631_v16  ;;  %v17666_v16 = vld [vmem:[#allocation44 + $0xb4] ss:$8 sps:$4 sm:$0xff]  }
0x356f   :  { %16618 = vmatprep.subr.bf16.mxu1 %v17632_v18 }
0x3572   :  { %16619 = vmatpush3.bf16.msra.mxu1 %v17632_v18  ;;  %v17667_v18 = vld [vmem:[#allocation44 + $0xc0] ss:$8 sps:$4 sm:$0xff]  }
0x3573   :  { %16620 = vmatprep.subr.bf16.mxu1 %v17633_v37 }
0x3576   :  { %16621 = vmatpush3.bf16.msra.mxu1 %v17633_v37  ;;  %v17669_v37 = vld [vmem:[#allocation44 + $0xc4] ss:$8 sps:$4 sm:$0xff]  }
0x3577   :  { %16622 = vmatprep.subr.bf16.mxu1 %v17634_v39 }
0x357a   :  { %16623 = vmatpush3.bf16.msra.mxu1 %v17634_v39  ;;  %v17670_v39 = vld [vmem:[#allocation44 + $0xd0] ss:$8 sps:$4 sm:$0xff]  }
0x357b   :  { %16648 = vmatprep.subr.bf16.mxu1 %v17635_v32 }
0x357d   :  { %16625 = vmatmul.mubr.bf16.vlgmr.msra.gmra.mrb[236].mxu1 %v11661_v48 }
0x357e   :  { %16628 = vmatprep.mubr.bf16.mxu1 %v11662_v12  ;;  %16649 = vmatpush3.bf16.msra.mxu1 %v17635_v32  ;;  %v17644_v12 = vld [vmem:[#allocation43 + $0x8] sm:$0xff]   ;;  %v17672_v32 = vld [vmem:[#allocation44 + $0xd4] ss:$8 sps:$4 sm:$0xff]  }
0x357f   :  { %16650 = vmatprep.subr.bf16.mxu1 %v17636_v1 }
0x3582   :  { %16651 = vmatpush3.bf16.msra.mxu1 %v17636_v1  ;;  %v17673_v1 = vld [vmem:[#allocation44 + $0xe0] ss:$8 sps:$4 sm:$0xff]  }
0x3583   :  { %16652 = vmatprep.subr.bf16.mxu1 %v17637_v62 }
0x3585   :  { %16629 = vmatmul.mubr.bf16.gmra.mrb[240].mxu1 %v11663_v28 }
0x3586   :  { %16653 = vmatpush3.bf16.msra.mxu1 %v17637_v62  ;;  %16664 = vmatprep.mubr.bf16.mxu1 %v12139_v46  ;;  %v17675_v62 = vld [vmem:[#allocation44 + $0xe4] ss:$8 sps:$4 sm:$0xff]  }
0x3587   :  { %16654 = vmatprep.subr.bf16.mxu1 %v17638_v4 }
0x358a   :  { %16655 = vmatpush3.bf16.msra.mxu1 %v17638_v4  ;;  %v17678_v4 = vld [vmem:[#allocation44 + $0xf4] ss:$8 sps:$4 sm:$0xff]  }
0x358b   :  { %16656 = vmatprep.subr.bf16.mxu1 %v17639_v7 }
0x358e   :  { %16657 = vmatpush3.bf16.msra.mxu1 %v17639_v7  ;;  %v17676_v7 = vld [vmem:[#allocation44 + $0xf0] ss:$8 sps:$4 sm:$0xff]  }
0x358f   :  { %16658 = vmatprep.subr.bf16.mxu1 %v17640_v9 }
0x3592   :  { %16659 = vmatpush3.bf16.msra.mxu1 %v17640_v9  ;;  %v17681_v9 = vld [vmem:[#allocation44 + $0x4] ss:$8 sps:$4 sm:$0xff]  }
0x3593   :  { %16660 = vmatprep.subr.bf16.mxu1 %v17641_v10 }
0x3596   :  { %16661 = vmatpush3.bf16.msra.mxu1 %v17641_v10 }
0x3597   :  { %16662 = vmatprep.subr.bf16.mxu1 %v17642_v30 }
0x359a   :  { %16663 = vmatpush3.bf16.msra.mxu1 %v17642_v30 }
0x359d   :  { %16665 = vmatmul.mubr.bf16.vlgmr.msra.gmra.mrb[236].mxu1 %v12140_v35 }
0x359e   :  { %16668 = vmatprep.mubr.bf16.mxu1 %v12141_v34  ;;  %v17652_v34 = vld [vmem:[#allocation43 + $0x48] sm:$0xff]  }
0x35a5   :  { %16669 = vmatmul.mubr.bf16.gmra.mrb[240].mxu1 %v12142_v33 }
0x35a6   :  { %16712 = vmatprep.mubr.msk.bf16.mxu1 %vm1157_vm0, %v17651_v17 }
0x3670   :  { %v16666_v19 = vpop.f32.mrb[236].mxu1 }
0x3671   :  { %v12290_v61 = vadd.f32 %v16666_v19, %v14190_v31  ;;  %v12242_v15 = vpop.f32.mrb[237].mxu1 }
0x3672   :  { %v12288_v20 = vadd.f32 %v14190_v31, %v12242_v15  ;;  %v16667_v23 = vpop.f32.mrb[238].mxu1 }
0x3673   :  { %v12291_v53 = vadd.f32 %v16667_v23, %v14190_v31  ;;  %v12245_v59 = vpop.f32.mrb[239].mxu1  ;;  %v12298_v26 = vmax.f32 %v12290_v61, 0.0 }
0x3674   :  { %v12289_v24 = vadd.f32 %v14190_v31, %v12245_v59  ;;  %v12296_v29 = vmax.f32 %v12288_v20, 0.0 }
0x3675   :  { %v12299_v27 = vmax.f32 %v12291_v53, 0.0 }
0x3676   :  { %v12297_v22 = vmax.f32 %v12289_v24, 0.0 }
0x3677   :  { %v12305_v48 = vpack.c.bf16 %v12299_v27, %v12298_v26 }
0x3678   :  { %v12304_v52 = vpack.c.bf16 %v12297_v22, %v12296_v29  ;;  %v16670_v35 = vpop.f32.mrb[240].mxu1 }
0x3679   :  { %v12294_v51 = vadd.f32 %v16670_v35, %v14190_v31  ;;  %v12258_v49 = vpop.f32.mrb[241].mxu1 }
0x367a   :  { %v12292_v46 = vadd.f32 %v14190_v31, %v12258_v49  ;;  %v16671_v55 = vpop.f32.mrb[242].mxu1  ;;  %16672 = vmatprep.subr.bf16.mxu0 %v12304_v52  ;;  %16704 = vmatprep.subr.bf16.mxu1 %v12304_v52 }
0x367b   :  { %v12295_v63 = vadd.f32 %v16671_v55, %v14190_v31  ;;  %v12261_v36 = vpop.f32.mrb[243].mxu1  ;;  %16673 = vmatpush3.bf16.msra.mxu0 %v12304_v52  ;;  %16705 = vmatpush3.bf16.msra.mxu1 %v12304_v52  ;;  %v12302_v40 = vmax.f32 %v12294_v51, 0.0 }
0x367c   :  { %v12293_v6 = vadd.f32 %v14190_v31, %v12261_v36  ;;  %16674 = vmatprep.subr.bf16.mxu0 %v12305_v48  ;;  %16706 = vmatprep.subr.bf16.mxu1 %v12305_v48  ;;  %v12300_v28 = vmax.f32 %v12292_v46, 0.0 }
0x367d   :  { %v12303_v54 = vmax.f32 %v12295_v63, 0.0 }
0x367e   :  { %v12301_v5 = vmax.f32 %v12293_v6, 0.0 }
0x367f   :  { %v12307_v33 = vpack.c.bf16 %v12303_v54, %v12302_v40  ;;  %16675 = vmatpush3.bf16.msra.mxu0 %v12305_v48  ;;  %16707 = vmatpush3.bf16.msra.mxu1 %v12305_v48 }
0x3680   :  { %v12306_v38 = vpack.c.bf16 %v12301_v5, %v12300_v28  ;;  %v17679_v28 = vld [vmem:[#allocation44] ss:$8 sps:$4 sm:$0xff]  }
0x3682   :  { %16676 = vmatprep.subr.bf16.mxu0 %v12306_v38  ;;  %16708 = vmatprep.subr.bf16.mxu1 %v12306_v38 }
0x3683   :  { %16677 = vmatpush3.bf16.msra.mxu0 %v12306_v38  ;;  %16709 = vmatpush3.bf16.msra.mxu1 %v12306_v38 }
0x3684   :  { %16678 = vmatprep.subr.bf16.mxu0 %v12307_v33  ;;  %16710 = vmatprep.subr.bf16.mxu1 %v12307_v33 }
0x3687   :  { %16679 = vmatpush3.bf16.msra.mxu0 %v12307_v33  ;;  %16711 = vmatpush3.bf16.msra.mxu1 %v12307_v33 }
0x3688   :  { %16688 = vmatprep.subr.bf16.mxu0 %v12304_v52 }
0x368a   :  { %16681 = vmatmul.mubr.msk.bf16.vlgmr.msra.gmra.mrb[236].mxu0 %vm1157_vm0, %v17644_v12  ;;  %16713 = vmatmul.mubr.msk.bf16.vlgmr.msra.gmra.mrb[244].mxu1 %vm1157_vm0, %v17652_v34  ;;  %v17687_v12 = vld [vmem:[#allocation44 + $0x24] ss:$8 sps:$4 sm:$0xff]  }
0x368b   :  { %16689 = vmatpush3.bf16.msra.mxu0 %v12304_v52  ;;  %16684 = vmatprep.mubr.msk.bf16.mxu0 %vm1157_vm0, %v17645_v60 }
0x368c   :  { %16690 = vmatprep.subr.bf16.mxu0 %v12305_v48  ;;  %16716 = vmatprep.mubr.msk.bf16.mxu1 %vm1157_vm0, %v17653_v3 }
0x368f   :  { %16691 = vmatpush3.bf16.msra.mxu0 %v12305_v48 }
0x3690   :  { %16692 = vmatprep.subr.bf16.mxu0 %v12306_v38 }
0x3692   :  { %16685 = vmatmul.mubr.msk.bf16.gmra.mrb[240].mxu0 %vm1157_vm0, %v17646_v41  ;;  %16717 = vmatmul.mubr.msk.bf16.gmra.mrb[248].mxu1 %vm1157_vm0, %v17654_v42  ;;  %v17685_v41 = vld [vmem:[#allocation44 + $0x20] ss:$8 sps:$4 sm:$0xff]  }
0x3693   :  { %16693 = vmatpush3.bf16.msra.mxu0 %v12306_v38  ;;  %16696 = vmatprep.mubr.msk.bf16.mxu0 %vm1157_vm0, %v17647_v43  ;;  %v17682_v38 = vld [vmem:[#allocation44 + $0x10] ss:$8 sps:$4 sm:$0xff]  }
0x3694   :  { %16694 = vmatprep.subr.bf16.mxu0 %v12307_v33 }
0x3697   :  { %16695 = vmatpush3.bf16.msra.mxu0 %v12307_v33  ;;  %v17684_v33 = vld [vmem:[#allocation44 + $0x14] ss:$8 sps:$4 sm:$0xff]  }
0x3698   :  { %12640 = vmatprep.subr.bf16.mxu0 %v17657_v44  ;;  %v17690_v44 = vld [vmem:[#allocation44 + $0x34] ss:$8 sps:$4 sm:$0xff]  }
0x369a   :  { %16697 = vmatmul.mubr.msk.bf16.vlgmr.msra.gmra.mrb[244].mxu0 %vm1157_vm0, %v17648_v45 }
0x369b   :  { %16700 = vmatprep.mubr.msk.bf16.mxu0 %vm1157_vm0, %v17649_v47  ;;  %12641 = vmatpush1.bf16.msra.mxu0 %v17655_v56  ;;  %v17688_v47 = vld [vmem:[#allocation44 + $0x30] ss:$8 sps:$4 sm:$0xff]   ;;  %v17693_v56 = vld [vmem:[#allocation44 + $0x44] ss:$8 sps:$4 sm:$0xff]  }
0x369c   :  { %12642 = vmatprep.subr.bf16.mxu0 %v17660_v57  ;;  %v17691_v57 = vld [vmem:[#allocation44 + $0x40] ss:$8 sps:$4 sm:$0xff]  }
0x369f   :  { %12643 = vmatpush1.bf16.msra.mxu0 %v17658_v50  ;;  %v17696_v50 = vld [vmem:[#allocation44 + $0x54] ss:$8 sps:$4 sm:$0xff]  }
0x36a0   :  { %12644 = vmatprep.subr.bf16.mxu0 %v17663_v58  ;;  %v17694_v58 = vld [vmem:[#allocation44 + $0x50] ss:$8 sps:$4 sm:$0xff]  }
0x36a2   :  { %16701 = vmatmul.mubr.msk.bf16.gmra.mrb[248].mxu0 %vm1157_vm0, %v17650_v13  ;;  %v17699_v13 = vld [vmem:[#allocation44 + $0x64] ss:$8 sps:$4 sm:$0xff]  }
0x36a3   :  { %12645 = vmatpush1.bf16.msra.mxu0 %v17661_v2  ;;  %12672 = vmatprep.mubr.bf16.mxu0 %v19395_v0  ;;  %v17697_v2 = vld [vmem:[#allocation44 + $0x60] ss:$8 sps:$4 sm:$0xff]  }
0x36a4   :  { %12646 = vmatprep.subr.bf16.mxu0 %v17666_v16  ;;  %v17700_v16 = vld [vmem:[#allocation44 + $0x70] ss:$8 sps:$4 sm:$0xff]  }
0x36a7   :  { %12647 = vmatpush1.bf16.msra.mxu0 %v17664_v8  ;;  %v17702_v8 = vld [vmem:[#allocation44 + $0x74] ss:$8 sps:$4 sm:$0xff]  }
0x36a8   :  { %12648 = vmatprep.subr.bf16.mxu0 %v17669_v37  ;;  %v17703_v37 = vld [vmem:[#allocation44 + $0x100] ss:$8 sps:$4 sm:$0xff]  }
0x36ab   :  { %12649 = vmatpush1.bf16.msra.mxu0 %v17667_v18  ;;  %v17705_v18 = vld [vmem:[#allocation44 + $0x104] ss:$8 sps:$4 sm:$0xff]  }
0x36ac   :  { %12650 = vmatprep.subr.bf16.mxu0 %v17672_v32  ;;  %v17706_v32 = vld [vmem:[#allocation44 + $0x110] ss:$8 sps:$4 sm:$0xff]  }
0x36af   :  { %12651 = vmatpush1.bf16.msra.mxu0 %v17670_v39  ;;  %v17708_v39 = vld [vmem:[#allocation44 + $0x114] ss:$8 sps:$4 sm:$0xff]  }
0x36b0   :  { %12652 = vmatprep.subr.bf16.mxu0 %v17675_v62  ;;  %v17709_v62 = vld [vmem:[#allocation44 + $0x120] ss:$8 sps:$4 sm:$0xff]  }
0x36b3   :  { %12653 = vmatpush1.bf16.msra.mxu0 %v17673_v1  ;;  %v17711_v1 = vld [vmem:[#allocation44 + $0x124] ss:$8 sps:$4 sm:$0xff]  }
0x36b4   :  { %12654 = vmatprep.subr.bf16.mxu0 %v17678_v4  ;;  %v17714_v4 = vld [vmem:[#allocation44 + $0x134] ss:$8 sps:$4 sm:$0xff]  }
0x36b7   :  { %12655 = vmatpush1.bf16.msra.mxu0 %v17676_v7  ;;  %v17712_v7 = vld [vmem:[#allocation44 + $0x130] ss:$8 sps:$4 sm:$0xff]  }
0x36b8   :  { %12793 = vmatprep.subr.bf16.mxu0 %v17681_v9  ;;  %v17717_v9 = vld [vmem:[#allocation44 + $0x144] ss:$8 sps:$4 sm:$0xff]  }
0x375d   :  { %v21162_v10 = vpop.f32.mrb[236].mxu0  ;;  %v21164_v30 = vpop.f32.mrb[244].mxu1 }
0x375e   :  { %v21166_v11 = vpop.f32.mrb[237].mxu0  ;;  %v21168_v17 = vpop.f32.mrb[245].mxu1 }
0x375f   :  { %v21170_v31 = vpop.f32.mrb[238].mxu0  ;;  %v21172_v19 = vpop.f32.mrb[246].mxu1 }
0x3760   :  { %v12414_v61 = vpack.c.bf16 %v21170_v31, %v21162_v10  ;;  %v21176_v15 = vpop.f32.mrb[239].mxu0  ;;  %v12973_v20 = vpack.c.bf16 %v21172_v19, %v21164_v30  ;;  %v21180_v23 = vpop.f32.mrb[247].mxu1  ;;  %v17723_v10 = vld [vmem:[#allocation44 + $0x164] ss:$8 sps:$4 sm:$0xff]   ;;  %v17721_v31 = vld [vmem:[#allocation44 + $0x160] ss:$8 sps:$4 sm:$0xff]  }
0x3761   :  { %v12413_v53 = vpack.c.bf16 %v21176_v15, %v21166_v11  ;;  %v12972_v59 = vpack.c.bf16 %v21180_v23, %v21168_v17  ;;  %v17715_v11 = vld [vmem:[#allocation44 + $0x140] ss:$8 sps:$4 sm:$0xff]   ;;  %v17720_v15 = vld [vmem:[#allocation44 + $0x154] ss:$8 sps:$4 sm:$0xff]  }
0x3765   :  { %v21186_v24 = vpop.f32.mrb[240].mxu0  ;;  %v21188_v26 = vpop.f32.mrb[248].mxu1 }
0x3766   :  { %v21190_v27 = vpop.f32.mrb[241].mxu0  ;;  %v21192_v29 = vpop.f32.mrb[249].mxu1 }
0x3767   :  { %v21194_v22 = vpop.f32.mrb[242].mxu0  ;;  %v21196_v48 = vpop.f32.mrb[250].mxu1 }
0x3768   :  { %v12416_v52 = vpack.c.bf16 %v21194_v22, %v21186_v24  ;;  %v21200_v35 = vpop.f32.mrb[243].mxu0  ;;  %v12975_v51 = vpack.c.bf16 %v21196_v48, %v21188_v26  ;;  %v21204_v49 = vpop.f32.mrb[251].mxu1 }
0x3769   :  { %v12415_v46 = vpack.c.bf16 %v21200_v35, %v21190_v27  ;;  %v12974_v55 = vpack.c.bf16 %v21204_v49, %v21192_v29 }
0x376d   :  { %v16698_v63 = vpop.f32.mrb[244].mxu0 }
0x376e   :  { %v12508_v36 = vpop.f32.mrb[245].mxu0 }
0x376f   :  { %v16699_v6 = vpop.f32.mrb[246].mxu0 }
0x3770   :  { %v12540_v40 = vpack.c.bf16 %v16699_v6, %v16698_v63  ;;  %v12511_v54 = vpop.f32.mrb[247].mxu0  ;;  %v17724_v63 = vld [vmem:[#allocation44 + $0x170] ss:$8 sps:$4 sm:$0xff]  }
0x3771   :  { %v12539_v5 = vpack.c.bf16 %v12511_v54, %v12508_v36 }
0x3773   :  { %12673 = vmatmul.mubr.bf16.vlgmr.msra.gmra.mrb[252].mxu0 %v12539_v5 }
0x3774   :  { %12794 = vmatpush1.bf16.msra.mxu0 %v17679_v28  ;;  %12682 = vmatprep.mubr.bf16.mxu0 %v19395_v0 }
0x3775   :  { %12795 = vmatprep.subr.bf16.mxu0 %v17684_v33  ;;  %v16702_v34 = vpop.f32.mrb[248].mxu0 }
0x3776   :  { %v12524_v60 = vpop.f32.mrb[249].mxu0 }
0x3777   :  { %v16703_v3 = vpop.f32.mrb[250].mxu0 }
0x3778   :  { %12796 = vmatpush1.bf16.msra.mxu0 %v17682_v38  ;;  %v12542_v42 = vpack.c.bf16 %v16703_v3, %v16702_v34  ;;  %v12527_v43 = vpop.f32.mrb[251].mxu0 }
0x3779   :  { %12797 = vmatprep.subr.bf16.mxu0 %v17687_v12  ;;  %v12541_v45 = vpack.c.bf16 %v12527_v43, %v12524_v60 }
0x377b   :  { %12683 = vmatmul.mubr.bf16.gmra.mrb[0].mxu0 %v12540_v40 }
0x377c   :  { %12798 = vmatpush1.bf16.msra.mxu0 %v17685_v41  ;;  %12692 = vmatprep.mubr.bf16.mxu0 %v19395_v0 }
0x377d   :  { %12799 = vmatprep.subr.bf16.mxu0 %v17690_v44 }
0x3780   :  { %12800 = vmatpush1.bf16.msra.mxu0 %v17688_v47 }
0x3781   :  { %12801 = vmatprep.subr.bf16.mxu0 %v17693_v56 }
0x3783   :  { %12693 = vmatmul.mubr.bf16.gmra.mrb[4].mxu0 %v12541_v45 }
0x3784   :  { %12802 = vmatpush1.bf16.msra.mxu0 %v17691_v57  ;;  %12702 = vmatprep.mubr.bf16.mxu0 %v19395_v0 }
0x3785   :  { %12803 = vmatprep.subr.bf16.mxu0 %v17696_v50 }
0x3788   :  { %12804 = vmatpush1.bf16.msra.mxu0 %v17694_v58 }
0x3789   :  { %12805 = vmatprep.subr.bf16.mxu0 %v17699_v13 }
0x378b   :  { %12703 = vmatmul.mubr.bf16.gmra.mrb[8].mxu0 %v12542_v42 }
0x378c   :  { %12806 = vmatpush1.bf16.msra.mxu0 %v17697_v2  ;;  %12825 = vmatprep.mubr.bf16.mxu0 %v19395_v0 }
0x378d   :  { %12807 = vmatprep.subr.bf16.mxu0 %v17702_v8 }
0x3790   :  { %12808 = vmatpush1.bf16.msra.mxu0 %v17700_v16 }
0x3791   :  { %13073 = vmatprep.subr.bf16.mxu0 %v17705_v18 }
0x3793   :  { %12826 = vmatmul.mubr.bf16.vlgmr.msra.gmra.mrb[252].mxu0 %v12413_v53  ;;  %v17718_v53 = vld [vmem:[#allocation44 + $0x150] ss:$8 sps:$4 sm:$0xff]  }
0x3794   :  { %13074 = vmatpush1.bf16.msra.mxu0 %v17703_v37  ;;  %12835 = vmatprep.mubr.bf16.mxu0 %v19395_v0 }
0x3795   :  { %13075 = vmatprep.subr.bf16.mxu0 %v17708_v39 }
0x3798   :  { %13076 = vmatpush1.bf16.msra.mxu0 %v17706_v32 }
0x3799   :  { %13077 = vmatprep.subr.bf16.mxu0 %v17711_v1 }
0x379b   :  { %12836 = vmatmul.mubr.bf16.gmra.mrb[0].mxu0 %v12414_v61  ;;  %v17726_v61 = vld [vmem:[#allocation44 + $0x174] ss:$8 sps:$4 sm:$0xff]  }
0x379c   :  { %13078 = vmatpush1.bf16.msra.mxu0 %v17709_v62  ;;  %12845 = vmatprep.mubr.bf16.mxu0 %v19395_v0 }
0x379d   :  { %13079 = vmatprep.subr.bf16.mxu0 %v17714_v4 }
0x37a0   :  { %13080 = vmatpush1.bf16.msra.mxu0 %v17712_v7 }
0x37a1   :  { %13081 = vmatprep.subr.bf16.mxu0 %v17717_v9 }
0x37a3   :  { %12846 = vmatmul.mubr.bf16.gmra.mrb[4].mxu0 %v12415_v46 }
0x37a4   :  { %13082 = vmatpush1.bf16.msra.mxu0 %v17715_v11  ;;  %12855 = vmatprep.mubr.bf16.mxu0 %v19395_v0 }
0x37a5   :  { %13083 = vmatprep.subr.bf16.mxu0 %v17720_v15 }
0x37a8   :  { %13084 = vmatpush1.bf16.msra.mxu0 %v17718_v53 }
0x37a9   :  { %13085 = vmatprep.subr.bf16.mxu0 %v17723_v10 }
0x37ab   :  { %12856 = vmatmul.mubr.bf16.gmra.mrb[8].mxu0 %v12416_v52 }
0x37ac   :  { %13086 = vmatpush1.bf16.msra.mxu0 %v17721_v31  ;;  %13105 = vmatprep.mubr.bf16.mxu0 %v19395_v0 }
0x37ad   :  { %13087 = vmatprep.subr.bf16.mxu0 %v17726_v61 }
0x37b0   :  { %13088 = vmatpush1.bf16.msra.mxu0 %v17724_v63 }
0x37b3   :  { %13106 = vmatmul.mubr.bf16.vlgmr.msra.gmra.mrb[252].mxu0 %v12972_v59 }
0x37b4   :  { %13115 = vmatprep.mubr.bf16.mxu0 %v19395_v0 }
0x37bb   :  { %13116 = vmatmul.mubr.bf16.gmra.mrb[0].mxu0 %v12973_v20 }
0x37bc   :  { %13125 = vmatprep.mubr.bf16.mxu0 %v19395_v0 }
0x37c3   :  { %13126 = vmatmul.mubr.bf16.gmra.mrb[4].mxu0 %v12974_v55 }
0x37c4   :  { %13135 = vmatprep.mubr.bf16.mxu0 %v19395_v0 }
0x37cb   :  { %13136 = vmatmul.mubr.bf16.gmra.mrb[8].mxu0 %v12975_v51 }
0x37cc   :  { %19130 = shalt.err (!%p19127_p4)
}
0x37cd   :  { %s19131_s27 = scalar_lea.hbm %s19773_s13, 16 }
0x37ce   :  { %p19132_p5 = scmp.ne.s32.totalorder %s19773_s13, %s19131_s27  ;;  %p19135_p6 = scmp.lt.u32.totalorder %s19131_s27, %s19773_s13 }
0x37d0   :  { %p19137_p7 = pnand %p19135_p6, %p19132_p5 }
0x37d2   :  { %19140 = shalt.err (!%p19137_p7)
}
0x37d3   :  { %13230 = dma.vmem_to_hbm [thread:$0]  %s13228_s7, 16, %s19773_s13, [#allocation100]  }
0x37d4   :  { %s19403_s4 = smov [#allocation101]  }
0x37d5   :  { %s13237_s11 = sshll.u32 %s19403_s4, 4  ;;  %s13238_s11 = int_to_ptr.vmem [resolvable:$true] %s13237_s11 }
0x37d6   :  { %s19141_s19 = scalar_lea.vmem %s13238_s11, 16  ;;  %s19145_s15 = scalar_lea.vmem %s13238_s11, 32 }
0x37d7   :  { %p19142_p8 = scmp.ne.s32.totalorder %s13238_s11, %s19141_s19  ;;  %p19146_p9 = scmp.lt.s32.totalorder %s13238_s11, %s13238_s11 }
0x37d8   :  { %p19147_p10 = scmp.lt.s32.totalorder %s19145_s15, %s19141_s19 }
0x37da   :  { %p19148_p11 = por %p19147_p10, %p19146_p9 }
0x37dc   :  { %p19149_p12 = pnand %p19148_p11, %p19142_p8 }
0x37de   :  { %19152 = shalt.err (!%p19149_p12)
}
0x37df   :  { %s19153_s5 = scalar_lea.hbm %s19778_s14, 16 }
0x37e0   :  { %p19154_p13 = scmp.ne.s32.totalorder %s19778_s14, %s19153_s5  ;;  %p19157_p0 = scmp.lt.u32.totalorder %s19153_s5, %s19778_s14 }
0x37e2   :  { %p19159_p1 = pnand %p19157_p0, %p19154_p13 }
0x37e4   :  { %19162 = shalt.err (!%p19159_p1)
}
0x37e5   :  { %s21441_s13 = sld [smem:[#allocation155_spill]] }
0x37e6   :  { %13240 = dma.vmem_to_hbm [thread:$0]  %s13238_s11, 16, %s19778_s14, [#allocation100]  }
0x37e7   :  { %s19404_s14 = smov [#allocation98]  }
0x37e8   :  { %s13214_s23 = sshll.u32 %s19404_s14, 4  ;;  %s13215_s23 = int_to_ptr.vmem [resolvable:$true] %s13214_s23 }
0x37e9   :  { %s19163_s24 = scalar_lea.vmem %s13215_s23, 2048  ;;  %p19168_p3 = scmp.lt.s32.totalorder %s13215_s23, %s13215_s23 }
0x37ea   :  { %p19164_p2 = scmp.ne.s32.totalorder %s13215_s23, %s19163_s24  ;;  %p19169_p4 = scmp.lt.s32.totalorder %s19163_s24, %s19163_s24 }
0x37eb   :  { %v13162_v0 = vld [vmem:[%s21441_s13] sm:$0x3] }
0x37ec   :  { %v13167_v30 = vrot.slane %v13162_v0, %v6719_v21  ;;  %v13171_v17 = vrot.slane %v13162_v0, %v6723_v25  ;;  %p19170_p5 = por %p19169_p4, %p19168_p3 }
0x37ee   :  { %p19171_p6 = pnand %p19170_p5, %p19164_p2 }
0x3886   :  { %v13107_v19 = vpop.f32.mrb[252].mxu0 }
0x3887   :  { %v13174_v20 = vadd.f32 %v13167_v30, %v13107_v19  ;;  %v13109_v23 = vpop.f32.mrb[253].mxu0 }
0x3888   :  { %v13175_v59 = vadd.f32 %v13171_v17, %v13109_v23  ;;  %v13111_v24 = vpop.f32.mrb[254].mxu0 }
0x3889   :  { %13190 = vst [vmem:[#allocation98] sm:$0xff] %v13174_v20  ;;  %v13176_v26 = vadd.f32 %v13167_v30, %v13111_v24  ;;  %v13113_v27 = vpop.f32.mrb[255].mxu0 }
0x388a   :  { %13191 = vst.msk [vmem:[#allocation98 + $0x8] sm:$0xff] %vm1533_vm3, %v13175_v59  ;;  %v13177_v29 = vadd.f32 %v13171_v17, %v13113_v27 }
0x388b   :  { %13192 = vst [vmem:[#allocation98 + $0x10] sm:$0xff] %v13176_v26 }
0x388c   :  { %13193 = vst.msk [vmem:[#allocation98 + $0x18] sm:$0xff] %vm1533_vm3, %v13177_v29 }
0x388e   :  { %v13117_v22 = vpop.f32.mrb[0].mxu0 }
0x388f   :  { %v13178_v48 = vadd.f32 %v13167_v30, %v13117_v22  ;;  %v13119_v21 = vpop.f32.mrb[1].mxu0 }
0x3890   :  { %v13179_v52 = vadd.f32 %v13171_v17, %v13119_v21  ;;  %v13121_v14 = vpop.f32.mrb[2].mxu0 }
0x3891   :  { %13194 = vst [vmem:[#allocation98 + $0x20] sm:$0xff] %v13178_v48  ;;  %v13180_v25 = vadd.f32 %v13167_v30, %v13121_v14  ;;  %v13123_v35 = vpop.f32.mrb[3].mxu0 }
0x3892   :  { %13195 = vst.msk [vmem:[#allocation98 + $0x28] sm:$0xff] %vm1533_vm3, %v13179_v52  ;;  %v13181_v51 = vadd.f32 %v13171_v17, %v13123_v35 }
0x3893   :  { %13196 = vst [vmem:[#allocation98 + $0x30] sm:$0xff] %v13180_v25 }
0x3894   :  { %13197 = vst.msk [vmem:[#allocation98 + $0x38] sm:$0xff] %vm1533_vm3, %v13181_v51 }
0x3896   :  { %v13127_v49 = vpop.f32.mrb[4].mxu0 }
0x3897   :  { %v13182_v46 = vadd.f32 %v13167_v30, %v13127_v49  ;;  %v13129_v55 = vpop.f32.mrb[5].mxu0 }
0x3898   :  { %v13183_v36 = vadd.f32 %v13171_v17, %v13129_v55  ;;  %v13131_v6 = vpop.f32.mrb[6].mxu0 }
0x3899   :  { %13198 = vst [vmem:[#allocation98 + $0x40] sm:$0xff] %v13182_v46  ;;  %v13184_v40 = vadd.f32 %v13167_v30, %v13131_v6  ;;  %v13133_v54 = vpop.f32.mrb[7].mxu0 }
0x389a   :  { %13199 = vst.msk [vmem:[#allocation98 + $0x48] sm:$0xff] %vm1533_vm3, %v13183_v36  ;;  %v13185_v28 = vadd.f32 %v13171_v17, %v13133_v54 }
0x389b   :  { %13200 = vst [vmem:[#allocation98 + $0x50] sm:$0xff] %v13184_v40 }
0x389c   :  { %13201 = vst.msk [vmem:[#allocation98 + $0x58] sm:$0xff] %vm1533_vm3, %v13185_v28 }
0x389e   :  { %v13137_v5 = vpop.f32.mrb[8].mxu0 }
0x389f   :  { %v13186_v33 = vadd.f32 %v13167_v30, %v13137_v5  ;;  %v13139_v38 = vpop.f32.mrb[9].mxu0 }
0x38a0   :  { %v13187_v12 = vadd.f32 %v13171_v17, %v13139_v38  ;;  %v13141_v34 = vpop.f32.mrb[10].mxu0 }
0x38a1   :  { %13202 = vst [vmem:[#allocation98 + $0x60] sm:$0xff] %v13186_v33  ;;  %v13188_v60 = vadd.f32 %v13167_v30, %v13141_v34  ;;  %v13143_v3 = vpop.f32.mrb[11].mxu0 }
0x38a2   :  { %13203 = vst.msk [vmem:[#allocation98 + $0x68] sm:$0xff] %vm1533_vm3, %v13187_v12  ;;  %v13189_v41 = vadd.f32 %v13171_v17, %v13143_v3 }
0x38a3   :  { %13204 = vst [vmem:[#allocation98 + $0x70] sm:$0xff] %v13188_v60 }
0x38a4   :  { %13205 = vst.msk [vmem:[#allocation98 + $0x78] sm:$0xff] %vm1533_vm3, %v13189_v41 }
0x38a5   :  { %19174 = shalt.err (!%p19171_p6)
}
0x38a6   :  { %s19175_s26 = scalar_lea.hbm %s19768_s3, 2048 }
0x38a7   :  { %p19176_p7 = scmp.ne.s32.totalorder %s19768_s3, %s19175_s26  ;;  %p19179_p8 = scmp.lt.u32.totalorder %s19175_s26, %s19768_s3 }
0x38a9   :  { %p19181_p9 = pnand %p19179_p8, %p19176_p7 }
0x38ab   :  { %19184 = shalt.err (!%p19181_p9)
}
0x38ac   :  { %13220 = dma.vmem_to_hbm [thread:$0]  %s13215_s23, 2048, %s19768_s3, [#allocation4], %s19361_s6, %s19361_s6, %s19362_s16  }
0x38ad   :  { %19249 = dma.done.wait [#allocation4], 2048  }
0x38ae   :  { %19250 = vsyncadd [#allocation4], 4294965248 }
0x38af   :  { %19251 = dma.done.wait [#allocation100], 32  }
0x38b0   :  { %19252 = vsyncadd [#allocation100], 4294967264 }
0x38b1   :  { %13250 = vsyncpa [#allocation3], 1 }
0x38b2   :  { %13251 = vsyncpa [#allocation6], 1 }
0x38b3   :  { %13252 = vsyncpa [#allocation9], 1 }
0x38b4   :  { %13253 = vsyncpa [#allocation12], 1 }
0x38b5   :  { %13254 = vsyncpa [#allocation15], 1 }
0x38b6   :  { %13255 = vsyncpa [#allocation18], 1 }
0x38b7   :  { %13256 = vsyncpa [#allocation21], 1 }
0x38b8   :  { %13257 = vsyncpa [#allocation24], 1 }
0x38b9   :  { %13258 = vsyncpa [#allocation27], 1 }
0x38ba   :  { %13259 = vsyncpa [#allocation30], 1 }
0x38bb   :  { %13260 = vsyncpa [#allocation33], 1 }
0x38bc   :  { %13261 = vsyncpa [#allocation36], 1 }
0x38bd   :  { %13262 = vsyncpa [#allocation39], 1 }
0x38be   :  { %13263 = vsyncpa [#allocation42], 1 }
0x38bf   :  { %13264 = vsyncpa [#allocation45], 1 }
0x38c0   :  { %13265 = vsyncpa [#allocation48], 1 }
0x38c1   :  { %13266 = vsyncpa [#allocation51], 1 }
0x38c2   :  { %13267 = vsyncpa [#allocation54], 1 }
0x38c3   :  { %13268 = vsyncpa [#allocation57], 1 }
0x38c4   :  { %13269 = vsyncpa [#allocation60], 1 }
0x38c5   :  { %13270 = vsyncpa [#allocation63], 1 }
0x38c6   :  { %13271 = vsyncpa [#allocation66], 1 }
0x38c7   :  { %13272 = vsyncpa [#allocation69], 1 }
0x38c8   :  { %13273 = vsyncpa [#allocation72], 1 }
0x38c9   :  { %13274 = vsyncpa [#allocation75], 1 }
0x38ca   :  { %13275 = vsyncpa [#allocation78], 1 }
0x38cb   :  { %13276 = vsyncpa [#allocation81], 1 }
0x38cc   :  { %13277 = vsyncpa [#allocation84], 1 }
0x38cd   :  { %13278 = vsyncpa [#allocation87], 1 }
0x38ce   :  { %13279 = vsyncpa [#allocation90], 1 }
0x38cf   :  { %13280 = vsyncpa [#allocation93], 1 }
0x38d0   :  { %13281 = vsyncpa [#allocation96], 1 }
0x38d1   :  { %13282 = vsyncpa [#allocation4], 1 }
0x38d2   :  { %13283 = vsyncpa [#allocation100], 1 }

</bundles_post_ra>
